<compile_context>
chip_gen: v7x
topology: tpu7x:2x2x1
jax: 0.10.0
libtpu: 0.0.40
codegen_flags: <defaults>
</compile_context>

<pallas_src>
import functools

import jax
import jax.numpy as jnp
from jax import lax
from jax.experimental import pallas as pl
from jax.experimental.pallas import tpu as pltpu

BN_EPS = 1e-5
_VMEM_LIMIT = 32 << 20  # fits v7x's 64 MiB physical VMEM with headroom


def _round_up(x, m):
    return (x + m - 1) // m * m


# -----------------------------------------------------------------------------
# Pass 1: tiled conv matmul + per-channel sum / sum-of-squares (global BN stats)
# -----------------------------------------------------------------------------
def _matmul_stats_kernel(a_ref, w_ref, y_ref, stats_ref):
    i = pl.program_id(0)          # M-tile index
    k = pl.program_id(1)          # K-tile index (reduction axis, innermost)
    nk = pl.num_programs(1)

    @pl.when(k == 0)
    def _():
        y_ref[...] = jnp.zeros_like(y_ref)

    # MXU matmul; f32 accumulation even when operands are bf16.
    y_ref[...] += jnp.dot(a_ref[...], w_ref[...],
                          preferred_element_type=jnp.float32)

    @pl.when((i == 0) & (k == 0))
    def _():
        stats_ref[...] = jnp.zeros_like(stats_ref)

    @pl.when(k == nk - 1)
    def _():
        y = y_ref[...]
        # Row 0: per-channel sum, row 1: per-channel sum of squares (rows 2..7 unused).
        stats_ref[0:1, :] += jnp.sum(y, axis=0, keepdims=True)
        stats_ref[1:2, :] += jnp.sum(y * y, axis=0, keepdims=True)


# -----------------------------------------------------------------------------
# Pass 2: folded BatchNorm affine + ReLU, in place on y (input_output_aliases)
# -----------------------------------------------------------------------------
def _bn_relu_kernel(y_ref, scale_ref, shift_ref, o_ref):
    o_ref[...] = jnp.maximum(y_ref[...] * scale_ref[...] + shift_ref[...], 0.0)


# -----------------------------------------------------------------------------
# Host-side glue
# -----------------------------------------------------------------------------
def _im2col_3d(x, kernel, padding):
    """x: (N, C, D, H, W) -> (M, K) with K ordered (channel-major, then dz,dy,dx)."""
    n, c, d, h, w = x.shape
    kd, kh, kw = kernel
    pd, ph, pw = padding
    do, ho, wo = d + 2 * pd - kd + 1, h + 2 * ph - kh + 1, w + 2 * pw - kw + 1
    if (kd, kh, kw) == (1, 1, 1):
        a = jnp.transpose(x, (0, 2, 3, 4, 1)).reshape(n * do * ho * wo, c)
        return a, (n, do, ho, wo)
    xp = jnp.pad(x, ((0, 0), (0, 0), (pd, pd), (ph, ph), (pw, pw)))
    taps = []
    for dz in range(kd):
        for dy in range(kh):
            for dx in range(kw):
                taps.append(xp[:, :, dz:dz + do, dy:dy + ho, dx:dx + wo])
    patches = jnp.stack(taps, axis=0)                     # (taps, N, C, Do, Ho, Wo)
    patches = jnp.transpose(patches, (1, 3, 4, 5, 2, 0))  # (N, Do, Ho, Wo, C, taps)
    a = patches.reshape(n * do * ho * wo, c * kd * kh * kw)
    return a, (n, do, ho, wo)


def _conv_bn_relu_fused(x, weights, gammas, betas, *, padding, matmul_dtype):
    """Conv3d(no-bias) + BatchNorm3d(batch stats) + ReLU for one or more branches that
    share the same input / kernel size / padding. Their out-channels are concatenated on
    the lane axis so one pair of Pallas calls serves all of them (lane-dense output)."""
    x = x.astype(jnp.float32)
    kd, kh, kw = (int(s) for s in weights[0].shape[2:])
    c_outs = [int(w.shape[0]) for w in weights]
    c_total = sum(c_outs)

    a, (n, do, ho, wo) = _im2col_3d(x, (kd, kh, kw), padding)
    m, kdim = a.shape

    w_mat = jnp.concatenate(
        [w.astype(jnp.float32).reshape(w.shape[0], -1) for w in weights], axis=0).T
    gamma = jnp.concatenate([g.astype(jnp.float32).reshape(-1) for g in gammas])
    beta = jnp.concatenate([b.astype(jnp.float32).reshape(-1) for b in betas])

    # --- tiling / padding: lane-dense C, 128-aligned K, VMEM-sized M tiles -------------
    c_pad = _round_up(c_total, 128)
    k_aligned = _round_up(kdim, 128)
    if k_aligned <= 1024:
        tile_k, k_pad = k_aligned, k_aligned
    else:
        tile_k, k_pad = 512, _round_up(kdim, 512)
    tile_m = 512 if m >= 512 else _round_up(m, 8)
    m_pad = _round_up(m, tile_m)

    a_p = jnp.pad(a, ((0, m_pad - m), (0, k_pad - kdim))).astype(matmul_dtype)
    w_p = jnp.pad(w_mat, ((0, k_pad - kdim), (0, c_pad - c_total))).astype(matmul_dtype)

    # ---- pass 1: tiled matmul + global per-channel sum / sumsq ------------------------
    y_flat, stats = pl.pallas_call(
        _matmul_stats_kernel,
        out_shape=(jax.ShapeDtypeStruct((m_pad, c_pad), jnp.float32),
                   jax.ShapeDtypeStruct((8, c_pad), jnp.float32)),
        grid=(m_pad // tile_m, k_pad // tile_k),
        in_specs=[pl.BlockSpec((tile_m, tile_k), lambda i, k: (i, k)),
                  pl.BlockSpec((tile_k, c_pad), lambda i, k: (k, 0))],
        out_specs=(pl.BlockSpec((tile_m, c_pad), lambda i, k: (i, 0)),
                   pl.BlockSpec((8, c_pad), lambda i, k: (0, 0))),
        compiler_params=pltpu.CompilerParams(
            # stats block is a grid-resident accumulator -> M axis must stay "arbitrary".
            dimension_semantics=("arbitrary", "arbitrary"),
            vmem_limit_bytes=_VMEM_LIMIT),
    )(a_p, w_p)

    # Fold global batch statistics into per-channel scale/shift (tiny XLA op).
    # Zero-padded rows contribute 0 to sum/sumsq, so dividing by the true M is exact.
    m_f = jnp.float32(m)
    mean = stats[0] / m_f
    var = jnp.maximum(stats[1] / m_f - mean * mean, 0.0)   # biased variance
    gamma_p = jnp.pad(gamma, (0, c_pad - c_total))
    beta_p = jnp.pad(beta, (0, c_pad - c_total))
    scale_v = gamma_p * lax.rsqrt(var + BN_EPS)
    shift_v = beta_p - mean * scale_v
    scale2 = scale_v.reshape(1, c_pad)
    shift2 = shift_v.reshape(1, c_pad)

    # ---- pass 2: y * scale + shift, ReLU; in place on y, parallel over M --------------
    out_flat = pl.pallas_call(
        _bn_relu_kernel,
        out_shape=jax.ShapeDtypeStruct((m_pad, c_pad), jnp.float32),
        grid=(m_pad // tile_m,),
        in_specs=[pl.BlockSpec((tile_m, c_pad), lambda i: (i, 0)),
                  pl.BlockSpec((1, c_pad), lambda i: (0, 0)),
                  pl.BlockSpec((1, c_pad), lambda i: (0, 0))],
        out_specs=pl.BlockSpec((tile_m, c_pad), lambda i: (i, 0)),
        input_output_aliases={0: 0},
        compiler_params=pltpu.CompilerParams(
            dimension_semantics=("parallel",),
            vmem_limit_bytes=_VMEM_LIMIT),
    )(y_flat, scale2, shift2)

    out = out_flat[:m, :c_total].reshape(n, do, ho, wo, c_total)
    out = jnp.transpose(out, (0, 4, 1, 2, 3))              # back to NCDHW
    outs, off = [], 0
    for c_o in c_outs:
        outs.append(out[:, off:off + c_o])
        off += c_o
    return outs


@functools.partial(jax.jit, static_argnames=("matmul_dtype",))
def inception_forward(x, params, *, matmul_dtype=jnp.float32):
    p = params
    # Branch 1x1.
    (b1,) = _conv_bn_relu_fused(x, [p["b1_w"]], [p["b1_g"]], [p["b1_b"]],
                                padding=(0, 0, 0), matmul_dtype=matmul_dtype)
    # Branch 3x3 fused with branch_pool:
    #   avg_pool3d(k=3, s=1, p=1, count_include_pad=True) followed by a 1x1 conv is
    #   exactly a 3x3x3 conv whose weight is the 1x1 weight tiled over the window / 27.
    w_pool_eff = jnp.broadcast_to(p["bp_w"], p["bp_w"].shape[:2] + (3, 3, 3)) / 27.0
    b3, bpool = _conv_bn_relu_fused(
        x, [p["b3_w"], w_pool_eff], [p["b3_g"], p["bp_g"]], [p["b3_b"], p["bp_b"]],
        padding=(1, 1, 1), matmul_dtype=matmul_dtype)
    # Branch 5x5.
    (b5,) = _conv_bn_relu_fused(x, [p["b5_w"]], [p["b5_g"]], [p["b5_b"]],
                                padding=(2, 2, 2), matmul_dtype=matmul_dtype)

    cat = jnp.concatenate([b1, b3, b5, bpool], axis=1)

    (y1,) = _conv_bn_relu_fused(cat, [p["c1_w"]], [p["c1_g"]], [p["c1_b"]],
                                padding=(1, 1, 1), matmul_dtype=matmul_dtype)
    (y2,) = _conv_bn_relu_fused(y1, [p["c2_w"]], [p["c2_g"]], [p["c2_b"]],
                                padding=(1, 1, 1), matmul_dtype=matmul_dtype)
    (y3,) = _conv_bn_relu_fused(y2, [p["c3_w"]], [p["c3_g"]], [p["c3_b"]],
                                padding=(0, 0, 0), matmul_dtype=matmul_dtype)
    return y3


# -----------------------------------------------------------------------------
# Pure-XLA reference (f32, highest precision) for correctness checking
# -----------------------------------------------------------------------------
def _ref_basic_conv3d(x, w, g, b, padding):
    y = lax.conv_general_dilated(
        x.astype(jnp.float32), w.astype(jnp.float32),
        window_strides=(1, 1, 1),
        padding=[(p, p) for p in padding],
        dimension_numbers=("NCDHW", "OIDHW", "NCDHW"),
        precision=lax.Precision.HIGHEST)
    mean = jnp.mean(y, axis=(0, 2, 3, 4), keepdims=True)
    var = jnp.mean((y - mean) ** 2, axis=(0, 2, 3, 4), keepdims=True)
    yh = (y - mean) * lax.rsqrt(var + BN_EPS)
    out = yh * g.reshape(1, -1, 1, 1, 1) + b.reshape(1, -1, 1, 1, 1)
    return jnp.maximum(out, 0.0)


def _ref_avg_pool3d(x):
    s = lax.reduce_window(x, 0.0, lax.add, (1, 1, 3, 3, 3), (1, 1, 1, 1, 1),
                          [(0, 0), (0, 0), (1, 1), (1, 1), (1, 1)])
    return s / 27.0  # count_include_pad=True semantics


def _ref_inception(x, p):
    b1 = _ref_basic_conv3d(x, p["b1_w"], p["b1_g"], p["b1_b"], (0, 0, 0))
    b3 = _ref_basic_conv3d(x, p["b3_w"], p["b3_g"], p["b3_b"], (1, 1, 1))
    b5 = _ref_basic_conv3d(x, p["b5_w"], p["b5_g"], p["b5_b"], (2, 2, 2))
    bp = _ref_basic_conv3d(_ref_avg_pool3d(x), p["bp_w"], p["bp_g"], p["bp_b"], (0, 0, 0))
    cat = jnp.concatenate([b1, b3, b5, bp], axis=1)
    y1 = _ref_basic_conv3d(cat, p["c1_w"], p["c1_g"], p["c1_b"], (1, 1, 1))
    y2 = _ref_basic_conv3d(y1, p["c2_w"], p["c2_g"], p["c2_b"], (1, 1, 1))
    y3 = _ref_basic_conv3d(y2, p["c3_w"], p["c3_g"], p["c3_b"], (0, 0, 0))
    return y3


if __name__ == "__main__":
    key = jax.random.PRNGKey(0)
    keys = iter(jax.random.split(key, 24))

    N, IN_CH = 2, 4
    D = H = W = 8
    CONV1_OUT, CONV3_OUT, CONV5_OUT, POOL_OUT = 8, 8, 8, 3
    conv_in = CONV1_OUT + CONV3_OUT + CONV5_OUT + POOL_OUT   # 27
    half = conv_in // 2                                       # 13

    x = jax.random.normal(next(keys), (N, IN_CH, D, H, W), jnp.float32)

    params = {}

    def add_conv(name, out_c, in_c, ks):
        fan_in = in_c * ks * ks * ks
        params[f"{name}_w"] = (jax.random.uniform(
            next(keys), (out_c, in_c, ks, ks, ks), jnp.float32, minval=-1.0, maxval=1.0)
            / jnp.sqrt(jnp.float32(fan_in)))
        # BN affine params perturbed from the default (gamma=1, beta=0) so the fold is
        # actually exercised. Running-stat buffers are not modeled (see JSON notes).
        params[f"{name}_g"] = 1.0 + 0.1 * jax.random.normal(next(keys), (out_c,), jnp.float32)
        params[f"{name}_b"] = 0.1 * jax.random.normal(next(keys), (out_c,), jnp.float32)

    add_conv("b1", CONV1_OUT, IN_CH, 1)
    add_conv("b3", CONV3_OUT, IN_CH, 3)
    add_conv("b5", CONV5_OUT, IN_CH, 5)
    add_conv("bp", POOL_OUT, IN_CH, 1)
    add_conv("c1", conv_in, conv_in, 3)
    add_conv("c2", half, conv_in, 3)
    add_conv("c3", 2, half, 1)

    # f32 matmul path: tight check against the XLA reference.
    out = jax.block_until_ready(inception_forward(x, params, matmul_dtype=jnp.float32))
    assert out.shape == (N, 2, D, H, W), out.shape
    ref = jax.block_until_ready(_ref_inception(x, params))
    err = float(jnp.max(jnp.abs(out - ref)))
    assert err < 3e-3, f"f32 path max abs err {err}"

    # bf16 MXU fast path (v6e/v7x perf recommendation): loose check.
    out_bf16 = jax.block_until_ready(
        inception_forward(x, params, matmul_dtype=jnp.bfloat16))
    assert bool(jnp.isfinite(out_bf16).all()), "bf16 path produced non-finite values"
    err_bf16 = float(jnp.max(jnp.abs(out_bf16 - ref)))
    assert err_bf16 < 0.25, f"bf16 path max abs err {err_bf16}"

    print("KERNEL_OK")
</pallas_src>

<mosaic_0001>
module attributes {stable_mosaic.version = 11 : i64} {
  func.func @_matmul_stats_kernel(%arg0: i32, %arg1: i32, %arg2: memref<512x128xf32, #tpu.memory_space<vmem>>, %arg3: memref<128x128xf32, #tpu.memory_space<vmem>>, %arg4: memref<512x128xf32, #tpu.memory_space<vmem>>, %arg5: memref<8x128xf32, #tpu.memory_space<vmem>>) attributes {dimension_semantics = [#tpu.dimension_semantics<arbitrary>, #tpu.dimension_semantics<arbitrary>], iteration_bounds = array<i64: 2, 1>, scalar_prefetch = 0 : i64, scratch_operands = 0 : i64, tpu.core_type = #tpu.core_type<tc>, window_params = [{transform_indices = @transform_0, window_bounds = array<i64: 512, 128>}, {transform_indices = @transform_1, window_bounds = array<i64: 128, 128>}, {transform_indices = @transform_2, window_bounds = array<i64: 512, 128>}, {pipeline_mode = #tpu.pipeline_mode<synchronous>, transform_indices = @transform_3, window_bounds = array<i64: 8, 128>}]} {
    %c0_i32 = arith.constant 0 : i32
    %0 = arith.cmpi eq, %arg1, %c0_i32 : i32
    %1 = arith.extui %0 : i1 to i32
    %c0_i32_0 = arith.constant 0 : i32
    %2 = arith.cmpi ne, %1, %c0_i32_0 : i32
    scf.if %2 {
      %cst_13 = arith.constant 0.000000e+00 : f32
      %17 = vector.broadcast %cst_13 : f32 to vector<512x128xf32>
      %c0_14 = arith.constant 0 : index
      %c0_15 = arith.constant 0 : index
      %18 = vector.load %arg4[%c0_14, %c0_15] : memref<512x128xf32, #tpu.memory_space<vmem>>, vector<512x128xf32>
      tpu.vector_store %arg4[%c0_14, %c0_15], %17 {strides = array<i32>} : memref<512x128xf32, #tpu.memory_space<vmem>>, vector<512x128xf32>,
    } else {
    }
    %c0 = arith.constant 0 : index
    %c0_1 = arith.constant 0 : index
    %3 = vector.load %arg4[%c0, %c0_1] : memref<512x128xf32, #tpu.memory_space<vmem>>, vector<512x128xf32>
    %c0_2 = arith.constant 0 : index
    %c0_3 = arith.constant 0 : index
    %4 = vector.load %arg2[%c0_2, %c0_3] : memref<512x128xf32, #tpu.memory_space<vmem>>, vector<512x128xf32>
    %c0_4 = arith.constant 0 : index
    %c0_5 = arith.constant 0 : index
    %5 = vector.load %arg3[%c0_4, %c0_5] : memref<128x128xf32, #tpu.memory_space<vmem>>, vector<128x128xf32>
    %cst = arith.constant dense<0.000000e+00> : vector<512x128xf32>
    %6 = tpu.matmul %4, %5, %cst {dimension_numbers = #tpu.dot_dimension_numbers<[1], [0], [0], [1], [0, 0, 1, 1], [], []>} : vector<512x128xf32>, vector<128x128xf32>, vector<512x128xf32> -> vector<512x128xf32>
    %7 = arith.addf %3, %6 : vector<512x128xf32>
    %c0_6 = arith.constant 0 : index
    %c0_7 = arith.constant 0 : index
    %8 = vector.load %arg4[%c0_6, %c0_7] : memref<512x128xf32, #tpu.memory_space<vmem>>, vector<512x128xf32>
    tpu.vector_store %arg4[%c0_6, %c0_7], %7 {strides = array<i32>} : memref<512x128xf32, #tpu.memory_space<vmem>>, vector<512x128xf32>,
    %c0_i32_8 = arith.constant 0 : i32
    %9 = arith.cmpi eq, %arg0, %c0_i32_8 : i32
    %c0_i32_9 = arith.constant 0 : i32
    %10 = arith.cmpi eq, %arg1, %c0_i32_9 : i32
    %11 = arith.andi %9, %10 : i1
    %12 = arith.extui %11 : i1 to i32
    %c0_i32_10 = arith.constant 0 : i32
    %13 = arith.cmpi ne, %12, %c0_i32_10 : i32
    scf.if %13 {
      %cst_13 = arith.constant 0.000000e+00 : f32
      %17 = vector.broadcast %cst_13 : f32 to vector<8x128xf32>
      %c0_14 = arith.constant 0 : index
      %c0_15 = arith.constant 0 : index
      %18 = vector.load %arg5[%c0_14, %c0_15] : memref<8x128xf32, #tpu.memory_space<vmem>>, vector<8x128xf32>
      tpu.vector_store %arg5[%c0_14, %c0_15], %17 {strides = array<i32>} : memref<8x128xf32, #tpu.memory_space<vmem>>, vector<8x128xf32>,
    } else {
    }
    %c0_i32_11 = arith.constant 0 : i32
    %14 = arith.cmpi eq, %arg1, %c0_i32_11 : i32
    %15 = arith.extui %14 : i1 to i32
    %c0_i32_12 = arith.constant 0 : i32
    %16 = arith.cmpi ne, %15, %c0_i32_12 : i32
    scf.if %16 {
      %c0_13 = arith.constant 0 : index
      %c0_14 = arith.constant 0 : index
      %17 = vector.load %arg4[%c0_13, %c0_14] : memref<512x128xf32, #tpu.memory_space<vmem>>, vector<512x128xf32>
      %c0_15 = arith.constant 0 : index
      %c0_16 = arith.constant 0 : index
      %18 = vector.load %arg5[%c0_15, %c0_16] : memref<8x128xf32, #tpu.memory_space<vmem>>, vector<1x128xf32>
      %cst_17 = arith.constant dense<0.000000e+00> : vector<128xf32>
      %19 = vector.multi_reduction <add>, %17, %cst_17 [0] : vector<512x128xf32> to vector<128xf32>
      %20 = vector.shape_cast %19 : vector<128xf32> to vector<1x128xf32>
      %21 = arith.addf %18, %20 : vector<1x128xf32>
      %c0_18 = arith.constant 0 : index
      %c0_19 = arith.constant 0 : index
      %22 = vector.load %arg5[%c0_18, %c0_19] : memref<8x128xf32, #tpu.memory_space<vmem>>, vector<1x128xf32>
      tpu.vector_store %arg5[%c0_18, %c0_19], %21 {strides = array<i32>} : memref<8x128xf32, #tpu.memory_space<vmem>>, vector<1x128xf32>,
      %c1 = arith.constant 1 : index
      %c0_20 = arith.constant 0 : index
      %23 = vector.load %arg5[%c1, %c0_20] : memref<8x128xf32, #tpu.memory_space<vmem>>, vector<1x128xf32>
      %24 = arith.mulf %17, %17 : vector<512x128xf32>
      %cst_21 = arith.constant dense<0.000000e+00> : vector<128xf32>
      %25 = vector.multi_reduction <add>, %24, %cst_21 [0] : vector<512x128xf32> to vector<128xf32>
      %26 = vector.shape_cast %25 : vector<128xf32> to vector<1x128xf32>
      %27 = arith.addf %23, %26 : vector<1x128xf32>
      %c1_22 = arith.constant 1 : index
      %c0_23 = arith.constant 0 : index
      %28 = vector.load %arg5[%c1_22, %c0_23] : memref<8x128xf32, #tpu.memory_space<vmem>>, vector<1x128xf32>
      tpu.vector_store %arg5[%c1_22, %c0_23], %27 {strides = array<i32>} : memref<8x128xf32, #tpu.memory_space<vmem>>, vector<1x128xf32>,
    } else {
    }
    return
  }
  func.func @transform_0(%arg0: i32, %arg1: i32) -> (i32, i32) {
    %c0_i32 = arith.constant 0 : i32
    return %arg0, %arg1 : i32, i32
  }
  func.func @transform_1(%arg0: i32, %arg1: i32) -> (i32, i32) {
    %c0_i32 = arith.constant 0 : i32
    %c0_i32_0 = arith.constant 0 : i32
    return %arg1, %c0_i32 : i32, i32
  }
  func.func @transform_2(%arg0: i32, %arg1: i32) -> (i32, i32) {
    %c0_i32 = arith.constant 0 : i32
    %c0_i32_0 = arith.constant 0 : i32
    return %arg0, %c0_i32 : i32, i32
  }
  func.func @transform_3(%arg0: i32, %arg1: i32) -> (i32, i32) {
    %c0_i32 = arith.constant 0 : i32
    %c0_i32_0 = arith.constant 0 : i32
    %c0_i32_1 = arith.constant 0 : i32
    return %c0_i32, %c0_i32_0 : i32, i32
  }
}

module attributes {stable_mosaic.version = 11 : i64} {
  func.func @_bn_relu_kernel(%arg0: i32, %arg1: memref<512x128xf32, #tpu.memory_space<vmem>>, %arg2: memref<1x128xf32, #tpu.memory_space<vmem>>, %arg3: memref<1x128xf32, #tpu.memory_space<vmem>>, %arg4: memref<512x128xf32, #tpu.memory_space<vmem>>) attributes {dimension_semantics = [#tpu.dimension_semantics<parallel>], iteration_bounds = array<i64: 2>, scalar_prefetch = 0 : i64, scratch_operands = 0 : i64, tpu.core_type = #tpu.core_type<tc>, window_params = [{transform_indices = @transform_0, window_bounds = array<i64: 512, 128>}, {pipeline_mode = #tpu.pipeline_mode<synchronous>, transform_indices = @transform_1, window_bounds = array<i64: 1, 128>}, {pipeline_mode = #tpu.pipeline_mode<synchronous>, transform_indices = @transform_2, window_bounds = array<i64: 1, 128>}, {transform_indices = @transform_3, window_bounds = array<i64: 512, 128>}]} {
    %c0 = arith.constant 0 : index
    %c0_0 = arith.constant 0 : index
    %0 = vector.load %arg1[%c0, %c0_0] : memref<512x128xf32, #tpu.memory_space<vmem>>, vector<512x128xf32>
    %c0_1 = arith.constant 0 : index
    %c0_2 = arith.constant 0 : index
    %1 = vector.load %arg2[%c0_1, %c0_2] : memref<1x128xf32, #tpu.memory_space<vmem>>, vector<1x128xf32>
    %2 = vector.broadcast %1 : vector<1x128xf32> to vector<512x128xf32>
    %3 = arith.mulf %0, %2 : vector<512x128xf32>
    %c0_3 = arith.constant 0 : index
    %c0_4 = arith.constant 0 : index
    %4 = vector.load %arg3[%c0_3, %c0_4] : memref<1x128xf32, #tpu.memory_space<vmem>>, vector<1x128xf32>
    %5 = vector.broadcast %4 : vector<1x128xf32> to vector<512x128xf32>
    %6 = arith.addf %3, %5 : vector<512x128xf32>
    %cst = arith.constant 0.000000e+00 : f32
    %7 = vector.broadcast %cst : f32 to vector<512x128xf32>
    %8 = arith.maximumf %6, %7 : vector<512x128xf32>
    %c0_5 = arith.constant 0 : index
    %c0_6 = arith.constant 0 : index
    %9 = vector.load %arg4[%c0_5, %c0_6] : memref<512x128xf32, #tpu.memory_space<vmem>>, vector<512x128xf32>
    tpu.vector_store %arg4[%c0_5, %c0_6], %8 {strides = array<i32>} : memref<512x128xf32, #tpu.memory_space<vmem>>, vector<512x128xf32>,
    return
  }
  func.func @transform_0(%arg0: i32) -> (i32, i32) {
    %c0_i32 = arith.constant 0 : i32
    %c0_i32_0 = arith.constant 0 : i32
    return %arg0, %c0_i32 : i32, i32
  }
  func.func @transform_1(%arg0: i32) -> (i32, i32) {
    %c0_i32 = arith.constant 0 : i32
    %c0_i32_0 = arith.constant 0 : i32
    %c0_i32_1 = arith.constant 0 : i32
    return %c0_i32, %c0_i32_0 : i32, i32
  }
  func.func @transform_2(%arg0: i32) -> (i32, i32) {
    %c0_i32 = arith.constant 0 : i32
    %c0_i32_0 = arith.constant 0 : i32
    %c0_i32_1 = arith.constant 0 : i32
    return %c0_i32, %c0_i32_0 : i32, i32
  }
  func.func @transform_3(%arg0: i32) -> (i32, i32) {
    %c0_i32 = arith.constant 0 : i32
    %c0_i32_0 = arith.constant 0 : i32
    return %arg0, %c0_i32 : i32, i32
  }
}

module attributes {stable_mosaic.version = 11 : i64} {
  func.func @_matmul_stats_kernel(%arg0: i32, %arg1: i32, %arg2: memref<512x512xf32, #tpu.memory_space<vmem>>, %arg3: memref<512x128xf32, #tpu.memory_space<vmem>>, %arg4: memref<512x128xf32, #tpu.memory_space<vmem>>, %arg5: memref<8x128xf32, #tpu.memory_space<vmem>>) attributes {dimension_semantics = [#tpu.dimension_semantics<arbitrary>, #tpu.dimension_semantics<arbitrary>], iteration_bounds = array<i64: 2, 1>, scalar_prefetch = 0 : i64, scratch_operands = 0 : i64, tpu.core_type = #tpu.core_type<tc>, window_params = [{transform_indices = @transform_0, window_bounds = array<i64: 512, 512>}, {transform_indices = @transform_1, window_bounds = array<i64: 512, 128>}, {transform_indices = @transform_2, window_bounds = array<i64: 512, 128>}, {pipeline_mode = #tpu.pipeline_mode<synchronous>, transform_indices = @transform_3, window_bounds = array<i64: 8, 128>}]} {
    %c0_i32 = arith.constant 0 : i32
    %0 = arith.cmpi eq, %arg1, %c0_i32 : i32
    %1 = arith.extui %0 : i1 to i32
    %c0_i32_0 = arith.constant 0 : i32
    %2 = arith.cmpi ne, %1, %c0_i32_0 : i32
    scf.if %2 {
      %cst_13 = arith.constant 0.000000e+00 : f32
      %17 = vector.broadcast %cst_13 : f32 to vector<512x128xf32>
      %c0_14 = arith.constant 0 : index
      %c0_15 = arith.constant 0 : index
      %18 = vector.load %arg4[%c0_14, %c0_15] : memref<512x128xf32, #tpu.memory_space<vmem>>, vector<512x128xf32>
      tpu.vector_store %arg4[%c0_14, %c0_15], %17 {strides = array<i32>} : memref<512x128xf32, #tpu.memory_space<vmem>>, vector<512x128xf32>,
    } else {
    }
    %c0 = arith.constant 0 : index
    %c0_1 = arith.constant 0 : index
    %3 = vector.load %arg4[%c0, %c0_1] : memref<512x128xf32, #tpu.memory_space<vmem>>, vector<512x128xf32>
    %c0_2 = arith.constant 0 : index
    %c0_3 = arith.constant 0 : index
    %4 = vector.load %arg2[%c0_2, %c0_3] : memref<512x512xf32, #tpu.memory_space<vmem>>, vector<512x512xf32>
    %c0_4 = arith.constant 0 : index
    %c0_5 = arith.constant 0 : index
    %5 = vector.load %arg3[%c0_4, %c0_5] : memref<512x128xf32, #tpu.memory_space<vmem>>, vector<512x128xf32>
    %cst = arith.constant dense<0.000000e+00> : vector<512x128xf32>
    %6 = tpu.matmul %4, %5, %cst {dimension_numbers = #tpu.dot_dimension_numbers<[1], [0], [0], [1], [0, 0, 1, 1], [], []>} : vector<512x512xf32>, vector<512x128xf32>, vector<512x128xf32> -> vector<512x128xf32>
    %7 = arith.addf %3, %6 : vector<512x128xf32>
    %c0_6 = arith.constant 0 : index
    %c0_7 = arith.constant 0 : index
    %8 = vector.load %arg4[%c0_6, %c0_7] : memref<512x128xf32, #tpu.memory_space<vmem>>, vector<512x128xf32>
    tpu.vector_store %arg4[%c0_6, %c0_7], %7 {strides = array<i32>} : memref<512x128xf32, #tpu.memory_space<vmem>>, vector<512x128xf32>,
    %c0_i32_8 = arith.constant 0 : i32
    %9 = arith.cmpi eq, %arg0, %c0_i32_8 : i32
    %c0_i32_9 = arith.constant 0 : i32
    %10 = arith.cmpi eq, %arg1, %c0_i32_9 : i32
    %11 = arith.andi %9, %10 : i1
    %12 = arith.extui %11 : i1 to i32
    %c0_i32_10 = arith.constant 0 : i32
    %13 = arith.cmpi ne, %12, %c0_i32_10 : i32
    scf.if %13 {
      %cst_13 = arith.constant 0.000000e+00 : f32
      %17 = vector.broadcast %cst_13 : f32 to vector<8x128xf32>
      %c0_14 = arith.constant 0 : index
      %c0_15 = arith.constant 0 : index
      %18 = vector.load %arg5[%c0_14, %c0_15] : memref<8x128xf32, #tpu.memory_space<vmem>>, vector<8x128xf32>
      tpu.vector_store %arg5[%c0_14, %c0_15], %17 {strides = array<i32>} : memref<8x128xf32, #tpu.memory_space<vmem>>, vector<8x128xf32>,
    } else {
    }
    %c0_i32_11 = arith.constant 0 : i32
    %14 = arith.cmpi eq, %arg1, %c0_i32_11 : i32
    %15 = arith.extui %14 : i1 to i32
    %c0_i32_12 = arith.constant 0 : i32
    %16 = arith.cmpi ne, %15, %c0_i32_12 : i32
    scf.if %16 {
      %c0_13 = arith.constant 0 : index
      %c0_14 = arith.constant 0 : index
      %17 = vector.load %arg4[%c0_13, %c0_14] : memref<512x128xf32, #tpu.memory_space<vmem>>, vector<512x128xf32>
      %c0_15 = arith.constant 0 : index
      %c0_16 = arith.constant 0 : index
      %18 = vector.load %arg5[%c0_15, %c0_16] : memref<8x128xf32, #tpu.memory_space<vmem>>, vector<1x128xf32>
      %cst_17 = arith.constant dense<0.000000e+00> : vector<128xf32>
      %19 = vector.multi_reduction <add>, %17, %cst_17 [0] : vector<512x128xf32> to vector<128xf32>
      %20 = vector.shape_cast %19 : vector<128xf32> to vector<1x128xf32>
      %21 = arith.addf %18, %20 : vector<1x128xf32>
      %c0_18 = arith.constant 0 : index
      %c0_19 = arith.constant 0 : index
      %22 = vector.load %arg5[%c0_18, %c0_19] : memref<8x128xf32, #tpu.memory_space<vmem>>, vector<1x128xf32>
      tpu.vector_store %arg5[%c0_18, %c0_19], %21 {strides = array<i32>} : memref<8x128xf32, #tpu.memory_space<vmem>>, vector<1x128xf32>,
      %c1 = arith.constant 1 : index
      %c0_20 = arith.constant 0 : index
      %23 = vector.load %arg5[%c1, %c0_20] : memref<8x128xf32, #tpu.memory_space<vmem>>, vector<1x128xf32>
      %24 = arith.mulf %17, %17 : vector<512x128xf32>
      %cst_21 = arith.constant dense<0.000000e+00> : vector<128xf32>
      %25 = vector.multi_reduction <add>, %24, %cst_21 [0] : vector<512x128xf32> to vector<128xf32>
      %26 = vector.shape_cast %25 : vector<128xf32> to vector<1x128xf32>
      %27 = arith.addf %23, %26 : vector<1x128xf32>
      %c1_22 = arith.constant 1 : index
      %c0_23 = arith.constant 0 : index
      %28 = vector.load %arg5[%c1_22, %c0_23] : memref<8x128xf32, #tpu.memory_space<vmem>>, vector<1x128xf32>
      tpu.vector_store %arg5[%c1_22, %c0_23], %27 {strides = array<i32>} : memref<8x128xf32, #tpu.memory_space<vmem>>, vector<1x128xf32>,
    } else {
    }
    return
  }
  func.func @transform_0(%arg0: i32, %arg1: i32) -> (i32, i32) {
    %c0_i32 = arith.constant 0 : i32
    return %arg0, %arg1 : i32, i32
  }
  func.func @transform_1(%arg0: i32, %arg1: i32) -> (i32, i32) {
    %c0_i32 = arith.constant 0 : i32
    %c0_i32_0 = arith.constant 0 : i32
    return %arg1, %c0_i32 : i32, i32
  }
  func.func @transform_2(%arg0: i32, %arg1: i32) -> (i32, i32) {
    %c0_i32 = arith.constant 0 : i32
    %c0_i32_0 = arith.constant 0 : i32
    return %arg0, %c0_i32 : i32, i32
  }
  func.func @transform_3(%arg0: i32, %arg1: i32) -> (i32, i32) {
    %c0_i32 = arith.constant 0 : i32
    %c0_i32_0 = arith.constant 0 : i32
    %c0_i32_1 = arith.constant 0 : i32
    return %c0_i32, %c0_i32_0 : i32, i32
  }
}

module attributes {stable_mosaic.version = 11 : i64} {
  func.func @_matmul_stats_kernel(%arg0: i32, %arg1: i32, %arg2: memref<512x768xf32, #tpu.memory_space<vmem>>, %arg3: memref<768x128xf32, #tpu.memory_space<vmem>>, %arg4: memref<512x128xf32, #tpu.memory_space<vmem>>, %arg5: memref<8x128xf32, #tpu.memory_space<vmem>>) attributes {dimension_semantics = [#tpu.dimension_semantics<arbitrary>, #tpu.dimension_semantics<arbitrary>], iteration_bounds = array<i64: 2, 1>, scalar_prefetch = 0 : i64, scratch_operands = 0 : i64, tpu.core_type = #tpu.core_type<tc>, window_params = [{transform_indices = @transform_0, window_bounds = array<i64: 512, 768>}, {transform_indices = @transform_1, window_bounds = array<i64: 768, 128>}, {transform_indices = @transform_2, window_bounds = array<i64: 512, 128>}, {pipeline_mode = #tpu.pipeline_mode<synchronous>, transform_indices = @transform_3, window_bounds = array<i64: 8, 128>}]} {
    %c0_i32 = arith.constant 0 : i32
    %0 = arith.cmpi eq, %arg1, %c0_i32 : i32
    %1 = arith.extui %0 : i1 to i32
    %c0_i32_0 = arith.constant 0 : i32
    %2 = arith.cmpi ne, %1, %c0_i32_0 : i32
    scf.if %2 {
      %cst_13 = arith.constant 0.000000e+00 : f32
      %17 = vector.broadcast %cst_13 : f32 to vector<512x128xf32>
      %c0_14 = arith.constant 0 : index
      %c0_15 = arith.constant 0 : index
      %18 = vector.load %arg4[%c0_14, %c0_15] : memref<512x128xf32, #tpu.memory_space<vmem>>, vector<512x128xf32>
      tpu.vector_store %arg4[%c0_14, %c0_15], %17 {strides = array<i32>} : memref<512x128xf32, #tpu.memory_space<vmem>>, vector<512x128xf32>,
    } else {
    }
    %c0 = arith.constant 0 : index
    %c0_1 = arith.constant 0 : index
    %3 = vector.load %arg4[%c0, %c0_1] : memref<512x128xf32, #tpu.memory_space<vmem>>, vector<512x128xf32>
    %c0_2 = arith.constant 0 : index
    %c0_3 = arith.constant 0 : index
    %4 = vector.load %arg2[%c0_2, %c0_3] : memref<512x768xf32, #tpu.memory_space<vmem>>, vector<512x768xf32>
    %c0_4 = arith.constant 0 : index
    %c0_5 = arith.constant 0 : index
    %5 = vector.load %arg3[%c0_4, %c0_5] : memref<768x128xf32, #tpu.memory_space<vmem>>, vector<768x128xf32>
    %cst = arith.constant dense<0.000000e+00> : vector<512x128xf32>
    %6 = tpu.matmul %4, %5, %cst {dimension_numbers = #tpu.dot_dimension_numbers<[1], [0], [0], [1], [0, 0, 1, 1], [], []>} : vector<512x768xf32>, vector<768x128xf32>, vector<512x128xf32> -> vector<512x128xf32>
    %7 = arith.addf %3, %6 : vector<512x128xf32>
    %c0_6 = arith.constant 0 : index
    %c0_7 = arith.constant 0 : index
    %8 = vector.load %arg4[%c0_6, %c0_7] : memref<512x128xf32, #tpu.memory_space<vmem>>, vector<512x128xf32>
    tpu.vector_store %arg4[%c0_6, %c0_7], %7 {strides = array<i32>} : memref<512x128xf32, #tpu.memory_space<vmem>>, vector<512x128xf32>,
    %c0_i32_8 = arith.constant 0 : i32
    %9 = arith.cmpi eq, %arg0, %c0_i32_8 : i32
    %c0_i32_9 = arith.constant 0 : i32
    %10 = arith.cmpi eq, %arg1, %c0_i32_9 : i32
    %11 = arith.andi %9, %10 : i1
    %12 = arith.extui %11 : i1 to i32
    %c0_i32_10 = arith.constant 0 : i32
    %13 = arith.cmpi ne, %12, %c0_i32_10 : i32
    scf.if %13 {
      %cst_13 = arith.constant 0.000000e+00 : f32
      %17 = vector.broadcast %cst_13 : f32 to vector<8x128xf32>
      %c0_14 = arith.constant 0 : index
      %c0_15 = arith.constant 0 : index
      %18 = vector.load %arg5[%c0_14, %c0_15] : memref<8x128xf32, #tpu.memory_space<vmem>>, vector<8x128xf32>
      tpu.vector_store %arg5[%c0_14, %c0_15], %17 {strides = array<i32>} : memref<8x128xf32, #tpu.memory_space<vmem>>, vector<8x128xf32>,
    } else {
    }
    %c0_i32_11 = arith.constant 0 : i32
    %14 = arith.cmpi eq, %arg1, %c0_i32_11 : i32
    %15 = arith.extui %14 : i1 to i32
    %c0_i32_12 = arith.constant 0 : i32
    %16 = arith.cmpi ne, %15, %c0_i32_12 : i32
    scf.if %16 {
      %c0_13 = arith.constant 0 : index
      %c0_14 = arith.constant 0 : index
      %17 = vector.load %arg4[%c0_13, %c0_14] : memref<512x128xf32, #tpu.memory_space<vmem>>, vector<512x128xf32>
      %c0_15 = arith.constant 0 : index
      %c0_16 = arith.constant 0 : index
      %18 = vector.load %arg5[%c0_15, %c0_16] : memref<8x128xf32, #tpu.memory_space<vmem>>, vector<1x128xf32>
      %cst_17 = arith.constant dense<0.000000e+00> : vector<128xf32>
      %19 = vector.multi_reduction <add>, %17, %cst_17 [0] : vector<512x128xf32> to vector<128xf32>
      %20 = vector.shape_cast %19 : vector<128xf32> to vector<1x128xf32>
      %21 = arith.addf %18, %20 : vector<1x128xf32>
      %c0_18 = arith.constant 0 : index
      %c0_19 = arith.constant 0 : index
      %22 = vector.load %arg5[%c0_18, %c0_19] : memref<8x128xf32, #tpu.memory_space<vmem>>, vector<1x128xf32>
      tpu.vector_store %arg5[%c0_18, %c0_19], %21 {strides = array<i32>} : memref<8x128xf32, #tpu.memory_space<vmem>>, vector<1x128xf32>,
      %c1 = arith.constant 1 : index
      %c0_20 = arith.constant 0 : index
      %23 = vector.load %arg5[%c1, %c0_20] : memref<8x128xf32, #tpu.memory_space<vmem>>, vector<1x128xf32>
      %24 = arith.mulf %17, %17 : vector<512x128xf32>
      %cst_21 = arith.constant dense<0.000000e+00> : vector<128xf32>
      %25 = vector.multi_reduction <add>, %24, %cst_21 [0] : vector<512x128xf32> to vector<128xf32>
      %26 = vector.shape_cast %25 : vector<128xf32> to vector<1x128xf32>
      %27 = arith.addf %23, %26 : vector<1x128xf32>
      %c1_22 = arith.constant 1 : index
      %c0_23 = arith.constant 0 : index
      %28 = vector.load %arg5[%c1_22, %c0_23] : memref<8x128xf32, #tpu.memory_space<vmem>>, vector<1x128xf32>
      tpu.vector_store %arg5[%c1_22, %c0_23], %27 {strides = array<i32>} : memref<8x128xf32, #tpu.memory_space<vmem>>, vector<1x128xf32>,
    } else {
    }
    return
  }
  func.func @transform_0(%arg0: i32, %arg1: i32) -> (i32, i32) {
    %c0_i32 = arith.constant 0 : i32
    return %arg0, %arg1 : i32, i32
  }
  func.func @transform_1(%arg0: i32, %arg1: i32) -> (i32, i32) {
    %c0_i32 = arith.constant 0 : i32
    %c0_i32_0 = arith.constant 0 : i32
    return %arg1, %c0_i32 : i32, i32
  }
  func.func @transform_2(%arg0: i32, %arg1: i32) -> (i32, i32) {
    %c0_i32 = arith.constant 0 : i32
    %c0_i32_0 = arith.constant 0 : i32
    return %arg0, %c0_i32 : i32, i32
  }
  func.func @transform_3(%arg0: i32, %arg1: i32) -> (i32, i32) {
    %c0_i32 = arith.constant 0 : i32
    %c0_i32_0 = arith.constant 0 : i32
    %c0_i32_1 = arith.constant 0 : i32
    return %c0_i32, %c0_i32_0 : i32, i32
  }
}

</mosaic_0001>

<bundles_post_ra>
// kernel: inception_forward.15
= control target key start
LH: loop header
LB: loop body
LE: loop exit
PB: predicated region body
PF: predicated region fallthrough
CT: control target
= control target key end

     0   :  { %s613_s12 = smov 0   ;;  %s1122_s0 = inlined_call_operand.vmem [shape: f32[1024,128], index: 0, kind: input, shape index: {}, may-alias: {0,3}]   ;;  %s1123_s1 = inlined_call_operand.vmem [shape: f32[1,128], index: 1, kind: input, shape index: {}]   ;;  %s1124_s2 = inlined_call_operand.vmem [shape: f32[1,128], index: 2, kind: input, shape index: {}]   ;;  %s1125_s3 = inlined_call_operand.vmem [shape: f32[1024,128], index: 3, kind: output, shape index: {}, may-alias: {0,3}]  }
   0x1 LB: > { %s564_s13 = sadd.s32 4294967295, %s591_s12   ;;  %p568_p0 = scmp.ge.s32.totalorder %s591_s12, 1  ;;  %s591_s12 = sphi %s613_s12, %s13_s12  }
   0x2   : > { %p138_p1 = scmp.lt.s32.totalorder %s591_s12, 3 }
   0x4   : > { %p139_p2 = pnand %p568_p0, %p138_p1 }
   0x6   : > { %142 = sbr.rel (%p139_p2) target bundleno = 75 (0x4b), region = 32 }
   0xd   : > { %s569_s14 = sshll.u32 %s564_s13, 6  ;;  %v627_v0 = vld [vmem:[%s1123_s1] ss:$0 sm:$0xff] }
   0xe   : > { %p163_p3 = scmp.lt.s32.totalorder %s569_s14, 127  ;;  %v639_v1 = vld [vmem:[%s1124_s2] ss:$0 sm:$0xff] }
  0x10   : > { %s1167_s14 = smov (!%p163_p3, %s569_s14), 127 }
  0x11   : > { %s570_s15 = sshll.u32 %s1167_s14, 3 }
  0x12   : > { %s634_s20 = scalar_lea.vmem %s1122_s0, %s570_s15  ;;  %s798_s25 = scalar_lea.vmem %s1125_s3, %s570_s15 }
  0x13   : > { %v174_v2 = vld [vmem:[%s634_s20] sm:$0xff]  ;;  %v175_v3 = vld [vmem:[%s634_s20 + $0x8] sm:$0xff]  ;;  %v176_v4 = vld [vmem:[%s634_s20 + $0x10] sm:$0xff] }
  0x14   : > { %v177_v5 = vld [vmem:[%s634_s20 + $0x18] sm:$0xff]  ;;  %v178_v6 = vld [vmem:[%s634_s20 + $0x20] sm:$0xff]  ;;  %v179_v7 = vld [vmem:[%s634_s20 + $0x28] sm:$0xff]  ;;  %v245_v8 = vmul.f32 %v627_v0, %v174_v2  ;;  %v246_v9 = vmul.f32 %v627_v0, %v175_v3  ;;  %v247_v10 = vmul.f32 %v627_v0, %v176_v4 }
  0x15   : > { %v180_v11 = vld [vmem:[%s634_s20 + $0x30] sm:$0xff]  ;;  %v181_v12 = vld [vmem:[%s634_s20 + $0x38] sm:$0xff]  ;;  %v248_v13 = vmul.f32 %v627_v0, %v177_v5  ;;  %v249_v14 = vmul.f32 %v627_v0, %v178_v6  ;;  %v250_v15 = vmul.f32 %v627_v0, %v179_v7  ;;  %v182_v20 = vld [vmem:[%s634_s20 + $0x40] sm:$0xff] }
  0x16   : > { %v656_v16 = vadd.f32 %v639_v1, %v245_v8  ;;  %v659_v17 = vadd.f32 %v639_v1, %v246_v9  ;;  %v662_v18 = vadd.f32 %v639_v1, %v247_v10  ;;  %v251_v19 = vmul.f32 %v627_v0, %v180_v11  ;;  %v183_v21 = vld [vmem:[%s634_s20 + $0x48] sm:$0xff]  ;;  %v184_v22 = vld [vmem:[%s634_s20 + $0x50] sm:$0xff]  ;;  %v185_v27 = vld [vmem:[%s634_s20 + $0x58] sm:$0xff] }
  0x17   : > { %v669_v23 = vadd.f32 %v639_v1, %v248_v13  ;;  %v672_v24 = vadd.f32 %v639_v1, %v249_v14  ;;  %v675_v25 = vadd.f32 %v639_v1, %v250_v15  ;;  %v252_v26 = vmul.f32 %v627_v0, %v181_v12  ;;  %v186_v28 = vld [vmem:[%s634_s20 + $0x60] sm:$0xff]  ;;  %v187_v29 = vld [vmem:[%s634_s20 + $0x68] sm:$0xff]  ;;  %v188_v34 = vld [vmem:[%s634_s20 + $0x70] sm:$0xff] }
  0x18   : > { %v685_v33 = vadd.f32 %v639_v1, %v251_v19  ;;  %v189_v39 = vld [vmem:[%s634_s20 + $0x78] sm:$0xff]  ;;  %v253_v41 = vmul.f32 %v627_v0, %v182_v20  ;;  %v254_v42 = vmul.f32 %v627_v0, %v183_v21  ;;  %v255_v43 = vmul.f32 %v627_v0, %v184_v22  ;;  %v190_v52 = vld [vmem:[%s634_s20 + $0x80] sm:$0xff]  ;;  %v191_v53 = vld [vmem:[%s634_s20 + $0x88] sm:$0xff] }
  0x19   : > { %v692_v38 = vadd.f32 %v639_v1, %v252_v26  ;;  %v256_v45 = vmul.f32 %v627_v0, %v185_v27  ;;  %v257_v46 = vmul.f32 %v627_v0, %v186_v28  ;;  %v258_v47 = vmul.f32 %v627_v0, %v187_v29  ;;  %v192_v54 = vld [vmem:[%s634_s20 + $0x90] sm:$0xff]  ;;  %v193_v59 = vld [vmem:[%s634_s20 + $0x98] sm:$0xff]  ;;  %v194_v60 = vld [vmem:[%s634_s20 + $0xa0] sm:$0xff] }
  0x1a   : > { %v704_v48 = vadd.f32 %v639_v1, %v253_v41  ;;  %v707_v49 = vadd.f32 %v639_v1, %v254_v42  ;;  %v710_v50 = vadd.f32 %v639_v1, %v255_v43  ;;  %v259_v51 = vmul.f32 %v627_v0, %v188_v34  ;;  %v195_v61 = vld [vmem:[%s634_s20 + $0xa8] sm:$0xff]  ;;  %v196_v4 = vld [vmem:[%s634_s20 + $0xb0] sm:$0xff]  ;;  %v197_v9 = vld [vmem:[%s634_s20 + $0xb8] sm:$0xff] }
  0x1b   : > { %v717_v55 = vadd.f32 %v639_v1, %v256_v45  ;;  %v720_v56 = vadd.f32 %v639_v1, %v257_v46  ;;  %v723_v57 = vadd.f32 %v639_v1, %v258_v47  ;;  %v260_v58 = vmul.f32 %v627_v0, %v189_v39  ;;  %v198_v28 = vld [vmem:[%s634_s20 + $0xc0] sm:$0xff]  ;;  %v199_v29 = vld [vmem:[%s634_s20 + $0xc8] sm:$0xff]  ;;  %v200_v34 = vld [vmem:[%s634_s20 + $0xd0] sm:$0xff] }
  0x1c   : > { %v733_v3 = vadd.f32 %v639_v1, %v259_v51  ;;  %v261_v11 = vmul.f32 %v627_v0, %v190_v52  ;;  %v262_v12 = vmul.f32 %v627_v0, %v191_v53  ;;  %v263_v13 = vmul.f32 %v627_v0, %v192_v54  ;;  %v201_v45 = vld [vmem:[%s634_s20 + $0xd8] sm:$0xff]  ;;  %v202_v46 = vld [vmem:[%s634_s20 + $0xe0] sm:$0xff]  ;;  %v203_v47 = vld [vmem:[%s634_s20 + $0xe8] sm:$0xff] }
  0x1d   : > { %v740_v8 = vadd.f32 %v639_v1, %v260_v58  ;;  %v264_v15 = vmul.f32 %v627_v0, %v193_v59  ;;  %v265_v19 = vmul.f32 %v627_v0, %v194_v60  ;;  %v266_v20 = vmul.f32 %v627_v0, %v195_v61  ;;  %v204_v58 = vld [vmem:[%s634_s20 + $0xf0] sm:$0xff]  ;;  %v785_v59 = vld [vmem:[%s634_s20 + $0xf8] sm:$0xff]  ;;  %v828_v61 = vld [vmem:[%s634_s20 + $0x148] sm:$0xff] }
  0x1e   : > { %v752_v21 = vadd.f32 %v639_v1, %v261_v11  ;;  %v755_v22 = vadd.f32 %v639_v1, %v262_v12  ;;  %v758_v26 = vadd.f32 %v639_v1, %v263_v13  ;;  %v267_v27 = vmul.f32 %v627_v0, %v196_v4  ;;  %v801_v11 = vld [vmem:[%s634_s20 + $0x100] sm:$0xff]  ;;  %v804_v12 = vld [vmem:[%s634_s20 + $0x108] sm:$0xff]  ;;  %v807_v13 = vld [vmem:[%s634_s20 + $0x110] sm:$0xff] }
  0x1f   : > { %v765_v39 = vadd.f32 %v639_v1, %v264_v15  ;;  %v768_v41 = vadd.f32 %v639_v1, %v265_v19  ;;  %v771_v42 = vadd.f32 %v639_v1, %v266_v20  ;;  %v268_v43 = vmul.f32 %v627_v0, %v197_v9  ;;  %v810_v15 = vld [vmem:[%s634_s20 + $0x118] sm:$0xff]  ;;  %v813_v19 = vld [vmem:[%s634_s20 + $0x120] sm:$0xff]  ;;  %v816_v20 = vld [vmem:[%s634_s20 + $0x128] sm:$0xff] }
  0x20   : > { %v781_v54 = vadd.f32 %v639_v1, %v267_v27  ;;  %v819_v27 = vld [vmem:[%s634_s20 + $0x130] sm:$0xff]  ;;  %v825_v4 = vld [vmem:[%s634_s20 + $0x140] sm:$0xff]  ;;  %v834_v53 = vld [vmem:[%s634_s20 + $0x158] sm:$0xff]  ;;  %v269_v32 = vmul.f32 %v627_v0, %v198_v28  ;;  %v270_v31 = vmul.f32 %v627_v0, %v199_v29  ;;  %v271_v30 = vmul.f32 %v627_v0, %v200_v34 }
  0x21   : > { %v791_v9 = vadd.f32 %v639_v1, %v268_v43  ;;  %v822_v43 = vld [vmem:[%s634_s20 + $0x138] sm:$0xff]  ;;  %v831_v60 = vld [vmem:[%s634_s20 + $0x150] sm:$0xff]  ;;  %v837_v52 = vld [vmem:[%s634_s20 + $0x160] sm:$0xff]  ;;  %v272_v28 = vmul.f32 %v627_v0, %v201_v45  ;;  %v273_v29 = vmul.f32 %v627_v0, %v202_v46  ;;  %v274_v34 = vmul.f32 %v627_v0, %v203_v47 }
  0x22   : > { %v840_v51 = vld [vmem:[%s634_s20 + $0x168] sm:$0xff]  ;;  %v843_v14 = vld [vmem:[%s634_s20 + $0x170] sm:$0xff]  ;;  %v846_v10 = vld [vmem:[%s634_s20 + $0x178] sm:$0xff]  ;;  %v402_v35 = vmax.f32 %v781_v54, 0.0  ;;  %v341_v45 = vadd.f32 %v639_v1, %v270_v31  ;;  %v342_v46 = vadd.f32 %v639_v1, %v271_v30  ;;  %v275_v47 = vmul.f32 %v627_v0, %v204_v58 }
  0x23   : > { %v849_v7 = vld [vmem:[%s634_s20 + $0x180] sm:$0xff]  ;;  %v852_v6 = vld [vmem:[%s634_s20 + $0x188] sm:$0xff]  ;;  %v855_v5 = vld [vmem:[%s634_s20 + $0x190] sm:$0xff]  ;;  %v1138_v31 = vmax.f32 %v669_v23, 0.0  ;;  %v1139_v30 = vmax.f32 %v672_v24, 0.0  ;;  %v1143_v23 = vmax.f32 %v704_v48, 0.0 }
  0x24   : > { %v858_v2 = vld [vmem:[%s634_s20 + $0x198] sm:$0xff]  ;;  %v861_v63 = vld [vmem:[%s634_s20 + $0x1a0] sm:$0xff]  ;;  %v864_v62 = vld [vmem:[%s634_s20 + $0x1a8] sm:$0xff]  ;;  %v1144_v24 = vmax.f32 %v707_v49, 0.0  ;;  %v1151_v48 = vmax.f32 %v752_v21, 0.0  ;;  %v1152_v49 = vmax.f32 %v755_v22, 0.0  ;;  %v345_v21 = vadd.f32 %v639_v1, %v274_v34 }
  0x25   : > { %1126 = vst [vmem:[#allocation2_spill] sm:$0xff] %v864_v62  ;;  %v867_v44 = vld [vmem:[%s634_s20 + $0x1b0] sm:$0xff]  ;;  %v870_v40 = vld [vmem:[%s634_s20 + $0x1b8] sm:$0xff]  ;;  %v873_v37 = vld [vmem:[%s634_s20 + $0x1c0] sm:$0xff]  ;;  %v276_v22 = vmul.f32 %v627_v0, %v785_v59  ;;  %v277_v59 = vmul.f32 %v627_v0, %v801_v11  ;;  %v278_v34 = vmul.f32 %v627_v0, %v804_v12 }
  0x26   : > { %1127 = vst [vmem:[#allocation3_spill] sm:$0xff] %v867_v44  ;;  %1128 = vst [vmem:[#allocation4_spill] sm:$0xff] %v870_v40  ;;  %v876_v36 = vld [vmem:[%s634_s20 + $0x1c8] sm:$0xff]  ;;  %v883_v62 = vld [vmem:[%s634_s20 + $0x1d0] sm:$0xff] }
  0x27   : > { %1129 = vst [vmem:[#allocation5_spill] sm:$0xff] %v876_v36  ;;  %v886_v44 = vld [vmem:[%s634_s20 + $0x1d8] sm:$0xff]  ;;  %v889_v40 = vld [vmem:[%s634_s20 + $0x1e0] sm:$0xff]  ;;  %v403_v36 = vmax.f32 %v791_v9, 0.0  ;;  %v896_v54 = vld [vmem:[%s634_s20 + $0x1e8] sm:$0xff]  ;;  %v340_v9 = vadd.f32 %v639_v1, %v269_v32  ;;  %v1145_v32 = vmax.f32 %v710_v50, 0.0  ;;  %v348_v11 = vadd.f32 %v639_v1, %v277_v59 }
  0x28   : > { %1130 = vst [vmem:[#allocation6_spill] sm:$0xff] %v886_v44  ;;  %1131 = vst [vmem:[#allocation7_spill] sm:$0xff] %v889_v40  ;;  %v899_v44 = vld [vmem:[%s634_s20 + $0x1f0] sm:$0xff]  ;;  %v902_v40 = vld [vmem:[%s634_s20 + $0x1f8] sm:$0xff]  ;;  %v1153_v50 = vmax.f32 %v758_v26, 0.0  ;;  %v349_v12 = vadd.f32 %v639_v1, %v278_v34 }
  0x29   : > { %1132 = vst [vmem:[#allocation8_spill] sm:$0xff] %v896_v54  ;;  %1133 = vst [vmem:[#allocation9_spill] sm:$0xff] %v899_v44  ;;  %v1135_v54 = vmax.f32 %v656_v16, 0.0  ;;  %v1136_v44 = vmax.f32 %v659_v17, 0.0  ;;  %v1140_v16 = vmax.f32 %v675_v25, 0.0  ;;  %v1141_v17 = vmax.f32 %v685_v33, 0.0 }
  0x2a   : > { %1134 = vst [vmem:[#allocation10_spill] sm:$0xff] %v902_v40  ;;  %v1137_v40 = vmax.f32 %v662_v18, 0.0  ;;  %447 = vst [vmem:[%s798_s25 + $0x18] sm:$0xff] %v1138_v31  ;;  %v1142_v18 = vmax.f32 %v692_v38, 0.0  ;;  %v1146_v25 = vmax.f32 %v717_v55, 0.0  ;;  %v1147_v33 = vmax.f32 %v720_v56, 0.0 }
  0x2b   : > { %444 = vst [vmem:[%s798_s25] sm:$0xff] %v1135_v54  ;;  %445 = vst [vmem:[%s798_s25 + $0x8] sm:$0xff] %v1136_v44  ;;  %v1148_v38 = vmax.f32 %v723_v57, 0.0  ;;  %v1150_v44 = vmax.f32 %v740_v8, 0.0  ;;  %v1154_v55 = vmax.f32 %v765_v39, 0.0  ;;  %v1155_v56 = vmax.f32 %v768_v41, 0.0 }
  0x2c   : > { %446 = vst [vmem:[%s798_s25 + $0x10] sm:$0xff] %v1137_v40  ;;  %448 = vst [vmem:[%s798_s25 + $0x20] sm:$0xff] %v1139_v30  ;;  %v1149_v40 = vmax.f32 %v733_v3, 0.0  ;;  %v1156_v57 = vmax.f32 %v771_v42, 0.0  ;;  %v343_v3 = vadd.f32 %v639_v1, %v272_v28  ;;  %v344_v8 = vadd.f32 %v639_v1, %v273_v29 }
  0x2d   : > { %449 = vst [vmem:[%s798_s25 + $0x28] sm:$0xff] %v1140_v16  ;;  %450 = vst [vmem:[%s798_s25 + $0x30] sm:$0xff] %v1141_v17  ;;  %v404_v26 = vmax.f32 %v340_v9, 0.0  ;;  %v405_v39 = vmax.f32 %v341_v45, 0.0  ;;  %v406_v41 = vmax.f32 %v342_v46, 0.0  ;;  %v346_v42 = vadd.f32 %v639_v1, %v275_v47  ;;  %v1158_v34 = vld [vmem:[#allocation3_spill] sm:$0xff] }
  0x2e   : > { %451 = vst [vmem:[%s798_s25 + $0x38] sm:$0xff] %v1142_v18  ;;  %452 = vst [vmem:[%s798_s25 + $0x40] sm:$0xff] %v1143_v23  ;;  %v408_v58 = vmax.f32 %v344_v8, 0.0  ;;  %v347_v28 = vadd.f32 %v639_v1, %v276_v22  ;;  %v279_v54 = vmul.f32 %v627_v0, %v807_v13  ;;  %v280_v45 = vmul.f32 %v627_v0, %v810_v15 }
  0x2f   : > { %453 = vst [vmem:[%s798_s25 + $0x48] sm:$0xff] %v1144_v24  ;;  %454 = vst [vmem:[%s798_s25 + $0x50] sm:$0xff] %v1145_v32  ;;  %v410_v29 = vmax.f32 %v346_v42, 0.0  ;;  %v281_v46 = vmul.f32 %v627_v0, %v813_v19  ;;  %v282_v47 = vmul.f32 %v627_v0, %v816_v20  ;;  %v283_v31 = vmul.f32 %v627_v0, %v819_v27 }
  0x30   : > { %455 = vst [vmem:[%s798_s25 + $0x58] sm:$0xff] %v1146_v25  ;;  %456 = vst [vmem:[%s798_s25 + $0x60] sm:$0xff] %v1147_v33  ;;  %v411_v9 = vmax.f32 %v347_v28, 0.0  ;;  %v350_v13 = vadd.f32 %v639_v1, %v279_v54  ;;  %v351_v15 = vadd.f32 %v639_v1, %v280_v45  ;;  %v284_v30 = vmul.f32 %v627_v0, %v822_v43  ;;  %v1159_v45 = vld [vmem:[#allocation4_spill] sm:$0xff] }
  0x31   : > { %457 = vst [vmem:[%s798_s25 + $0x68] sm:$0xff] %v1148_v38  ;;  %458 = vst [vmem:[%s798_s25 + $0x70] sm:$0xff] %v1149_v40  ;;  %v352_v19 = vadd.f32 %v639_v1, %v281_v46  ;;  %v353_v20 = vadd.f32 %v639_v1, %v282_v47  ;;  %v412_v16 = vmax.f32 %v348_v11, 0.0  ;;  %v413_v17 = vmax.f32 %v349_v12, 0.0 }
  0x32   : > { %459 = vst [vmem:[%s798_s25 + $0x78] sm:$0xff] %v1150_v44  ;;  %460 = vst [vmem:[%s798_s25 + $0x80] sm:$0xff] %v1151_v48  ;;  %v414_v18 = vmax.f32 %v350_v13, 0.0  ;;  %v354_v23 = vadd.f32 %v639_v1, %v283_v31  ;;  %v415_v27 = vmax.f32 %v351_v15, 0.0  ;;  %v355_v25 = vadd.f32 %v639_v1, %v284_v30 }
  0x33   : > { %461 = vst [vmem:[%s798_s25 + $0x88] sm:$0xff] %v1152_v49  ;;  %462 = vst [vmem:[%s798_s25 + $0x90] sm:$0xff] %v1153_v50  ;;  %v416_v24 = vmax.f32 %v352_v19, 0.0  ;;  %v417_v32 = vmax.f32 %v353_v20, 0.0  ;;  %v285_v43 = vmul.f32 %v627_v0, %v825_v4  ;;  %v286_v38 = vmul.f32 %v627_v0, %v828_v61 }
  0x34   : > { %463 = vst [vmem:[%s798_s25 + $0x98] sm:$0xff] %v1154_v55  ;;  %464 = vst [vmem:[%s798_s25 + $0xa0] sm:$0xff] %v1155_v56  ;;  %v418_v33 = vmax.f32 %v354_v23, 0.0  ;;  %v287_v40 = vmul.f32 %v627_v0, %v831_v60  ;;  %v419_v44 = vmax.f32 %v355_v25, 0.0  ;;  %v288_v48 = vmul.f32 %v627_v0, %v834_v53  ;;  %v1162_v25 = vld [vmem:[#allocation7_spill] sm:$0xff] }
  0x35   : > { %465 = vst [vmem:[%s798_s25 + $0xa8] sm:$0xff] %v1156_v57  ;;  %466 = vst [vmem:[%s798_s25 + $0xb0] sm:$0xff] %v402_v35  ;;  %v407_v35 = vmax.f32 %v343_v3, 0.0  ;;  %v289_v49 = vmul.f32 %v627_v0, %v837_v52  ;;  %v290_v50 = vmul.f32 %v627_v0, %v840_v51  ;;  %v356_v4 = vadd.f32 %v639_v1, %v285_v43  ;;  %v1163_v43 = vld [vmem:[#allocation8_spill] sm:$0xff] }
  0x36   : > { %467 = vst [vmem:[%s798_s25 + $0xb8] sm:$0xff] %v403_v36  ;;  %v409_v36 = vmax.f32 %v345_v21, 0.0  ;;  %468 = vst [vmem:[%s798_s25 + $0xc0] sm:$0xff] %v404_v26  ;;  %v357_v61 = vadd.f32 %v639_v1, %v286_v38  ;;  %v358_v60 = vadd.f32 %v639_v1, %v287_v40  ;;  %v291_v55 = vmul.f32 %v627_v0, %v843_v14 }
  0x37   : > { %469 = vst [vmem:[%s798_s25 + $0xc8] sm:$0xff] %v405_v39  ;;  %470 = vst [vmem:[%s798_s25 + $0xd0] sm:$0xff] %v406_v41  ;;  %v359_v53 = vadd.f32 %v639_v1, %v288_v48  ;;  %v360_v52 = vadd.f32 %v639_v1, %v289_v49  ;;  %v361_v51 = vadd.f32 %v639_v1, %v290_v50  ;;  %v420_v57 = vmax.f32 %v356_v4, 0.0 }
  0x38   : > { %471 = vst [vmem:[%s798_s25 + $0xd8] sm:$0xff] %v407_v35  ;;  %472 = vst [vmem:[%s798_s25 + $0xe0] sm:$0xff] %v408_v58  ;;  %v292_v56 = vmul.f32 %v627_v0, %v846_v10  ;;  %v421_v3 = vmax.f32 %v357_v61, 0.0  ;;  %v422_v8 = vmax.f32 %v358_v60, 0.0  ;;  %v362_v21 = vadd.f32 %v639_v1, %v291_v55  ;;  %v1165_v61 = vld [vmem:[#allocation10_spill] sm:$0xff] }
  0x39   : > { %473 = vst [vmem:[%s798_s25 + $0xe8] sm:$0xff] %v409_v36  ;;  %474 = vst [vmem:[%s798_s25 + $0xf0] sm:$0xff] %v410_v29  ;;  %v423_v14 = vmax.f32 %v359_v53, 0.0  ;;  %v424_v22 = vmax.f32 %v360_v52, 0.0  ;;  %v425_v26 = vmax.f32 %v361_v51, 0.0  ;;  %v293_v10 = vmul.f32 %v627_v0, %v849_v7  ;;  %v1157_v29 = vld [vmem:[#allocation2_spill] sm:$0xff] }
  0x3a   : > { %475 = vst [vmem:[%s798_s25 + $0xf8] sm:$0xff] %v411_v9  ;;  %476 = vst [vmem:[%s798_s25 + $0x100] sm:$0xff] %v412_v16  ;;  %v363_v39 = vadd.f32 %v639_v1, %v292_v56  ;;  %v426_v41 = vmax.f32 %v362_v21, 0.0  ;;  %v294_v42 = vmul.f32 %v627_v0, %v852_v6  ;;  %v295_v35 = vmul.f32 %v627_v0, %v855_v5 }
  0x3b   : > { %477 = vst [vmem:[%s798_s25 + $0x108] sm:$0xff] %v413_v17  ;;  %478 = vst [vmem:[%s798_s25 + $0x110] sm:$0xff] %v414_v18  ;;  %v296_v36 = vmul.f32 %v627_v0, %v858_v2  ;;  %v297_v28 = vmul.f32 %v627_v0, %v861_v63  ;;  %v298_v59 = vmul.f32 %v627_v0, %v1157_v29  ;;  %v1160_v17 = vld [vmem:[#allocation5_spill] sm:$0xff] }
  0x3c   : > { %479 = vst [vmem:[%s798_s25 + $0x118] sm:$0xff] %v415_v27  ;;  %480 = vst [vmem:[%s798_s25 + $0x120] sm:$0xff] %v416_v24  ;;  %v427_v58 = vmax.f32 %v363_v39, 0.0  ;;  %v364_v7 = vadd.f32 %v639_v1, %v293_v10  ;;  %v365_v6 = vadd.f32 %v639_v1, %v294_v42  ;;  %v366_v5 = vadd.f32 %v639_v1, %v295_v35  ;;  %v1161_v24 = vld [vmem:[#allocation6_spill] sm:$0xff] }
  0x3d   : > { %481 = vst [vmem:[%s798_s25 + $0x128] sm:$0xff] %v417_v32  ;;  %482 = vst [vmem:[%s798_s25 + $0x130] sm:$0xff] %v418_v33  ;;  %v299_v54 = vmul.f32 %v627_v0, %v1158_v34  ;;  %v367_v2 = vadd.f32 %v639_v1, %v296_v36  ;;  %v368_v63 = vadd.f32 %v639_v1, %v297_v28 }
  0x3e   : > { %483 = vst [vmem:[%s798_s25 + $0x138] sm:$0xff] %v419_v44  ;;  %484 = vst [vmem:[%s798_s25 + $0x140] sm:$0xff] %v420_v57  ;;  %v369_v9 = vadd.f32 %v639_v1, %v298_v59  ;;  %v300_v46 = vmul.f32 %v627_v0, %v1159_v45  ;;  %v428_v47 = vmax.f32 %v364_v7, 0.0  ;;  %v429_v11 = vmax.f32 %v365_v6, 0.0  ;;  %v1164_v44 = vld [vmem:[#allocation9_spill] sm:$0xff] }
  0x3f   : > { %485 = vst [vmem:[%s798_s25 + $0x148] sm:$0xff] %v421_v3  ;;  %486 = vst [vmem:[%s798_s25 + $0x150] sm:$0xff] %v422_v8  ;;  %v430_v12 = vmax.f32 %v366_v5, 0.0  ;;  %v370_v13 = vadd.f32 %v639_v1, %v299_v54  ;;  %v431_v31 = vmax.f32 %v367_v2, 0.0  ;;  %v432_v15 = vmax.f32 %v368_v63, 0.0 }
  0x40   : > { %487 = vst [vmem:[%s798_s25 + $0x158] sm:$0xff] %v423_v14  ;;  %488 = vst [vmem:[%s798_s25 + $0x160] sm:$0xff] %v424_v22  ;;  %v433_v19 = vmax.f32 %v369_v9, 0.0  ;;  %v371_v20 = vadd.f32 %v639_v1, %v300_v46  ;;  %v301_v16 = vmul.f32 %v627_v0, %v873_v37  ;;  %v302_v18 = vmul.f32 %v627_v0, %v1160_v17 }
  0x41   : > { %489 = vst [vmem:[%s798_s25 + $0x168] sm:$0xff] %v425_v26  ;;  %490 = vst [vmem:[%s798_s25 + $0x170] sm:$0xff] %v426_v41  ;;  %v434_v30 = vmax.f32 %v370_v13, 0.0  ;;  %v303_v23 = vmul.f32 %v627_v0, %v883_v62  ;;  %v304_v32 = vmul.f32 %v627_v0, %v1161_v24  ;;  %v305_v33 = vmul.f32 %v627_v0, %v1162_v25 }
  0x42   : > { %491 = vst [vmem:[%s798_s25 + $0x178] sm:$0xff] %v427_v58  ;;  %492 = vst [vmem:[%s798_s25 + $0x180] sm:$0xff] %v428_v47  ;;  %v435_v27 = vmax.f32 %v371_v20, 0.0  ;;  %v306_v38 = vmul.f32 %v627_v0, %v1163_v43  ;;  %v372_v37 = vadd.f32 %v639_v1, %v301_v16  ;;  %v373_v40 = vadd.f32 %v639_v1, %v302_v18 }
  0x43   : > { %493 = vst [vmem:[%s798_s25 + $0x188] sm:$0xff] %v429_v11  ;;  %494 = vst [vmem:[%s798_s25 + $0x190] sm:$0xff] %v430_v12  ;;  %v374_v62 = vadd.f32 %v639_v1, %v303_v23  ;;  %v307_v48 = vmul.f32 %v627_v0, %v1164_v44  ;;  %v375_v49 = vadd.f32 %v639_v1, %v304_v32 }
  0x44   : > { %495 = vst [vmem:[%s798_s25 + $0x198] sm:$0xff] %v431_v31  ;;  %496 = vst [vmem:[%s798_s25 + $0x1a0] sm:$0xff] %v432_v15  ;;  %v376_v50 = vadd.f32 %v639_v1, %v305_v33  ;;  %v377_v4 = vadd.f32 %v639_v1, %v306_v38  ;;  %v308_v60 = vmul.f32 %v627_v0, %v1165_v61  ;;  %v436_v55 = vmax.f32 %v372_v37, 0.0 }
  0x45   : > { %497 = vst [vmem:[%s798_s25 + $0x1a8] sm:$0xff] %v433_v19  ;;  %498 = vst [vmem:[%s798_s25 + $0x1b0] sm:$0xff] %v434_v30  ;;  %v437_v53 = vmax.f32 %v373_v40, 0.0  ;;  %v438_v52 = vmax.f32 %v374_v62, 0.0  ;;  %v378_v51 = vadd.f32 %v639_v1, %v307_v48  ;;  %v439_v56 = vmax.f32 %v375_v49, 0.0 }
  0x46   : > { %499 = vst [vmem:[%s798_s25 + $0x1b8] sm:$0xff] %v435_v27  ;;  %v440_v57 = vmax.f32 %v376_v50, 0.0  ;;  %v441_v3 = vmax.f32 %v377_v4, 0.0  ;;  %v379_v8 = vadd.f32 %v639_v1, %v308_v60  ;;  %500 = vst [vmem:[%s798_s25 + $0x1c0] sm:$0xff] %v436_v55 }
  0x47   : > { %501 = vst [vmem:[%s798_s25 + $0x1c8] sm:$0xff] %v437_v53  ;;  %502 = vst [vmem:[%s798_s25 + $0x1d0] sm:$0xff] %v438_v52  ;;  %v442_v21 = vmax.f32 %v378_v51, 0.0 }
  0x48   : > { %503 = vst [vmem:[%s798_s25 + $0x1d8] sm:$0xff] %v439_v56  ;;  %504 = vst [vmem:[%s798_s25 + $0x1e0] sm:$0xff] %v440_v57  ;;  %v443_v0 = vmax.f32 %v379_v8, 0.0 }
  0x49   : > { %505 = vst [vmem:[%s798_s25 + $0x1e8] sm:$0xff] %v441_v3  ;;  %506 = vst [vmem:[%s798_s25 + $0x1f0] sm:$0xff] %v442_v21 }
  0x4a   : > { %507 = vst [vmem:[%s798_s25 + $0x1f8] sm:$0xff] %v443_v0 }
  0x4b PF: > { %s13_s12 = sadd.s32 1, %s591_s12  }
  0x4c   : > { %p10_p4 = scmp.ge.s32.totalorder %s13_s12, 4  }
  0x4e   :  { %12 = sbr.rel (!%p10_p4) target bundleno = 1 (0x1), region = 62 }

// kernel: inception_forward.14
= control target key start
LH: loop header
LB: loop body
LE: loop exit
PB: predicated region body
PF: predicated region fallthrough
CT: control target
= control target key end

     0   :  { %s1653_s12 = smov 0   ;;  %s1655_s13 = smov 0   ;;  %s1958_s0 = inlined_call_operand.vmem [shape: f32[1024,128], index: 0, kind: input, shape index: {}]   ;;  %s1959_s1 = inlined_call_operand.vmem [shape: f32[128,128], index: 1, kind: input, shape index: {}]   ;;  %s1960_s2 = inlined_call_operand.vmem [shape: f32[1024,128], index: 2, kind: output, shape index: {0}]   ;;  %s1961_s3 = inlined_call_operand.vmem [shape: f32[8,128], index: 3, kind: output, shape index: {1}]  }
   0x1   :  { %s1657_s14 = smov 0  }
   0x2 LB: > { %s26_s15 = sadd.s32 1, %s1626_s13  ;;  %p1317_p0 = scmp.ge.s32.totalorder %s1630_s14, 1  ;;  %s1630_s14 = sphi %s1657_s14, %s14_s14   ;;  %s1626_s13 = sphi %s1655_s13, %s1963_s13   ;;  %s1622_s12 = sphi %s1653_s12, %s1962_s12  }
   0x3   : > { %p28_p1 = scmp.ge.s32.totalorder %s26_s15, 2  ;;  %p164_p2 = scmp.lt.s32.totalorder %s1630_s14, 3 }
   0x5   : > { %s1965_s15 = smov (%p28_p1, %s26_s15), 0  ;;  %p165_p3 = pnand %p1317_p0, %p164_p2 }
   0x6   : > { %v413_v0 = vld [vmem:[%s1959_s1] sm:$0xff] (!%p165_p3)  ;;  %v414_v1 = vld [vmem:[%s1959_s1 + $0x8] sm:$0xff] (!%p165_p3)  ;;  %v415_v2 = vld [vmem:[%s1959_s1 + $0x10] sm:$0xff] (!%p165_p3)  ;;  %s1318_s22 = sshll.u32 (!%p165_p3), %s1622_s12, 6  ;;  %p942_p5 = scmp.eq.s32.totalorder (!%p165_p3), %s1622_s12, 0 }
   0x7   : > { %168 = sbr.rel (%p165_p3) target bundleno = 460 (0x1cc), region = 28  ;;  %v1534_v3 = vpack.c.bf16 (!%p165_p3), %v414_v1, %v413_v0  ;;  %v416_v4 = vld [vmem:[%s1959_s1 + $0x18] sm:$0xff] (!%p165_p3)  ;;  %p197_p4 = scmp.lt.s32.totalorder (!%p165_p3), %s1318_s22, 127  ;;  %v417_v6 = vld [vmem:[%s1959_s1 + $0x20] sm:$0xff] (!%p165_p3)  ;;  %v418_v7 = vld [vmem:[%s1959_s1 + $0x28] sm:$0xff] (!%p165_p3) }
   0x8   : > { %v1538_v5 = vpack.c.bf16 (!%p165_p3), %v416_v4, %v415_v2  ;;  %v1542_v8 = vpack.c.bf16 (!%p165_p3), %v418_v7, %v417_v6  ;;  %v419_v9 = vld [vmem:[%s1959_s1 + $0x30] sm:$0xff] (!%p165_p3)  ;;  %v420_v10 = vld [vmem:[%s1959_s1 + $0x38] sm:$0xff] (!%p165_p3)  ;;  %v421_v14 = vld [vmem:[%s1959_s1 + $0x40] sm:$0xff] (!%p165_p3) }
   0x9   : > { %1535 = vmatprep.subr.bf16.mxu0 (!%p165_p3), %v1534_v3  ;;  %1566 = vmatprep.subr.bf16.mxu1 (!%p165_p3), %v1534_v3  ;;  %v1546_v13 = vpack.c.bf16 (!%p165_p3), %v420_v10, %v419_v9  ;;  %v422_v15 = vld [vmem:[%s1959_s1 + $0x48] sm:$0xff] (!%p165_p3)  ;;  %v423_v17 = vld [vmem:[%s1959_s1 + $0x50] sm:$0xff] (!%p165_p3)  ;;  %v424_v18 = vld [vmem:[%s1959_s1 + $0x58] sm:$0xff] (!%p165_p3) }
   0xa   : > { %1537 = vmatpush3.bf16.msra.mxu0 (!%p165_p3), %v1534_v3  ;;  %1574 = vmatpush3.bf16.msra.mxu1 (!%p165_p3), %v1534_v3  ;;  %v1550_v16 = vpack.c.bf16 (!%p165_p3), %v422_v15, %v421_v14  ;;  %v1554_v19 = vpack.c.bf16 (!%p165_p3), %v424_v18, %v423_v17  ;;  %v425_v20 = vld [vmem:[%s1959_s1 + $0x60] sm:$0xff] (!%p165_p3)  ;;  %v426_v21 = vld [vmem:[%s1959_s1 + $0x68] sm:$0xff] (!%p165_p3)  ;;  %v427_v23 = vld [vmem:[%s1959_s1 + $0x70] sm:$0xff] (!%p165_p3) }
   0xb   : > { %1539 = vmatprep.subr.bf16.mxu0 (!%p165_p3), %v1538_v5  ;;  %1567 = vmatprep.subr.bf16.mxu1 (!%p165_p3), %v1538_v5  ;;  %v1558_v22 = vpack.c.bf16 (!%p165_p3), %v426_v21, %v425_v20  ;;  %v428_v24 = vld [vmem:[%s1959_s1 + $0x78] sm:$0xff] (!%p165_p3) }
   0xc   : > { %v1562_v25 = vpack.c.bf16 (!%p165_p3), %v428_v24, %v427_v23 }
   0xe   : > { %s1967_s22 = smov (!%p197_p4, %s1318_s22), 127  ;;  %1541 = vmatpush3.bf16.msra.mxu0 %v1538_v5  ;;  %1575 = vmatpush3.bf16.msra.mxu1 %v1538_v5 }
   0xf   : > { %s1319_s29 = sshll.u32 %s1967_s22, 3  ;;  %1543 = vmatprep.subr.bf16.mxu0 %v1542_v8  ;;  %1568 = vmatprep.subr.bf16.mxu1 %v1542_v8 }
  0x10   : > { %s1706_s9 = scalar_lea.vmem %s1958_s0, %s1319_s29  ;;  %s1802_s7 = scalar_lea.vmem %s1960_s2, %s1319_s29 }
  0x11   : > { %v349_v11 = vld [vmem:[%s1706_s9] sm:$0xff]  ;;  %v350_v26 = vld [vmem:[%s1706_s9 + $0x8] sm:$0xff]  ;;  %v351_v28 = vld [vmem:[%s1706_s9 + $0x10] sm:$0xff] }
  0x12   : > { %v381_v12 = vld [vmem:[%s1706_s9 + $0x100] sm:$0xff]  ;;  %1438 = vmatprep.mubr.f32.mxu0 %v349_v11  ;;  %1545 = vmatpush3.bf16.msra.mxu0 %v1542_v8  ;;  %v382_v27 = vld [vmem:[%s1706_s9 + $0x108] sm:$0xff]  ;;  %v383_v29 = vld [vmem:[%s1706_s9 + $0x110] sm:$0xff] }
  0x13   : > { %1486 = vmatprep.mubr.f32.mxu1 %v381_v12  ;;  %1576 = vmatpush3.bf16.msra.mxu1 %v1542_v8  ;;  %v352_v30 = vld [vmem:[%s1706_s9 + $0x18] sm:$0xff]  ;;  %v353_v32 = vld [vmem:[%s1706_s9 + $0x20] sm:$0xff]  ;;  %v354_v34 = vld [vmem:[%s1706_s9 + $0x28] sm:$0xff] }
  0x14   : > { %1547 = vmatprep.subr.bf16.mxu0 %v1546_v13  ;;  %1569 = vmatprep.subr.bf16.mxu1 %v1546_v13  ;;  %v384_v31 = vld [vmem:[%s1706_s9 + $0x118] sm:$0xff]  ;;  %v385_v33 = vld [vmem:[%s1706_s9 + $0x120] sm:$0xff]  ;;  %v386_v35 = vld [vmem:[%s1706_s9 + $0x128] sm:$0xff] }
  0x15   : > { %v355_v36 = vld [vmem:[%s1706_s9 + $0x30] sm:$0xff]  ;;  %v356_v38 = vld [vmem:[%s1706_s9 + $0x38] sm:$0xff]  ;;  %v357_v40 = vld [vmem:[%s1706_s9 + $0x40] sm:$0xff] }
  0x16   : > { %1549 = vmatpush3.bf16.msra.mxu0 %v1546_v13  ;;  %v387_v37 = vld [vmem:[%s1706_s9 + $0x130] sm:$0xff]  ;;  %v388_v39 = vld [vmem:[%s1706_s9 + $0x138] sm:$0xff]  ;;  %v389_v41 = vld [vmem:[%s1706_s9 + $0x140] sm:$0xff] }
  0x17   : > { %1577 = vmatpush3.bf16.msra.mxu1 %v1546_v13  ;;  %1551 = vmatprep.subr.bf16.mxu0 %v1550_v16  ;;  %v358_v42 = vld [vmem:[%s1706_s9 + $0x48] sm:$0xff]  ;;  %v359_v44 = vld [vmem:[%s1706_s9 + $0x50] sm:$0xff]  ;;  %v360_v46 = vld [vmem:[%s1706_s9 + $0x58] sm:$0xff] }
  0x18   : > { %1570 = vmatprep.subr.bf16.mxu1 %v1550_v16  ;;  %v390_v43 = vld [vmem:[%s1706_s9 + $0x148] sm:$0xff]  ;;  %v391_v45 = vld [vmem:[%s1706_s9 + $0x150] sm:$0xff]  ;;  %v392_v47 = vld [vmem:[%s1706_s9 + $0x158] sm:$0xff] }
  0x19   : > { %v361_v48 = vld [vmem:[%s1706_s9 + $0x60] sm:$0xff]  ;;  %v362_v50 = vld [vmem:[%s1706_s9 + $0x68] sm:$0xff]  ;;  %v363_v52 = vld [vmem:[%s1706_s9 + $0x70] sm:$0xff] }
  0x1a   : > { %1553 = vmatpush3.bf16.msra.mxu0 %v1550_v16  ;;  %v393_v49 = vld [vmem:[%s1706_s9 + $0x160] sm:$0xff]  ;;  %v394_v51 = vld [vmem:[%s1706_s9 + $0x168] sm:$0xff]  ;;  %v395_v53 = vld [vmem:[%s1706_s9 + $0x170] sm:$0xff] }
  0x1b   : > { %1578 = vmatpush3.bf16.msra.mxu1 %v1550_v16  ;;  %1555 = vmatprep.subr.bf16.mxu0 %v1554_v19  ;;  %v364_v54 = vld [vmem:[%s1706_s9 + $0x78] sm:$0xff]  ;;  %v365_v56 = vld [vmem:[%s1706_s9 + $0x80] sm:$0xff]  ;;  %v366_v58 = vld [vmem:[%s1706_s9 + $0x88] sm:$0xff] }
  0x1c   : > { %1571 = vmatprep.subr.bf16.mxu1 %v1554_v19  ;;  %v396_v55 = vld [vmem:[%s1706_s9 + $0x178] sm:$0xff]  ;;  %v397_v57 = vld [vmem:[%s1706_s9 + $0x180] sm:$0xff]  ;;  %v398_v59 = vld [vmem:[%s1706_s9 + $0x188] sm:$0xff] }
  0x1d   : > { %v367_v60 = vld [vmem:[%s1706_s9 + $0x90] sm:$0xff]  ;;  %v368_v62 = vld [vmem:[%s1706_s9 + $0x98] sm:$0xff]  ;;  %v369_v0 = vld [vmem:[%s1706_s9 + $0xa0] sm:$0xff] }
  0x1e   : > { %1557 = vmatpush3.bf16.msra.mxu0 %v1554_v19  ;;  %v399_v61 = vld [vmem:[%s1706_s9 + $0x190] sm:$0xff]  ;;  %v400_v63 = vld [vmem:[%s1706_s9 + $0x198] sm:$0xff]  ;;  %v401_v1 = vld [vmem:[%s1706_s9 + $0x1a0] sm:$0xff] }
  0x1f   : > { %1579 = vmatpush3.bf16.msra.mxu1 %v1554_v19  ;;  %1559 = vmatprep.subr.bf16.mxu0 %v1558_v22  ;;  %v370_v2 = vld [vmem:[%s1706_s9 + $0xa8] sm:$0xff]  ;;  %v371_v4 = vld [vmem:[%s1706_s9 + $0xb0] sm:$0xff]  ;;  %v372_v6 = vld [vmem:[%s1706_s9 + $0xb8] sm:$0xff] }
  0x20   : > { %1572 = vmatprep.subr.bf16.mxu1 %v1558_v22  ;;  %v402_v3 = vld [vmem:[%s1706_s9 + $0x1a8] sm:$0xff]  ;;  %v403_v5 = vld [vmem:[%s1706_s9 + $0x1b0] sm:$0xff]  ;;  %v404_v7 = vld [vmem:[%s1706_s9 + $0x1b8] sm:$0xff] }
  0x21   : > { %v373_v8 = vld [vmem:[%s1706_s9 + $0xc0] sm:$0xff]  ;;  %v374_v10 = vld [vmem:[%s1706_s9 + $0xc8] sm:$0xff]  ;;  %v375_v12 = vld [vmem:[%s1706_s9 + $0xd0] sm:$0xff] }
  0x22   : > { %1561 = vmatpush3.bf16.msra.mxu0 %v1558_v22  ;;  %v405_v9 = vld [vmem:[%s1706_s9 + $0x1c0] sm:$0xff]  ;;  %v406_v11 = vld [vmem:[%s1706_s9 + $0x1c8] sm:$0xff]  ;;  %v407_v13 = vld [vmem:[%s1706_s9 + $0x1d0] sm:$0xff] }
  0x23   : > { %1580 = vmatpush3.bf16.msra.mxu1 %v1558_v22  ;;  %1563 = vmatprep.subr.bf16.mxu0 %v1562_v25  ;;  %v376_v14 = vld [vmem:[%s1706_s9 + $0xd8] sm:$0xff]  ;;  %v377_v16 = vld [vmem:[%s1706_s9 + $0xe0] sm:$0xff]  ;;  %v378_v18 = vld [vmem:[%s1706_s9 + $0xe8] sm:$0xff] }
  0x24   : > { %1573 = vmatprep.subr.bf16.mxu1 %v1562_v25  ;;  %v408_v15 = vld [vmem:[%s1706_s9 + $0x1d8] sm:$0xff]  ;;  %v409_v17 = vld [vmem:[%s1706_s9 + $0x1e0] sm:$0xff]  ;;  %v410_v19 = vld [vmem:[%s1706_s9 + $0x1e8] sm:$0xff] }
  0x25   : > { %v379_v20 = vld [vmem:[%s1706_s9 + $0xf0] sm:$0xff]  ;;  %v380_v22 = vld [vmem:[%s1706_s9 + $0xf8] sm:$0xff] }
  0x26   : > { %1565 = vmatpush3.bf16.msra.mxu0 %v1562_v25  ;;  %v411_v21 = vld [vmem:[%s1706_s9 + $0x1f0] sm:$0xff]  ;;  %v412_v23 = vld [vmem:[%s1706_s9 + $0x1f8] sm:$0xff] }
  0x27   : > { %1581 = vmatpush3.bf16.msra.mxu1 %v1562_v25 }
  0x29   : > { %1439 = vmatmul.mubr.f32.vlgmr.msra.gmra.mrb[0].mxu0 %v350_v26 }
  0x2a   : > { %1487 = vmatmul.mubr.f32.vlgmr.msra.gmra.mrb[0].mxu1 %v382_v27  ;;  %1441 = vmatprep.mubr.f32.mxu0 %v351_v28 }
  0x2b   : > { %1489 = vmatprep.mubr.f32.mxu1 %v383_v29 }
  0x2d   : > { %1442 = vmatmul.mubr.f32.gmra.mrb[2].mxu0 %v352_v30 }
  0x2e   : > { %1490 = vmatmul.mubr.f32.gmra.mrb[2].mxu1 %v384_v31  ;;  %1444 = vmatprep.mubr.f32.mxu0 %v353_v32 }
  0x2f   : > { %1492 = vmatprep.mubr.f32.mxu1 %v385_v33 }
  0x31   : > { %1445 = vmatmul.mubr.f32.gmra.mrb[4].mxu0 %v354_v34 }
  0x32   : > { %1493 = vmatmul.mubr.f32.gmra.mrb[4].mxu1 %v386_v35  ;;  %1447 = vmatprep.mubr.f32.mxu0 %v355_v36 }
  0x33   : > { %1495 = vmatprep.mubr.f32.mxu1 %v387_v37 }
  0x35   : > { %1448 = vmatmul.mubr.f32.gmra.mrb[6].mxu0 %v356_v38 }
  0x36   : > { %1496 = vmatmul.mubr.f32.gmra.mrb[6].mxu1 %v388_v39  ;;  %1450 = vmatprep.mubr.f32.mxu0 %v357_v40 }
  0x37   : > { %1498 = vmatprep.mubr.f32.mxu1 %v389_v41 }
  0x39   : > { %1451 = vmatmul.mubr.f32.gmra.mrb[8].mxu0 %v358_v42 }
  0x3a   : > { %1499 = vmatmul.mubr.f32.gmra.mrb[8].mxu1 %v390_v43  ;;  %1453 = vmatprep.mubr.f32.mxu0 %v359_v44 }
  0x3b   : > { %1501 = vmatprep.mubr.f32.mxu1 %v391_v45 }
  0x3d   : > { %1454 = vmatmul.mubr.f32.gmra.mrb[10].mxu0 %v360_v46 }
  0x3e   : > { %1502 = vmatmul.mubr.f32.gmra.mrb[10].mxu1 %v392_v47  ;;  %1456 = vmatprep.mubr.f32.mxu0 %v361_v48 }
  0x3f   : > { %1504 = vmatprep.mubr.f32.mxu1 %v393_v49 }
  0x41   : > { %1457 = vmatmul.mubr.f32.gmra.mrb[12].mxu0 %v362_v50 }
  0x42   : > { %1505 = vmatmul.mubr.f32.gmra.mrb[12].mxu1 %v394_v51  ;;  %1459 = vmatprep.mubr.f32.mxu0 %v363_v52 }
  0x43   : > { %1507 = vmatprep.mubr.f32.mxu1 %v395_v53 }
  0x45   : > { %1460 = vmatmul.mubr.f32.gmra.mrb[14].mxu0 %v364_v54 }
  0x46   : > { %1508 = vmatmul.mubr.f32.gmra.mrb[14].mxu1 %v396_v55  ;;  %1462 = vmatprep.mubr.f32.mxu0 %v365_v56 }
  0x47   : > { %1510 = vmatprep.mubr.f32.mxu1 %v397_v57 }
  0x49   : > { %1463 = vmatmul.mubr.f32.gmra.mrb[16].mxu0 %v366_v58 }
  0x4a   : > { %1511 = vmatmul.mubr.f32.gmra.mrb[16].mxu1 %v398_v59  ;;  %1465 = vmatprep.mubr.f32.mxu0 %v367_v60 }
  0x4b   : > { %1513 = vmatprep.mubr.f32.mxu1 %v399_v61 }
  0x4d   : > { %1466 = vmatmul.mubr.f32.gmra.mrb[18].mxu0 %v368_v62 }
  0x4e   : > { %1514 = vmatmul.mubr.f32.gmra.mrb[18].mxu1 %v400_v63  ;;  %1468 = vmatprep.mubr.f32.mxu0 %v369_v0 }
  0x4f   : > { %1516 = vmatprep.mubr.f32.mxu1 %v401_v1 }
  0x51   : > { %1469 = vmatmul.mubr.f32.gmra.mrb[20].mxu0 %v370_v2 }
  0x52   : > { %1517 = vmatmul.mubr.f32.gmra.mrb[20].mxu1 %v402_v3  ;;  %1471 = vmatprep.mubr.f32.mxu0 %v371_v4 }
  0x53   : > { %1519 = vmatprep.mubr.f32.mxu1 %v403_v5 }
  0x55   : > { %1472 = vmatmul.mubr.f32.gmra.mrb[22].mxu0 %v372_v6 }
  0x56   : > { %1520 = vmatmul.mubr.f32.gmra.mrb[22].mxu1 %v404_v7  ;;  %1474 = vmatprep.mubr.f32.mxu0 %v373_v8 }
  0x57   : > { %1522 = vmatprep.mubr.f32.mxu1 %v405_v9 }
  0x59   : > { %1475 = vmatmul.mubr.f32.gmra.mrb[24].mxu0 %v374_v10 }
  0x5a   : > { %1523 = vmatmul.mubr.f32.gmra.mrb[24].mxu1 %v406_v11  ;;  %1477 = vmatprep.mubr.f32.mxu0 %v375_v12 }
  0x5b   : > { %1525 = vmatprep.mubr.f32.mxu1 %v407_v13 }
  0x5d   : > { %1478 = vmatmul.mubr.f32.gmra.mrb[26].mxu0 %v376_v14 }
  0x5e   : > { %1526 = vmatmul.mubr.f32.gmra.mrb[26].mxu1 %v408_v15  ;;  %1480 = vmatprep.mubr.f32.mxu0 %v377_v16 }
  0x5f   : > { %1528 = vmatprep.mubr.f32.mxu1 %v409_v17 }
  0x61   : > { %1481 = vmatmul.mubr.f32.gmra.mrb[28].mxu0 %v378_v18 }
  0x62   : > { %1529 = vmatmul.mubr.f32.gmra.mrb[28].mxu1 %v410_v19  ;;  %1483 = vmatprep.mubr.f32.mxu0 %v379_v20 }
  0x63   : > { %1531 = vmatprep.mubr.f32.mxu1 %v411_v21 }
  0x65   : > { %1484 = vmatmul.mubr.f32.gmra.mrb[30].mxu0 %v380_v22 }
  0x66   : > { %1532 = vmatmul.mubr.f32.gmra.mrb[30].mxu1 %v412_v23 }
  0xfc   : > { %v1440_v24 = vpop.f32.mrb[0].mxu0 }
  0xfd   : > { %v1488_v25 = vpop.f32.mrb[0].mxu1  ;;  %v495_v26 = vpop.f32.mrb[1].mxu0  ;;  %879 = vst [vmem:[%s1802_s7 + $0x8] sm:$0xff] %v1440_v24  ;;  %v1632_v24 = vmov (%p942_p5), 0.0  }
  0xfe   : > { %v655_v27 = vpop.f32.mrb[1].mxu1  ;;  %911 = vst [vmem:[%s1802_s7 + $0x108] sm:$0xff] %v1488_v25  ;;  %878 = vst [vmem:[%s1802_s7] sm:$0xff] %v495_v26 }
  0xff   : > { %910 = vst [vmem:[%s1802_s7 + $0x100] sm:$0xff] %v655_v27  ;;  %947 = vst [vmem:[%s1961_s3] sm:$0xff] (%p942_p5), %v1632_v24 }
 0x100   : > { %v1443_v28 = vpop.f32.mrb[2].mxu0 }
 0x101   : > { %v1491_v29 = vpop.f32.mrb[2].mxu1  ;;  %v505_v30 = vpop.f32.mrb[3].mxu0  ;;  %881 = vst [vmem:[%s1802_s7 + $0x18] sm:$0xff] %v1443_v28 }
 0x102   : > { %v665_v31 = vpop.f32.mrb[3].mxu1  ;;  %913 = vst [vmem:[%s1802_s7 + $0x118] sm:$0xff] %v1491_v29  ;;  %880 = vst [vmem:[%s1802_s7 + $0x10] sm:$0xff] %v505_v30 }
 0x103   : > { %912 = vst [vmem:[%s1802_s7 + $0x110] sm:$0xff] %v665_v31 }
 0x104   : > { %v1446_v32 = vpop.f32.mrb[4].mxu0 }
 0x105   : > { %v1494_v33 = vpop.f32.mrb[4].mxu1  ;;  %v515_v34 = vpop.f32.mrb[5].mxu0  ;;  %883 = vst [vmem:[%s1802_s7 + $0x28] sm:$0xff] %v1446_v32 }
 0x106   : > { %v675_v35 = vpop.f32.mrb[5].mxu1  ;;  %915 = vst [vmem:[%s1802_s7 + $0x128] sm:$0xff] %v1494_v33  ;;  %882 = vst [vmem:[%s1802_s7 + $0x20] sm:$0xff] %v515_v34 }
 0x107   : > { %914 = vst [vmem:[%s1802_s7 + $0x120] sm:$0xff] %v675_v35 }
 0x108   : > { %v1449_v36 = vpop.f32.mrb[6].mxu0 }
 0x109   : > { %v1497_v37 = vpop.f32.mrb[6].mxu1  ;;  %v525_v38 = vpop.f32.mrb[7].mxu0  ;;  %885 = vst [vmem:[%s1802_s7 + $0x38] sm:$0xff] %v1449_v36 }
 0x10a   : > { %v685_v39 = vpop.f32.mrb[7].mxu1  ;;  %917 = vst [vmem:[%s1802_s7 + $0x138] sm:$0xff] %v1497_v37  ;;  %884 = vst [vmem:[%s1802_s7 + $0x30] sm:$0xff] %v525_v38 }
 0x10b   : > { %916 = vst [vmem:[%s1802_s7 + $0x130] sm:$0xff] %v685_v39 }
 0x10c   : > { %v1452_v40 = vpop.f32.mrb[8].mxu0 }
 0x10d   : > { %v1500_v41 = vpop.f32.mrb[8].mxu1  ;;  %v535_v42 = vpop.f32.mrb[9].mxu0  ;;  %887 = vst [vmem:[%s1802_s7 + $0x48] sm:$0xff] %v1452_v40 }
 0x10e   : > { %v695_v43 = vpop.f32.mrb[9].mxu1  ;;  %919 = vst [vmem:[%s1802_s7 + $0x148] sm:$0xff] %v1500_v41  ;;  %886 = vst [vmem:[%s1802_s7 + $0x40] sm:$0xff] %v535_v42 }
 0x10f   : > { %918 = vst [vmem:[%s1802_s7 + $0x140] sm:$0xff] %v695_v43 }
 0x110   : > { %v1455_v44 = vpop.f32.mrb[10].mxu0 }
 0x111   : > { %v1503_v45 = vpop.f32.mrb[10].mxu1  ;;  %v545_v46 = vpop.f32.mrb[11].mxu0  ;;  %889 = vst [vmem:[%s1802_s7 + $0x58] sm:$0xff] %v1455_v44 }
 0x112   : > { %v705_v47 = vpop.f32.mrb[11].mxu1  ;;  %921 = vst [vmem:[%s1802_s7 + $0x158] sm:$0xff] %v1503_v45  ;;  %888 = vst [vmem:[%s1802_s7 + $0x50] sm:$0xff] %v545_v46 }
 0x113   : > { %920 = vst [vmem:[%s1802_s7 + $0x150] sm:$0xff] %v705_v47 }
 0x114   : > { %v1458_v48 = vpop.f32.mrb[12].mxu0 }
 0x115   : > { %v1506_v49 = vpop.f32.mrb[12].mxu1  ;;  %v555_v50 = vpop.f32.mrb[13].mxu0  ;;  %891 = vst [vmem:[%s1802_s7 + $0x68] sm:$0xff] %v1458_v48 }
 0x116   : > { %v715_v51 = vpop.f32.mrb[13].mxu1  ;;  %923 = vst [vmem:[%s1802_s7 + $0x168] sm:$0xff] %v1506_v49  ;;  %890 = vst [vmem:[%s1802_s7 + $0x60] sm:$0xff] %v555_v50 }
 0x117   : > { %922 = vst [vmem:[%s1802_s7 + $0x160] sm:$0xff] %v715_v51 }
 0x118   : > { %v1461_v52 = vpop.f32.mrb[14].mxu0 }
 0x119   : > { %v1509_v53 = vpop.f32.mrb[14].mxu1  ;;  %v565_v54 = vpop.f32.mrb[15].mxu0  ;;  %893 = vst [vmem:[%s1802_s7 + $0x78] sm:$0xff] %v1461_v52 }
 0x11a   : > { %v725_v55 = vpop.f32.mrb[15].mxu1  ;;  %925 = vst [vmem:[%s1802_s7 + $0x178] sm:$0xff] %v1509_v53  ;;  %892 = vst [vmem:[%s1802_s7 + $0x70] sm:$0xff] %v565_v54 }
 0x11b   : > { %924 = vst [vmem:[%s1802_s7 + $0x170] sm:$0xff] %v725_v55 }
 0x11c   : > { %v1464_v56 = vpop.f32.mrb[16].mxu0 }
 0x11d   : > { %v1512_v57 = vpop.f32.mrb[16].mxu1  ;;  %v575_v58 = vpop.f32.mrb[17].mxu0  ;;  %895 = vst [vmem:[%s1802_s7 + $0x88] sm:$0xff] %v1464_v56 }
 0x11e   : > { %v735_v59 = vpop.f32.mrb[17].mxu1  ;;  %927 = vst [vmem:[%s1802_s7 + $0x188] sm:$0xff] %v1512_v57  ;;  %894 = vst [vmem:[%s1802_s7 + $0x80] sm:$0xff] %v575_v58 }
 0x11f   : > { %926 = vst [vmem:[%s1802_s7 + $0x180] sm:$0xff] %v735_v59 }
 0x120   : > { %v1467_v60 = vpop.f32.mrb[18].mxu0 }
 0x121   : > { %v1515_v61 = vpop.f32.mrb[18].mxu1  ;;  %v585_v62 = vpop.f32.mrb[19].mxu0  ;;  %897 = vst [vmem:[%s1802_s7 + $0x98] sm:$0xff] %v1467_v60 }
 0x122   : > { %v745_v63 = vpop.f32.mrb[19].mxu1  ;;  %929 = vst [vmem:[%s1802_s7 + $0x198] sm:$0xff] %v1515_v61  ;;  %896 = vst [vmem:[%s1802_s7 + $0x90] sm:$0xff] %v585_v62 }
 0x123   : > { %928 = vst [vmem:[%s1802_s7 + $0x190] sm:$0xff] %v745_v63 }
 0x124   : > { %v1470_v0 = vpop.f32.mrb[20].mxu0 }
 0x125   : > { %v1518_v1 = vpop.f32.mrb[20].mxu1  ;;  %v595_v2 = vpop.f32.mrb[21].mxu0  ;;  %899 = vst [vmem:[%s1802_s7 + $0xa8] sm:$0xff] %v1470_v0 }
 0x126   : > { %v755_v3 = vpop.f32.mrb[21].mxu1  ;;  %931 = vst [vmem:[%s1802_s7 + $0x1a8] sm:$0xff] %v1518_v1  ;;  %898 = vst [vmem:[%s1802_s7 + $0xa0] sm:$0xff] %v595_v2 }
 0x127   : > { %930 = vst [vmem:[%s1802_s7 + $0x1a0] sm:$0xff] %v755_v3 }
 0x128   : > { %v1473_v4 = vpop.f32.mrb[22].mxu0 }
 0x129   : > { %v1521_v5 = vpop.f32.mrb[22].mxu1  ;;  %v605_v6 = vpop.f32.mrb[23].mxu0  ;;  %901 = vst [vmem:[%s1802_s7 + $0xb8] sm:$0xff] %v1473_v4 }
 0x12a   : > { %v765_v7 = vpop.f32.mrb[23].mxu1  ;;  %933 = vst [vmem:[%s1802_s7 + $0x1b8] sm:$0xff] %v1521_v5  ;;  %900 = vst [vmem:[%s1802_s7 + $0xb0] sm:$0xff] %v605_v6 }
 0x12b   : > { %932 = vst [vmem:[%s1802_s7 + $0x1b0] sm:$0xff] %v765_v7 }
 0x12c   : > { %v1476_v8 = vpop.f32.mrb[24].mxu0 }
 0x12d   : > { %v1524_v9 = vpop.f32.mrb[24].mxu1  ;;  %v615_v10 = vpop.f32.mrb[25].mxu0  ;;  %903 = vst [vmem:[%s1802_s7 + $0xc8] sm:$0xff] %v1476_v8 }
 0x12e   : > { %v775_v11 = vpop.f32.mrb[25].mxu1  ;;  %935 = vst [vmem:[%s1802_s7 + $0x1c8] sm:$0xff] %v1524_v9  ;;  %902 = vst [vmem:[%s1802_s7 + $0xc0] sm:$0xff] %v615_v10 }
 0x12f   : > { %934 = vst [vmem:[%s1802_s7 + $0x1c0] sm:$0xff] %v775_v11 }
 0x130   : > { %v1479_v12 = vpop.f32.mrb[26].mxu0 }
 0x131   : > { %v1527_v13 = vpop.f32.mrb[26].mxu1  ;;  %v625_v14 = vpop.f32.mrb[27].mxu0  ;;  %905 = vst [vmem:[%s1802_s7 + $0xd8] sm:$0xff] %v1479_v12 }
 0x132   : > { %v785_v15 = vpop.f32.mrb[27].mxu1  ;;  %937 = vst [vmem:[%s1802_s7 + $0x1d8] sm:$0xff] %v1527_v13  ;;  %904 = vst [vmem:[%s1802_s7 + $0xd0] sm:$0xff] %v625_v14 }
 0x133   : > { %936 = vst [vmem:[%s1802_s7 + $0x1d0] sm:$0xff] %v785_v15 }
 0x134   : > { %v1482_v16 = vpop.f32.mrb[28].mxu0 }
 0x135   : > { %v1530_v17 = vpop.f32.mrb[28].mxu1  ;;  %v635_v18 = vpop.f32.mrb[29].mxu0  ;;  %907 = vst [vmem:[%s1802_s7 + $0xe8] sm:$0xff] %v1482_v16  ;;  %946 = sbr.rel (!%p942_p5) target bundleno = 316 (0x13c), region = 36 }
 0x136   : > { %v795_v19 = vpop.f32.mrb[29].mxu1  ;;  %939 = vst [vmem:[%s1802_s7 + $0x1e8] sm:$0xff] %v1530_v17  ;;  %906 = vst [vmem:[%s1802_s7 + $0xe0] sm:$0xff] %v635_v18 }
 0x137   : > { %938 = vst [vmem:[%s1802_s7 + $0x1e0] sm:$0xff] %v795_v19 }
 0x138   : > { %v1485_v20 = vpop.f32.mrb[30].mxu0 }
 0x139   : > { %v1533_v21 = vpop.f32.mrb[30].mxu1  ;;  %v645_v22 = vpop.f32.mrb[31].mxu0  ;;  %909 = vst [vmem:[%s1802_s7 + $0xf8] sm:$0xff] %v1485_v20 }
 0x13a   : > { %v805_v23 = vpop.f32.mrb[31].mxu1  ;;  %941 = vst [vmem:[%s1802_s7 + $0x1f8] sm:$0xff] %v1533_v21  ;;  %908 = vst [vmem:[%s1802_s7 + $0xf0] sm:$0xff] %v645_v22 }
 0x13b   : > { %940 = vst [vmem:[%s1802_s7 + $0x1f0] sm:$0xff] %v805_v23 }
 0x13c PF: > { %v951_v25 = vld [vmem:[%s1802_s7] sm:$0xff]  ;;  %v952_v26 = vld [vmem:[%s1802_s7 + $0x8] sm:$0xff]  ;;  %v953_v27 = vld [vmem:[%s1802_s7 + $0x10] sm:$0xff] }
 0x13d   : > { %v954_v28 = vld [vmem:[%s1802_s7 + $0x18] sm:$0xff]  ;;  %v1016_v29 = vadd.f32 %v952_v26, %v951_v25  ;;  %v1088_v30 = vmul.f32 %v951_v25, %v951_v25  ;;  %v1089_v31 = vmul.f32 %v952_v26, %v952_v26  ;;  %v1090_v32 = vmul.f32 %v953_v27, %v953_v27  ;;  %v955_v33 = vld [vmem:[%s1802_s7 + $0x20] sm:$0xff]  ;;  %v956_v37 = vld [vmem:[%s1802_s7 + $0x28] sm:$0xff] }
 0x13e   : > { %v1091_v35 = vmul.f32 %v954_v28, %v954_v28  ;;  %v1092_v39 = vmul.f32 %v955_v33, %v955_v33  ;;  %v957_v41 = vld [vmem:[%s1802_s7 + $0x30] sm:$0xff]  ;;  %v1093_v43 = vmul.f32 %v956_v37, %v956_v37  ;;  %v958_v45 = vld [vmem:[%s1802_s7 + $0x38] sm:$0xff]  ;;  %v959_v49 = vld [vmem:[%s1802_s7 + $0x40] sm:$0xff] }
 0x13f   : > { %v1017_v34 = vadd.f32 %v1016_v29, %v953_v27  ;;  %v1152_v36 = vadd.f32 %v1089_v31, %v1088_v30  ;;  %v1094_v47 = vmul.f32 %v957_v41, %v957_v41  ;;  %v1095_v51 = vmul.f32 %v958_v45, %v958_v45  ;;  %v960_v53 = vld [vmem:[%s1802_s7 + $0x48] sm:$0xff]  ;;  %v961_v57 = vld [vmem:[%s1802_s7 + $0x50] sm:$0xff]  ;;  %v962_v61 = vld [vmem:[%s1802_s7 + $0x58] sm:$0xff] }
 0x140   : > { %v1096_v55 = vmul.f32 %v959_v49, %v959_v49  ;;  %v1097_v59 = vmul.f32 %v960_v53, %v960_v53  ;;  %v1098_v63 = vmul.f32 %v961_v57, %v961_v57  ;;  %v963_v1 = vld [vmem:[%s1802_s7 + $0x60] sm:$0xff]  ;;  %v1099_v3 = vmul.f32 %v962_v61, %v962_v61  ;;  %v964_v5 = vld [vmem:[%s1802_s7 + $0x68] sm:$0xff]  ;;  %v965_v9 = vld [vmem:[%s1802_s7 + $0x70] sm:$0xff] }
 0x141   : > { %v1018_v38 = vadd.f32 %v1017_v34, %v954_v28  ;;  %v1153_v40 = vadd.f32 %v1152_v36, %v1090_v32  ;;  %v1100_v7 = vmul.f32 %v963_v1, %v963_v1  ;;  %v1101_v11 = vmul.f32 %v964_v5, %v964_v5  ;;  %v966_v13 = vld [vmem:[%s1802_s7 + $0x78] sm:$0xff]  ;;  %v967_v17 = vld [vmem:[%s1802_s7 + $0x80] sm:$0xff]  ;;  %v968_v21 = vld [vmem:[%s1802_s7 + $0x88] sm:$0xff] }
 0x142   : > { %v1102_v15 = vmul.f32 %v965_v9, %v965_v9  ;;  %v1103_v19 = vmul.f32 %v966_v13, %v966_v13  ;;  %v1104_v23 = vmul.f32 %v967_v17, %v967_v17  ;;  %v969_v25 = vld [vmem:[%s1802_s7 + $0x90] sm:$0xff]  ;;  %v1105_v27 = vmul.f32 %v968_v21, %v968_v21  ;;  %v970_v29 = vld [vmem:[%s1802_s7 + $0x98] sm:$0xff] }
 0x143   : > { %v1019_v42 = vadd.f32 %v1018_v38, %v955_v33  ;;  %v1154_v44 = vadd.f32 %v1153_v40, %v1091_v35  ;;  %v1106_v31 = vmul.f32 %v969_v25, %v969_v25  ;;  %v971_v33 = vld [vmem:[%s1802_s7 + $0xa0] sm:$0xff]  ;;  %v1107_v35 = vmul.f32 %v970_v29, %v970_v29 }
 0x145   : > { %v1020_v46 = vadd.f32 %v1019_v42, %v956_v37  ;;  %v1155_v48 = vadd.f32 %v1154_v44, %v1092_v39  ;;  %v972_v37 = vld [vmem:[%s1802_s7 + $0xa8] sm:$0xff]  ;;  %v1108_v39 = vmul.f32 %v971_v33, %v971_v33 }
 0x147   : > { %v1021_v50 = vadd.f32 %v1020_v46, %v957_v41  ;;  %v1156_v52 = vadd.f32 %v1155_v48, %v1093_v43  ;;  %v973_v41 = vld [vmem:[%s1802_s7 + $0xb0] sm:$0xff]  ;;  %v1109_v43 = vmul.f32 %v972_v37, %v972_v37 }
 0x149   : > { %v1022_v54 = vadd.f32 %v1021_v50, %v958_v45  ;;  %v1157_v56 = vadd.f32 %v1156_v52, %v1094_v47  ;;  %v974_v45 = vld [vmem:[%s1802_s7 + $0xb8] sm:$0xff]  ;;  %v1110_v47 = vmul.f32 %v973_v41, %v973_v41 }
 0x14b   : > { %v1023_v58 = vadd.f32 %v1022_v54, %v959_v49  ;;  %v1158_v60 = vadd.f32 %v1157_v56, %v1095_v51  ;;  %v975_v49 = vld [vmem:[%s1802_s7 + $0xc0] sm:$0xff]  ;;  %v1111_v51 = vmul.f32 %v974_v45, %v974_v45 }
 0x14d   : > { %v1024_v62 = vadd.f32 %v1023_v58, %v960_v53  ;;  %v1159_v0 = vadd.f32 %v1158_v60, %v1096_v55  ;;  %v976_v53 = vld [vmem:[%s1802_s7 + $0xc8] sm:$0xff]  ;;  %v1112_v55 = vmul.f32 %v975_v49, %v975_v49 }
 0x14f   : > { %v1025_v2 = vadd.f32 %v1024_v62, %v961_v57  ;;  %v1160_v4 = vadd.f32 %v1159_v0, %v1097_v59  ;;  %v977_v57 = vld [vmem:[%s1802_s7 + $0xd0] sm:$0xff]  ;;  %v1113_v59 = vmul.f32 %v976_v53, %v976_v53 }
 0x151   : > { %v1026_v6 = vadd.f32 %v1025_v2, %v962_v61  ;;  %v1161_v8 = vadd.f32 %v1160_v4, %v1098_v63  ;;  %v978_v61 = vld [vmem:[%s1802_s7 + $0xd8] sm:$0xff]  ;;  %v1114_v63 = vmul.f32 %v977_v57, %v977_v57 }
 0x153   : > { %v1027_v10 = vadd.f32 %v1026_v6, %v963_v1  ;;  %v1162_v12 = vadd.f32 %v1161_v8, %v1099_v3  ;;  %v979_v1 = vld [vmem:[%s1802_s7 + $0xe0] sm:$0xff]  ;;  %v1115_v3 = vmul.f32 %v978_v61, %v978_v61 }
 0x155   : > { %v1028_v14 = vadd.f32 %v1027_v10, %v964_v5  ;;  %v1163_v16 = vadd.f32 %v1162_v12, %v1100_v7  ;;  %v980_v5 = vld [vmem:[%s1802_s7 + $0xe8] sm:$0xff]  ;;  %v1116_v7 = vmul.f32 %v979_v1, %v979_v1 }
 0x157   : > { %v1029_v18 = vadd.f32 %v1028_v14, %v965_v9  ;;  %v1164_v20 = vadd.f32 %v1163_v16, %v1101_v11  ;;  %v981_v9 = vld [vmem:[%s1802_s7 + $0xf0] sm:$0xff]  ;;  %v1117_v11 = vmul.f32 %v980_v5, %v980_v5 }
 0x159   : > { %v1030_v22 = vadd.f32 %v1029_v18, %v966_v13  ;;  %v1165_v24 = vadd.f32 %v1164_v20, %v1102_v15  ;;  %v982_v13 = vld [vmem:[%s1802_s7 + $0xf8] sm:$0xff]  ;;  %v1118_v15 = vmul.f32 %v981_v9, %v981_v9 }
 0x15b   : > { %v1031_v26 = vadd.f32 %v1030_v22, %v967_v17  ;;  %v1166_v28 = vadd.f32 %v1165_v24, %v1103_v19  ;;  %v983_v17 = vld [vmem:[%s1802_s7 + $0x100] sm:$0xff]  ;;  %v1119_v19 = vmul.f32 %v982_v13, %v982_v13 }
 0x15d   : > { %v1032_v30 = vadd.f32 %v1031_v26, %v968_v21  ;;  %v1167_v32 = vadd.f32 %v1166_v28, %v1104_v23  ;;  %v984_v21 = vld [vmem:[%s1802_s7 + $0x108] sm:$0xff]  ;;  %v1120_v23 = vmul.f32 %v983_v17, %v983_v17 }
 0x15f   : > { %v1033_v34 = vadd.f32 %v1032_v30, %v969_v25  ;;  %v1168_v36 = vadd.f32 %v1167_v32, %v1105_v27  ;;  %v985_v25 = vld [vmem:[%s1802_s7 + $0x110] sm:$0xff]  ;;  %v1121_v27 = vmul.f32 %v984_v21, %v984_v21 }
 0x161   : > { %v1034_v38 = vadd.f32 %v1033_v34, %v970_v29  ;;  %v1169_v40 = vadd.f32 %v1168_v36, %v1106_v31  ;;  %v986_v29 = vld [vmem:[%s1802_s7 + $0x118] sm:$0xff]  ;;  %v1122_v31 = vmul.f32 %v985_v25, %v985_v25 }
 0x163   : > { %v1035_v42 = vadd.f32 %v1034_v38, %v971_v33  ;;  %v1170_v44 = vadd.f32 %v1169_v40, %v1107_v35  ;;  %v987_v33 = vld [vmem:[%s1802_s7 + $0x120] sm:$0xff]  ;;  %v1123_v35 = vmul.f32 %v986_v29, %v986_v29 }
 0x165   : > { %v1036_v46 = vadd.f32 %v1035_v42, %v972_v37  ;;  %v1171_v48 = vadd.f32 %v1170_v44, %v1108_v39  ;;  %v988_v37 = vld [vmem:[%s1802_s7 + $0x128] sm:$0xff]  ;;  %v1124_v39 = vmul.f32 %v987_v33, %v987_v33 }
 0x167   : > { %v1037_v50 = vadd.f32 %v1036_v46, %v973_v41  ;;  %v1172_v52 = vadd.f32 %v1171_v48, %v1109_v43  ;;  %v989_v41 = vld [vmem:[%s1802_s7 + $0x130] sm:$0xff]  ;;  %v1125_v43 = vmul.f32 %v988_v37, %v988_v37 }
 0x169   : > { %v1038_v54 = vadd.f32 %v1037_v50, %v974_v45  ;;  %v1173_v56 = vadd.f32 %v1172_v52, %v1110_v47  ;;  %v990_v45 = vld [vmem:[%s1802_s7 + $0x138] sm:$0xff]  ;;  %v1126_v47 = vmul.f32 %v989_v41, %v989_v41 }
 0x16b   : > { %v1039_v58 = vadd.f32 %v1038_v54, %v975_v49  ;;  %v1174_v60 = vadd.f32 %v1173_v56, %v1111_v51  ;;  %v991_v49 = vld [vmem:[%s1802_s7 + $0x140] sm:$0xff]  ;;  %v1127_v51 = vmul.f32 %v990_v45, %v990_v45 }
 0x16d   : > { %v1040_v62 = vadd.f32 %v1039_v58, %v976_v53  ;;  %v1175_v0 = vadd.f32 %v1174_v60, %v1112_v55  ;;  %v992_v53 = vld [vmem:[%s1802_s7 + $0x148] sm:$0xff]  ;;  %v1128_v55 = vmul.f32 %v991_v49, %v991_v49 }
 0x16f   : > { %v1041_v2 = vadd.f32 %v1040_v62, %v977_v57  ;;  %v1176_v4 = vadd.f32 %v1175_v0, %v1113_v59  ;;  %v993_v57 = vld [vmem:[%s1802_s7 + $0x150] sm:$0xff]  ;;  %v1129_v59 = vmul.f32 %v992_v53, %v992_v53 }
 0x171   : > { %v1042_v6 = vadd.f32 %v1041_v2, %v978_v61  ;;  %v1177_v8 = vadd.f32 %v1176_v4, %v1114_v63  ;;  %v994_v61 = vld [vmem:[%s1802_s7 + $0x158] sm:$0xff]  ;;  %v1130_v63 = vmul.f32 %v993_v57, %v993_v57 }
 0x173   : > { %v1043_v10 = vadd.f32 %v1042_v6, %v979_v1  ;;  %v1178_v12 = vadd.f32 %v1177_v8, %v1115_v3  ;;  %v995_v1 = vld [vmem:[%s1802_s7 + $0x160] sm:$0xff]  ;;  %v1131_v3 = vmul.f32 %v994_v61, %v994_v61 }
 0x175   : > { %v1044_v14 = vadd.f32 %v1043_v10, %v980_v5  ;;  %v1179_v16 = vadd.f32 %v1178_v12, %v1116_v7  ;;  %v996_v5 = vld [vmem:[%s1802_s7 + $0x168] sm:$0xff]  ;;  %v1132_v7 = vmul.f32 %v995_v1, %v995_v1 }
 0x177   : > { %v1045_v18 = vadd.f32 %v1044_v14, %v981_v9  ;;  %v1180_v20 = vadd.f32 %v1179_v16, %v1117_v11  ;;  %v997_v9 = vld [vmem:[%s1802_s7 + $0x170] sm:$0xff]  ;;  %v1133_v11 = vmul.f32 %v996_v5, %v996_v5 }
 0x179   : > { %v1046_v22 = vadd.f32 %v1045_v18, %v982_v13  ;;  %v1181_v24 = vadd.f32 %v1180_v20, %v1118_v15  ;;  %v998_v13 = vld [vmem:[%s1802_s7 + $0x178] sm:$0xff]  ;;  %v1134_v15 = vmul.f32 %v997_v9, %v997_v9 }
 0x17b   : > { %v1047_v26 = vadd.f32 %v1046_v22, %v983_v17  ;;  %v1182_v28 = vadd.f32 %v1181_v24, %v1119_v19  ;;  %v999_v17 = vld [vmem:[%s1802_s7 + $0x180] sm:$0xff]  ;;  %v1135_v19 = vmul.f32 %v998_v13, %v998_v13 }
 0x17d   : > { %v1048_v30 = vadd.f32 %v1047_v26, %v984_v21  ;;  %v1183_v32 = vadd.f32 %v1182_v28, %v1120_v23  ;;  %v1000_v21 = vld [vmem:[%s1802_s7 + $0x188] sm:$0xff]  ;;  %v1136_v23 = vmul.f32 %v999_v17, %v999_v17 }
 0x17f   : > { %v1049_v34 = vadd.f32 %v1048_v30, %v985_v25  ;;  %v1184_v36 = vadd.f32 %v1183_v32, %v1121_v27  ;;  %v1001_v25 = vld [vmem:[%s1802_s7 + $0x190] sm:$0xff]  ;;  %v1137_v27 = vmul.f32 %v1000_v21, %v1000_v21 }
 0x181   : > { %v1050_v38 = vadd.f32 %v1049_v34, %v986_v29  ;;  %v1185_v40 = vadd.f32 %v1184_v36, %v1122_v31  ;;  %v1002_v29 = vld [vmem:[%s1802_s7 + $0x198] sm:$0xff]  ;;  %v1138_v31 = vmul.f32 %v1001_v25, %v1001_v25 }
 0x183   : > { %v1051_v42 = vadd.f32 %v1050_v38, %v987_v33  ;;  %v1186_v44 = vadd.f32 %v1185_v40, %v1123_v35  ;;  %v1003_v33 = vld [vmem:[%s1802_s7 + $0x1a0] sm:$0xff]  ;;  %v1139_v35 = vmul.f32 %v1002_v29, %v1002_v29 }
 0x185   : > { %v1052_v46 = vadd.f32 %v1051_v42, %v988_v37  ;;  %v1187_v48 = vadd.f32 %v1186_v44, %v1124_v39  ;;  %v1004_v37 = vld [vmem:[%s1802_s7 + $0x1a8] sm:$0xff]  ;;  %v1140_v39 = vmul.f32 %v1003_v33, %v1003_v33 }
 0x187   : > { %v1053_v50 = vadd.f32 %v1052_v46, %v989_v41  ;;  %v1188_v52 = vadd.f32 %v1187_v48, %v1125_v43  ;;  %v1005_v41 = vld [vmem:[%s1802_s7 + $0x1b0] sm:$0xff]  ;;  %v1141_v43 = vmul.f32 %v1004_v37, %v1004_v37 }
 0x189   : > { %v1054_v54 = vadd.f32 %v1053_v50, %v990_v45  ;;  %v1189_v56 = vadd.f32 %v1188_v52, %v1126_v47  ;;  %v1006_v45 = vld [vmem:[%s1802_s7 + $0x1b8] sm:$0xff]  ;;  %v1142_v47 = vmul.f32 %v1005_v41, %v1005_v41 }
 0x18b   : > { %v1055_v58 = vadd.f32 %v1054_v54, %v991_v49  ;;  %v1190_v60 = vadd.f32 %v1189_v56, %v1127_v51  ;;  %v1007_v49 = vld [vmem:[%s1802_s7 + $0x1c0] sm:$0xff]  ;;  %v1143_v51 = vmul.f32 %v1006_v45, %v1006_v45 }
 0x18d   : > { %v1056_v62 = vadd.f32 %v1055_v58, %v992_v53  ;;  %v1191_v0 = vadd.f32 %v1190_v60, %v1128_v55  ;;  %v1008_v53 = vld [vmem:[%s1802_s7 + $0x1c8] sm:$0xff]  ;;  %v1144_v55 = vmul.f32 %v1007_v49, %v1007_v49 }
 0x18f   : > { %v1057_v2 = vadd.f32 %v1056_v62, %v993_v57  ;;  %v1192_v4 = vadd.f32 %v1191_v0, %v1129_v59  ;;  %v1009_v57 = vld [vmem:[%s1802_s7 + $0x1d0] sm:$0xff]  ;;  %v1145_v59 = vmul.f32 %v1008_v53, %v1008_v53 }
 0x191   : > { %v1058_v6 = vadd.f32 %v1057_v2, %v994_v61  ;;  %v1193_v8 = vadd.f32 %v1192_v4, %v1130_v63  ;;  %v1010_v61 = vld [vmem:[%s1802_s7 + $0x1d8] sm:$0xff]  ;;  %v1146_v63 = vmul.f32 %v1009_v57, %v1009_v57 }
 0x193   : > { %v1059_v10 = vadd.f32 %v1058_v6, %v995_v1  ;;  %v1194_v12 = vadd.f32 %v1193_v8, %v1131_v3  ;;  %v1011_v1 = vld [vmem:[%s1802_s7 + $0x1e0] sm:$0xff]  ;;  %v1147_v3 = vmul.f32 %v1010_v61, %v1010_v61 }
 0x195   : > { %v1060_v14 = vadd.f32 %v1059_v10, %v996_v5  ;;  %v1195_v16 = vadd.f32 %v1194_v12, %v1132_v7  ;;  %v1012_v5 = vld [vmem:[%s1802_s7 + $0x1e8] sm:$0xff]  ;;  %v1148_v7 = vmul.f32 %v1011_v1, %v1011_v1 }
 0x197   : > { %v1061_v18 = vadd.f32 %v1060_v14, %v997_v9  ;;  %v1196_v20 = vadd.f32 %v1195_v16, %v1133_v11  ;;  %v1013_v9 = vld [vmem:[%s1802_s7 + $0x1f0] sm:$0xff]  ;;  %v1149_v11 = vmul.f32 %v1012_v5, %v1012_v5 }
 0x199   : > { %v1062_v22 = vadd.f32 %v1061_v18, %v998_v13  ;;  %v1197_v24 = vadd.f32 %v1196_v20, %v1134_v15  ;;  %v1014_v13 = vld [vmem:[%s1802_s7 + $0x1f8] sm:$0xff]  ;;  %v1150_v15 = vmul.f32 %v1013_v9, %v1013_v9 }
 0x19a   : > { %v1151_v18 = vmul.f32 %v1014_v13, %v1014_v13 }
 0x19b   : > { %v1063_v26 = vadd.f32 %v1062_v22, %v999_v17  ;;  %v1198_v28 = vadd.f32 %v1197_v24, %v1135_v19 }
 0x19d   : > { %v1064_v30 = vadd.f32 %v1063_v26, %v1000_v21  ;;  %v1199_v32 = vadd.f32 %v1198_v28, %v1136_v23 }
 0x19f   : > { %v1065_v34 = vadd.f32 %v1064_v30, %v1001_v25  ;;  %v1200_v36 = vadd.f32 %v1199_v32, %v1137_v27 }
 0x1a1   : > { %v1066_v38 = vadd.f32 %v1065_v34, %v1002_v29  ;;  %v1201_v40 = vadd.f32 %v1200_v36, %v1138_v31  ;;  %v1015_v31 = vld [vmem:[%s1961_s3] sm:$0x1]  ;;  %v1087_v36 = vld [vmem:[%s1961_s3 + $0x1] sm:$0x1] }
 0x1a3   : > { %v1067_v42 = vadd.f32 %v1066_v38, %v1003_v33  ;;  %v1202_v44 = vadd.f32 %v1201_v40, %v1139_v35 }
 0x1a5   : > { %v1068_v46 = vadd.f32 %v1067_v42, %v1004_v37  ;;  %v1203_v48 = vadd.f32 %v1202_v44, %v1140_v39 }
 0x1a7   : > { %v1069_v50 = vadd.f32 %v1068_v46, %v1005_v41  ;;  %v1204_v52 = vadd.f32 %v1203_v48, %v1141_v43 }
 0x1a9   : > { %v1070_v54 = vadd.f32 %v1069_v50, %v1006_v45  ;;  %v1205_v56 = vadd.f32 %v1204_v52, %v1142_v47 }
 0x1ab   : > { %v1071_v58 = vadd.f32 %v1070_v54, %v1007_v49  ;;  %v1206_v60 = vadd.f32 %v1205_v56, %v1143_v51 }
 0x1ad   : > { %v1072_v62 = vadd.f32 %v1071_v58, %v1008_v53  ;;  %v1207_v0 = vadd.f32 %v1206_v60, %v1144_v55 }
 0x1af   : > { %v1073_v2 = vadd.f32 %v1072_v62, %v1009_v57  ;;  %v1208_v4 = vadd.f32 %v1207_v0, %v1145_v59 }
 0x1b1   : > { %v1074_v6 = vadd.f32 %v1073_v2, %v1010_v61  ;;  %v1209_v8 = vadd.f32 %v1208_v4, %v1146_v63 }
 0x1b3   : > { %v1075_v10 = vadd.f32 %v1074_v6, %v1011_v1  ;;  %v1210_v12 = vadd.f32 %v1209_v8, %v1147_v3 }
 0x1b5   : > { %v1076_v14 = vadd.f32 %v1075_v10, %v1012_v5  ;;  %v1211_v16 = vadd.f32 %v1210_v12, %v1148_v7 }
 0x1b7   : > { %v1077_v17 = vadd.f32 %v1076_v14, %v1013_v9  ;;  %v1212_v19 = vadd.f32 %v1211_v16, %v1149_v11 }
 0x1b9   : > { %v1078_v20 = vadd.f32 %v1077_v17, %v1014_v13  ;;  %v1213_v21 = vadd.f32 %v1212_v19, %v1150_v15 }
 0x1bb   : > { %v1079_v22 = vrot.slane %v1078_v20, 4  ;;  %v1214_v23 = vadd.f32 %v1213_v21, %v1151_v18 }
 0x1bd   : > { %v1080_v24 = vadd.f32 %v1079_v22, %v1078_v20  ;;  %v1215_v25 = vrot.slane %v1214_v23, 4 }
 0x1bf   : > { %v1081_v26 = vrot.slane %v1080_v24, 2  ;;  %v1216_v27 = vadd.f32 %v1215_v25, %v1214_v23 }
 0x1c1   : > { %v1082_v28 = vadd.f32 %v1081_v26, %v1080_v24  ;;  %v1217_v29 = vrot.slane %v1216_v27, 2 }
 0x1c3   : > { %v1083_v30 = vrot.slane %v1082_v28, 1  ;;  %v1218_v32 = vadd.f32 %v1217_v29, %v1216_v27 }
 0x1c5   : > { %v1084_v33 = vadd.f32 %v1083_v30, %v1082_v28  ;;  %v1219_v34 = vrot.slane %v1218_v32, 1 }
 0x1c7   : > { %v1085_v35 = vadd.f32 %v1084_v33, %v1015_v31  ;;  %v1220_v37 = vadd.f32 %v1219_v34, %v1218_v32 }
 0x1c9   : > { %1086 = vst [vmem:[%s1961_s3] sm:$0x1] %v1085_v35  ;;  %v1221_v38 = vadd.f32 %v1220_v37, %v1087_v36 }
 0x1cb   : > { %1222 = vst [vmem:[%s1961_s3 + $0x1] sm:$0x1] %v1221_v38 }
 0x1cc PF: > { %s14_s14 = sadd.s32 1, %s1630_s14   ;;  %s1962_s12 = smov %s1626_s13 }
 0x1cd   : > { %p11_p6 = scmp.ge.s32.totalorder %s14_s14, 4   ;;  %s1963_s13 = smov %s1965_s15 }
 0x1cf   :  { %13 = sbr.rel (!%p11_p6) target bundleno = 2 (0x2), region = 81 }

// kernel: inception_forward.16
= control target key start
LH: loop header
LB: loop body
LE: loop exit
PB: predicated region body
PF: predicated region fallthrough
CT: control target
= control target key end

     0   :  { %s2133_s12 = smov 0   ;;  %s2135_s13 = smov 0   ;;  %s2803_s0 = inlined_call_operand.vmem [shape: f32[1024,512], index: 0, kind: input, shape index: {}]   ;;  %s2804_s1 = inlined_call_operand.vmem [shape: f32[512,128], index: 1, kind: input, shape index: {}]   ;;  %s2805_s2 = inlined_call_operand.vmem [shape: f32[1024,128], index: 2, kind: output, shape index: {0}]   ;;  %s2806_s3 = inlined_call_operand.vmem [shape: f32[8,128], index: 3, kind: output, shape index: {1}]  }
   0x1   :  { %s2137_s14 = smov 0  }
   0x2 LB: > { %s26_s15 = sadd.s32 1, %s2105_s13  ;;  %p1953_p0 = scmp.ge.s32.totalorder %s2109_s14, 1  ;;  %s2109_s14 = sphi %s2137_s14, %s14_s14   ;;  %s2105_s13 = sphi %s2135_s13, %s2808_s13   ;;  %s2101_s12 = sphi %s2133_s12, %s2807_s12  }
   0x3   : > { %p28_p1 = scmp.ge.s32.totalorder %s26_s15, 2  ;;  %p167_p2 = scmp.lt.s32.totalorder %s2109_s14, 3 }
   0x5   : > { %s2810_s15 = smov (%p28_p1, %s26_s15), 0  ;;  %p168_p3 = pnand %p1953_p0, %p167_p2 }
   0x6   : > { %v613_v0 = vld [vmem:[%s2804_s1] sm:$0xff] (!%p168_p3)  ;;  %v614_v1 = vld [vmem:[%s2804_s1 + $0x8] sm:$0xff] (!%p168_p3)  ;;  %v2111_v3 = vmov (!%p168_p3), 0.0|0.0   ;;  %v615_v6 = vld [vmem:[%s2804_s1 + $0x10] sm:$0xff] (!%p168_p3)  ;;  %s1954_s9 = sshll.u32 (!%p168_p3), %s2101_s12, 6  ;;  %p1575_p5 = scmp.eq.s32.totalorder (!%p168_p3), %s2101_s12, 0 }
   0x7   : > { %171 = sbr.rel (%p168_p3) target bundleno = 684 (0x2ac), region = 28  ;;  %v645_v2 = vld [vmem:[%s2804_s1 + $0x100] sm:$0xff] (!%p168_p3)  ;;  %1964 = vmatprep.subr.bf16.mxu0 (!%p168_p3), %v2111_v3  ;;  %2012 = vmatprep.subr.bf16.mxu1 (!%p168_p3), %v2111_v3  ;;  %v1965_v4 = vpack.c.bf16 (!%p168_p3), %v614_v1, %v613_v0  ;;  %v646_v5 = vld [vmem:[%s2804_s1 + $0x108] sm:$0xff] (!%p168_p3)  ;;  %v616_v7 = vld [vmem:[%s2804_s1 + $0x18] sm:$0xff] (!%p168_p3)  ;;  %p203_p4 = scmp.lt.s32.totalorder (!%p168_p3), %s1954_s9, 127 }
   0x8   : > { %v2013_v8 = vpack.c.bf16 (!%p168_p3), %v646_v5, %v645_v2  ;;  %v647_v9 = vld [vmem:[%s2804_s1 + $0x110] sm:$0xff] (!%p168_p3)  ;;  %v648_v10 = vld [vmem:[%s2804_s1 + $0x118] sm:$0xff] (!%p168_p3)  ;;  %v1968_v11 = vpack.c.bf16 (!%p168_p3), %v616_v7, %v615_v6  ;;  %v617_v13 = vld [vmem:[%s2804_s1 + $0x20] sm:$0xff] (!%p168_p3) }
   0x9   : > { %1966 = vmatpush1.bf16.msra.mxu0 (!%p168_p3), %v1965_v4  ;;  %v2016_v12 = vpack.c.bf16 (!%p168_p3), %v648_v10, %v647_v9  ;;  %v618_v14 = vld [vmem:[%s2804_s1 + $0x28] sm:$0xff] (!%p168_p3)  ;;  %v649_v15 = vld [vmem:[%s2804_s1 + $0x120] sm:$0xff] (!%p168_p3)  ;;  %v619_v19 = vld [vmem:[%s2804_s1 + $0x30] sm:$0xff] (!%p168_p3) }
   0xa   : > { %2014 = vmatpush1.bf16.msra.mxu1 (!%p168_p3), %v2013_v8  ;;  %1967 = vmatprep.subr.bf16.mxu0 (!%p168_p3), %v2111_v3  ;;  %v650_v16 = vld [vmem:[%s2804_s1 + $0x128] sm:$0xff] (!%p168_p3)  ;;  %v1971_v17 = vpack.c.bf16 (!%p168_p3), %v618_v14, %v617_v13  ;;  %v620_v20 = vld [vmem:[%s2804_s1 + $0x38] sm:$0xff] (!%p168_p3)  ;;  %v651_v21 = vld [vmem:[%s2804_s1 + $0x130] sm:$0xff] (!%p168_p3) }
   0xb   : > { %2015 = vmatprep.subr.bf16.mxu1 (!%p168_p3), %v2111_v3  ;;  %v2019_v18 = vpack.c.bf16 (!%p168_p3), %v650_v16, %v649_v15  ;;  %v652_v22 = vld [vmem:[%s2804_s1 + $0x138] sm:$0xff] (!%p168_p3)  ;;  %v1974_v23 = vpack.c.bf16 (!%p168_p3), %v620_v20, %v619_v19  ;;  %v621_v25 = vld [vmem:[%s2804_s1 + $0x40] sm:$0xff] (!%p168_p3)  ;;  %v622_v26 = vld [vmem:[%s2804_s1 + $0x48] sm:$0xff] (!%p168_p3) }
   0xc   : > { %v2022_v24 = vpack.c.bf16 (!%p168_p3), %v652_v22, %v651_v21  ;;  %v653_v27 = vld [vmem:[%s2804_s1 + $0x140] sm:$0xff] (!%p168_p3)  ;;  %v654_v28 = vld [vmem:[%s2804_s1 + $0x148] sm:$0xff] (!%p168_p3)  ;;  %v1977_v29 = vpack.c.bf16 (!%p168_p3), %v622_v26, %v621_v25  ;;  %v623_v31 = vld [vmem:[%s2804_s1 + $0x50] sm:$0xff] (!%p168_p3) }
   0xd   : > { %1969 = vmatpush1.bf16.msra.mxu0 (!%p168_p3), %v1968_v11  ;;  %v2025_v30 = vpack.c.bf16 (!%p168_p3), %v654_v28, %v653_v27  ;;  %v624_v32 = vld [vmem:[%s2804_s1 + $0x58] sm:$0xff] (!%p168_p3)  ;;  %v655_v33 = vld [vmem:[%s2804_s1 + $0x150] sm:$0xff] (!%p168_p3)  ;;  %v625_v37 = vld [vmem:[%s2804_s1 + $0x60] sm:$0xff] (!%p168_p3) }
   0xe   : > { %2017 = vmatpush1.bf16.msra.mxu1 %v2016_v12  ;;  %1970 = vmatprep.subr.bf16.mxu0 %v2111_v3  ;;  %s2812_s9 = smov (!%p203_p4, %s1954_s9), 127  ;;  %v656_v34 = vld [vmem:[%s2804_s1 + $0x158] sm:$0xff]  ;;  %v1980_v35 = vpack.c.bf16 %v624_v32, %v623_v31  ;;  %v626_v38 = vld [vmem:[%s2804_s1 + $0x68] sm:$0xff]  ;;  %v657_v39 = vld [vmem:[%s2804_s1 + $0x160] sm:$0xff] }
   0xf   : > { %2018 = vmatprep.subr.bf16.mxu1 %v2111_v3  ;;  %s1962_s7 = sshll.u32 %s2812_s9, 5  ;;  %v2028_v36 = vpack.c.bf16 %v656_v34, %v655_v33  ;;  %v658_v40 = vld [vmem:[%s2804_s1 + $0x168] sm:$0xff]  ;;  %v1983_v43 = vpack.c.bf16 %v626_v38, %v625_v37  ;;  %v627_v45 = vld [vmem:[%s2804_s1 + $0x70] sm:$0xff]  ;;  %v628_v46 = vld [vmem:[%s2804_s1 + $0x78] sm:$0xff]  ;;  %s1958_s19 = sshll.u32 %s2812_s9, 3 }
  0x10   : > { %s2242_s23 = scalar_lea.vmem %s2803_s0, %s1962_s7  ;;  %v2031_v44 = vpack.c.bf16 %v658_v40, %v657_v39  ;;  %v659_v47 = vld [vmem:[%s2804_s1 + $0x170] sm:$0xff]  ;;  %v660_v48 = vld [vmem:[%s2804_s1 + $0x178] sm:$0xff]  ;;  %v1986_v49 = vpack.c.bf16 %v628_v46, %v627_v45  ;;  %v629_v51 = vld [vmem:[%s2804_s1 + $0x80] sm:$0xff]  ;;  %s2609_s22 = scalar_lea.vmem %s2805_s2, %s1958_s19 }
  0x11   : > { %1972 = vmatpush1.bf16.msra.mxu0 %v1971_v17  ;;  %v358_v41 = vld [vmem:[%s2242_s23 + $0x8] sm:$0xff]  ;;  %v360_v42 = vld [vmem:[%s2242_s23 + $0x18] sm:$0xff]  ;;  %v2034_v50 = vpack.c.bf16 %v660_v48, %v659_v47  ;;  %v661_v53 = vld [vmem:[%s2804_s1 + $0x180] sm:$0xff] }
  0x12   : > { %2020 = vmatpush1.bf16.msra.mxu1 %v2019_v18  ;;  %1973 = vmatprep.subr.bf16.mxu0 %v2111_v3  ;;  %v630_v52 = vld [vmem:[%s2804_s1 + $0x88] sm:$0xff]  ;;  %v631_v57 = vld [vmem:[%s2804_s1 + $0x90] sm:$0xff]  ;;  %v632_v58 = vld [vmem:[%s2804_s1 + $0x98] sm:$0xff] }
  0x13   : > { %2021 = vmatprep.subr.bf16.mxu1 %v2111_v3  ;;  %741 = vmatprep.mubr.f32.mxu0 %v358_v41  ;;  %v662_v54 = vld [vmem:[%s2804_s1 + $0x188] sm:$0xff]  ;;  %v1989_v55 = vpack.c.bf16 %v630_v52, %v629_v51  ;;  %v663_v59 = vld [vmem:[%s2804_s1 + $0x190] sm:$0xff]  ;;  %v664_v60 = vld [vmem:[%s2804_s1 + $0x198] sm:$0xff]  ;;  %v1992_v61 = vpack.c.bf16 %v632_v58, %v631_v57 }
  0x14   : > { %1126 = vmatprep.mubr.f32.mxu1 %v360_v42  ;;  %v2037_v56 = vpack.c.bf16 %v662_v54, %v661_v53  ;;  %v2040_v62 = vpack.c.bf16 %v664_v60, %v663_v59  ;;  %v633_v63 = vld [vmem:[%s2804_s1 + $0xa0] sm:$0xff]  ;;  %v634_v0 = vld [vmem:[%s2804_s1 + $0xa8] sm:$0xff]  ;;  %v635_v6 = vld [vmem:[%s2804_s1 + $0xb0] sm:$0xff] }
  0x15   : > { %1975 = vmatpush1.bf16.msra.mxu0 %v1974_v23  ;;  %v665_v1 = vld [vmem:[%s2804_s1 + $0x1a0] sm:$0xff]  ;;  %v666_v2 = vld [vmem:[%s2804_s1 + $0x1a8] sm:$0xff]  ;;  %v1995_v4 = vpack.c.bf16 %v634_v0, %v633_v63  ;;  %v636_v7 = vld [vmem:[%s2804_s1 + $0xb8] sm:$0xff] }
  0x16   : > { %2023 = vmatpush1.bf16.msra.mxu1 %v2022_v24  ;;  %1976 = vmatprep.subr.bf16.mxu0 %v2111_v3  ;;  %v2043_v5 = vpack.c.bf16 %v666_v2, %v665_v1  ;;  %v667_v8 = vld [vmem:[%s2804_s1 + $0x1b0] sm:$0xff]  ;;  %v668_v9 = vld [vmem:[%s2804_s1 + $0x1b8] sm:$0xff]  ;;  %v1998_v10 = vpack.c.bf16 %v636_v7, %v635_v6  ;;  %v637_v12 = vld [vmem:[%s2804_s1 + $0xc0] sm:$0xff] }
  0x17   : > { %2024 = vmatprep.subr.bf16.mxu1 %v2111_v3  ;;  %v2046_v11 = vpack.c.bf16 %v668_v9, %v667_v8  ;;  %v638_v13 = vld [vmem:[%s2804_s1 + $0xc8] sm:$0xff]  ;;  %v669_v14 = vld [vmem:[%s2804_s1 + $0x1c0] sm:$0xff]  ;;  %v639_v18 = vld [vmem:[%s2804_s1 + $0xd0] sm:$0xff] }
  0x18   : > { %v670_v15 = vld [vmem:[%s2804_s1 + $0x1c8] sm:$0xff]  ;;  %v2001_v16 = vpack.c.bf16 %v638_v13, %v637_v12  ;;  %v640_v19 = vld [vmem:[%s2804_s1 + $0xd8] sm:$0xff]  ;;  %v671_v20 = vld [vmem:[%s2804_s1 + $0x1d0] sm:$0xff] }
  0x19   : > { %1978 = vmatpush1.bf16.msra.mxu0 %v1977_v29  ;;  %v2049_v17 = vpack.c.bf16 %v670_v15, %v669_v14  ;;  %v672_v21 = vld [vmem:[%s2804_s1 + $0x1d8] sm:$0xff]  ;;  %v2004_v22 = vpack.c.bf16 %v640_v19, %v639_v18  ;;  %v641_v24 = vld [vmem:[%s2804_s1 + $0xe0] sm:$0xff]  ;;  %v642_v25 = vld [vmem:[%s2804_s1 + $0xe8] sm:$0xff] }
  0x1a   : > { %2026 = vmatpush1.bf16.msra.mxu1 %v2025_v30  ;;  %1979 = vmatprep.subr.bf16.mxu0 %v2111_v3  ;;  %v2052_v23 = vpack.c.bf16 %v672_v21, %v671_v20  ;;  %v673_v26 = vld [vmem:[%s2804_s1 + $0x1e0] sm:$0xff]  ;;  %v674_v27 = vld [vmem:[%s2804_s1 + $0x1e8] sm:$0xff]  ;;  %v2007_v28 = vpack.c.bf16 %v642_v25, %v641_v24  ;;  %v643_v30 = vld [vmem:[%s2804_s1 + $0xf0] sm:$0xff] }
  0x1b   : > { %2027 = vmatprep.subr.bf16.mxu1 %v2111_v3  ;;  %v2055_v29 = vpack.c.bf16 %v674_v27, %v673_v26  ;;  %v644_v31 = vld [vmem:[%s2804_s1 + $0xf8] sm:$0xff]  ;;  %v675_v32 = vld [vmem:[%s2804_s1 + $0x1f0] sm:$0xff]  ;;  %v362_v38 = vld [vmem:[%s2242_s23 + $0x28] sm:$0xff] }
  0x1c   : > { %v676_v33 = vld [vmem:[%s2804_s1 + $0x1f8] sm:$0xff]  ;;  %v2010_v34 = vpack.c.bf16 %v644_v31, %v643_v30  ;;  %v359_v37 = vld [vmem:[%s2242_s23 + $0x10] sm:$0xff]  ;;  %v361_v40 = vld [vmem:[%s2242_s23 + $0x20] sm:$0xff] }
  0x1d   : > { %1981 = vmatpush1.bf16.msra.mxu0 %v1980_v35  ;;  %v2058_v35 = vpack.c.bf16 %v676_v33, %v675_v32  ;;  %v364_v39 = vld [vmem:[%s2242_s23 + $0x38] sm:$0xff]  ;;  %v363_v41 = vld [vmem:[%s2242_s23 + $0x30] sm:$0xff]  ;;  %v366_v42 = vld [vmem:[%s2242_s23 + $0x48] sm:$0xff] }
  0x1e   : > { %2029 = vmatpush1.bf16.msra.mxu1 %v2028_v36  ;;  %1982 = vmatprep.subr.bf16.mxu0 %v2111_v3  ;;  %v357_v36 = vld [vmem:[%s2242_s23] sm:$0xff]  ;;  %v370_v45 = vld [vmem:[%s2242_s23 + $0x68] sm:$0xff]  ;;  %v372_v46 = vld [vmem:[%s2242_s23 + $0x78] sm:$0xff] }
  0x1f   : > { %2030 = vmatprep.subr.bf16.mxu1 %v2111_v3  ;;  %v369_v47 = vld [vmem:[%s2242_s23 + $0x60] sm:$0xff]  ;;  %v371_v48 = vld [vmem:[%s2242_s23 + $0x70] sm:$0xff]  ;;  %v378_v53 = vld [vmem:[%s2242_s23 + $0xa8] sm:$0xff] }
  0x20   : > { %v373_v51 = vld [vmem:[%s2242_s23 + $0x80] sm:$0xff]  ;;  %v375_v52 = vld [vmem:[%s2242_s23 + $0x90] sm:$0xff]  ;;  %v380_v54 = vld [vmem:[%s2242_s23 + $0xb8] sm:$0xff] }
  0x21   : > { %1984 = vmatpush1.bf16.msra.mxu0 %v1983_v43  ;;  %v365_v43 = vld [vmem:[%s2242_s23 + $0x40] sm:$0xff]  ;;  %v382_v57 = vld [vmem:[%s2242_s23 + $0xc8] sm:$0xff]  ;;  %v384_v58 = vld [vmem:[%s2242_s23 + $0xd8] sm:$0xff] }
  0x22   : > { %2032 = vmatpush1.bf16.msra.mxu1 %v2031_v44  ;;  %1985 = vmatprep.subr.bf16.mxu0 %v2111_v3  ;;  %v367_v44 = vld [vmem:[%s2242_s23 + $0x50] sm:$0xff]  ;;  %v381_v59 = vld [vmem:[%s2242_s23 + $0xc0] sm:$0xff]  ;;  %v390_v1 = vld [vmem:[%s2242_s23 + $0x108] sm:$0xff] }
  0x23   : > { %2033 = vmatprep.subr.bf16.mxu1 %v2111_v3  ;;  %v383_v60 = vld [vmem:[%s2242_s23 + $0xd0] sm:$0xff]  ;;  %v385_v63 = vld [vmem:[%s2242_s23 + $0xe0] sm:$0xff]  ;;  %v392_v2 = vld [vmem:[%s2242_s23 + $0x118] sm:$0xff] }
  0x24   : > { %v387_v0 = vld [vmem:[%s2242_s23 + $0xf0] sm:$0xff]  ;;  %v394_v6 = vld [vmem:[%s2242_s23 + $0x128] sm:$0xff]  ;;  %v396_v7 = vld [vmem:[%s2242_s23 + $0x138] sm:$0xff] }
  0x25   : > { %1987 = vmatpush1.bf16.msra.mxu0 %v1986_v49  ;;  %v374_v49 = vld [vmem:[%s2242_s23 + $0x88] sm:$0xff]  ;;  %v393_v8 = vld [vmem:[%s2242_s23 + $0x120] sm:$0xff]  ;;  %v395_v9 = vld [vmem:[%s2242_s23 + $0x130] sm:$0xff] }
  0x26   : > { %2035 = vmatpush1.bf16.msra.mxu1 %v2034_v50  ;;  %1988 = vmatprep.subr.bf16.mxu0 %v2111_v3  ;;  %v376_v50 = vld [vmem:[%s2242_s23 + $0x98] sm:$0xff]  ;;  %v397_v12 = vld [vmem:[%s2242_s23 + $0x140] sm:$0xff]  ;;  %v399_v13 = vld [vmem:[%s2242_s23 + $0x150] sm:$0xff] }
  0x27   : > { %2036 = vmatprep.subr.bf16.mxu1 %v2111_v3  ;;  %v402_v14 = vld [vmem:[%s2242_s23 + $0x168] sm:$0xff]  ;;  %v404_v15 = vld [vmem:[%s2242_s23 + $0x178] sm:$0xff]  ;;  %v405_v20 = vld [vmem:[%s2242_s23 + $0x180] sm:$0xff] }
  0x28   : > { %v406_v18 = vld [vmem:[%s2242_s23 + $0x188] sm:$0xff]  ;;  %v408_v19 = vld [vmem:[%s2242_s23 + $0x198] sm:$0xff]  ;;  %v407_v21 = vld [vmem:[%s2242_s23 + $0x190] sm:$0xff] }
  0x29   : > { %1990 = vmatpush1.bf16.msra.mxu0 %v1989_v55  ;;  %v377_v55 = vld [vmem:[%s2242_s23 + $0xa0] sm:$0xff]  ;;  %v411_v25 = vld [vmem:[%s2242_s23 + $0x1b0] sm:$0xff]  ;;  %v414_v26 = vld [vmem:[%s2242_s23 + $0x1c8] sm:$0xff] }
  0x2a   : > { %2038 = vmatpush1.bf16.msra.mxu1 %v2037_v56  ;;  %1991 = vmatprep.subr.bf16.mxu0 %v2111_v3  ;;  %v379_v56 = vld [vmem:[%s2242_s23 + $0xb0] sm:$0xff]  ;;  %v409_v24 = vld [vmem:[%s2242_s23 + $0x1a0] sm:$0xff]  ;;  %v416_v27 = vld [vmem:[%s2242_s23 + $0x1d8] sm:$0xff] }
  0x2b   : > { %2039 = vmatprep.subr.bf16.mxu1 %v2111_v3  ;;  %v418_v30 = vld [vmem:[%s2242_s23 + $0x1e8] sm:$0xff]  ;;  %v420_v31 = vld [vmem:[%s2242_s23 + $0x1f8] sm:$0xff]  ;;  %v417_v32 = vld [vmem:[%s2242_s23 + $0x1e0] sm:$0xff] }
  0x2c   : > { %v419_v33 = vld [vmem:[%s2242_s23 + $0x1f0] sm:$0xff] }
  0x2d   : > { %1993 = vmatpush1.bf16.msra.mxu0 %v1992_v61  ;;  %v386_v61 = vld [vmem:[%s2242_s23 + $0xe8] sm:$0xff] }
  0x2e   : > { %2041 = vmatpush1.bf16.msra.mxu1 %v2040_v62  ;;  %1994 = vmatprep.subr.bf16.mxu0 %v2111_v3  ;;  %v388_v62 = vld [vmem:[%s2242_s23 + $0xf8] sm:$0xff] }
  0x2f   : > { %2042 = vmatprep.subr.bf16.mxu1 %v2111_v3 }
  0x31   : > { %1996 = vmatpush1.bf16.msra.mxu0 %v1995_v4  ;;  %v389_v4 = vld [vmem:[%s2242_s23 + $0x100] sm:$0xff] }
  0x32   : > { %2044 = vmatpush1.bf16.msra.mxu1 %v2043_v5  ;;  %1997 = vmatprep.subr.bf16.mxu0 %v2111_v3  ;;  %v391_v5 = vld [vmem:[%s2242_s23 + $0x110] sm:$0xff] }
  0x33   : > { %2045 = vmatprep.subr.bf16.mxu1 %v2111_v3 }
  0x35   : > { %1999 = vmatpush1.bf16.msra.mxu0 %v1998_v10  ;;  %v398_v10 = vld [vmem:[%s2242_s23 + $0x148] sm:$0xff] }
  0x36   : > { %2047 = vmatpush1.bf16.msra.mxu1 %v2046_v11  ;;  %2000 = vmatprep.subr.bf16.mxu0 %v2111_v3  ;;  %v400_v11 = vld [vmem:[%s2242_s23 + $0x158] sm:$0xff] }
  0x37   : > { %2048 = vmatprep.subr.bf16.mxu1 %v2111_v3 }
  0x39   : > { %2002 = vmatpush1.bf16.msra.mxu0 %v2001_v16  ;;  %v401_v16 = vld [vmem:[%s2242_s23 + $0x160] sm:$0xff] }
  0x3a   : > { %2050 = vmatpush1.bf16.msra.mxu1 %v2049_v17  ;;  %2003 = vmatprep.subr.bf16.mxu0 %v2111_v3  ;;  %v403_v17 = vld [vmem:[%s2242_s23 + $0x170] sm:$0xff] }
  0x3b   : > { %2051 = vmatprep.subr.bf16.mxu1 %v2111_v3 }
  0x3d   : > { %2005 = vmatpush1.bf16.msra.mxu0 %v2004_v22  ;;  %v410_v22 = vld [vmem:[%s2242_s23 + $0x1a8] sm:$0xff] }
  0x3e   : > { %2053 = vmatpush1.bf16.msra.mxu1 %v2052_v23  ;;  %2006 = vmatprep.subr.bf16.mxu0 %v2111_v3  ;;  %v412_v23 = vld [vmem:[%s2242_s23 + $0x1b8] sm:$0xff] }
  0x3f   : > { %2054 = vmatprep.subr.bf16.mxu1 %v2111_v3 }
  0x41   : > { %2008 = vmatpush1.bf16.msra.mxu0 %v2007_v28  ;;  %v413_v28 = vld [vmem:[%s2242_s23 + $0x1c0] sm:$0xff] }
  0x42   : > { %2056 = vmatpush1.bf16.msra.mxu1 %v2055_v29  ;;  %2009 = vmatprep.subr.bf16.mxu0 %v2111_v3  ;;  %v415_v29 = vld [vmem:[%s2242_s23 + $0x1d0] sm:$0xff] }
  0x43   : > { %2057 = vmatprep.subr.bf16.mxu1 %v2111_v3  ;;  %v368_v3 = vld [vmem:[%s2242_s23 + $0x58] sm:$0xff] }
  0x45   : > { %2011 = vmatpush1.bf16.msra.mxu0 %v2010_v34  ;;  %v422_v34 = vld [vmem:[%s2242_s23 + $0x208] sm:$0xff] }
  0x46   : > { %2059 = vmatpush1.bf16.msra.mxu1 %v2058_v35  ;;  %v424_v35 = vld [vmem:[%s2242_s23 + $0x218] sm:$0xff] }
  0x48   : > { %742 = vmatmul.mubr.f32.vlgmr.msra.gmra.mrb[0].mxu0 %v357_v36  ;;  %v421_v36 = vld [vmem:[%s2242_s23 + $0x200] sm:$0xff] }
  0x49   : > { %1127 = vmatmul.mubr.f32.vlgmr.msra.gmra.mrb[0].mxu1 %v359_v37  ;;  %746 = vmatprep.mubr.f32.mxu0 %v362_v38  ;;  %v423_v37 = vld [vmem:[%s2242_s23 + $0x210] sm:$0xff]  ;;  %v426_v38 = vld [vmem:[%s2242_s23 + $0x228] sm:$0xff] }
  0x4a   : > { %1131 = vmatprep.mubr.f32.mxu1 %v364_v39  ;;  %v428_v39 = vld [vmem:[%s2242_s23 + $0x238] sm:$0xff] }
  0x4c   : > { %747 = vmatmul.mubr.f32.gmra.mrb[2].mxu0 %v361_v40  ;;  %v425_v40 = vld [vmem:[%s2242_s23 + $0x220] sm:$0xff] }
  0x4d   : > { %1132 = vmatmul.mubr.f32.gmra.mrb[2].mxu1 %v363_v41  ;;  %751 = vmatprep.mubr.f32.mxu0 %v366_v42  ;;  %v427_v41 = vld [vmem:[%s2242_s23 + $0x230] sm:$0xff]  ;;  %v430_v42 = vld [vmem:[%s2242_s23 + $0x248] sm:$0xff] }
  0x4e   : > { %1136 = vmatprep.mubr.f32.mxu1 %v368_v3  ;;  %v432_v3 = vld [vmem:[%s2242_s23 + $0x258] sm:$0xff] }
  0x50   : > { %752 = vmatmul.mubr.f32.gmra.mrb[4].mxu0 %v365_v43  ;;  %v429_v43 = vld [vmem:[%s2242_s23 + $0x240] sm:$0xff] }
  0x51   : > { %1137 = vmatmul.mubr.f32.gmra.mrb[4].mxu1 %v367_v44  ;;  %756 = vmatprep.mubr.f32.mxu0 %v370_v45  ;;  %v431_v44 = vld [vmem:[%s2242_s23 + $0x250] sm:$0xff]  ;;  %v434_v45 = vld [vmem:[%s2242_s23 + $0x268] sm:$0xff] }
  0x52   : > { %1141 = vmatprep.mubr.f32.mxu1 %v372_v46  ;;  %v436_v46 = vld [vmem:[%s2242_s23 + $0x278] sm:$0xff] }
  0x54   : > { %757 = vmatmul.mubr.f32.gmra.mrb[6].mxu0 %v369_v47  ;;  %v433_v47 = vld [vmem:[%s2242_s23 + $0x260] sm:$0xff] }
  0x55   : > { %1142 = vmatmul.mubr.f32.gmra.mrb[6].mxu1 %v371_v48  ;;  %761 = vmatprep.mubr.f32.mxu0 %v374_v49  ;;  %v435_v48 = vld [vmem:[%s2242_s23 + $0x270] sm:$0xff]  ;;  %v438_v49 = vld [vmem:[%s2242_s23 + $0x288] sm:$0xff] }
  0x56   : > { %1146 = vmatprep.mubr.f32.mxu1 %v376_v50  ;;  %v440_v50 = vld [vmem:[%s2242_s23 + $0x298] sm:$0xff] }
  0x58   : > { %762 = vmatmul.mubr.f32.gmra.mrb[8].mxu0 %v373_v51  ;;  %v437_v51 = vld [vmem:[%s2242_s23 + $0x280] sm:$0xff] }
  0x59   : > { %1147 = vmatmul.mubr.f32.gmra.mrb[8].mxu1 %v375_v52  ;;  %766 = vmatprep.mubr.f32.mxu0 %v378_v53  ;;  %v439_v52 = vld [vmem:[%s2242_s23 + $0x290] sm:$0xff]  ;;  %v442_v53 = vld [vmem:[%s2242_s23 + $0x2a8] sm:$0xff] }
  0x5a   : > { %1151 = vmatprep.mubr.f32.mxu1 %v380_v54  ;;  %v444_v54 = vld [vmem:[%s2242_s23 + $0x2b8] sm:$0xff] }
  0x5c   : > { %767 = vmatmul.mubr.f32.gmra.mrb[10].mxu0 %v377_v55  ;;  %v441_v55 = vld [vmem:[%s2242_s23 + $0x2a0] sm:$0xff] }
  0x5d   : > { %1152 = vmatmul.mubr.f32.gmra.mrb[10].mxu1 %v379_v56  ;;  %771 = vmatprep.mubr.f32.mxu0 %v382_v57  ;;  %v443_v56 = vld [vmem:[%s2242_s23 + $0x2b0] sm:$0xff]  ;;  %v446_v57 = vld [vmem:[%s2242_s23 + $0x2c8] sm:$0xff] }
  0x5e   : > { %1156 = vmatprep.mubr.f32.mxu1 %v384_v58  ;;  %v448_v58 = vld [vmem:[%s2242_s23 + $0x2d8] sm:$0xff] }
  0x60   : > { %772 = vmatmul.mubr.f32.gmra.mrb[12].mxu0 %v381_v59  ;;  %v445_v59 = vld [vmem:[%s2242_s23 + $0x2c0] sm:$0xff] }
  0x61   : > { %1157 = vmatmul.mubr.f32.gmra.mrb[12].mxu1 %v383_v60  ;;  %776 = vmatprep.mubr.f32.mxu0 %v386_v61  ;;  %v447_v60 = vld [vmem:[%s2242_s23 + $0x2d0] sm:$0xff]  ;;  %v450_v61 = vld [vmem:[%s2242_s23 + $0x2e8] sm:$0xff] }
  0x62   : > { %1161 = vmatprep.mubr.f32.mxu1 %v388_v62  ;;  %v452_v62 = vld [vmem:[%s2242_s23 + $0x2f8] sm:$0xff] }
  0x64   : > { %777 = vmatmul.mubr.f32.gmra.mrb[14].mxu0 %v385_v63  ;;  %v449_v63 = vld [vmem:[%s2242_s23 + $0x2e0] sm:$0xff] }
  0x65   : > { %1162 = vmatmul.mubr.f32.gmra.mrb[14].mxu1 %v387_v0  ;;  %781 = vmatprep.mubr.f32.mxu0 %v390_v1  ;;  %v451_v0 = vld [vmem:[%s2242_s23 + $0x2f0] sm:$0xff]  ;;  %v454_v1 = vld [vmem:[%s2242_s23 + $0x308] sm:$0xff] }
  0x66   : > { %1166 = vmatprep.mubr.f32.mxu1 %v392_v2  ;;  %v456_v2 = vld [vmem:[%s2242_s23 + $0x318] sm:$0xff] }
  0x68   : > { %782 = vmatmul.mubr.f32.gmra.mrb[16].mxu0 %v389_v4  ;;  %v453_v4 = vld [vmem:[%s2242_s23 + $0x300] sm:$0xff] }
  0x69   : > { %1167 = vmatmul.mubr.f32.gmra.mrb[16].mxu1 %v391_v5  ;;  %786 = vmatprep.mubr.f32.mxu0 %v394_v6  ;;  %v455_v5 = vld [vmem:[%s2242_s23 + $0x310] sm:$0xff]  ;;  %v458_v6 = vld [vmem:[%s2242_s23 + $0x328] sm:$0xff] }
  0x6a   : > { %1171 = vmatprep.mubr.f32.mxu1 %v396_v7  ;;  %v460_v7 = vld [vmem:[%s2242_s23 + $0x338] sm:$0xff] }
  0x6c   : > { %787 = vmatmul.mubr.f32.gmra.mrb[18].mxu0 %v393_v8  ;;  %v457_v8 = vld [vmem:[%s2242_s23 + $0x320] sm:$0xff] }
  0x6d   : > { %1172 = vmatmul.mubr.f32.gmra.mrb[18].mxu1 %v395_v9  ;;  %791 = vmatprep.mubr.f32.mxu0 %v398_v10  ;;  %v459_v9 = vld [vmem:[%s2242_s23 + $0x330] sm:$0xff]  ;;  %v462_v10 = vld [vmem:[%s2242_s23 + $0x348] sm:$0xff] }
  0x6e   : > { %1176 = vmatprep.mubr.f32.mxu1 %v400_v11  ;;  %v464_v11 = vld [vmem:[%s2242_s23 + $0x358] sm:$0xff] }
  0x70   : > { %792 = vmatmul.mubr.f32.gmra.mrb[20].mxu0 %v397_v12  ;;  %v461_v12 = vld [vmem:[%s2242_s23 + $0x340] sm:$0xff] }
  0x71   : > { %1177 = vmatmul.mubr.f32.gmra.mrb[20].mxu1 %v399_v13  ;;  %796 = vmatprep.mubr.f32.mxu0 %v402_v14  ;;  %v463_v13 = vld [vmem:[%s2242_s23 + $0x350] sm:$0xff]  ;;  %v466_v14 = vld [vmem:[%s2242_s23 + $0x368] sm:$0xff] }
  0x72   : > { %1181 = vmatprep.mubr.f32.mxu1 %v404_v15  ;;  %v468_v15 = vld [vmem:[%s2242_s23 + $0x378] sm:$0xff] }
  0x74   : > { %797 = vmatmul.mubr.f32.gmra.mrb[22].mxu0 %v401_v16  ;;  %v465_v16 = vld [vmem:[%s2242_s23 + $0x360] sm:$0xff] }
  0x75   : > { %1182 = vmatmul.mubr.f32.gmra.mrb[22].mxu1 %v403_v17  ;;  %801 = vmatprep.mubr.f32.mxu0 %v406_v18  ;;  %v467_v17 = vld [vmem:[%s2242_s23 + $0x370] sm:$0xff]  ;;  %v470_v18 = vld [vmem:[%s2242_s23 + $0x388] sm:$0xff] }
  0x76   : > { %1186 = vmatprep.mubr.f32.mxu1 %v408_v19  ;;  %v472_v19 = vld [vmem:[%s2242_s23 + $0x398] sm:$0xff] }
  0x78   : > { %802 = vmatmul.mubr.f32.gmra.mrb[24].mxu0 %v405_v20  ;;  %v469_v20 = vld [vmem:[%s2242_s23 + $0x380] sm:$0xff] }
  0x79   : > { %1187 = vmatmul.mubr.f32.gmra.mrb[24].mxu1 %v407_v21  ;;  %806 = vmatprep.mubr.f32.mxu0 %v410_v22  ;;  %v471_v21 = vld [vmem:[%s2242_s23 + $0x390] sm:$0xff]  ;;  %v474_v22 = vld [vmem:[%s2242_s23 + $0x3a8] sm:$0xff] }
  0x7a   : > { %1191 = vmatprep.mubr.f32.mxu1 %v412_v23  ;;  %v476_v23 = vld [vmem:[%s2242_s23 + $0x3b8] sm:$0xff] }
  0x7c   : > { %807 = vmatmul.mubr.f32.gmra.mrb[26].mxu0 %v409_v24  ;;  %v473_v24 = vld [vmem:[%s2242_s23 + $0x3a0] sm:$0xff] }
  0x7d   : > { %1192 = vmatmul.mubr.f32.gmra.mrb[26].mxu1 %v411_v25  ;;  %811 = vmatprep.mubr.f32.mxu0 %v414_v26  ;;  %v475_v25 = vld [vmem:[%s2242_s23 + $0x3b0] sm:$0xff]  ;;  %v478_v26 = vld [vmem:[%s2242_s23 + $0x3c8] sm:$0xff] }
  0x7e   : > { %1196 = vmatprep.mubr.f32.mxu1 %v416_v27  ;;  %v480_v27 = vld [vmem:[%s2242_s23 + $0x3d8] sm:$0xff] }
  0x80   : > { %812 = vmatmul.mubr.f32.gmra.mrb[28].mxu0 %v413_v28  ;;  %v477_v28 = vld [vmem:[%s2242_s23 + $0x3c0] sm:$0xff] }
  0x81   : > { %1197 = vmatmul.mubr.f32.gmra.mrb[28].mxu1 %v415_v29  ;;  %816 = vmatprep.mubr.f32.mxu0 %v418_v30  ;;  %v479_v29 = vld [vmem:[%s2242_s23 + $0x3d0] sm:$0xff]  ;;  %v482_v30 = vld [vmem:[%s2242_s23 + $0x3e8] sm:$0xff] }
  0x82   : > { %1201 = vmatprep.mubr.f32.mxu1 %v420_v31  ;;  %v484_v31 = vld [vmem:[%s2242_s23 + $0x3f8] sm:$0xff] }
  0x84   : > { %817 = vmatmul.mubr.f32.gmra.mrb[30].mxu0 %v417_v32  ;;  %v481_v32 = vld [vmem:[%s2242_s23 + $0x3e0] sm:$0xff] }
  0x85   : > { %1202 = vmatmul.mubr.f32.gmra.mrb[30].mxu1 %v419_v33  ;;  %821 = vmatprep.mubr.f32.mxu0 %v422_v34  ;;  %v483_v33 = vld [vmem:[%s2242_s23 + $0x3f0] sm:$0xff]  ;;  %v486_v34 = vld [vmem:[%s2242_s23 + $0x408] sm:$0xff] }
  0x86   : > { %1206 = vmatprep.mubr.f32.mxu1 %v424_v35  ;;  %v488_v35 = vld [vmem:[%s2242_s23 + $0x418] sm:$0xff] }
  0x88   : > { %822 = vmatmul.mubr.f32.gmra.mrb[32].mxu0 %v421_v36  ;;  %v485_v36 = vld [vmem:[%s2242_s23 + $0x400] sm:$0xff] }
  0x89   : > { %1207 = vmatmul.mubr.f32.gmra.mrb[32].mxu1 %v423_v37  ;;  %826 = vmatprep.mubr.f32.mxu0 %v426_v38  ;;  %v487_v37 = vld [vmem:[%s2242_s23 + $0x410] sm:$0xff]  ;;  %v490_v38 = vld [vmem:[%s2242_s23 + $0x428] sm:$0xff] }
  0x8a   : > { %1211 = vmatprep.mubr.f32.mxu1 %v428_v39  ;;  %v492_v39 = vld [vmem:[%s2242_s23 + $0x438] sm:$0xff] }
  0x8c   : > { %827 = vmatmul.mubr.f32.gmra.mrb[34].mxu0 %v425_v40  ;;  %v489_v40 = vld [vmem:[%s2242_s23 + $0x420] sm:$0xff] }
  0x8d   : > { %1212 = vmatmul.mubr.f32.gmra.mrb[34].mxu1 %v427_v41  ;;  %831 = vmatprep.mubr.f32.mxu0 %v430_v42  ;;  %v491_v41 = vld [vmem:[%s2242_s23 + $0x430] sm:$0xff]  ;;  %v494_v42 = vld [vmem:[%s2242_s23 + $0x448] sm:$0xff] }
  0x8e   : > { %1216 = vmatprep.mubr.f32.mxu1 %v432_v3  ;;  %v496_v3 = vld [vmem:[%s2242_s23 + $0x458] sm:$0xff] }
  0x90   : > { %832 = vmatmul.mubr.f32.gmra.mrb[36].mxu0 %v429_v43  ;;  %v493_v43 = vld [vmem:[%s2242_s23 + $0x440] sm:$0xff] }
  0x91   : > { %1217 = vmatmul.mubr.f32.gmra.mrb[36].mxu1 %v431_v44  ;;  %836 = vmatprep.mubr.f32.mxu0 %v434_v45  ;;  %v495_v44 = vld [vmem:[%s2242_s23 + $0x450] sm:$0xff]  ;;  %v498_v45 = vld [vmem:[%s2242_s23 + $0x468] sm:$0xff] }
  0x92   : > { %1221 = vmatprep.mubr.f32.mxu1 %v436_v46  ;;  %v500_v46 = vld [vmem:[%s2242_s23 + $0x478] sm:$0xff] }
  0x94   : > { %837 = vmatmul.mubr.f32.gmra.mrb[38].mxu0 %v433_v47  ;;  %v497_v47 = vld [vmem:[%s2242_s23 + $0x460] sm:$0xff] }
  0x95   : > { %1222 = vmatmul.mubr.f32.gmra.mrb[38].mxu1 %v435_v48  ;;  %841 = vmatprep.mubr.f32.mxu0 %v438_v49  ;;  %v499_v48 = vld [vmem:[%s2242_s23 + $0x470] sm:$0xff]  ;;  %v502_v49 = vld [vmem:[%s2242_s23 + $0x488] sm:$0xff] }
  0x96   : > { %1226 = vmatprep.mubr.f32.mxu1 %v440_v50  ;;  %v504_v50 = vld [vmem:[%s2242_s23 + $0x498] sm:$0xff] }
  0x98   : > { %842 = vmatmul.mubr.f32.gmra.mrb[40].mxu0 %v437_v51  ;;  %v501_v51 = vld [vmem:[%s2242_s23 + $0x480] sm:$0xff] }
  0x99   : > { %1227 = vmatmul.mubr.f32.gmra.mrb[40].mxu1 %v439_v52  ;;  %846 = vmatprep.mubr.f32.mxu0 %v442_v53  ;;  %v503_v52 = vld [vmem:[%s2242_s23 + $0x490] sm:$0xff]  ;;  %v506_v53 = vld [vmem:[%s2242_s23 + $0x4a8] sm:$0xff] }
  0x9a   : > { %1231 = vmatprep.mubr.f32.mxu1 %v444_v54  ;;  %v508_v54 = vld [vmem:[%s2242_s23 + $0x4b8] sm:$0xff] }
  0x9c   : > { %847 = vmatmul.mubr.f32.gmra.mrb[42].mxu0 %v441_v55  ;;  %v505_v55 = vld [vmem:[%s2242_s23 + $0x4a0] sm:$0xff] }
  0x9d   : > { %1232 = vmatmul.mubr.f32.gmra.mrb[42].mxu1 %v443_v56  ;;  %851 = vmatprep.mubr.f32.mxu0 %v446_v57  ;;  %v507_v56 = vld [vmem:[%s2242_s23 + $0x4b0] sm:$0xff]  ;;  %v510_v57 = vld [vmem:[%s2242_s23 + $0x4c8] sm:$0xff] }
  0x9e   : > { %1236 = vmatprep.mubr.f32.mxu1 %v448_v58  ;;  %v512_v58 = vld [vmem:[%s2242_s23 + $0x4d8] sm:$0xff] }
  0xa0   : > { %852 = vmatmul.mubr.f32.gmra.mrb[44].mxu0 %v445_v59  ;;  %v509_v59 = vld [vmem:[%s2242_s23 + $0x4c0] sm:$0xff] }
  0xa1   : > { %1237 = vmatmul.mubr.f32.gmra.mrb[44].mxu1 %v447_v60  ;;  %856 = vmatprep.mubr.f32.mxu0 %v450_v61  ;;  %v511_v60 = vld [vmem:[%s2242_s23 + $0x4d0] sm:$0xff]  ;;  %v514_v61 = vld [vmem:[%s2242_s23 + $0x4e8] sm:$0xff] }
  0xa2   : > { %1241 = vmatprep.mubr.f32.mxu1 %v452_v62  ;;  %v516_v62 = vld [vmem:[%s2242_s23 + $0x4f8] sm:$0xff] }
  0xa4   : > { %857 = vmatmul.mubr.f32.gmra.mrb[46].mxu0 %v449_v63  ;;  %v513_v63 = vld [vmem:[%s2242_s23 + $0x4e0] sm:$0xff] }
  0xa5   : > { %1242 = vmatmul.mubr.f32.gmra.mrb[46].mxu1 %v451_v0  ;;  %861 = vmatprep.mubr.f32.mxu0 %v454_v1  ;;  %v515_v0 = vld [vmem:[%s2242_s23 + $0x4f0] sm:$0xff]  ;;  %v518_v1 = vld [vmem:[%s2242_s23 + $0x508] sm:$0xff] }
  0xa6   : > { %1246 = vmatprep.mubr.f32.mxu1 %v456_v2  ;;  %v520_v2 = vld [vmem:[%s2242_s23 + $0x518] sm:$0xff] }
  0xa8   : > { %862 = vmatmul.mubr.f32.gmra.mrb[48].mxu0 %v453_v4  ;;  %v517_v4 = vld [vmem:[%s2242_s23 + $0x500] sm:$0xff] }
  0xa9   : > { %1247 = vmatmul.mubr.f32.gmra.mrb[48].mxu1 %v455_v5  ;;  %866 = vmatprep.mubr.f32.mxu0 %v458_v6  ;;  %v519_v5 = vld [vmem:[%s2242_s23 + $0x510] sm:$0xff]  ;;  %v522_v6 = vld [vmem:[%s2242_s23 + $0x528] sm:$0xff] }
  0xaa   : > { %1251 = vmatprep.mubr.f32.mxu1 %v460_v7  ;;  %v524_v7 = vld [vmem:[%s2242_s23 + $0x538] sm:$0xff] }
  0xac   : > { %867 = vmatmul.mubr.f32.gmra.mrb[50].mxu0 %v457_v8  ;;  %v521_v8 = vld [vmem:[%s2242_s23 + $0x520] sm:$0xff] }
  0xad   : > { %1252 = vmatmul.mubr.f32.gmra.mrb[50].mxu1 %v459_v9  ;;  %871 = vmatprep.mubr.f32.mxu0 %v462_v10  ;;  %v523_v9 = vld [vmem:[%s2242_s23 + $0x530] sm:$0xff]  ;;  %v526_v10 = vld [vmem:[%s2242_s23 + $0x548] sm:$0xff] }
  0xae   : > { %1256 = vmatprep.mubr.f32.mxu1 %v464_v11  ;;  %v528_v11 = vld [vmem:[%s2242_s23 + $0x558] sm:$0xff] }
  0xb0   : > { %872 = vmatmul.mubr.f32.gmra.mrb[52].mxu0 %v461_v12  ;;  %v525_v12 = vld [vmem:[%s2242_s23 + $0x540] sm:$0xff] }
  0xb1   : > { %1257 = vmatmul.mubr.f32.gmra.mrb[52].mxu1 %v463_v13  ;;  %876 = vmatprep.mubr.f32.mxu0 %v466_v14  ;;  %v527_v13 = vld [vmem:[%s2242_s23 + $0x550] sm:$0xff]  ;;  %v530_v14 = vld [vmem:[%s2242_s23 + $0x568] sm:$0xff] }
  0xb2   : > { %1261 = vmatprep.mubr.f32.mxu1 %v468_v15  ;;  %v532_v15 = vld [vmem:[%s2242_s23 + $0x578] sm:$0xff] }
  0xb4   : > { %877 = vmatmul.mubr.f32.gmra.mrb[54].mxu0 %v465_v16  ;;  %v529_v16 = vld [vmem:[%s2242_s23 + $0x560] sm:$0xff] }
  0xb5   : > { %1262 = vmatmul.mubr.f32.gmra.mrb[54].mxu1 %v467_v17  ;;  %881 = vmatprep.mubr.f32.mxu0 %v470_v18  ;;  %v531_v17 = vld [vmem:[%s2242_s23 + $0x570] sm:$0xff]  ;;  %v534_v18 = vld [vmem:[%s2242_s23 + $0x588] sm:$0xff] }
  0xb6   : > { %1266 = vmatprep.mubr.f32.mxu1 %v472_v19  ;;  %v536_v19 = vld [vmem:[%s2242_s23 + $0x598] sm:$0xff] }
  0xb8   : > { %882 = vmatmul.mubr.f32.gmra.mrb[56].mxu0 %v469_v20  ;;  %v533_v20 = vld [vmem:[%s2242_s23 + $0x580] sm:$0xff] }
  0xb9   : > { %1267 = vmatmul.mubr.f32.gmra.mrb[56].mxu1 %v471_v21  ;;  %886 = vmatprep.mubr.f32.mxu0 %v474_v22  ;;  %v535_v21 = vld [vmem:[%s2242_s23 + $0x590] sm:$0xff]  ;;  %v538_v22 = vld [vmem:[%s2242_s23 + $0x5a8] sm:$0xff] }
  0xba   : > { %1271 = vmatprep.mubr.f32.mxu1 %v476_v23  ;;  %v540_v23 = vld [vmem:[%s2242_s23 + $0x5b8] sm:$0xff] }
  0xbc   : > { %887 = vmatmul.mubr.f32.gmra.mrb[58].mxu0 %v473_v24  ;;  %v537_v24 = vld [vmem:[%s2242_s23 + $0x5a0] sm:$0xff] }
  0xbd   : > { %1272 = vmatmul.mubr.f32.gmra.mrb[58].mxu1 %v475_v25  ;;  %891 = vmatprep.mubr.f32.mxu0 %v478_v26  ;;  %v539_v25 = vld [vmem:[%s2242_s23 + $0x5b0] sm:$0xff]  ;;  %v542_v26 = vld [vmem:[%s2242_s23 + $0x5c8] sm:$0xff] }
  0xbe   : > { %1276 = vmatprep.mubr.f32.mxu1 %v480_v27  ;;  %v544_v27 = vld [vmem:[%s2242_s23 + $0x5d8] sm:$0xff] }
  0xc0   : > { %892 = vmatmul.mubr.f32.gmra.mrb[60].mxu0 %v477_v28  ;;  %v541_v28 = vld [vmem:[%s2242_s23 + $0x5c0] sm:$0xff] }
  0xc1   : > { %1277 = vmatmul.mubr.f32.gmra.mrb[60].mxu1 %v479_v29  ;;  %896 = vmatprep.mubr.f32.mxu0 %v482_v30  ;;  %v543_v29 = vld [vmem:[%s2242_s23 + $0x5d0] sm:$0xff]  ;;  %v546_v30 = vld [vmem:[%s2242_s23 + $0x5e8] sm:$0xff] }
  0xc2   : > { %1281 = vmatprep.mubr.f32.mxu1 %v484_v31  ;;  %v548_v31 = vld [vmem:[%s2242_s23 + $0x5f8] sm:$0xff] }
  0xc4   : > { %897 = vmatmul.mubr.f32.gmra.mrb[62].mxu0 %v481_v32  ;;  %v545_v32 = vld [vmem:[%s2242_s23 + $0x5e0] sm:$0xff] }
  0xc5   : > { %1282 = vmatmul.mubr.f32.gmra.mrb[62].mxu1 %v483_v33  ;;  %901 = vmatprep.mubr.f32.mxu0 %v486_v34  ;;  %v547_v33 = vld [vmem:[%s2242_s23 + $0x5f0] sm:$0xff]  ;;  %v550_v34 = vld [vmem:[%s2242_s23 + $0x608] sm:$0xff] }
  0xc6   : > { %1286 = vmatprep.mubr.f32.mxu1 %v488_v35  ;;  %v552_v35 = vld [vmem:[%s2242_s23 + $0x618] sm:$0xff] }
  0xc8   : > { %902 = vmatmul.mubr.f32.gmra.mrb[64].mxu0 %v485_v36  ;;  %v549_v36 = vld [vmem:[%s2242_s23 + $0x600] sm:$0xff] }
  0xc9   : > { %1287 = vmatmul.mubr.f32.gmra.mrb[64].mxu1 %v487_v37  ;;  %906 = vmatprep.mubr.f32.mxu0 %v490_v38  ;;  %v551_v37 = vld [vmem:[%s2242_s23 + $0x610] sm:$0xff]  ;;  %v554_v38 = vld [vmem:[%s2242_s23 + $0x628] sm:$0xff] }
  0xca   : > { %1291 = vmatprep.mubr.f32.mxu1 %v492_v39  ;;  %v556_v39 = vld [vmem:[%s2242_s23 + $0x638] sm:$0xff] }
  0xcc   : > { %907 = vmatmul.mubr.f32.gmra.mrb[66].mxu0 %v489_v40  ;;  %v553_v40 = vld [vmem:[%s2242_s23 + $0x620] sm:$0xff] }
  0xcd   : > { %1292 = vmatmul.mubr.f32.gmra.mrb[66].mxu1 %v491_v41  ;;  %911 = vmatprep.mubr.f32.mxu0 %v494_v42  ;;  %v555_v41 = vld [vmem:[%s2242_s23 + $0x630] sm:$0xff]  ;;  %v558_v42 = vld [vmem:[%s2242_s23 + $0x648] sm:$0xff] }
  0xce   : > { %1296 = vmatprep.mubr.f32.mxu1 %v496_v3  ;;  %v560_v3 = vld [vmem:[%s2242_s23 + $0x658] sm:$0xff] }
  0xd0   : > { %912 = vmatmul.mubr.f32.gmra.mrb[68].mxu0 %v493_v43  ;;  %v557_v43 = vld [vmem:[%s2242_s23 + $0x640] sm:$0xff] }
  0xd1   : > { %1297 = vmatmul.mubr.f32.gmra.mrb[68].mxu1 %v495_v44  ;;  %916 = vmatprep.mubr.f32.mxu0 %v498_v45  ;;  %v559_v44 = vld [vmem:[%s2242_s23 + $0x650] sm:$0xff]  ;;  %v562_v45 = vld [vmem:[%s2242_s23 + $0x668] sm:$0xff] }
  0xd2   : > { %1301 = vmatprep.mubr.f32.mxu1 %v500_v46  ;;  %v564_v46 = vld [vmem:[%s2242_s23 + $0x678] sm:$0xff] }
  0xd4   : > { %917 = vmatmul.mubr.f32.gmra.mrb[70].mxu0 %v497_v47  ;;  %v561_v47 = vld [vmem:[%s2242_s23 + $0x660] sm:$0xff] }
  0xd5   : > { %1302 = vmatmul.mubr.f32.gmra.mrb[70].mxu1 %v499_v48  ;;  %921 = vmatprep.mubr.f32.mxu0 %v502_v49  ;;  %v563_v48 = vld [vmem:[%s2242_s23 + $0x670] sm:$0xff]  ;;  %v566_v49 = vld [vmem:[%s2242_s23 + $0x688] sm:$0xff] }
  0xd6   : > { %1306 = vmatprep.mubr.f32.mxu1 %v504_v50  ;;  %v568_v50 = vld [vmem:[%s2242_s23 + $0x698] sm:$0xff] }
  0xd8   : > { %922 = vmatmul.mubr.f32.gmra.mrb[72].mxu0 %v501_v51  ;;  %v565_v51 = vld [vmem:[%s2242_s23 + $0x680] sm:$0xff] }
  0xd9   : > { %1307 = vmatmul.mubr.f32.gmra.mrb[72].mxu1 %v503_v52  ;;  %926 = vmatprep.mubr.f32.mxu0 %v506_v53  ;;  %v567_v52 = vld [vmem:[%s2242_s23 + $0x690] sm:$0xff]  ;;  %v570_v53 = vld [vmem:[%s2242_s23 + $0x6a8] sm:$0xff] }
  0xda   : > { %1311 = vmatprep.mubr.f32.mxu1 %v508_v54  ;;  %v572_v54 = vld [vmem:[%s2242_s23 + $0x6b8] sm:$0xff] }
  0xdc   : > { %927 = vmatmul.mubr.f32.gmra.mrb[74].mxu0 %v505_v55  ;;  %v569_v55 = vld [vmem:[%s2242_s23 + $0x6a0] sm:$0xff] }
  0xdd   : > { %1312 = vmatmul.mubr.f32.gmra.mrb[74].mxu1 %v507_v56  ;;  %931 = vmatprep.mubr.f32.mxu0 %v510_v57  ;;  %v571_v56 = vld [vmem:[%s2242_s23 + $0x6b0] sm:$0xff]  ;;  %v574_v57 = vld [vmem:[%s2242_s23 + $0x6c8] sm:$0xff] }
  0xde   : > { %1316 = vmatprep.mubr.f32.mxu1 %v512_v58 }
  0xe0   : > { %932 = vmatmul.mubr.f32.gmra.mrb[76].mxu0 %v509_v59  ;;  %v576_v59 = vld [vmem:[%s2242_s23 + $0x6d8] sm:$0xff] }
  0xe1   : > { %1317 = vmatmul.mubr.f32.gmra.mrb[76].mxu1 %v511_v60  ;;  %936 = vmatprep.mubr.f32.mxu0 %v514_v61 }
  0xe2   : > { %1321 = vmatprep.mubr.f32.mxu1 %v516_v62 }
  0xe4   : > { %937 = vmatmul.mubr.f32.gmra.mrb[78].mxu0 %v513_v63 }
  0xe5   : > { %1322 = vmatmul.mubr.f32.gmra.mrb[78].mxu1 %v515_v0  ;;  %941 = vmatprep.mubr.f32.mxu0 %v518_v1  ;;  %v573_v0 = vld [vmem:[%s2242_s23 + $0x6c0] sm:$0xff]  ;;  %v575_v1 = vld [vmem:[%s2242_s23 + $0x6d0] sm:$0xff] }
  0xe6   : > { %1326 = vmatprep.mubr.f32.mxu1 %v520_v2  ;;  %v578_v2 = vld [vmem:[%s2242_s23 + $0x6e8] sm:$0xff] }
  0xe8   : > { %942 = vmatmul.mubr.f32.gmra.mrb[80].mxu0 %v517_v4 }
  0xe9   : > { %1327 = vmatmul.mubr.f32.gmra.mrb[80].mxu1 %v519_v5  ;;  %946 = vmatprep.mubr.f32.mxu0 %v522_v6  ;;  %v580_v5 = vld [vmem:[%s2242_s23 + $0x6f8] sm:$0xff] }
  0xea   : > { %1331 = vmatprep.mubr.f32.mxu1 %v524_v7 }
  0xec   : > { %947 = vmatmul.mubr.f32.gmra.mrb[82].mxu0 %v521_v8 }
  0xed   : > { %1332 = vmatmul.mubr.f32.gmra.mrb[82].mxu1 %v523_v9  ;;  %951 = vmatprep.mubr.f32.mxu0 %v526_v10  ;;  %v577_v10 = vld [vmem:[%s2242_s23 + $0x6e0] sm:$0xff] }
  0xee   : > { %1336 = vmatprep.mubr.f32.mxu1 %v528_v11  ;;  %v579_v11 = vld [vmem:[%s2242_s23 + $0x6f0] sm:$0xff] }
  0xf0   : > { %952 = vmatmul.mubr.f32.gmra.mrb[84].mxu0 %v525_v12  ;;  %v582_v12 = vld [vmem:[%s2242_s23 + $0x708] sm:$0xff] }
  0xf1   : > { %1337 = vmatmul.mubr.f32.gmra.mrb[84].mxu1 %v527_v13  ;;  %956 = vmatprep.mubr.f32.mxu0 %v530_v14  ;;  %v584_v14 = vld [vmem:[%s2242_s23 + $0x718] sm:$0xff] }
  0xf2   : > { %1341 = vmatprep.mubr.f32.mxu1 %v532_v15 }
  0xf4   : > { %957 = vmatmul.mubr.f32.gmra.mrb[86].mxu0 %v529_v16 }
  0xf5   : > { %1342 = vmatmul.mubr.f32.gmra.mrb[86].mxu1 %v531_v17  ;;  %961 = vmatprep.mubr.f32.mxu0 %v534_v18 }
  0xf6   : > { %1346 = vmatprep.mubr.f32.mxu1 %v536_v19  ;;  %v581_v19 = vld [vmem:[%s2242_s23 + $0x700] sm:$0xff] }
  0xf8   : > { %962 = vmatmul.mubr.f32.gmra.mrb[88].mxu0 %v533_v20  ;;  %v583_v20 = vld [vmem:[%s2242_s23 + $0x710] sm:$0xff] }
  0xf9   : > { %1347 = vmatmul.mubr.f32.gmra.mrb[88].mxu1 %v535_v21  ;;  %966 = vmatprep.mubr.f32.mxu0 %v538_v22  ;;  %v586_v21 = vld [vmem:[%s2242_s23 + $0x728] sm:$0xff] }
  0xfa   : > { %1351 = vmatprep.mubr.f32.mxu1 %v540_v23  ;;  %v588_v23 = vld [vmem:[%s2242_s23 + $0x738] sm:$0xff] }
  0xfc   : > { %967 = vmatmul.mubr.f32.gmra.mrb[90].mxu0 %v537_v24 }
  0xfd   : > { %1352 = vmatmul.mubr.f32.gmra.mrb[90].mxu1 %v539_v25  ;;  %971 = vmatprep.mubr.f32.mxu0 %v542_v26 }
  0xfe   : > { %1356 = vmatprep.mubr.f32.mxu1 %v544_v27 }
 0x100   : > { %972 = vmatmul.mubr.f32.gmra.mrb[92].mxu0 %v541_v28  ;;  %v585_v28 = vld [vmem:[%s2242_s23 + $0x720] sm:$0xff] }
 0x101   : > { %1357 = vmatmul.mubr.f32.gmra.mrb[92].mxu1 %v543_v29  ;;  %976 = vmatprep.mubr.f32.mxu0 %v546_v30  ;;  %v587_v29 = vld [vmem:[%s2242_s23 + $0x730] sm:$0xff]  ;;  %v590_v30 = vld [vmem:[%s2242_s23 + $0x748] sm:$0xff] }
 0x102   : > { %1361 = vmatprep.mubr.f32.mxu1 %v548_v31 }
 0x104   : > { %977 = vmatmul.mubr.f32.gmra.mrb[94].mxu0 %v545_v32  ;;  %v592_v32 = vld [vmem:[%s2242_s23 + $0x758] sm:$0xff] }
 0x105   : > { %1362 = vmatmul.mubr.f32.gmra.mrb[94].mxu1 %v547_v33  ;;  %981 = vmatprep.mubr.f32.mxu0 %v550_v34 }
 0x106   : > { %1366 = vmatprep.mubr.f32.mxu1 %v552_v35 }
 0x108   : > { %982 = vmatmul.mubr.f32.gmra.mrb[96].mxu0 %v549_v36 }
 0x109   : > { %1367 = vmatmul.mubr.f32.gmra.mrb[96].mxu1 %v551_v37  ;;  %986 = vmatprep.mubr.f32.mxu0 %v554_v38  ;;  %v589_v37 = vld [vmem:[%s2242_s23 + $0x740] sm:$0xff]  ;;  %v591_v38 = vld [vmem:[%s2242_s23 + $0x750] sm:$0xff] }
 0x10a   : > { %1371 = vmatprep.mubr.f32.mxu1 %v556_v39  ;;  %v594_v39 = vld [vmem:[%s2242_s23 + $0x768] sm:$0xff] }
 0x10c   : > { %987 = vmatmul.mubr.f32.gmra.mrb[98].mxu0 %v553_v40 }
 0x10d   : > { %1372 = vmatmul.mubr.f32.gmra.mrb[98].mxu1 %v555_v41  ;;  %991 = vmatprep.mubr.f32.mxu0 %v558_v42  ;;  %v596_v41 = vld [vmem:[%s2242_s23 + $0x778] sm:$0xff] }
 0x10e   : > { %1376 = vmatprep.mubr.f32.mxu1 %v560_v3 }
 0x110   : > { %992 = vmatmul.mubr.f32.gmra.mrb[100].mxu0 %v557_v43 }
 0x111   : > { %1377 = vmatmul.mubr.f32.gmra.mrb[100].mxu1 %v559_v44  ;;  %996 = vmatprep.mubr.f32.mxu0 %v562_v45  ;;  %v593_v45 = vld [vmem:[%s2242_s23 + $0x760] sm:$0xff] }
 0x112   : > { %1381 = vmatprep.mubr.f32.mxu1 %v564_v46  ;;  %v595_v46 = vld [vmem:[%s2242_s23 + $0x770] sm:$0xff] }
 0x114   : > { %997 = vmatmul.mubr.f32.gmra.mrb[102].mxu0 %v561_v47  ;;  %v598_v47 = vld [vmem:[%s2242_s23 + $0x788] sm:$0xff] }
 0x115   : > { %1382 = vmatmul.mubr.f32.gmra.mrb[102].mxu1 %v563_v48  ;;  %1001 = vmatprep.mubr.f32.mxu0 %v566_v49  ;;  %v600_v49 = vld [vmem:[%s2242_s23 + $0x798] sm:$0xff] }
 0x116   : > { %1386 = vmatprep.mubr.f32.mxu1 %v568_v50 }
 0x118   : > { %1002 = vmatmul.mubr.f32.gmra.mrb[104].mxu0 %v565_v51 }
 0x119   : > { %1387 = vmatmul.mubr.f32.gmra.mrb[104].mxu1 %v567_v52  ;;  %1006 = vmatprep.mubr.f32.mxu0 %v570_v53 }
 0x11a   : > { %1391 = vmatprep.mubr.f32.mxu1 %v572_v54  ;;  %v597_v54 = vld [vmem:[%s2242_s23 + $0x780] sm:$0xff] }
 0x11b   : > { %v743_v58 = vpop.f32.mrb[0].mxu0 }
 0x11c   : > { %v1128_v60 = vpop.f32.mrb[0].mxu1  ;;  %v745_v61 = vpop.f32.mrb[1].mxu0  ;;  %1007 = vmatmul.mubr.f32.gmra.mrb[106].mxu0 %v569_v55  ;;  %v599_v55 = vld [vmem:[%s2242_s23 + $0x790] sm:$0xff] }
 0x11d   : > { %v1129_v62 = vadd.f32 %v1128_v60, %v743_v58  ;;  %v1130_v63 = vpop.f32.mrb[1].mxu1  ;;  %1392 = vmatmul.mubr.f32.gmra.mrb[106].mxu1 %v571_v56  ;;  %1011 = vmatprep.mubr.f32.mxu0 %v574_v57  ;;  %v602_v56 = vld [vmem:[%s2242_s23 + $0x7a8] sm:$0xff]  ;;  %v604_v58 = vld [vmem:[%s2242_s23 + $0x7b8] sm:$0xff] }
 0x11e   : > { %1396 = vmatprep.mubr.f32.mxu1 %v576_v59  ;;  %v601_v63 = vld [vmem:[%s2242_s23 + $0x7a0] sm:$0xff] }
 0x11f   : > { %v748_v4 = vpop.f32.mrb[2].mxu0  ;;  %1511 = vst [vmem:[%s2609_s22] sm:$0xff] %v1129_v62 }
 0x120   : > { %v1133_v6 = vpop.f32.mrb[2].mxu1  ;;  %v750_v7 = vpop.f32.mrb[3].mxu0  ;;  %1012 = vmatmul.mubr.f32.gmra.mrb[108].mxu0 %v573_v0  ;;  %v603_v0 = vld [vmem:[%s2242_s23 + $0x7b0] sm:$0xff] }
 0x121   : > { %v1134_v8 = vadd.f32 %v1133_v6, %v748_v4  ;;  %v1135_v9 = vpop.f32.mrb[3].mxu1  ;;  %1397 = vmatmul.mubr.f32.gmra.mrb[108].mxu1 %v575_v1  ;;  %1016 = vmatprep.mubr.f32.mxu0 %v578_v2  ;;  %v606_v1 = vld [vmem:[%s2242_s23 + $0x7c8] sm:$0xff]  ;;  %v608_v4 = vld [vmem:[%s2242_s23 + $0x7d8] sm:$0xff] }
 0x122   : > { %1401 = vmatprep.mubr.f32.mxu1 %v580_v5  ;;  %v605_v9 = vld [vmem:[%s2242_s23 + $0x7c0] sm:$0xff] }
 0x123   : > { %v753_v13 = vpop.f32.mrb[4].mxu0  ;;  %1512 = vst [vmem:[%s2609_s22 + $0x8] sm:$0xff] %v1134_v8 }
 0x124   : > { %v1138_v15 = vpop.f32.mrb[4].mxu1  ;;  %v755_v16 = vpop.f32.mrb[5].mxu0  ;;  %1017 = vmatmul.mubr.f32.gmra.mrb[110].mxu0 %v577_v10  ;;  %v607_v10 = vld [vmem:[%s2242_s23 + $0x7d0] sm:$0xff] }
 0x125   : > { %v1139_v17 = vadd.f32 %v1138_v15, %v753_v13  ;;  %v1140_v18 = vpop.f32.mrb[5].mxu1  ;;  %1402 = vmatmul.mubr.f32.gmra.mrb[110].mxu1 %v579_v11  ;;  %1021 = vmatprep.mubr.f32.mxu0 %v582_v12  ;;  %v610_v11 = vld [vmem:[%s2242_s23 + $0x7e8] sm:$0xff]  ;;  %v612_v13 = vld [vmem:[%s2242_s23 + $0x7f8] sm:$0xff] }
 0x126   : > { %1406 = vmatprep.mubr.f32.mxu1 %v584_v14  ;;  %v609_v18 = vld [vmem:[%s2242_s23 + $0x7e0] sm:$0xff] }
 0x127   : > { %v758_v22 = vpop.f32.mrb[6].mxu0  ;;  %1513 = vst [vmem:[%s2609_s22 + $0x10] sm:$0xff] %v1139_v17 }
 0x128   : > { %v1143_v24 = vpop.f32.mrb[6].mxu1  ;;  %v760_v25 = vpop.f32.mrb[7].mxu0  ;;  %1022 = vmatmul.mubr.f32.gmra.mrb[112].mxu0 %v581_v19  ;;  %v611_v19 = vld [vmem:[%s2242_s23 + $0x7f0] sm:$0xff] }
 0x129   : > { %v1144_v26 = vadd.f32 %v1143_v24, %v758_v22  ;;  %v1145_v27 = vpop.f32.mrb[7].mxu1  ;;  %1407 = vmatmul.mubr.f32.gmra.mrb[112].mxu1 %v583_v20  ;;  %1026 = vmatprep.mubr.f32.mxu0 %v586_v21 }
 0x12a   : > { %1411 = vmatprep.mubr.f32.mxu1 %v588_v23 }
 0x12b   : > { %v763_v31 = vpop.f32.mrb[8].mxu0  ;;  %1514 = vst [vmem:[%s2609_s22 + $0x18] sm:$0xff] %v1144_v26 }
 0x12c   : > { %v1148_v33 = vpop.f32.mrb[8].mxu1  ;;  %v765_v34 = vpop.f32.mrb[9].mxu0  ;;  %1027 = vmatmul.mubr.f32.gmra.mrb[114].mxu0 %v585_v28 }
 0x12d   : > { %v1149_v35 = vadd.f32 %v1148_v33, %v763_v31  ;;  %v1150_v36 = vpop.f32.mrb[9].mxu1  ;;  %1412 = vmatmul.mubr.f32.gmra.mrb[114].mxu1 %v587_v29  ;;  %1031 = vmatprep.mubr.f32.mxu0 %v590_v30 }
 0x12e   : > { %1416 = vmatprep.mubr.f32.mxu1 %v592_v32 }
 0x12f   : > { %v768_v40 = vpop.f32.mrb[10].mxu0  ;;  %1515 = vst [vmem:[%s2609_s22 + $0x20] sm:$0xff] %v1149_v35 }
 0x130   : > { %v1153_v42 = vpop.f32.mrb[10].mxu1  ;;  %v770_v3 = vpop.f32.mrb[11].mxu0  ;;  %1032 = vmatmul.mubr.f32.gmra.mrb[116].mxu0 %v589_v37 }
 0x131   : > { %v1154_v43 = vadd.f32 %v1153_v42, %v768_v40  ;;  %v1155_v44 = vpop.f32.mrb[11].mxu1  ;;  %1417 = vmatmul.mubr.f32.gmra.mrb[116].mxu1 %v591_v38  ;;  %1036 = vmatprep.mubr.f32.mxu0 %v594_v39 }
 0x132   : > { %1421 = vmatprep.mubr.f32.mxu1 %v596_v41 }
 0x133   : > { %v773_v48 = vpop.f32.mrb[12].mxu0  ;;  %1516 = vst [vmem:[%s2609_s22 + $0x28] sm:$0xff] %v1154_v43 }
 0x134   : > { %v1158_v50 = vpop.f32.mrb[12].mxu1  ;;  %v775_v51 = vpop.f32.mrb[13].mxu0  ;;  %1037 = vmatmul.mubr.f32.gmra.mrb[118].mxu0 %v593_v45 }
 0x135   : > { %v1159_v52 = vadd.f32 %v1158_v50, %v773_v48  ;;  %v1160_v53 = vpop.f32.mrb[13].mxu1  ;;  %1422 = vmatmul.mubr.f32.gmra.mrb[118].mxu1 %v595_v46  ;;  %1041 = vmatprep.mubr.f32.mxu0 %v598_v47 }
 0x136   : > { %1426 = vmatprep.mubr.f32.mxu1 %v600_v49 }
 0x137   : > { %v778_v57 = vpop.f32.mrb[14].mxu0  ;;  %1517 = vst [vmem:[%s2609_s22 + $0x30] sm:$0xff] %v1159_v52 }
 0x138   : > { %v1163_v59 = vpop.f32.mrb[14].mxu1  ;;  %v780_v60 = vpop.f32.mrb[15].mxu0  ;;  %1042 = vmatmul.mubr.f32.gmra.mrb[120].mxu0 %v597_v54 }
 0x139   : > { %v1164_v61 = vadd.f32 %v1163_v59, %v778_v57  ;;  %v1165_v62 = vpop.f32.mrb[15].mxu1  ;;  %1427 = vmatmul.mubr.f32.gmra.mrb[120].mxu1 %v599_v55  ;;  %1046 = vmatprep.mubr.f32.mxu0 %v602_v56 }
 0x13a   : > { %1431 = vmatprep.mubr.f32.mxu1 %v604_v58 }
 0x13b   : > { %v783_v2 = vpop.f32.mrb[16].mxu0  ;;  %1518 = vst [vmem:[%s2609_s22 + $0x38] sm:$0xff] %v1164_v61 }
 0x13c   : > { %v1168_v5 = vpop.f32.mrb[16].mxu1  ;;  %v785_v6 = vpop.f32.mrb[17].mxu0  ;;  %1047 = vmatmul.mubr.f32.gmra.mrb[122].mxu0 %v601_v63 }
 0x13d   : > { %v1169_v7 = vadd.f32 %v1168_v5, %v783_v2  ;;  %v1170_v8 = vpop.f32.mrb[17].mxu1  ;;  %1432 = vmatmul.mubr.f32.gmra.mrb[122].mxu1 %v603_v0  ;;  %1051 = vmatprep.mubr.f32.mxu0 %v606_v1 }
 0x13e   : > { %1436 = vmatprep.mubr.f32.mxu1 %v608_v4 }
 0x13f   : > { %v788_v12 = vpop.f32.mrb[18].mxu0  ;;  %1519 = vst [vmem:[%s2609_s22 + $0x40] sm:$0xff] %v1169_v7 }
 0x140   : > { %v1173_v14 = vpop.f32.mrb[18].mxu1  ;;  %v790_v15 = vpop.f32.mrb[19].mxu0  ;;  %1052 = vmatmul.mubr.f32.gmra.mrb[124].mxu0 %v605_v9 }
 0x141   : > { %v1174_v16 = vadd.f32 %v1173_v14, %v788_v12  ;;  %v1175_v17 = vpop.f32.mrb[19].mxu1  ;;  %1437 = vmatmul.mubr.f32.gmra.mrb[124].mxu1 %v607_v10  ;;  %1056 = vmatprep.mubr.f32.mxu0 %v610_v11 }
 0x142   : > { %1441 = vmatprep.mubr.f32.mxu1 %v612_v13 }
 0x143   : > { %v793_v20 = vpop.f32.mrb[20].mxu0  ;;  %1520 = vst [vmem:[%s2609_s22 + $0x48] sm:$0xff] %v1174_v16 }
 0x144   : > { %v1178_v21 = vpop.f32.mrb[20].mxu1  ;;  %v795_v22 = vpop.f32.mrb[21].mxu0  ;;  %1057 = vmatmul.mubr.f32.gmra.mrb[126].mxu0 %v609_v18 }
 0x145   : > { %v1179_v23 = vadd.f32 %v1178_v21, %v793_v20  ;;  %v1180_v24 = vpop.f32.mrb[21].mxu1  ;;  %1442 = vmatmul.mubr.f32.gmra.mrb[126].mxu1 %v611_v19 }
 0x147   : > { %v798_v25 = vpop.f32.mrb[22].mxu0  ;;  %1521 = vst [vmem:[%s2609_s22 + $0x50] sm:$0xff] %v1179_v23 }
 0x148   : > { %v1183_v26 = vpop.f32.mrb[22].mxu1  ;;  %v800_v27 = vpop.f32.mrb[23].mxu0 }
 0x149   : > { %v1184_v28 = vadd.f32 %v1183_v26, %v798_v25  ;;  %v1185_v29 = vpop.f32.mrb[23].mxu1 }
 0x14b   : > { %v803_v30 = vpop.f32.mrb[24].mxu0  ;;  %1522 = vst [vmem:[%s2609_s22 + $0x58] sm:$0xff] %v1184_v28 }
 0x14c   : > { %v1188_v31 = vpop.f32.mrb[24].mxu1  ;;  %v805_v32 = vpop.f32.mrb[25].mxu0 }
 0x14d   : > { %v1189_v33 = vadd.f32 %v1188_v31, %v803_v30  ;;  %v1190_v34 = vpop.f32.mrb[25].mxu1 }
 0x14f   : > { %v808_v35 = vpop.f32.mrb[26].mxu0  ;;  %1523 = vst [vmem:[%s2609_s22 + $0x60] sm:$0xff] %v1189_v33 }
 0x150   : > { %v1193_v36 = vpop.f32.mrb[26].mxu1  ;;  %v810_v37 = vpop.f32.mrb[27].mxu0 }
 0x151   : > { %v1194_v38 = vadd.f32 %v1193_v36, %v808_v35  ;;  %v1195_v39 = vpop.f32.mrb[27].mxu1 }
 0x153   : > { %v813_v40 = vpop.f32.mrb[28].mxu0  ;;  %1524 = vst [vmem:[%s2609_s22 + $0x68] sm:$0xff] %v1194_v38 }
 0x154   : > { %v1198_v41 = vpop.f32.mrb[28].mxu1  ;;  %v815_v42 = vpop.f32.mrb[29].mxu0 }
 0x155   : > { %v1199_v3 = vadd.f32 %v1198_v41, %v813_v40  ;;  %v1200_v43 = vpop.f32.mrb[29].mxu1 }
 0x157   : > { %v818_v44 = vpop.f32.mrb[30].mxu0  ;;  %1525 = vst [vmem:[%s2609_s22 + $0x70] sm:$0xff] %v1199_v3 }
 0x158   : > { %v1203_v45 = vpop.f32.mrb[30].mxu1  ;;  %v820_v46 = vpop.f32.mrb[31].mxu0 }
 0x159   : > { %v1204_v47 = vadd.f32 %v1203_v45, %v818_v44  ;;  %v1205_v48 = vpop.f32.mrb[31].mxu1 }
 0x15b   : > { %v823_v49 = vpop.f32.mrb[32].mxu0  ;;  %1526 = vst [vmem:[%s2609_s22 + $0x78] sm:$0xff] %v1204_v47 }
 0x15c   : > { %v1208_v50 = vpop.f32.mrb[32].mxu1  ;;  %v825_v51 = vpop.f32.mrb[33].mxu0 }
 0x15d   : > { %v1209_v52 = vadd.f32 %v1208_v50, %v823_v49  ;;  %v1210_v53 = vpop.f32.mrb[33].mxu1 }
 0x15f   : > { %v828_v54 = vpop.f32.mrb[34].mxu0  ;;  %1527 = vst [vmem:[%s2609_s22 + $0x80] sm:$0xff] %v1209_v52 }
 0x160   : > { %v1213_v55 = vpop.f32.mrb[34].mxu1  ;;  %v830_v56 = vpop.f32.mrb[35].mxu0 }
 0x161   : > { %v1214_v57 = vadd.f32 %v1213_v55, %v828_v54  ;;  %v1215_v58 = vpop.f32.mrb[35].mxu1 }
 0x163   : > { %v833_v59 = vpop.f32.mrb[36].mxu0  ;;  %1528 = vst [vmem:[%s2609_s22 + $0x88] sm:$0xff] %v1214_v57 }
 0x164   : > { %v1218_v60 = vpop.f32.mrb[36].mxu1  ;;  %v835_v61 = vpop.f32.mrb[37].mxu0 }
 0x165   : > { %v1219_v62 = vadd.f32 %v1218_v60, %v833_v59  ;;  %v1220_v63 = vpop.f32.mrb[37].mxu1 }
 0x167   : > { %v838_v0 = vpop.f32.mrb[38].mxu0  ;;  %1529 = vst [vmem:[%s2609_s22 + $0x90] sm:$0xff] %v1219_v62 }
 0x168   : > { %v1223_v1 = vpop.f32.mrb[38].mxu1  ;;  %v840_v2 = vpop.f32.mrb[39].mxu0 }
 0x169   : > { %v1224_v4 = vadd.f32 %v1223_v1, %v838_v0  ;;  %v1225_v5 = vpop.f32.mrb[39].mxu1 }
 0x16b   : > { %v843_v6 = vpop.f32.mrb[40].mxu0  ;;  %1530 = vst [vmem:[%s2609_s22 + $0x98] sm:$0xff] %v1224_v4 }
 0x16c   : > { %v1228_v7 = vpop.f32.mrb[40].mxu1  ;;  %v845_v8 = vpop.f32.mrb[41].mxu0 }
 0x16d   : > { %v1229_v9 = vadd.f32 %v1228_v7, %v843_v6  ;;  %v1230_v10 = vpop.f32.mrb[41].mxu1 }
 0x16f   : > { %v848_v11 = vpop.f32.mrb[42].mxu0  ;;  %1531 = vst [vmem:[%s2609_s22 + $0xa0] sm:$0xff] %v1229_v9 }
 0x170   : > { %v1233_v12 = vpop.f32.mrb[42].mxu1  ;;  %v850_v13 = vpop.f32.mrb[43].mxu0 }
 0x171   : > { %v1234_v14 = vadd.f32 %v1233_v12, %v848_v11  ;;  %v1235_v15 = vpop.f32.mrb[43].mxu1 }
 0x173   : > { %v853_v16 = vpop.f32.mrb[44].mxu0  ;;  %1532 = vst [vmem:[%s2609_s22 + $0xa8] sm:$0xff] %v1234_v14 }
 0x174   : > { %v1238_v17 = vpop.f32.mrb[44].mxu1  ;;  %v855_v18 = vpop.f32.mrb[45].mxu0 }
 0x175   : > { %v1239_v19 = vadd.f32 %v1238_v17, %v853_v16  ;;  %v1240_v20 = vpop.f32.mrb[45].mxu1 }
 0x177   : > { %v858_v21 = vpop.f32.mrb[46].mxu0  ;;  %1533 = vst [vmem:[%s2609_s22 + $0xb0] sm:$0xff] %v1239_v19 }
 0x178   : > { %v1243_v22 = vpop.f32.mrb[46].mxu1  ;;  %v860_v23 = vpop.f32.mrb[47].mxu0 }
 0x179   : > { %v1244_v24 = vadd.f32 %v1243_v22, %v858_v21  ;;  %v1245_v25 = vpop.f32.mrb[47].mxu1 }
 0x17b   : > { %v863_v26 = vpop.f32.mrb[48].mxu0  ;;  %1534 = vst [vmem:[%s2609_s22 + $0xb8] sm:$0xff] %v1244_v24 }
 0x17c   : > { %v1248_v27 = vpop.f32.mrb[48].mxu1  ;;  %v865_v28 = vpop.f32.mrb[49].mxu0 }
 0x17d   : > { %v1249_v29 = vadd.f32 %v1248_v27, %v863_v26  ;;  %v1250_v30 = vpop.f32.mrb[49].mxu1 }
 0x17f   : > { %v868_v31 = vpop.f32.mrb[50].mxu0  ;;  %1535 = vst [vmem:[%s2609_s22 + $0xc0] sm:$0xff] %v1249_v29 }
 0x180   : > { %v1253_v32 = vpop.f32.mrb[50].mxu1  ;;  %v870_v33 = vpop.f32.mrb[51].mxu0 }
 0x181   : > { %v1254_v34 = vadd.f32 %v1253_v32, %v868_v31  ;;  %v1255_v35 = vpop.f32.mrb[51].mxu1 }
 0x183   : > { %v873_v36 = vpop.f32.mrb[52].mxu0  ;;  %1536 = vst [vmem:[%s2609_s22 + $0xc8] sm:$0xff] %v1254_v34 }
 0x184   : > { %v1258_v37 = vpop.f32.mrb[52].mxu1  ;;  %v875_v38 = vpop.f32.mrb[53].mxu0 }
 0x185   : > { %v1259_v39 = vadd.f32 %v1258_v37, %v873_v36  ;;  %v1260_v40 = vpop.f32.mrb[53].mxu1 }
 0x187   : > { %v878_v41 = vpop.f32.mrb[54].mxu0  ;;  %1537 = vst [vmem:[%s2609_s22 + $0xd0] sm:$0xff] %v1259_v39 }
 0x188   : > { %v1263_v42 = vpop.f32.mrb[54].mxu1  ;;  %v880_v3 = vpop.f32.mrb[55].mxu0 }
 0x189   : > { %v1264_v43 = vadd.f32 %v1263_v42, %v878_v41  ;;  %v1265_v44 = vpop.f32.mrb[55].mxu1 }
 0x18b   : > { %v883_v45 = vpop.f32.mrb[56].mxu0  ;;  %1538 = vst [vmem:[%s2609_s22 + $0xd8] sm:$0xff] %v1264_v43 }
 0x18c   : > { %v1268_v46 = vpop.f32.mrb[56].mxu1  ;;  %v885_v47 = vpop.f32.mrb[57].mxu0 }
 0x18d   : > { %v1269_v48 = vadd.f32 %v1268_v46, %v883_v45  ;;  %v1270_v49 = vpop.f32.mrb[57].mxu1 }
 0x18f   : > { %v888_v50 = vpop.f32.mrb[58].mxu0  ;;  %1539 = vst [vmem:[%s2609_s22 + $0xe0] sm:$0xff] %v1269_v48 }
 0x190   : > { %v1273_v51 = vpop.f32.mrb[58].mxu1  ;;  %v890_v52 = vpop.f32.mrb[59].mxu0 }
 0x191   : > { %v1274_v53 = vadd.f32 %v1273_v51, %v888_v50  ;;  %v1275_v54 = vpop.f32.mrb[59].mxu1 }
 0x193   : > { %v893_v55 = vpop.f32.mrb[60].mxu0  ;;  %1540 = vst [vmem:[%s2609_s22 + $0xe8] sm:$0xff] %v1274_v53 }
 0x194   : > { %v1278_v56 = vpop.f32.mrb[60].mxu1  ;;  %v895_v57 = vpop.f32.mrb[61].mxu0 }
 0x195   : > { %v1279_v58 = vadd.f32 %v1278_v56, %v893_v55  ;;  %v1280_v59 = vpop.f32.mrb[61].mxu1 }
 0x197   : > { %v898_v60 = vpop.f32.mrb[62].mxu0  ;;  %1541 = vst [vmem:[%s2609_s22 + $0xf0] sm:$0xff] %v1279_v58 }
 0x198   : > { %v1283_v61 = vpop.f32.mrb[62].mxu1  ;;  %v900_v62 = vpop.f32.mrb[63].mxu0 }
 0x199   : > { %v1284_v63 = vadd.f32 %v1283_v61, %v898_v60  ;;  %v1285_v0 = vpop.f32.mrb[63].mxu1 }
 0x19b   : > { %v903_v1 = vpop.f32.mrb[64].mxu0  ;;  %1542 = vst [vmem:[%s2609_s22 + $0xf8] sm:$0xff] %v1284_v63 }
 0x19c   : > { %v1288_v2 = vpop.f32.mrb[64].mxu1  ;;  %v905_v4 = vpop.f32.mrb[65].mxu0 }
 0x19d   : > { %v1289_v5 = vadd.f32 %v1288_v2, %v903_v1  ;;  %v1290_v6 = vpop.f32.mrb[65].mxu1 }
 0x19f   : > { %v908_v7 = vpop.f32.mrb[66].mxu0  ;;  %1543 = vst [vmem:[%s2609_s22 + $0x100] sm:$0xff] %v1289_v5 }
 0x1a0   : > { %v1293_v8 = vpop.f32.mrb[66].mxu1  ;;  %v910_v9 = vpop.f32.mrb[67].mxu0 }
 0x1a1   : > { %v1294_v10 = vadd.f32 %v1293_v8, %v908_v7  ;;  %v1295_v11 = vpop.f32.mrb[67].mxu1 }
 0x1a3   : > { %v913_v12 = vpop.f32.mrb[68].mxu0  ;;  %1544 = vst [vmem:[%s2609_s22 + $0x108] sm:$0xff] %v1294_v10 }
 0x1a4   : > { %v1298_v13 = vpop.f32.mrb[68].mxu1  ;;  %v915_v14 = vpop.f32.mrb[69].mxu0 }
 0x1a5   : > { %v1299_v15 = vadd.f32 %v1298_v13, %v913_v12  ;;  %v1300_v16 = vpop.f32.mrb[69].mxu1 }
 0x1a7   : > { %v918_v17 = vpop.f32.mrb[70].mxu0  ;;  %1545 = vst [vmem:[%s2609_s22 + $0x110] sm:$0xff] %v1299_v15 }
 0x1a8   : > { %v1303_v18 = vpop.f32.mrb[70].mxu1  ;;  %v920_v19 = vpop.f32.mrb[71].mxu0 }
 0x1a9   : > { %v1304_v20 = vadd.f32 %v1303_v18, %v918_v17  ;;  %v1305_v21 = vpop.f32.mrb[71].mxu1 }
 0x1ab   : > { %v923_v22 = vpop.f32.mrb[72].mxu0  ;;  %1546 = vst [vmem:[%s2609_s22 + $0x118] sm:$0xff] %v1304_v20 }
 0x1ac   : > { %v1308_v23 = vpop.f32.mrb[72].mxu1  ;;  %v925_v24 = vpop.f32.mrb[73].mxu0 }
 0x1ad   : > { %v1309_v25 = vadd.f32 %v1308_v23, %v923_v22  ;;  %v1310_v26 = vpop.f32.mrb[73].mxu1 }
 0x1af   : > { %v928_v27 = vpop.f32.mrb[74].mxu0  ;;  %1547 = vst [vmem:[%s2609_s22 + $0x120] sm:$0xff] %v1309_v25 }
 0x1b0   : > { %v1313_v28 = vpop.f32.mrb[74].mxu1  ;;  %v930_v29 = vpop.f32.mrb[75].mxu0 }
 0x1b1   : > { %v1314_v30 = vadd.f32 %v1313_v28, %v928_v27  ;;  %v1315_v31 = vpop.f32.mrb[75].mxu1 }
 0x1b3   : > { %v933_v32 = vpop.f32.mrb[76].mxu0  ;;  %1548 = vst [vmem:[%s2609_s22 + $0x128] sm:$0xff] %v1314_v30 }
 0x1b4   : > { %v1318_v33 = vpop.f32.mrb[76].mxu1  ;;  %v935_v34 = vpop.f32.mrb[77].mxu0 }
 0x1b5   : > { %v1319_v35 = vadd.f32 %v1318_v33, %v933_v32  ;;  %v1320_v36 = vpop.f32.mrb[77].mxu1 }
 0x1b7   : > { %v938_v37 = vpop.f32.mrb[78].mxu0  ;;  %1549 = vst [vmem:[%s2609_s22 + $0x130] sm:$0xff] %v1319_v35 }
 0x1b8   : > { %v1323_v38 = vpop.f32.mrb[78].mxu1  ;;  %v940_v39 = vpop.f32.mrb[79].mxu0 }
 0x1b9   : > { %v1324_v40 = vadd.f32 %v1323_v38, %v938_v37  ;;  %v1325_v41 = vpop.f32.mrb[79].mxu1 }
 0x1bb   : > { %v943_v42 = vpop.f32.mrb[80].mxu0  ;;  %1550 = vst [vmem:[%s2609_s22 + $0x138] sm:$0xff] %v1324_v40 }
 0x1bc   : > { %v1328_v3 = vpop.f32.mrb[80].mxu1  ;;  %v945_v43 = vpop.f32.mrb[81].mxu0 }
 0x1bd   : > { %v1329_v44 = vadd.f32 %v1328_v3, %v943_v42  ;;  %v1330_v45 = vpop.f32.mrb[81].mxu1 }
 0x1bf   : > { %v948_v46 = vpop.f32.mrb[82].mxu0  ;;  %1551 = vst [vmem:[%s2609_s22 + $0x140] sm:$0xff] %v1329_v44 }
 0x1c0   : > { %v1333_v47 = vpop.f32.mrb[82].mxu1  ;;  %v950_v48 = vpop.f32.mrb[83].mxu0 }
 0x1c1   : > { %v1334_v49 = vadd.f32 %v1333_v47, %v948_v46  ;;  %v1335_v50 = vpop.f32.mrb[83].mxu1 }
 0x1c3   : > { %v953_v51 = vpop.f32.mrb[84].mxu0  ;;  %1552 = vst [vmem:[%s2609_s22 + $0x148] sm:$0xff] %v1334_v49 }
 0x1c4   : > { %v1338_v52 = vpop.f32.mrb[84].mxu1  ;;  %v955_v53 = vpop.f32.mrb[85].mxu0 }
 0x1c5   : > { %v1339_v54 = vadd.f32 %v1338_v52, %v953_v51  ;;  %v1340_v55 = vpop.f32.mrb[85].mxu1 }
 0x1c7   : > { %v958_v56 = vpop.f32.mrb[86].mxu0  ;;  %1553 = vst [vmem:[%s2609_s22 + $0x150] sm:$0xff] %v1339_v54 }
 0x1c8   : > { %v1343_v57 = vpop.f32.mrb[86].mxu1  ;;  %v960_v58 = vpop.f32.mrb[87].mxu0 }
 0x1c9   : > { %v1344_v59 = vadd.f32 %v1343_v57, %v958_v56  ;;  %v1345_v60 = vpop.f32.mrb[87].mxu1 }
 0x1cb   : > { %v963_v61 = vpop.f32.mrb[88].mxu0  ;;  %1554 = vst [vmem:[%s2609_s22 + $0x158] sm:$0xff] %v1344_v59 }
 0x1cc   : > { %v1348_v62 = vpop.f32.mrb[88].mxu1  ;;  %v965_v63 = vpop.f32.mrb[89].mxu0 }
 0x1cd   : > { %v1349_v0 = vadd.f32 %v1348_v62, %v963_v61  ;;  %v1350_v1 = vpop.f32.mrb[89].mxu1 }
 0x1cf   : > { %v968_v2 = vpop.f32.mrb[90].mxu0  ;;  %1555 = vst [vmem:[%s2609_s22 + $0x160] sm:$0xff] %v1349_v0 }
 0x1d0   : > { %v1353_v4 = vpop.f32.mrb[90].mxu1  ;;  %v970_v5 = vpop.f32.mrb[91].mxu0 }
 0x1d1   : > { %v1354_v6 = vadd.f32 %v1353_v4, %v968_v2  ;;  %v1355_v7 = vpop.f32.mrb[91].mxu1 }
 0x1d3   : > { %v973_v8 = vpop.f32.mrb[92].mxu0  ;;  %1556 = vst [vmem:[%s2609_s22 + $0x168] sm:$0xff] %v1354_v6 }
 0x1d4   : > { %v1358_v9 = vpop.f32.mrb[92].mxu1  ;;  %v975_v10 = vpop.f32.mrb[93].mxu0 }
 0x1d5   : > { %v1359_v11 = vadd.f32 %v1358_v9, %v973_v8  ;;  %v1360_v12 = vpop.f32.mrb[93].mxu1 }
 0x1d7   : > { %v978_v13 = vpop.f32.mrb[94].mxu0  ;;  %1557 = vst [vmem:[%s2609_s22 + $0x170] sm:$0xff] %v1359_v11 }
 0x1d8   : > { %v1363_v14 = vpop.f32.mrb[94].mxu1  ;;  %v980_v15 = vpop.f32.mrb[95].mxu0 }
 0x1d9   : > { %v1364_v16 = vadd.f32 %v1363_v14, %v978_v13  ;;  %v1365_v17 = vpop.f32.mrb[95].mxu1 }
 0x1db   : > { %v983_v18 = vpop.f32.mrb[96].mxu0  ;;  %1558 = vst [vmem:[%s2609_s22 + $0x178] sm:$0xff] %v1364_v16 }
 0x1dc   : > { %v1368_v19 = vpop.f32.mrb[96].mxu1  ;;  %v985_v20 = vpop.f32.mrb[97].mxu0 }
 0x1dd   : > { %v1369_v21 = vadd.f32 %v1368_v19, %v983_v18  ;;  %v1370_v22 = vpop.f32.mrb[97].mxu1 }
 0x1df   : > { %v988_v23 = vpop.f32.mrb[98].mxu0  ;;  %1559 = vst [vmem:[%s2609_s22 + $0x180] sm:$0xff] %v1369_v21 }
 0x1e0   : > { %v1373_v24 = vpop.f32.mrb[98].mxu1  ;;  %v990_v25 = vpop.f32.mrb[99].mxu0 }
 0x1e1   : > { %v1374_v26 = vadd.f32 %v1373_v24, %v988_v23  ;;  %v1375_v27 = vpop.f32.mrb[99].mxu1 }
 0x1e3   : > { %v993_v28 = vpop.f32.mrb[100].mxu0  ;;  %1560 = vst [vmem:[%s2609_s22 + $0x188] sm:$0xff] %v1374_v26 }
 0x1e4   : > { %v1378_v29 = vpop.f32.mrb[100].mxu1  ;;  %v995_v30 = vpop.f32.mrb[101].mxu0 }
 0x1e5   : > { %v1379_v31 = vadd.f32 %v1378_v29, %v993_v28  ;;  %v1380_v32 = vpop.f32.mrb[101].mxu1 }
 0x1e7   : > { %v998_v33 = vpop.f32.mrb[102].mxu0  ;;  %1561 = vst [vmem:[%s2609_s22 + $0x190] sm:$0xff] %v1379_v31 }
 0x1e8   : > { %v1383_v34 = vpop.f32.mrb[102].mxu1  ;;  %v1000_v35 = vpop.f32.mrb[103].mxu0 }
 0x1e9   : > { %v1384_v36 = vadd.f32 %v1383_v34, %v998_v33  ;;  %v1385_v37 = vpop.f32.mrb[103].mxu1  ;;  %v2112_v34 = vmov (%p1575_p5), 0.0  }
 0x1ea   : > { %1580 = vst [vmem:[%s2806_s3] sm:$0xff] (%p1575_p5), %v2112_v34 }
 0x1eb   : > { %v1003_v38 = vpop.f32.mrb[104].mxu0  ;;  %1562 = vst [vmem:[%s2609_s22 + $0x198] sm:$0xff] %v1384_v36 }
 0x1ec   : > { %v1388_v39 = vpop.f32.mrb[104].mxu1  ;;  %v1005_v40 = vpop.f32.mrb[105].mxu0 }
 0x1ed   : > { %v1389_v41 = vadd.f32 %v1388_v39, %v1003_v38  ;;  %v1390_v42 = vpop.f32.mrb[105].mxu1 }
 0x1ef   : > { %v1008_v3 = vpop.f32.mrb[106].mxu0  ;;  %1563 = vst [vmem:[%s2609_s22 + $0x1a0] sm:$0xff] %v1389_v41 }
 0x1f0   : > { %v1393_v43 = vpop.f32.mrb[106].mxu1  ;;  %v1010_v44 = vpop.f32.mrb[107].mxu0 }
 0x1f1   : > { %v1394_v45 = vadd.f32 %v1393_v43, %v1008_v3  ;;  %v1395_v46 = vpop.f32.mrb[107].mxu1 }
 0x1f3   : > { %v1013_v47 = vpop.f32.mrb[108].mxu0  ;;  %1564 = vst [vmem:[%s2609_s22 + $0x1a8] sm:$0xff] %v1394_v45 }
 0x1f4   : > { %v1398_v48 = vpop.f32.mrb[108].mxu1  ;;  %v1015_v49 = vpop.f32.mrb[109].mxu0 }
 0x1f5   : > { %v1399_v50 = vadd.f32 %v1398_v48, %v1013_v47  ;;  %v1400_v51 = vpop.f32.mrb[109].mxu1 }
 0x1f7   : > { %v1018_v52 = vpop.f32.mrb[110].mxu0  ;;  %1565 = vst [vmem:[%s2609_s22 + $0x1b0] sm:$0xff] %v1399_v50 }
 0x1f8   : > { %v1403_v53 = vpop.f32.mrb[110].mxu1  ;;  %v1020_v54 = vpop.f32.mrb[111].mxu0 }
 0x1f9   : > { %v1404_v55 = vadd.f32 %v1403_v53, %v1018_v52  ;;  %v1405_v56 = vpop.f32.mrb[111].mxu1 }
 0x1fb   : > { %v1023_v57 = vpop.f32.mrb[112].mxu0  ;;  %1566 = vst [vmem:[%s2609_s22 + $0x1b8] sm:$0xff] %v1404_v55 }
 0x1fc   : > { %v1408_v58 = vpop.f32.mrb[112].mxu1  ;;  %v1025_v59 = vpop.f32.mrb[113].mxu0 }
 0x1fd   : > { %v1409_v60 = vadd.f32 %v1408_v58, %v1023_v57  ;;  %v1410_v61 = vpop.f32.mrb[113].mxu1 }
 0x1ff   : > { %v1028_v62 = vpop.f32.mrb[114].mxu0  ;;  %1567 = vst [vmem:[%s2609_s22 + $0x1c0] sm:$0xff] %v1409_v60 }
 0x200   : > { %v1413_v63 = vpop.f32.mrb[114].mxu1  ;;  %v1030_v0 = vpop.f32.mrb[115].mxu0 }
 0x201   : > { %v1414_v1 = vadd.f32 %v1413_v63, %v1028_v62  ;;  %v1415_v2 = vpop.f32.mrb[115].mxu1 }
 0x203   : > { %v1033_v4 = vpop.f32.mrb[116].mxu0  ;;  %1568 = vst [vmem:[%s2609_s22 + $0x1c8] sm:$0xff] %v1414_v1 }
 0x204   : > { %v1418_v5 = vpop.f32.mrb[116].mxu1  ;;  %v1035_v6 = vpop.f32.mrb[117].mxu0 }
 0x205   : > { %v1419_v7 = vadd.f32 %v1418_v5, %v1033_v4  ;;  %v1420_v8 = vpop.f32.mrb[117].mxu1 }
 0x207   : > { %v1038_v9 = vpop.f32.mrb[118].mxu0  ;;  %1569 = vst [vmem:[%s2609_s22 + $0x1d0] sm:$0xff] %v1419_v7 }
 0x208   : > { %v1423_v10 = vpop.f32.mrb[118].mxu1  ;;  %v1040_v11 = vpop.f32.mrb[119].mxu0 }
 0x209   : > { %v1424_v12 = vadd.f32 %v1423_v10, %v1038_v9  ;;  %v1425_v13 = vpop.f32.mrb[119].mxu1 }
 0x20b   : > { %v1043_v14 = vpop.f32.mrb[120].mxu0  ;;  %1570 = vst [vmem:[%s2609_s22 + $0x1d8] sm:$0xff] %v1424_v12 }
 0x20c   : > { %v1428_v15 = vpop.f32.mrb[120].mxu1  ;;  %v1045_v16 = vpop.f32.mrb[121].mxu0 }
 0x20d   : > { %v1429_v17 = vadd.f32 %v1428_v15, %v1043_v14  ;;  %v1430_v18 = vpop.f32.mrb[121].mxu1 }
 0x20f   : > { %v1048_v19 = vpop.f32.mrb[122].mxu0  ;;  %1571 = vst [vmem:[%s2609_s22 + $0x1e0] sm:$0xff] %v1429_v17 }
 0x210   : > { %v1433_v20 = vpop.f32.mrb[122].mxu1  ;;  %v1050_v21 = vpop.f32.mrb[123].mxu0 }
 0x211   : > { %v1434_v22 = vadd.f32 %v1433_v20, %v1048_v19  ;;  %v1435_v23 = vpop.f32.mrb[123].mxu1 }
 0x213   : > { %v1053_v24 = vpop.f32.mrb[124].mxu0  ;;  %1572 = vst [vmem:[%s2609_s22 + $0x1e8] sm:$0xff] %v1434_v22 }
 0x214   : > { %v1438_v25 = vpop.f32.mrb[124].mxu1  ;;  %v1055_v26 = vpop.f32.mrb[125].mxu0 }
 0x215   : > { %v1439_v27 = vadd.f32 %v1438_v25, %v1053_v24  ;;  %v1440_v28 = vpop.f32.mrb[125].mxu1  ;;  %1579 = sbr.rel (!%p1575_p5) target bundleno = 540 (0x21c), region = 36 }
 0x217   : > { %v1058_v29 = vpop.f32.mrb[126].mxu0  ;;  %1573 = vst [vmem:[%s2609_s22 + $0x1f0] sm:$0xff] %v1439_v27 }
 0x218   : > { %v1443_v30 = vpop.f32.mrb[126].mxu1  ;;  %v1060_v31 = vpop.f32.mrb[127].mxu0 }
 0x219   : > { %v1444_v32 = vadd.f32 %v1443_v30, %v1058_v29  ;;  %v1445_v33 = vpop.f32.mrb[127].mxu1 }
 0x21b   : > { %1574 = vst [vmem:[%s2609_s22 + $0x1f8] sm:$0xff] %v1444_v32 }
 0x21c PF: > { %v1584_v35 = vld [vmem:[%s2609_s22] sm:$0xff]  ;;  %v1585_v36 = vld [vmem:[%s2609_s22 + $0x8] sm:$0xff]  ;;  %v1586_v37 = vld [vmem:[%s2609_s22 + $0x10] sm:$0xff] }
 0x21d   : > { %v1587_v38 = vld [vmem:[%s2609_s22 + $0x18] sm:$0xff]  ;;  %v1649_v39 = vadd.f32 %v1585_v36, %v1584_v35  ;;  %v1721_v40 = vmul.f32 %v1584_v35, %v1584_v35  ;;  %v1722_v41 = vmul.f32 %v1585_v36, %v1585_v36  ;;  %v1723_v42 = vmul.f32 %v1586_v37, %v1586_v37  ;;  %v1588_v3 = vld [vmem:[%s2609_s22 + $0x20] sm:$0xff]  ;;  %v1589_v46 = vld [vmem:[%s2609_s22 + $0x28] sm:$0xff] }
 0x21e   : > { %v1724_v44 = vmul.f32 %v1587_v38, %v1587_v38  ;;  %v1725_v48 = vmul.f32 %v1588_v3, %v1588_v3  ;;  %v1590_v50 = vld [vmem:[%s2609_s22 + $0x30] sm:$0xff]  ;;  %v1726_v52 = vmul.f32 %v1589_v46, %v1589_v46  ;;  %v1591_v54 = vld [vmem:[%s2609_s22 + $0x38] sm:$0xff]  ;;  %v1592_v58 = vld [vmem:[%s2609_s22 + $0x40] sm:$0xff] }
 0x21f   : > { %v1650_v43 = vadd.f32 %v1649_v39, %v1586_v37  ;;  %v1785_v45 = vadd.f32 %v1722_v41, %v1721_v40  ;;  %v1727_v56 = vmul.f32 %v1590_v50, %v1590_v50  ;;  %v1728_v60 = vmul.f32 %v1591_v54, %v1591_v54  ;;  %v1593_v62 = vld [vmem:[%s2609_s22 + $0x48] sm:$0xff]  ;;  %v1594_v2 = vld [vmem:[%s2609_s22 + $0x50] sm:$0xff]  ;;  %v1595_v7 = vld [vmem:[%s2609_s22 + $0x58] sm:$0xff] }
 0x220   : > { %v1729_v0 = vmul.f32 %v1592_v58, %v1592_v58  ;;  %v1730_v5 = vmul.f32 %v1593_v62, %v1593_v62  ;;  %v1731_v9 = vmul.f32 %v1594_v2, %v1594_v2  ;;  %v1596_v11 = vld [vmem:[%s2609_s22 + $0x60] sm:$0xff]  ;;  %v1732_v13 = vmul.f32 %v1595_v7, %v1595_v7  ;;  %v1597_v15 = vld [vmem:[%s2609_s22 + $0x68] sm:$0xff]  ;;  %v1598_v19 = vld [vmem:[%s2609_s22 + $0x70] sm:$0xff] }
 0x221   : > { %v1651_v47 = vadd.f32 %v1650_v43, %v1587_v38  ;;  %v1786_v49 = vadd.f32 %v1785_v45, %v1723_v42  ;;  %v1733_v17 = vmul.f32 %v1596_v11, %v1596_v11  ;;  %v1734_v21 = vmul.f32 %v1597_v15, %v1597_v15  ;;  %v1599_v23 = vld [vmem:[%s2609_s22 + $0x78] sm:$0xff]  ;;  %v1600_v27 = vld [vmem:[%s2609_s22 + $0x80] sm:$0xff]  ;;  %v1601_v31 = vld [vmem:[%s2609_s22 + $0x88] sm:$0xff] }
 0x222   : > { %v1735_v25 = vmul.f32 %v1598_v19, %v1598_v19  ;;  %v1736_v29 = vmul.f32 %v1599_v23, %v1599_v23  ;;  %v1737_v33 = vmul.f32 %v1600_v27, %v1600_v27  ;;  %v1602_v35 = vld [vmem:[%s2609_s22 + $0x90] sm:$0xff]  ;;  %v1738_v37 = vmul.f32 %v1601_v31, %v1601_v31  ;;  %v1603_v39 = vld [vmem:[%s2609_s22 + $0x98] sm:$0xff] }
 0x223   : > { %v1652_v51 = vadd.f32 %v1651_v47, %v1588_v3  ;;  %v1787_v53 = vadd.f32 %v1786_v49, %v1724_v44  ;;  %v1739_v41 = vmul.f32 %v1602_v35, %v1602_v35  ;;  %v1604_v3 = vld [vmem:[%s2609_s22 + $0xa0] sm:$0xff]  ;;  %v1740_v44 = vmul.f32 %v1603_v39, %v1603_v39 }
 0x225   : > { %v1653_v55 = vadd.f32 %v1652_v51, %v1589_v46  ;;  %v1788_v57 = vadd.f32 %v1787_v53, %v1725_v48  ;;  %v1605_v46 = vld [vmem:[%s2609_s22 + $0xa8] sm:$0xff]  ;;  %v1741_v48 = vmul.f32 %v1604_v3, %v1604_v3 }
 0x227   : > { %v1654_v59 = vadd.f32 %v1653_v55, %v1590_v50  ;;  %v1789_v61 = vadd.f32 %v1788_v57, %v1726_v52  ;;  %v1606_v50 = vld [vmem:[%s2609_s22 + $0xb0] sm:$0xff]  ;;  %v1742_v52 = vmul.f32 %v1605_v46, %v1605_v46 }
 0x229   : > { %v1655_v63 = vadd.f32 %v1654_v59, %v1591_v54  ;;  %v1790_v1 = vadd.f32 %v1789_v61, %v1727_v56  ;;  %v1607_v54 = vld [vmem:[%s2609_s22 + $0xb8] sm:$0xff]  ;;  %v1743_v56 = vmul.f32 %v1606_v50, %v1606_v50 }
 0x22b   : > { %v1656_v4 = vadd.f32 %v1655_v63, %v1592_v58  ;;  %v1791_v6 = vadd.f32 %v1790_v1, %v1728_v60  ;;  %v1608_v58 = vld [vmem:[%s2609_s22 + $0xc0] sm:$0xff]  ;;  %v1744_v60 = vmul.f32 %v1607_v54, %v1607_v54 }
 0x22d   : > { %v1657_v8 = vadd.f32 %v1656_v4, %v1593_v62  ;;  %v1792_v10 = vadd.f32 %v1791_v6, %v1729_v0  ;;  %v1609_v62 = vld [vmem:[%s2609_s22 + $0xc8] sm:$0xff]  ;;  %v1745_v0 = vmul.f32 %v1608_v58, %v1608_v58 }
 0x22f   : > { %v1658_v12 = vadd.f32 %v1657_v8, %v1594_v2  ;;  %v1793_v14 = vadd.f32 %v1792_v10, %v1730_v5  ;;  %v1610_v2 = vld [vmem:[%s2609_s22 + $0xd0] sm:$0xff]  ;;  %v1746_v5 = vmul.f32 %v1609_v62, %v1609_v62 }
 0x231   : > { %v1659_v16 = vadd.f32 %v1658_v12, %v1595_v7  ;;  %v1794_v18 = vadd.f32 %v1793_v14, %v1731_v9  ;;  %v1611_v7 = vld [vmem:[%s2609_s22 + $0xd8] sm:$0xff]  ;;  %v1747_v9 = vmul.f32 %v1610_v2, %v1610_v2 }
 0x233   : > { %v1660_v20 = vadd.f32 %v1659_v16, %v1596_v11  ;;  %v1795_v22 = vadd.f32 %v1794_v18, %v1732_v13  ;;  %v1612_v11 = vld [vmem:[%s2609_s22 + $0xe0] sm:$0xff]  ;;  %v1748_v13 = vmul.f32 %v1611_v7, %v1611_v7 }
 0x235   : > { %v1661_v24 = vadd.f32 %v1660_v20, %v1597_v15  ;;  %v1796_v26 = vadd.f32 %v1795_v22, %v1733_v17  ;;  %v1613_v15 = vld [vmem:[%s2609_s22 + $0xe8] sm:$0xff]  ;;  %v1749_v17 = vmul.f32 %v1612_v11, %v1612_v11 }
 0x237   : > { %v1662_v28 = vadd.f32 %v1661_v24, %v1598_v19  ;;  %v1797_v30 = vadd.f32 %v1796_v26, %v1734_v21  ;;  %v1614_v19 = vld [vmem:[%s2609_s22 + $0xf0] sm:$0xff]  ;;  %v1750_v21 = vmul.f32 %v1613_v15, %v1613_v15 }
 0x239   : > { %v1663_v32 = vadd.f32 %v1662_v28, %v1599_v23  ;;  %v1798_v34 = vadd.f32 %v1797_v30, %v1735_v25  ;;  %v1615_v23 = vld [vmem:[%s2609_s22 + $0xf8] sm:$0xff]  ;;  %v1751_v25 = vmul.f32 %v1614_v19, %v1614_v19 }
 0x23b   : > { %v1664_v36 = vadd.f32 %v1663_v32, %v1600_v27  ;;  %v1799_v38 = vadd.f32 %v1798_v34, %v1736_v29  ;;  %v1616_v27 = vld [vmem:[%s2609_s22 + $0x100] sm:$0xff]  ;;  %v1752_v29 = vmul.f32 %v1615_v23, %v1615_v23 }
 0x23d   : > { %v1665_v40 = vadd.f32 %v1664_v36, %v1601_v31  ;;  %v1800_v42 = vadd.f32 %v1799_v38, %v1737_v33  ;;  %v1617_v31 = vld [vmem:[%s2609_s22 + $0x108] sm:$0xff]  ;;  %v1753_v33 = vmul.f32 %v1616_v27, %v1616_v27 }
 0x23f   : > { %v1666_v43 = vadd.f32 %v1665_v40, %v1602_v35  ;;  %v1801_v45 = vadd.f32 %v1800_v42, %v1738_v37  ;;  %v1618_v35 = vld [vmem:[%s2609_s22 + $0x110] sm:$0xff]  ;;  %v1754_v37 = vmul.f32 %v1617_v31, %v1617_v31 }
 0x241   : > { %v1667_v47 = vadd.f32 %v1666_v43, %v1603_v39  ;;  %v1802_v49 = vadd.f32 %v1801_v45, %v1739_v41  ;;  %v1619_v39 = vld [vmem:[%s2609_s22 + $0x118] sm:$0xff]  ;;  %v1755_v41 = vmul.f32 %v1618_v35, %v1618_v35 }
 0x243   : > { %v1668_v51 = vadd.f32 %v1667_v47, %v1604_v3  ;;  %v1803_v53 = vadd.f32 %v1802_v49, %v1740_v44  ;;  %v1620_v3 = vld [vmem:[%s2609_s22 + $0x120] sm:$0xff]  ;;  %v1756_v44 = vmul.f32 %v1619_v39, %v1619_v39 }
 0x245   : > { %v1669_v55 = vadd.f32 %v1668_v51, %v1605_v46  ;;  %v1804_v57 = vadd.f32 %v1803_v53, %v1741_v48  ;;  %v1621_v46 = vld [vmem:[%s2609_s22 + $0x128] sm:$0xff]  ;;  %v1757_v48 = vmul.f32 %v1620_v3, %v1620_v3 }
 0x247   : > { %v1670_v59 = vadd.f32 %v1669_v55, %v1606_v50  ;;  %v1805_v61 = vadd.f32 %v1804_v57, %v1742_v52  ;;  %v1622_v50 = vld [vmem:[%s2609_s22 + $0x130] sm:$0xff]  ;;  %v1758_v52 = vmul.f32 %v1621_v46, %v1621_v46 }
 0x249   : > { %v1671_v63 = vadd.f32 %v1670_v59, %v1607_v54  ;;  %v1806_v1 = vadd.f32 %v1805_v61, %v1743_v56  ;;  %v1623_v54 = vld [vmem:[%s2609_s22 + $0x138] sm:$0xff]  ;;  %v1759_v56 = vmul.f32 %v1622_v50, %v1622_v50 }
 0x24b   : > { %v1672_v4 = vadd.f32 %v1671_v63, %v1608_v58  ;;  %v1807_v6 = vadd.f32 %v1806_v1, %v1744_v60  ;;  %v1624_v58 = vld [vmem:[%s2609_s22 + $0x140] sm:$0xff]  ;;  %v1760_v60 = vmul.f32 %v1623_v54, %v1623_v54 }
 0x24d   : > { %v1673_v8 = vadd.f32 %v1672_v4, %v1609_v62  ;;  %v1808_v10 = vadd.f32 %v1807_v6, %v1745_v0  ;;  %v1625_v62 = vld [vmem:[%s2609_s22 + $0x148] sm:$0xff]  ;;  %v1761_v0 = vmul.f32 %v1624_v58, %v1624_v58 }
 0x24f   : > { %v1674_v12 = vadd.f32 %v1673_v8, %v1610_v2  ;;  %v1809_v14 = vadd.f32 %v1808_v10, %v1746_v5  ;;  %v1626_v2 = vld [vmem:[%s2609_s22 + $0x150] sm:$0xff]  ;;  %v1762_v5 = vmul.f32 %v1625_v62, %v1625_v62 }
 0x251   : > { %v1675_v16 = vadd.f32 %v1674_v12, %v1611_v7  ;;  %v1810_v18 = vadd.f32 %v1809_v14, %v1747_v9  ;;  %v1627_v7 = vld [vmem:[%s2609_s22 + $0x158] sm:$0xff]  ;;  %v1763_v9 = vmul.f32 %v1626_v2, %v1626_v2 }
 0x253   : > { %v1676_v20 = vadd.f32 %v1675_v16, %v1612_v11  ;;  %v1811_v22 = vadd.f32 %v1810_v18, %v1748_v13  ;;  %v1628_v11 = vld [vmem:[%s2609_s22 + $0x160] sm:$0xff]  ;;  %v1764_v13 = vmul.f32 %v1627_v7, %v1627_v7 }
 0x255   : > { %v1677_v24 = vadd.f32 %v1676_v20, %v1613_v15  ;;  %v1812_v26 = vadd.f32 %v1811_v22, %v1749_v17  ;;  %v1629_v15 = vld [vmem:[%s2609_s22 + $0x168] sm:$0xff]  ;;  %v1765_v17 = vmul.f32 %v1628_v11, %v1628_v11 }
 0x257   : > { %v1678_v28 = vadd.f32 %v1677_v24, %v1614_v19  ;;  %v1813_v30 = vadd.f32 %v1812_v26, %v1750_v21  ;;  %v1630_v19 = vld [vmem:[%s2609_s22 + $0x170] sm:$0xff]  ;;  %v1766_v21 = vmul.f32 %v1629_v15, %v1629_v15 }
 0x259   : > { %v1679_v32 = vadd.f32 %v1678_v28, %v1615_v23  ;;  %v1814_v34 = vadd.f32 %v1813_v30, %v1751_v25  ;;  %v1631_v23 = vld [vmem:[%s2609_s22 + $0x178] sm:$0xff]  ;;  %v1767_v25 = vmul.f32 %v1630_v19, %v1630_v19 }
 0x25b   : > { %v1680_v36 = vadd.f32 %v1679_v32, %v1616_v27  ;;  %v1815_v38 = vadd.f32 %v1814_v34, %v1752_v29  ;;  %v1632_v27 = vld [vmem:[%s2609_s22 + $0x180] sm:$0xff]  ;;  %v1768_v29 = vmul.f32 %v1631_v23, %v1631_v23 }
 0x25d   : > { %v1681_v40 = vadd.f32 %v1680_v36, %v1617_v31  ;;  %v1816_v42 = vadd.f32 %v1815_v38, %v1753_v33  ;;  %v1633_v31 = vld [vmem:[%s2609_s22 + $0x188] sm:$0xff]  ;;  %v1769_v33 = vmul.f32 %v1632_v27, %v1632_v27 }
 0x25f   : > { %v1682_v43 = vadd.f32 %v1681_v40, %v1618_v35  ;;  %v1817_v45 = vadd.f32 %v1816_v42, %v1754_v37  ;;  %v1634_v35 = vld [vmem:[%s2609_s22 + $0x190] sm:$0xff]  ;;  %v1770_v37 = vmul.f32 %v1633_v31, %v1633_v31 }
 0x261   : > { %v1683_v47 = vadd.f32 %v1682_v43, %v1619_v39  ;;  %v1818_v49 = vadd.f32 %v1817_v45, %v1755_v41  ;;  %v1635_v39 = vld [vmem:[%s2609_s22 + $0x198] sm:$0xff]  ;;  %v1771_v41 = vmul.f32 %v1634_v35, %v1634_v35 }
 0x263   : > { %v1684_v51 = vadd.f32 %v1683_v47, %v1620_v3  ;;  %v1819_v53 = vadd.f32 %v1818_v49, %v1756_v44  ;;  %v1636_v3 = vld [vmem:[%s2609_s22 + $0x1a0] sm:$0xff]  ;;  %v1772_v44 = vmul.f32 %v1635_v39, %v1635_v39 }
 0x265   : > { %v1685_v55 = vadd.f32 %v1684_v51, %v1621_v46  ;;  %v1820_v57 = vadd.f32 %v1819_v53, %v1757_v48  ;;  %v1637_v46 = vld [vmem:[%s2609_s22 + $0x1a8] sm:$0xff]  ;;  %v1773_v48 = vmul.f32 %v1636_v3, %v1636_v3 }
 0x267   : > { %v1686_v59 = vadd.f32 %v1685_v55, %v1622_v50  ;;  %v1821_v61 = vadd.f32 %v1820_v57, %v1758_v52  ;;  %v1638_v50 = vld [vmem:[%s2609_s22 + $0x1b0] sm:$0xff]  ;;  %v1774_v52 = vmul.f32 %v1637_v46, %v1637_v46 }
 0x269   : > { %v1687_v63 = vadd.f32 %v1686_v59, %v1623_v54  ;;  %v1822_v1 = vadd.f32 %v1821_v61, %v1759_v56  ;;  %v1639_v54 = vld [vmem:[%s2609_s22 + $0x1b8] sm:$0xff]  ;;  %v1775_v56 = vmul.f32 %v1638_v50, %v1638_v50 }
 0x26b   : > { %v1688_v4 = vadd.f32 %v1687_v63, %v1624_v58  ;;  %v1823_v6 = vadd.f32 %v1822_v1, %v1760_v60  ;;  %v1640_v58 = vld [vmem:[%s2609_s22 + $0x1c0] sm:$0xff]  ;;  %v1776_v60 = vmul.f32 %v1639_v54, %v1639_v54 }
 0x26d   : > { %v1689_v8 = vadd.f32 %v1688_v4, %v1625_v62  ;;  %v1824_v10 = vadd.f32 %v1823_v6, %v1761_v0  ;;  %v1641_v62 = vld [vmem:[%s2609_s22 + $0x1c8] sm:$0xff]  ;;  %v1777_v0 = vmul.f32 %v1640_v58, %v1640_v58 }
 0x26f   : > { %v1690_v12 = vadd.f32 %v1689_v8, %v1626_v2  ;;  %v1825_v14 = vadd.f32 %v1824_v10, %v1762_v5  ;;  %v1642_v2 = vld [vmem:[%s2609_s22 + $0x1d0] sm:$0xff]  ;;  %v1778_v5 = vmul.f32 %v1641_v62, %v1641_v62 }
 0x271   : > { %v1691_v16 = vadd.f32 %v1690_v12, %v1627_v7  ;;  %v1826_v18 = vadd.f32 %v1825_v14, %v1763_v9  ;;  %v1643_v7 = vld [vmem:[%s2609_s22 + $0x1d8] sm:$0xff]  ;;  %v1779_v9 = vmul.f32 %v1642_v2, %v1642_v2 }
 0x273   : > { %v1692_v20 = vadd.f32 %v1691_v16, %v1628_v11  ;;  %v1827_v22 = vadd.f32 %v1826_v18, %v1764_v13  ;;  %v1644_v11 = vld [vmem:[%s2609_s22 + $0x1e0] sm:$0xff]  ;;  %v1780_v13 = vmul.f32 %v1643_v7, %v1643_v7 }
 0x275   : > { %v1693_v24 = vadd.f32 %v1692_v20, %v1629_v15  ;;  %v1828_v26 = vadd.f32 %v1827_v22, %v1765_v17  ;;  %v1645_v15 = vld [vmem:[%s2609_s22 + $0x1e8] sm:$0xff]  ;;  %v1781_v17 = vmul.f32 %v1644_v11, %v1644_v11 }
 0x277   : > { %v1694_v28 = vadd.f32 %v1693_v24, %v1630_v19  ;;  %v1829_v30 = vadd.f32 %v1828_v26, %v1766_v21  ;;  %v1646_v19 = vld [vmem:[%s2609_s22 + $0x1f0] sm:$0xff]  ;;  %v1782_v21 = vmul.f32 %v1645_v15, %v1645_v15 }
 0x279   : > { %v1695_v32 = vadd.f32 %v1694_v28, %v1631_v23  ;;  %v1830_v34 = vadd.f32 %v1829_v30, %v1767_v25  ;;  %v1647_v23 = vld [vmem:[%s2609_s22 + $0x1f8] sm:$0xff]  ;;  %v1783_v25 = vmul.f32 %v1646_v19, %v1646_v19 }
 0x27a   : > { %v1784_v28 = vmul.f32 %v1647_v23, %v1647_v23 }
 0x27b   : > { %v1696_v36 = vadd.f32 %v1695_v32, %v1632_v27  ;;  %v1831_v38 = vadd.f32 %v1830_v34, %v1768_v29 }
 0x27d   : > { %v1697_v40 = vadd.f32 %v1696_v36, %v1633_v31  ;;  %v1832_v42 = vadd.f32 %v1831_v38, %v1769_v33 }
 0x27f   : > { %v1698_v43 = vadd.f32 %v1697_v40, %v1634_v35  ;;  %v1833_v45 = vadd.f32 %v1832_v42, %v1770_v37 }
 0x281   : > { %v1699_v47 = vadd.f32 %v1698_v43, %v1635_v39  ;;  %v1834_v49 = vadd.f32 %v1833_v45, %v1771_v41  ;;  %v1648_v41 = vld [vmem:[%s2806_s3] sm:$0x1]  ;;  %v1720_v45 = vld [vmem:[%s2806_s3 + $0x1] sm:$0x1] }
 0x283   : > { %v1700_v51 = vadd.f32 %v1699_v47, %v1636_v3  ;;  %v1835_v53 = vadd.f32 %v1834_v49, %v1772_v44 }
 0x285   : > { %v1701_v55 = vadd.f32 %v1700_v51, %v1637_v46  ;;  %v1836_v57 = vadd.f32 %v1835_v53, %v1773_v48 }
 0x287   : > { %v1702_v59 = vadd.f32 %v1701_v55, %v1638_v50  ;;  %v1837_v61 = vadd.f32 %v1836_v57, %v1774_v52 }
 0x289   : > { %v1703_v63 = vadd.f32 %v1702_v59, %v1639_v54  ;;  %v1838_v1 = vadd.f32 %v1837_v61, %v1775_v56 }
 0x28b   : > { %v1704_v4 = vadd.f32 %v1703_v63, %v1640_v58  ;;  %v1839_v6 = vadd.f32 %v1838_v1, %v1776_v60 }
 0x28d   : > { %v1705_v8 = vadd.f32 %v1704_v4, %v1641_v62  ;;  %v1840_v10 = vadd.f32 %v1839_v6, %v1777_v0 }
 0x28f   : > { %v1706_v12 = vadd.f32 %v1705_v8, %v1642_v2  ;;  %v1841_v14 = vadd.f32 %v1840_v10, %v1778_v5 }
 0x291   : > { %v1707_v16 = vadd.f32 %v1706_v12, %v1643_v7  ;;  %v1842_v18 = vadd.f32 %v1841_v14, %v1779_v9 }
 0x293   : > { %v1708_v20 = vadd.f32 %v1707_v16, %v1644_v11  ;;  %v1843_v22 = vadd.f32 %v1842_v18, %v1780_v13 }
 0x295   : > { %v1709_v24 = vadd.f32 %v1708_v20, %v1645_v15  ;;  %v1844_v26 = vadd.f32 %v1843_v22, %v1781_v17 }
 0x297   : > { %v1710_v27 = vadd.f32 %v1709_v24, %v1646_v19  ;;  %v1845_v29 = vadd.f32 %v1844_v26, %v1782_v21 }
 0x299   : > { %v1711_v30 = vadd.f32 %v1710_v27, %v1647_v23  ;;  %v1846_v31 = vadd.f32 %v1845_v29, %v1783_v25 }
 0x29b   : > { %v1712_v32 = vrot.slane %v1711_v30, 4  ;;  %v1847_v33 = vadd.f32 %v1846_v31, %v1784_v28 }
 0x29d   : > { %v1713_v34 = vadd.f32 %v1712_v32, %v1711_v30  ;;  %v1848_v35 = vrot.slane %v1847_v33, 4 }
 0x29f   : > { %v1714_v36 = vrot.slane %v1713_v34, 2  ;;  %v1849_v37 = vadd.f32 %v1848_v35, %v1847_v33 }
 0x2a1   : > { %v1715_v38 = vadd.f32 %v1714_v36, %v1713_v34  ;;  %v1850_v39 = vrot.slane %v1849_v37, 2 }
 0x2a3   : > { %v1716_v40 = vrot.slane %v1715_v38, 1  ;;  %v1851_v42 = vadd.f32 %v1850_v39, %v1849_v37 }
 0x2a5   : > { %v1717_v3 = vadd.f32 %v1716_v40, %v1715_v38  ;;  %v1852_v43 = vrot.slane %v1851_v42, 1 }
 0x2a7   : > { %v1718_v44 = vadd.f32 %v1717_v3, %v1648_v41  ;;  %v1853_v46 = vadd.f32 %v1852_v43, %v1851_v42 }
 0x2a9   : > { %1719 = vst [vmem:[%s2806_s3] sm:$0x1] %v1718_v44  ;;  %v1854_v47 = vadd.f32 %v1853_v46, %v1720_v45 }
 0x2ab   : > { %1855 = vst [vmem:[%s2806_s3 + $0x1] sm:$0x1] %v1854_v47 }
 0x2ac PF: > { %s14_s14 = sadd.s32 1, %s2109_s14   ;;  %s2807_s12 = smov %s2105_s13 }
 0x2ad   : > { %p11_p6 = scmp.ge.s32.totalorder %s14_s14, 4   ;;  %s2808_s13 = smov %s2810_s15 }
 0x2af   :  { %13 = sbr.rel (!%p11_p6) target bundleno = 2 (0x2), region = 81 }

// kernel: inception_forward.18
= control target key start
LH: loop header
LB: loop body
LE: loop exit
PB: predicated region body
PF: predicated region fallthrough
CT: control target
= control target key end

     0   :  { %s2757_s12 = smov 0   ;;  %s2759_s13 = smov 0   ;;  %s3875_s0 = inlined_call_operand.vmem [shape: f32[1024,768], index: 0, kind: input, shape index: {}]   ;;  %s3876_s1 = inlined_call_operand.vmem [shape: f32[768,128], index: 1, kind: input, shape index: {}]   ;;  %s3877_s2 = inlined_call_operand.vmem [shape: f32[1024,128], index: 2, kind: output, shape index: {0}]   ;;  %s3878_s3 = inlined_call_operand.vmem [shape: f32[8,128], index: 3, kind: output, shape index: {1}]  }
   0x1   :  { %s2761_s14 = smov 0  }
   0x2 LB: > { %s26_s15 = sadd.s32 1, %s2729_s13  ;;  %p2498_p0 = scmp.ge.s32.totalorder %s2733_s14, 1  ;;  %s2733_s14 = sphi %s2761_s14, %s14_s14   ;;  %s2729_s13 = sphi %s2759_s13, %s3912_s13   ;;  %s2725_s12 = sphi %s2757_s12, %s3911_s12  }
   0x3   : > { %p28_p1 = scmp.ge.s32.totalorder %s26_s15, 2  ;;  %p167_p2 = scmp.lt.s32.totalorder %s2733_s14, 3 }
   0x5   : > { %s3914_s15 = smov (%p28_p1, %s26_s15), 0  ;;  %p168_p3 = pnand %p2498_p0, %p167_p2 }
   0x7   : > { %171 = sbr.rel (%p168_p3) target bundleno = 821 (0x335), region = 28 }
   0xe   : > { %v741_v0 = vld [vmem:[%s3876_s1] sm:$0xff]  ;;  %v742_v1 = vld [vmem:[%s3876_s1 + $0x8] sm:$0xff]  ;;  %v743_v2 = vld [vmem:[%s3876_s1 + $0x10] sm:$0xff]  ;;  %s2499_s22 = sshll.u32 %s2725_s12, 6  ;;  %v2735_v3 = vmov 0.0|0.0   ;;  %p2120_p5 = scmp.eq.s32.totalorder %s2725_s12, 0 }
   0xf   : > { %2651 = vmatprep.subr.bf16.mxu1 %v2735_v3  ;;  %v2508_v4 = vpack.c.bf16 %v742_v1, %v741_v0  ;;  %2507 = vmatprep.subr.bf16.mxu0 %v2735_v3  ;;  %v744_v5 = vld [vmem:[%s3876_s1 + $0x18] sm:$0xff]  ;;  %p203_p4 = scmp.lt.s32.totalorder %s2499_s22, 127  ;;  %v745_v7 = vld [vmem:[%s3876_s1 + $0x20] sm:$0xff]  ;;  %v746_v8 = vld [vmem:[%s3876_s1 + $0x28] sm:$0xff] }
  0x10   : > { %v2511_v6 = vpack.c.bf16 %v744_v5, %v743_v2  ;;  %v2514_v9 = vpack.c.bf16 %v746_v8, %v745_v7  ;;  %v747_v10 = vld [vmem:[%s3876_s1 + $0x30] sm:$0xff]  ;;  %v748_v11 = vld [vmem:[%s3876_s1 + $0x38] sm:$0xff]  ;;  %v749_v15 = vld [vmem:[%s3876_s1 + $0x40] sm:$0xff] }
  0x11   : > { %2667 = vmatpush1.bf16.msra.mxu1 %v2508_v4  ;;  %2509 = vmatpush1.bf16.msra.mxu0 %v2508_v4  ;;  %s3916_s22 = smov (!%p203_p4, %s2499_s22), 127  ;;  %v2517_v13 = vpack.c.bf16 %v748_v11, %v747_v10  ;;  %v750_v16 = vld [vmem:[%s3876_s1 + $0x48] sm:$0xff]  ;;  %v751_v18 = vld [vmem:[%s3876_s1 + $0x50] sm:$0xff]  ;;  %v752_v19 = vld [vmem:[%s3876_s1 + $0x58] sm:$0xff] }
  0x12   : > { %2652 = vmatprep.subr.bf16.mxu1 %v2735_v3  ;;  %2510 = vmatprep.subr.bf16.mxu0 %v2735_v3  ;;  %s2683_s29 = smul.u32 48, %s3916_s22  ;;  %v2520_v17 = vpack.c.bf16 %v750_v16, %v749_v15  ;;  %v2523_v20 = vpack.c.bf16 %v752_v19, %v751_v18  ;;  %v753_v21 = vld [vmem:[%s3876_s1 + $0x60] sm:$0xff]  ;;  %v754_v22 = vld [vmem:[%s3876_s1 + $0x68] sm:$0xff]  ;;  %v755_v24 = vld [vmem:[%s3876_s1 + $0x70] sm:$0xff]  ;;  %s2502_s23 = sshll.u32 %s3916_s22, 3 }
  0x13   : > { %v2526_v23 = vpack.c.bf16 %v754_v22, %v753_v21  ;;  %v756_v25 = vld [vmem:[%s3876_s1 + $0x78] sm:$0xff]  ;;  %v757_v27 = vld [vmem:[%s3876_s1 + $0x80] sm:$0xff]  ;;  %v758_v28 = vld [vmem:[%s3876_s1 + $0x88] sm:$0xff]  ;;  %s3621_s26 = scalar_lea.vmem %s3877_s2, %s2502_s23 }
  0x14   : > { %s2806_s5 = scalar_lea.vmem %s3875_s0, %s2683_s29  ;;  %v2529_v26 = vpack.c.bf16 %v756_v25, %v755_v24  ;;  %v2532_v29 = vpack.c.bf16 %v758_v28, %v757_v27  ;;  %v759_v30 = vld [vmem:[%s3876_s1 + $0x90] sm:$0xff]  ;;  %v760_v31 = vld [vmem:[%s3876_s1 + $0x98] sm:$0xff]  ;;  %v761_v33 = vld [vmem:[%s3876_s1 + $0xa0] sm:$0xff] }
  0x15   : > { %2668 = vmatpush1.bf16.msra.mxu1 %v2511_v6  ;;  %2512 = vmatpush1.bf16.msra.mxu0 %v2511_v6  ;;  %v550_v12 = vld [vmem:[%s2806_s5 + $0x608] sm:$0xff]  ;;  %v2535_v32 = vpack.c.bf16 %v760_v31, %v759_v30  ;;  %v763_v36 = vld [vmem:[%s3876_s1 + $0xb0] sm:$0xff]  ;;  %v764_v37 = vld [vmem:[%s3876_s1 + $0xb8] sm:$0xff] }
  0x16   : > { %2653 = vmatprep.subr.bf16.mxu1 %v2735_v3  ;;  %2513 = vmatprep.subr.bf16.mxu0 %v2735_v3  ;;  %v358_v14 = vld [vmem:[%s2806_s5 + $0x8] sm:$0xff]  ;;  %v2541_v38 = vpack.c.bf16 %v764_v37, %v763_v36  ;;  %v765_v39 = vld [vmem:[%s3876_s1 + $0xc0] sm:$0xff]  ;;  %v767_v42 = vld [vmem:[%s3876_s1 + $0xd0] sm:$0xff] }
  0x17   : > { %1061 = vmatprep.mubr.f32.mxu1 %v550_v12  ;;  %901 = vmatprep.mubr.f32.mxu0 %v358_v14  ;;  %v762_v34 = vld [vmem:[%s3876_s1 + $0xa8] sm:$0xff]  ;;  %v768_v43 = vld [vmem:[%s3876_s1 + $0xd8] sm:$0xff]  ;;  %v769_v45 = vld [vmem:[%s3876_s1 + $0xe0] sm:$0xff] }
  0x18   : > { %v2538_v35 = vpack.c.bf16 %v762_v34, %v761_v33  ;;  %v766_v40 = vld [vmem:[%s3876_s1 + $0xc8] sm:$0xff]  ;;  %v2547_v44 = vpack.c.bf16 %v768_v43, %v767_v42  ;;  %v771_v48 = vld [vmem:[%s3876_s1 + $0xf0] sm:$0xff]  ;;  %v772_v49 = vld [vmem:[%s3876_s1 + $0xf8] sm:$0xff] }
  0x19   : > { %2669 = vmatpush1.bf16.msra.mxu1 %v2514_v9  ;;  %2515 = vmatpush1.bf16.msra.mxu0 %v2514_v9  ;;  %v2544_v41 = vpack.c.bf16 %v766_v40, %v765_v39  ;;  %v770_v46 = vld [vmem:[%s3876_s1 + $0xe8] sm:$0xff]  ;;  %v2553_v50 = vpack.c.bf16 %v772_v49, %v771_v48  ;;  %v773_v51 = vld [vmem:[%s3876_s1 + $0x100] sm:$0xff]  ;;  %v556_v58 = vld [vmem:[%s2806_s5 + $0x638] sm:$0xff] }
  0x1a   : > { %2654 = vmatprep.subr.bf16.mxu1 %v2735_v3  ;;  %2516 = vmatprep.subr.bf16.mxu0 %v2735_v3  ;;  %v2550_v47 = vpack.c.bf16 %v770_v46, %v769_v45  ;;  %v774_v52 = vld [vmem:[%s3876_s1 + $0x108] sm:$0xff]  ;;  %v805_v53 = vld [vmem:[%s3876_s1 + $0x200] sm:$0xff]  ;;  %v364_v60 = vld [vmem:[%s2806_s5 + $0x38] sm:$0xff] }
  0x1b   : > { %v806_v54 = vld [vmem:[%s3876_s1 + $0x208] sm:$0xff]  ;;  %v549_v55 = vld [vmem:[%s2806_s5 + $0x600] sm:$0xff]  ;;  %v2556_v56 = vpack.c.bf16 %v774_v52, %v773_v51  ;;  %v775_v61 = vld [vmem:[%s3876_s1 + $0x110] sm:$0xff] }
  0x1c   : > { %v357_v57 = vld [vmem:[%s2806_s5] sm:$0xff]  ;;  %v2604_v59 = vpack.c.bf16 %v806_v54, %v805_v53  ;;  %v776_v62 = vld [vmem:[%s3876_s1 + $0x118] sm:$0xff]  ;;  %v807_v63 = vld [vmem:[%s3876_s1 + $0x210] sm:$0xff] }
  0x1d   : > { %2670 = vmatpush1.bf16.msra.mxu1 %v2517_v13  ;;  %2518 = vmatpush1.bf16.msra.mxu0 %v2517_v13  ;;  %v808_v0 = vld [vmem:[%s3876_s1 + $0x218] sm:$0xff]  ;;  %v555_v1 = vld [vmem:[%s2806_s5 + $0x630] sm:$0xff]  ;;  %v562_v4 = vld [vmem:[%s2806_s5 + $0x668] sm:$0xff]  ;;  %v2559_v6 = vpack.c.bf16 %v776_v62, %v775_v61 }
  0x1e   : > { %2655 = vmatprep.subr.bf16.mxu1 %v2735_v3  ;;  %2519 = vmatprep.subr.bf16.mxu0 %v2735_v3  ;;  %v363_v2 = vld [vmem:[%s2806_s5 + $0x30] sm:$0xff]  ;;  %v370_v5 = vld [vmem:[%s2806_s5 + $0x68] sm:$0xff]  ;;  %v2607_v7 = vpack.c.bf16 %v808_v0, %v807_v63  ;;  %v777_v8 = vld [vmem:[%s3876_s1 + $0x120] sm:$0xff] }
  0x1f   : > { %v778_v9 = vld [vmem:[%s3876_s1 + $0x128] sm:$0xff]  ;;  %v809_v10 = vld [vmem:[%s3876_s1 + $0x220] sm:$0xff]  ;;  %v568_v14 = vld [vmem:[%s2806_s5 + $0x698] sm:$0xff] }
  0x20   : > { %v810_v11 = vld [vmem:[%s3876_s1 + $0x228] sm:$0xff]  ;;  %v561_v12 = vld [vmem:[%s2806_s5 + $0x660] sm:$0xff]  ;;  %v376_v15 = vld [vmem:[%s2806_s5 + $0x98] sm:$0xff]  ;;  %v2562_v16 = vpack.c.bf16 %v778_v9, %v777_v8 }
  0x21   : > { %2671 = vmatpush1.bf16.msra.mxu1 %v2520_v17  ;;  %2521 = vmatpush1.bf16.msra.mxu0 %v2520_v17  ;;  %v369_v13 = vld [vmem:[%s2806_s5 + $0x60] sm:$0xff]  ;;  %v2610_v17 = vpack.c.bf16 %v810_v11, %v809_v10  ;;  %v779_v18 = vld [vmem:[%s3876_s1 + $0x130] sm:$0xff]  ;;  %v780_v19 = vld [vmem:[%s3876_s1 + $0x138] sm:$0xff] }
  0x22   : > { %2656 = vmatprep.subr.bf16.mxu1 %v2735_v3  ;;  %2522 = vmatprep.subr.bf16.mxu0 %v2735_v3  ;;  %v812_v21 = vld [vmem:[%s3876_s1 + $0x238] sm:$0xff]  ;;  %v567_v22 = vld [vmem:[%s2806_s5 + $0x690] sm:$0xff]  ;;  %v574_v24 = vld [vmem:[%s2806_s5 + $0x6c8] sm:$0xff] }
  0x23   : > { %v382_v25 = vld [vmem:[%s2806_s5 + $0xc8] sm:$0xff]  ;;  %v781_v28 = vld [vmem:[%s3876_s1 + $0x140] sm:$0xff]  ;;  %v580_v34 = vld [vmem:[%s2806_s5 + $0x6f8] sm:$0xff] }
  0x24   : > { %v813_v30 = vld [vmem:[%s3876_s1 + $0x240] sm:$0xff]  ;;  %v814_v31 = vld [vmem:[%s3876_s1 + $0x248] sm:$0xff]  ;;  %v784_v39 = vld [vmem:[%s3876_s1 + $0x158] sm:$0xff] }
  0x25   : > { %2672 = vmatpush1.bf16.msra.mxu1 %v2523_v20  ;;  %2524 = vmatpush1.bf16.msra.mxu0 %v2523_v20  ;;  %v811_v20 = vld [vmem:[%s3876_s1 + $0x230] sm:$0xff]  ;;  %v381_v33 = vld [vmem:[%s2806_s5 + $0xc0] sm:$0xff]  ;;  %v2616_v37 = vpack.c.bf16 %v814_v31, %v813_v30  ;;  %v394_v45 = vld [vmem:[%s2806_s5 + $0x128] sm:$0xff] }
  0x26   : > { %2657 = vmatprep.subr.bf16.mxu1 %v2735_v3  ;;  %2525 = vmatprep.subr.bf16.mxu0 %v2735_v3  ;;  %v2613_v27 = vpack.c.bf16 %v812_v21, %v811_v20  ;;  %v815_v40 = vld [vmem:[%s3876_s1 + $0x250] sm:$0xff]  ;;  %v785_v48 = vld [vmem:[%s3876_s1 + $0x160] sm:$0xff]  ;;  %v786_v49 = vld [vmem:[%s3876_s1 + $0x168] sm:$0xff] }
  0x27   : > { %v579_v42 = vld [vmem:[%s2806_s5 + $0x6f0] sm:$0xff]  ;;  %v818_v51 = vld [vmem:[%s3876_s1 + $0x268] sm:$0xff]  ;;  %v585_v52 = vld [vmem:[%s2806_s5 + $0x720] sm:$0xff] }
  0x28   : > { %v387_v43 = vld [vmem:[%s2806_s5 + $0xf0] sm:$0xff]  ;;  %v393_v53 = vld [vmem:[%s2806_s5 + $0x120] sm:$0xff]  ;;  %v592_v54 = vld [vmem:[%s2806_s5 + $0x758] sm:$0xff] }
  0x29   : > { %2673 = vmatpush1.bf16.msra.mxu1 %v2526_v23  ;;  %2527 = vmatpush1.bf16.msra.mxu0 %v2526_v23  ;;  %v375_v23 = vld [vmem:[%s2806_s5 + $0x90] sm:$0xff]  ;;  %v820_v61 = vld [vmem:[%s3876_s1 + $0x278] sm:$0xff]  ;;  %v598_v0 = vld [vmem:[%s2806_s5 + $0x788] sm:$0xff] }
  0x2a   : > { %2658 = vmatprep.subr.bf16.mxu1 %v2735_v3  ;;  %2528 = vmatprep.subr.bf16.mxu0 %v2735_v3  ;;  %v591_v62 = vld [vmem:[%s2806_s5 + $0x750] sm:$0xff]  ;;  %v822_v8 = vld [vmem:[%s3876_s1 + $0x288] sm:$0xff]  ;;  %v597_v9 = vld [vmem:[%s2806_s5 + $0x780] sm:$0xff] }
  0x2b   : > { %v399_v63 = vld [vmem:[%s2806_s5 + $0x150] sm:$0xff]  ;;  %v405_v10 = vld [vmem:[%s2806_s5 + $0x180] sm:$0xff]  ;;  %v604_v11 = vld [vmem:[%s2806_s5 + $0x7b8] sm:$0xff] }
  0x2c   : > { %v411_v20 = vld [vmem:[%s2806_s5 + $0x1b0] sm:$0xff]  ;;  %v610_v21 = vld [vmem:[%s2806_s5 + $0x7e8] sm:$0xff]  ;;  %v417_v30 = vld [vmem:[%s2806_s5 + $0x1e0] sm:$0xff] }
  0x2d   : > { %2674 = vmatpush1.bf16.msra.mxu1 %v2529_v26  ;;  %2530 = vmatpush1.bf16.msra.mxu0 %v2529_v26  ;;  %v2565_v26 = vpack.c.bf16 %v780_v19, %v779_v18  ;;  %v824_v18 = vld [vmem:[%s3876_s1 + $0x298] sm:$0xff]  ;;  %v603_v19 = vld [vmem:[%s2806_s5 + $0x7b0] sm:$0xff] }
  0x2e   : > { %2659 = vmatprep.subr.bf16.mxu1 %v2735_v3  ;;  %2531 = vmatprep.subr.bf16.mxu0 %v2735_v3  ;;  %v616_v31 = vld [vmem:[%s2806_s5 + $0x818] sm:$0xff] }
  0x31   : > { %2675 = vmatpush1.bf16.msra.mxu1 %v2532_v29  ;;  %2533 = vmatpush1.bf16.msra.mxu0 %v2532_v29  ;;  %v782_v29 = vld [vmem:[%s3876_s1 + $0x148] sm:$0xff] }
  0x32   : > { %2660 = vmatprep.subr.bf16.mxu1 %v2735_v3  ;;  %2534 = vmatprep.subr.bf16.mxu0 %v2735_v3  ;;  %v2568_v36 = vpack.c.bf16 %v782_v29, %v781_v28  ;;  %v826_v28 = vld [vmem:[%s3876_s1 + $0x2a8] sm:$0xff]  ;;  %v609_v29 = vld [vmem:[%s2806_s5 + $0x7e0] sm:$0xff] }
  0x35   : > { %2676 = vmatpush1.bf16.msra.mxu1 %v2535_v32  ;;  %2536 = vmatpush1.bf16.msra.mxu0 %v2535_v32  ;;  %v573_v32 = vld [vmem:[%s2806_s5 + $0x6c0] sm:$0xff] }
  0x36   : > { %2661 = vmatprep.subr.bf16.mxu1 %v2735_v3  ;;  %2537 = vmatprep.subr.bf16.mxu0 %v2735_v3 }
  0x39   : > { %2677 = vmatpush1.bf16.msra.mxu1 %v2538_v35  ;;  %2539 = vmatpush1.bf16.msra.mxu0 %v2538_v35  ;;  %v388_v35 = vld [vmem:[%s2806_s5 + $0xf8] sm:$0xff] }
  0x3a   : > { %2662 = vmatprep.subr.bf16.mxu1 %v2735_v3  ;;  %2540 = vmatprep.subr.bf16.mxu0 %v2735_v3 }
  0x3d   : > { %2678 = vmatpush1.bf16.msra.mxu1 %v2541_v38  ;;  %2542 = vmatpush1.bf16.msra.mxu0 %v2541_v38  ;;  %v783_v38 = vld [vmem:[%s3876_s1 + $0x150] sm:$0xff] }
  0x3e   : > { %2663 = vmatprep.subr.bf16.mxu1 %v2735_v3  ;;  %2543 = vmatprep.subr.bf16.mxu0 %v2735_v3  ;;  %v2571_v46 = vpack.c.bf16 %v784_v39, %v783_v38  ;;  %v828_v38 = vld [vmem:[%s3876_s1 + $0x2b8] sm:$0xff]  ;;  %v615_v39 = vld [vmem:[%s2806_s5 + $0x810] sm:$0xff] }
  0x41   : > { %2679 = vmatpush1.bf16.msra.mxu1 %v2544_v41  ;;  %2545 = vmatpush1.bf16.msra.mxu0 %v2544_v41  ;;  %v816_v41 = vld [vmem:[%s3876_s1 + $0x258] sm:$0xff] }
  0x42   : > { %2664 = vmatprep.subr.bf16.mxu1 %v2735_v3  ;;  %2546 = vmatprep.subr.bf16.mxu0 %v2735_v3 }
  0x45   : > { %2680 = vmatpush1.bf16.msra.mxu1 %v2547_v44  ;;  %2548 = vmatpush1.bf16.msra.mxu0 %v2547_v44  ;;  %v586_v44 = vld [vmem:[%s2806_s5 + $0x728] sm:$0xff] }
  0x46   : > { %2665 = vmatprep.subr.bf16.mxu1 %v2735_v3  ;;  %2549 = vmatprep.subr.bf16.mxu0 %v2735_v3 }
  0x49   : > { %2681 = vmatpush1.bf16.msra.mxu1 %v2550_v47  ;;  %2551 = vmatpush1.bf16.msra.mxu0 %v2550_v47  ;;  %v2619_v47 = vpack.c.bf16 %v816_v41, %v815_v40  ;;  %v423_v40 = vld [vmem:[%s2806_s5 + $0x210] sm:$0xff]  ;;  %v622_v41 = vld [vmem:[%s2806_s5 + $0x848] sm:$0xff] }
  0x4a   : > { %2666 = vmatprep.subr.bf16.mxu1 %v2735_v3  ;;  %2552 = vmatprep.subr.bf16.mxu0 %v2735_v3 }
  0x4d   : > { %2682 = vmatpush1.bf16.msra.mxu1 %v2553_v50  ;;  %2554 = vmatpush1.bf16.msra.mxu0 %v2553_v50  ;;  %v817_v50 = vld [vmem:[%s3876_s1 + $0x260] sm:$0xff] }
  0x4e   : > { %2555 = vmatprep.subr.bf16.mxu1 %v2735_v3  ;;  %2603 = vmatprep.subr.bf16.mxu0 %v2735_v3 }
  0x50   : > { %1062 = vmatmul.mubr.f32.vlgmr.msra.gmra.mrb[0].mxu1 %v549_v55  ;;  %902 = vmatmul.mubr.f32.vlgmr.msra.gmra.mrb[0].mxu0 %v357_v57  ;;  %v400_v55 = vld [vmem:[%s2806_s5 + $0x158] sm:$0xff]  ;;  %v2622_v57 = vpack.c.bf16 %v818_v51, %v817_v50  ;;  %v429_v50 = vld [vmem:[%s2806_s5 + $0x240] sm:$0xff] }
  0x51   : > { %2557 = vmatpush1.bf16.msra.mxu1 %v2556_v56  ;;  %1066 = vmatprep.mubr.f32.mxu1 %v556_v58  ;;  %v2574_v56 = vpack.c.bf16 %v786_v49, %v785_v48  ;;  %v787_v58 = vld [vmem:[%s3876_s1 + $0x170] sm:$0xff]  ;;  %v830_v48 = vld [vmem:[%s3876_s1 + $0x2c8] sm:$0xff]  ;;  %v621_v49 = vld [vmem:[%s2806_s5 + $0x840] sm:$0xff] }
  0x52   : > { %2605 = vmatpush1.bf16.msra.mxu0 %v2604_v59  ;;  %906 = vmatprep.mubr.f32.mxu0 %v364_v60  ;;  %v788_v59 = vld [vmem:[%s3876_s1 + $0x178] sm:$0xff]  ;;  %v819_v60 = vld [vmem:[%s3876_s1 + $0x270] sm:$0xff] }
  0x53   : > { %2558 = vmatprep.subr.bf16.mxu1 %v2735_v3  ;;  %2606 = vmatprep.subr.bf16.mxu0 %v2735_v3  ;;  %v628_v51 = vld [vmem:[%s2806_s5 + $0x878] sm:$0xff] }
  0x54   : > { %1067 = vmatmul.mubr.f32.gmra.mrb[2].mxu1 %v555_v1  ;;  %907 = vmatmul.mubr.f32.gmra.mrb[2].mxu0 %v363_v2  ;;  %v406_v1 = vld [vmem:[%s2806_s5 + $0x188] sm:$0xff]  ;;  %v2577_v2 = vpack.c.bf16 %v788_v59, %v787_v58  ;;  %v832_v58 = vld [vmem:[%s3876_s1 + $0x2d8] sm:$0xff]  ;;  %v627_v59 = vld [vmem:[%s2806_s5 + $0x870] sm:$0xff] }
  0x55   : > { %1071 = vmatprep.mubr.f32.mxu1 %v562_v4  ;;  %911 = vmatprep.mubr.f32.mxu0 %v370_v5  ;;  %v2625_v4 = vpack.c.bf16 %v820_v61, %v819_v60  ;;  %v789_v5 = vld [vmem:[%s3876_s1 + $0x180] sm:$0xff]  ;;  %v435_v60 = vld [vmem:[%s2806_s5 + $0x270] sm:$0xff]  ;;  %v634_v61 = vld [vmem:[%s2806_s5 + $0x8a8] sm:$0xff] }
  0x56   : > { %2560 = vmatpush1.bf16.msra.mxu1 %v2559_v6  ;;  %2608 = vmatpush1.bf16.msra.mxu0 %v2607_v7  ;;  %v790_v6 = vld [vmem:[%s3876_s1 + $0x188] sm:$0xff]  ;;  %v821_v7 = vld [vmem:[%s3876_s1 + $0x280] sm:$0xff] }
  0x57   : > { %2561 = vmatprep.subr.bf16.mxu1 %v2735_v3  ;;  %2609 = vmatprep.subr.bf16.mxu0 %v2735_v3 }
  0x58   : > { %1072 = vmatmul.mubr.f32.gmra.mrb[4].mxu1 %v561_v12  ;;  %912 = vmatmul.mubr.f32.gmra.mrb[4].mxu0 %v369_v13  ;;  %v412_v12 = vld [vmem:[%s2806_s5 + $0x1b8] sm:$0xff]  ;;  %v2580_v13 = vpack.c.bf16 %v790_v6, %v789_v5  ;;  %v834_v5 = vld [vmem:[%s3876_s1 + $0x2e8] sm:$0xff]  ;;  %v633_v6 = vld [vmem:[%s2806_s5 + $0x8a0] sm:$0xff] }
  0x59   : > { %1076 = vmatprep.mubr.f32.mxu1 %v568_v14  ;;  %916 = vmatprep.mubr.f32.mxu0 %v376_v15  ;;  %v2628_v14 = vpack.c.bf16 %v822_v8, %v821_v7  ;;  %v791_v15 = vld [vmem:[%s3876_s1 + $0x190] sm:$0xff]  ;;  %v441_v7 = vld [vmem:[%s2806_s5 + $0x2a0] sm:$0xff]  ;;  %v640_v8 = vld [vmem:[%s2806_s5 + $0x8d8] sm:$0xff] }
  0x5a   : > { %2563 = vmatpush1.bf16.msra.mxu1 %v2562_v16  ;;  %2611 = vmatpush1.bf16.msra.mxu0 %v2610_v17  ;;  %v792_v16 = vld [vmem:[%s3876_s1 + $0x198] sm:$0xff]  ;;  %v823_v17 = vld [vmem:[%s3876_s1 + $0x290] sm:$0xff] }
  0x5b   : > { %2564 = vmatprep.subr.bf16.mxu1 %v2735_v3  ;;  %2612 = vmatprep.subr.bf16.mxu0 %v2735_v3 }
  0x5c   : > { %1077 = vmatmul.mubr.f32.gmra.mrb[6].mxu1 %v567_v22  ;;  %917 = vmatmul.mubr.f32.gmra.mrb[6].mxu0 %v375_v23  ;;  %v418_v22 = vld [vmem:[%s2806_s5 + $0x1e8] sm:$0xff]  ;;  %v2583_v23 = vpack.c.bf16 %v792_v16, %v791_v15  ;;  %v836_v15 = vld [vmem:[%s3876_s1 + $0x2f8] sm:$0xff]  ;;  %v639_v16 = vld [vmem:[%s2806_s5 + $0x8d0] sm:$0xff] }
  0x5d   : > { %1081 = vmatprep.mubr.f32.mxu1 %v574_v24  ;;  %921 = vmatprep.mubr.f32.mxu0 %v382_v25  ;;  %v2631_v24 = vpack.c.bf16 %v824_v18, %v823_v17  ;;  %v793_v25 = vld [vmem:[%s3876_s1 + $0x1a0] sm:$0xff]  ;;  %v447_v17 = vld [vmem:[%s2806_s5 + $0x2d0] sm:$0xff]  ;;  %v646_v18 = vld [vmem:[%s2806_s5 + $0x908] sm:$0xff] }
  0x5e   : > { %2566 = vmatpush1.bf16.msra.mxu1 %v2565_v26  ;;  %2614 = vmatpush1.bf16.msra.mxu0 %v2613_v27  ;;  %v794_v26 = vld [vmem:[%s3876_s1 + $0x1a8] sm:$0xff]  ;;  %v825_v27 = vld [vmem:[%s3876_s1 + $0x2a0] sm:$0xff] }
  0x5f   : > { %2567 = vmatprep.subr.bf16.mxu1 %v2735_v3  ;;  %2615 = vmatprep.subr.bf16.mxu0 %v2735_v3 }
  0x60   : > { %1082 = vmatmul.mubr.f32.gmra.mrb[8].mxu1 %v573_v32  ;;  %922 = vmatmul.mubr.f32.gmra.mrb[8].mxu0 %v381_v33  ;;  %v424_v32 = vld [vmem:[%s2806_s5 + $0x218] sm:$0xff]  ;;  %v2586_v33 = vpack.c.bf16 %v794_v26, %v793_v25  ;;  %v459_v26 = vld [vmem:[%s2806_s5 + $0x330] sm:$0xff] }
  0x61   : > { %1086 = vmatprep.mubr.f32.mxu1 %v580_v34  ;;  %926 = vmatprep.mubr.f32.mxu0 %v388_v35  ;;  %v2634_v34 = vpack.c.bf16 %v826_v28, %v825_v27  ;;  %v795_v35 = vld [vmem:[%s3876_s1 + $0x1b0] sm:$0xff]  ;;  %v460_v25 = vld [vmem:[%s2806_s5 + $0x338] sm:$0xff]  ;;  %v658_v27 = vld [vmem:[%s2806_s5 + $0x968] sm:$0xff] }
  0x62   : > { %2569 = vmatpush1.bf16.msra.mxu1 %v2568_v36  ;;  %2617 = vmatpush1.bf16.msra.mxu0 %v2616_v37  ;;  %v796_v36 = vld [vmem:[%s3876_s1 + $0x1b8] sm:$0xff]  ;;  %v827_v37 = vld [vmem:[%s3876_s1 + $0x2b0] sm:$0xff]  ;;  %v466_v28 = vld [vmem:[%s2806_s5 + $0x368] sm:$0xff] }
  0x63   : > { %2570 = vmatprep.subr.bf16.mxu1 %v2735_v3  ;;  %2618 = vmatprep.subr.bf16.mxu0 %v2735_v3 }
  0x64   : > { %1087 = vmatmul.mubr.f32.gmra.mrb[10].mxu1 %v579_v42  ;;  %927 = vmatmul.mubr.f32.gmra.mrb[10].mxu0 %v387_v43  ;;  %v430_v42 = vld [vmem:[%s2806_s5 + $0x248] sm:$0xff]  ;;  %v2589_v43 = vpack.c.bf16 %v796_v36, %v795_v35 }
  0x65   : > { %1091 = vmatprep.mubr.f32.mxu1 %v586_v44  ;;  %931 = vmatprep.mubr.f32.mxu0 %v394_v45  ;;  %v2637_v44 = vpack.c.bf16 %v828_v38, %v827_v37  ;;  %v797_v45 = vld [vmem:[%s3876_s1 + $0x1c0] sm:$0xff]  ;;  %v670_v35 = vld [vmem:[%s2806_s5 + $0x9c8] sm:$0xff] }
  0x66   : > { %2572 = vmatpush1.bf16.msra.mxu1 %v2571_v46  ;;  %2620 = vmatpush1.bf16.msra.mxu0 %v2619_v47  ;;  %v798_v46 = vld [vmem:[%s3876_s1 + $0x1c8] sm:$0xff]  ;;  %v829_v47 = vld [vmem:[%s3876_s1 + $0x2c0] sm:$0xff] }
  0x67   : > { %2573 = vmatprep.subr.bf16.mxu1 %v2735_v3  ;;  %2621 = vmatprep.subr.bf16.mxu0 %v2735_v3  ;;  %v478_v36 = vld [vmem:[%s2806_s5 + $0x3c8] sm:$0xff]  ;;  %v669_v37 = vld [vmem:[%s2806_s5 + $0x9c0] sm:$0xff] }
  0x68   : > { %1092 = vmatmul.mubr.f32.gmra.mrb[12].mxu1 %v585_v52  ;;  %932 = vmatmul.mubr.f32.gmra.mrb[12].mxu0 %v393_v53  ;;  %v436_v52 = vld [vmem:[%s2806_s5 + $0x278] sm:$0xff]  ;;  %v2592_v53 = vpack.c.bf16 %v798_v46, %v797_v45  ;;  %v477_v38 = vld [vmem:[%s2806_s5 + $0x3c0] sm:$0xff] }
  0x69   : > { %1096 = vmatprep.mubr.f32.mxu1 %v592_v54  ;;  %936 = vmatprep.mubr.f32.mxu0 %v400_v55  ;;  %v2640_v54 = vpack.c.bf16 %v830_v48, %v829_v47  ;;  %v799_v55 = vld [vmem:[%s3876_s1 + $0x1d0] sm:$0xff]  ;;  %v681_v45 = vld [vmem:[%s2806_s5 + $0xa20] sm:$0xff]  ;;  %v688_v47 = vld [vmem:[%s2806_s5 + $0xa58] sm:$0xff] }
  0x6a   : > { %2575 = vmatpush1.bf16.msra.mxu1 %v2574_v56  ;;  %2623 = vmatpush1.bf16.msra.mxu0 %v2622_v57  ;;  %v800_v56 = vld [vmem:[%s3876_s1 + $0x1d8] sm:$0xff]  ;;  %v831_v57 = vld [vmem:[%s3876_s1 + $0x2d0] sm:$0xff]  ;;  %v489_v46 = vld [vmem:[%s2806_s5 + $0x420] sm:$0xff] }
  0x6b   : > { %2576 = vmatprep.subr.bf16.mxu1 %v2735_v3  ;;  %2624 = vmatprep.subr.bf16.mxu0 %v2735_v3  ;;  %v496_v48 = vld [vmem:[%s2806_s5 + $0x458] sm:$0xff] }
  0x6c   : > { %1097 = vmatmul.mubr.f32.gmra.mrb[14].mxu1 %v591_v62  ;;  %937 = vmatmul.mubr.f32.gmra.mrb[14].mxu0 %v399_v63  ;;  %v442_v62 = vld [vmem:[%s2806_s5 + $0x2a8] sm:$0xff]  ;;  %v2595_v63 = vpack.c.bf16 %v800_v56, %v799_v55  ;;  %v700_v55 = vld [vmem:[%s2806_s5 + $0xab8] sm:$0xff] }
  0x6d   : > { %1101 = vmatprep.mubr.f32.mxu1 %v598_v0  ;;  %941 = vmatprep.mubr.f32.mxu0 %v406_v1  ;;  %v2643_v0 = vpack.c.bf16 %v832_v58, %v831_v57  ;;  %v801_v1 = vld [vmem:[%s3876_s1 + $0x1e0] sm:$0xff]  ;;  %v508_v56 = vld [vmem:[%s2806_s5 + $0x4b8] sm:$0xff]  ;;  %v699_v57 = vld [vmem:[%s2806_s5 + $0xab0] sm:$0xff] }
  0x6e   : > { %2578 = vmatpush1.bf16.msra.mxu1 %v2577_v2  ;;  %2626 = vmatpush1.bf16.msra.mxu0 %v2625_v4  ;;  %v802_v2 = vld [vmem:[%s3876_s1 + $0x1e8] sm:$0xff]  ;;  %v833_v4 = vld [vmem:[%s3876_s1 + $0x2e0] sm:$0xff]  ;;  %v507_v58 = vld [vmem:[%s2806_s5 + $0x4b0] sm:$0xff] }
  0x6f   : > { %2579 = vmatprep.subr.bf16.mxu1 %v2735_v3  ;;  %2627 = vmatprep.subr.bf16.mxu0 %v2735_v3 }
  0x70   : > { %1102 = vmatmul.mubr.f32.gmra.mrb[16].mxu1 %v597_v9  ;;  %942 = vmatmul.mubr.f32.gmra.mrb[16].mxu0 %v405_v10  ;;  %v448_v9 = vld [vmem:[%s2806_s5 + $0x2d8] sm:$0xff]  ;;  %v2598_v10 = vpack.c.bf16 %v802_v2, %v801_v1  ;;  %v711_v1 = vld [vmem:[%s2806_s5 + $0xb10] sm:$0xff] }
  0x71   : > { %1106 = vmatprep.mubr.f32.mxu1 %v604_v11  ;;  %946 = vmatprep.mubr.f32.mxu0 %v412_v12  ;;  %v2646_v11 = vpack.c.bf16 %v834_v5, %v833_v4  ;;  %v803_v12 = vld [vmem:[%s3876_s1 + $0x1f0] sm:$0xff]  ;;  %v718_v4 = vld [vmem:[%s2806_s5 + $0xb48] sm:$0xff] }
  0x72   : > { %2581 = vmatpush1.bf16.msra.mxu1 %v2580_v13  ;;  %2629 = vmatpush1.bf16.msra.mxu0 %v2628_v14  ;;  %v804_v13 = vld [vmem:[%s3876_s1 + $0x1f8] sm:$0xff]  ;;  %v835_v14 = vld [vmem:[%s3876_s1 + $0x2f0] sm:$0xff]  ;;  %v526_v5 = vld [vmem:[%s2806_s5 + $0x548] sm:$0xff] }
  0x73   : > { %2582 = vmatprep.subr.bf16.mxu1 %v2735_v3  ;;  %2630 = vmatprep.subr.bf16.mxu0 %v2735_v3  ;;  %v519_v2 = vld [vmem:[%s2806_s5 + $0x510] sm:$0xff] }
  0x74   : > { %1107 = vmatmul.mubr.f32.gmra.mrb[18].mxu1 %v603_v19  ;;  %947 = vmatmul.mubr.f32.gmra.mrb[18].mxu0 %v411_v20  ;;  %v454_v19 = vld [vmem:[%s2806_s5 + $0x308] sm:$0xff]  ;;  %v2601_v20 = vpack.c.bf16 %v804_v13, %v803_v12 }
  0x75   : > { %1111 = vmatprep.mubr.f32.mxu1 %v610_v21  ;;  %951 = vmatprep.mubr.f32.mxu0 %v418_v22  ;;  %v2649_v21 = vpack.c.bf16 %v836_v15, %v835_v14  ;;  %v645_v22 = vld [vmem:[%s2806_s5 + $0x900] sm:$0xff]  ;;  %v730_v12 = vld [vmem:[%s2806_s5 + $0xba8] sm:$0xff] }
  0x76   : > { %2584 = vmatpush1.bf16.msra.mxu1 %v2583_v23  ;;  %2632 = vmatpush1.bf16.msra.mxu0 %v2631_v24  ;;  %v453_v23 = vld [vmem:[%s2806_s5 + $0x300] sm:$0xff]  ;;  %v652_v24 = vld [vmem:[%s2806_s5 + $0x938] sm:$0xff]  ;;  %v538_v13 = vld [vmem:[%s2806_s5 + $0x5a8] sm:$0xff] }
  0x77   : > { %2585 = vmatprep.subr.bf16.mxu1 %v2735_v3  ;;  %2633 = vmatprep.subr.bf16.mxu0 %v2735_v3  ;;  %v729_v14 = vld [vmem:[%s2806_s5 + $0xba0] sm:$0xff] }
  0x78   : > { %1112 = vmatmul.mubr.f32.gmra.mrb[20].mxu1 %v609_v29  ;;  %952 = vmatmul.mubr.f32.gmra.mrb[20].mxu0 %v417_v30  ;;  %v657_v29 = vld [vmem:[%s2806_s5 + $0x960] sm:$0xff] }
  0x79   : > { %1116 = vmatprep.mubr.f32.mxu1 %v616_v31  ;;  %956 = vmatprep.mubr.f32.mxu0 %v424_v32  ;;  %v465_v30 = vld [vmem:[%s2806_s5 + $0x360] sm:$0xff]  ;;  %v664_v31 = vld [vmem:[%s2806_s5 + $0x998] sm:$0xff] }
  0x7a   : > { %2587 = vmatpush1.bf16.msra.mxu1 %v2586_v33  ;;  %2635 = vmatpush1.bf16.msra.mxu0 %v2634_v34  ;;  %v472_v32 = vld [vmem:[%s2806_s5 + $0x398] sm:$0xff]  ;;  %v663_v33 = vld [vmem:[%s2806_s5 + $0x990] sm:$0xff]  ;;  %v537_v15 = vld [vmem:[%s2806_s5 + $0x5a0] sm:$0xff] }
  0x7b   : > { %2588 = vmatprep.subr.bf16.mxu1 %v2735_v3  ;;  %2636 = vmatprep.subr.bf16.mxu0 %v2735_v3  ;;  %v471_v34 = vld [vmem:[%s2806_s5 + $0x390] sm:$0xff] }
  0x7c   : > { %1117 = vmatmul.mubr.f32.gmra.mrb[22].mxu1 %v615_v39  ;;  %957 = vmatmul.mubr.f32.gmra.mrb[22].mxu0 %v423_v40  ;;  %v676_v39 = vld [vmem:[%s2806_s5 + $0x9f8] sm:$0xff] }
  0x7d   : > { %1121 = vmatprep.mubr.f32.mxu1 %v622_v41  ;;  %961 = vmatprep.mubr.f32.mxu0 %v430_v42  ;;  %v484_v40 = vld [vmem:[%s2806_s5 + $0x3f8] sm:$0xff]  ;;  %v675_v41 = vld [vmem:[%s2806_s5 + $0x9f0] sm:$0xff] }
  0x7e   : > { %2590 = vmatpush1.bf16.msra.mxu1 %v2589_v43  ;;  %2638 = vmatpush1.bf16.msra.mxu0 %v2637_v44  ;;  %v483_v42 = vld [vmem:[%s2806_s5 + $0x3f0] sm:$0xff]  ;;  %v682_v43 = vld [vmem:[%s2806_s5 + $0xa28] sm:$0xff] }
  0x7f   : > { %2591 = vmatprep.subr.bf16.mxu1 %v2735_v3  ;;  %2639 = vmatprep.subr.bf16.mxu0 %v2735_v3  ;;  %v490_v44 = vld [vmem:[%s2806_s5 + $0x428] sm:$0xff] }
  0x80   : > { %1122 = vmatmul.mubr.f32.gmra.mrb[24].mxu1 %v621_v49  ;;  %962 = vmatmul.mubr.f32.gmra.mrb[24].mxu0 %v429_v50  ;;  %v687_v49 = vld [vmem:[%s2806_s5 + $0xa50] sm:$0xff] }
  0x81   : > { %1126 = vmatprep.mubr.f32.mxu1 %v628_v51  ;;  %966 = vmatprep.mubr.f32.mxu0 %v436_v52  ;;  %v495_v50 = vld [vmem:[%s2806_s5 + $0x450] sm:$0xff]  ;;  %v694_v51 = vld [vmem:[%s2806_s5 + $0xa88] sm:$0xff] }
  0x82   : > { %2593 = vmatpush1.bf16.msra.mxu1 %v2592_v53  ;;  %2641 = vmatpush1.bf16.msra.mxu0 %v2640_v54  ;;  %v502_v52 = vld [vmem:[%s2806_s5 + $0x488] sm:$0xff]  ;;  %v693_v53 = vld [vmem:[%s2806_s5 + $0xa80] sm:$0xff] }
  0x83   : > { %2594 = vmatprep.subr.bf16.mxu1 %v2735_v3  ;;  %2642 = vmatprep.subr.bf16.mxu0 %v2735_v3  ;;  %v501_v54 = vld [vmem:[%s2806_s5 + $0x480] sm:$0xff] }
  0x84   : > { %1127 = vmatmul.mubr.f32.gmra.mrb[26].mxu1 %v627_v59  ;;  %967 = vmatmul.mubr.f32.gmra.mrb[26].mxu0 %v435_v60  ;;  %v706_v59 = vld [vmem:[%s2806_s5 + $0xae8] sm:$0xff] }
  0x85   : > { %1131 = vmatprep.mubr.f32.mxu1 %v634_v61  ;;  %971 = vmatprep.mubr.f32.mxu0 %v442_v62  ;;  %v514_v60 = vld [vmem:[%s2806_s5 + $0x4e8] sm:$0xff]  ;;  %v705_v61 = vld [vmem:[%s2806_s5 + $0xae0] sm:$0xff] }
  0x86   : > { %2596 = vmatpush1.bf16.msra.mxu1 %v2595_v63  ;;  %2644 = vmatpush1.bf16.msra.mxu0 %v2643_v0  ;;  %v513_v62 = vld [vmem:[%s2806_s5 + $0x4e0] sm:$0xff]  ;;  %v712_v63 = vld [vmem:[%s2806_s5 + $0xb18] sm:$0xff] }
  0x87   : > { %2597 = vmatprep.subr.bf16.mxu1 %v2735_v3  ;;  %2645 = vmatprep.subr.bf16.mxu0 %v2735_v3  ;;  %v520_v0 = vld [vmem:[%s2806_s5 + $0x518] sm:$0xff] }
  0x88   : > { %1132 = vmatmul.mubr.f32.gmra.mrb[28].mxu1 %v633_v6  ;;  %972 = vmatmul.mubr.f32.gmra.mrb[28].mxu0 %v441_v7  ;;  %v717_v6 = vld [vmem:[%s2806_s5 + $0xb40] sm:$0xff] }
  0x89   : > { %1136 = vmatprep.mubr.f32.mxu1 %v640_v8  ;;  %976 = vmatprep.mubr.f32.mxu0 %v448_v9  ;;  %v525_v7 = vld [vmem:[%s2806_s5 + $0x540] sm:$0xff]  ;;  %v724_v8 = vld [vmem:[%s2806_s5 + $0xb78] sm:$0xff] }
  0x8a   : > { %2599 = vmatpush1.bf16.msra.mxu1 %v2598_v10  ;;  %2647 = vmatpush1.bf16.msra.mxu0 %v2646_v11  ;;  %v532_v9 = vld [vmem:[%s2806_s5 + $0x578] sm:$0xff]  ;;  %v723_v10 = vld [vmem:[%s2806_s5 + $0xb70] sm:$0xff] }
  0x8b   : > { %2600 = vmatprep.subr.bf16.mxu1 %v2735_v3  ;;  %2648 = vmatprep.subr.bf16.mxu0 %v2735_v3  ;;  %v651_v3 = vld [vmem:[%s2806_s5 + $0x930] sm:$0xff] }
  0x8c   : > { %1137 = vmatmul.mubr.f32.gmra.mrb[30].mxu1 %v639_v16  ;;  %977 = vmatmul.mubr.f32.gmra.mrb[30].mxu0 %v447_v17  ;;  %v531_v11 = vld [vmem:[%s2806_s5 + $0x570] sm:$0xff]  ;;  %v736_v16 = vld [vmem:[%s2806_s5 + $0xbd8] sm:$0xff] }
  0x8d   : > { %1141 = vmatprep.mubr.f32.mxu1 %v646_v18  ;;  %981 = vmatprep.mubr.f32.mxu0 %v454_v19  ;;  %v544_v17 = vld [vmem:[%s2806_s5 + $0x5d8] sm:$0xff]  ;;  %v735_v18 = vld [vmem:[%s2806_s5 + $0xbd0] sm:$0xff] }
  0x8e   : > { %2602 = vmatpush1.bf16.msra.mxu1 %v2601_v20  ;;  %2650 = vmatpush1.bf16.msra.mxu0 %v2649_v21  ;;  %v543_v19 = vld [vmem:[%s2806_s5 + $0x5d0] sm:$0xff]  ;;  %v360_v20 = vld [vmem:[%s2806_s5 + $0x18] sm:$0xff]  ;;  %v362_v21 = vld [vmem:[%s2806_s5 + $0x28] sm:$0xff] }
  0x90   : > { %1142 = vmatmul.mubr.f32.gmra.mrb[32].mxu1 %v645_v22  ;;  %982 = vmatmul.mubr.f32.gmra.mrb[32].mxu0 %v453_v23  ;;  %v359_v22 = vld [vmem:[%s2806_s5 + $0x10] sm:$0xff]  ;;  %v361_v23 = vld [vmem:[%s2806_s5 + $0x20] sm:$0xff] }
  0x91   : > { %1146 = vmatprep.mubr.f32.mxu1 %v652_v24  ;;  %986 = vmatprep.mubr.f32.mxu0 %v460_v25  ;;  %v366_v24 = vld [vmem:[%s2806_s5 + $0x48] sm:$0xff]  ;;  %v368_v25 = vld [vmem:[%s2806_s5 + $0x58] sm:$0xff] }
  0x94   : > { %1147 = vmatmul.mubr.f32.gmra.mrb[34].mxu1 %v651_v3  ;;  %987 = vmatmul.mubr.f32.gmra.mrb[34].mxu0 %v459_v26  ;;  %v365_v3 = vld [vmem:[%s2806_s5 + $0x40] sm:$0xff]  ;;  %v367_v26 = vld [vmem:[%s2806_s5 + $0x50] sm:$0xff] }
  0x95   : > { %1151 = vmatprep.mubr.f32.mxu1 %v658_v27  ;;  %991 = vmatprep.mubr.f32.mxu0 %v466_v28  ;;  %v372_v27 = vld [vmem:[%s2806_s5 + $0x78] sm:$0xff]  ;;  %v374_v28 = vld [vmem:[%s2806_s5 + $0x88] sm:$0xff] }
  0x98   : > { %1152 = vmatmul.mubr.f32.gmra.mrb[36].mxu1 %v657_v29  ;;  %992 = vmatmul.mubr.f32.gmra.mrb[36].mxu0 %v465_v30  ;;  %v371_v29 = vld [vmem:[%s2806_s5 + $0x70] sm:$0xff]  ;;  %v373_v30 = vld [vmem:[%s2806_s5 + $0x80] sm:$0xff] }
  0x99   : > { %1156 = vmatprep.mubr.f32.mxu1 %v664_v31  ;;  %996 = vmatprep.mubr.f32.mxu0 %v472_v32  ;;  %v378_v31 = vld [vmem:[%s2806_s5 + $0xa8] sm:$0xff]  ;;  %v380_v32 = vld [vmem:[%s2806_s5 + $0xb8] sm:$0xff] }
  0x9c   : > { %1157 = vmatmul.mubr.f32.gmra.mrb[38].mxu1 %v663_v33  ;;  %997 = vmatmul.mubr.f32.gmra.mrb[38].mxu0 %v471_v34  ;;  %v377_v33 = vld [vmem:[%s2806_s5 + $0xa0] sm:$0xff]  ;;  %v379_v34 = vld [vmem:[%s2806_s5 + $0xb0] sm:$0xff] }
  0x9d   : > { %1161 = vmatprep.mubr.f32.mxu1 %v670_v35  ;;  %1001 = vmatprep.mubr.f32.mxu0 %v478_v36  ;;  %v384_v35 = vld [vmem:[%s2806_s5 + $0xd8] sm:$0xff]  ;;  %v386_v36 = vld [vmem:[%s2806_s5 + $0xe8] sm:$0xff] }
  0xa0   : > { %1162 = vmatmul.mubr.f32.gmra.mrb[40].mxu1 %v669_v37  ;;  %1002 = vmatmul.mubr.f32.gmra.mrb[40].mxu0 %v477_v38  ;;  %v383_v37 = vld [vmem:[%s2806_s5 + $0xd0] sm:$0xff]  ;;  %v385_v38 = vld [vmem:[%s2806_s5 + $0xe0] sm:$0xff] }
  0xa1   : > { %1166 = vmatprep.mubr.f32.mxu1 %v676_v39  ;;  %1006 = vmatprep.mubr.f32.mxu0 %v484_v40  ;;  %v390_v39 = vld [vmem:[%s2806_s5 + $0x108] sm:$0xff]  ;;  %v392_v40 = vld [vmem:[%s2806_s5 + $0x118] sm:$0xff] }
  0xa4   : > { %1167 = vmatmul.mubr.f32.gmra.mrb[42].mxu1 %v675_v41  ;;  %1007 = vmatmul.mubr.f32.gmra.mrb[42].mxu0 %v483_v42  ;;  %v389_v41 = vld [vmem:[%s2806_s5 + $0x100] sm:$0xff]  ;;  %v391_v42 = vld [vmem:[%s2806_s5 + $0x110] sm:$0xff] }
  0xa5   : > { %1171 = vmatprep.mubr.f32.mxu1 %v682_v43  ;;  %1011 = vmatprep.mubr.f32.mxu0 %v490_v44  ;;  %v396_v43 = vld [vmem:[%s2806_s5 + $0x138] sm:$0xff]  ;;  %v398_v44 = vld [vmem:[%s2806_s5 + $0x148] sm:$0xff] }
  0xa8   : > { %1172 = vmatmul.mubr.f32.gmra.mrb[44].mxu1 %v681_v45  ;;  %1012 = vmatmul.mubr.f32.gmra.mrb[44].mxu0 %v489_v46  ;;  %v395_v45 = vld [vmem:[%s2806_s5 + $0x130] sm:$0xff]  ;;  %v397_v46 = vld [vmem:[%s2806_s5 + $0x140] sm:$0xff] }
  0xa9   : > { %1176 = vmatprep.mubr.f32.mxu1 %v688_v47  ;;  %1016 = vmatprep.mubr.f32.mxu0 %v496_v48  ;;  %v402_v47 = vld [vmem:[%s2806_s5 + $0x168] sm:$0xff]  ;;  %v404_v48 = vld [vmem:[%s2806_s5 + $0x178] sm:$0xff] }
  0xac   : > { %1177 = vmatmul.mubr.f32.gmra.mrb[46].mxu1 %v687_v49  ;;  %1017 = vmatmul.mubr.f32.gmra.mrb[46].mxu0 %v495_v50  ;;  %v401_v49 = vld [vmem:[%s2806_s5 + $0x160] sm:$0xff]  ;;  %v403_v50 = vld [vmem:[%s2806_s5 + $0x170] sm:$0xff] }
  0xad   : > { %1181 = vmatprep.mubr.f32.mxu1 %v694_v51  ;;  %1021 = vmatprep.mubr.f32.mxu0 %v502_v52  ;;  %v408_v51 = vld [vmem:[%s2806_s5 + $0x198] sm:$0xff]  ;;  %v410_v52 = vld [vmem:[%s2806_s5 + $0x1a8] sm:$0xff] }
  0xb0   : > { %1182 = vmatmul.mubr.f32.gmra.mrb[48].mxu1 %v693_v53  ;;  %1022 = vmatmul.mubr.f32.gmra.mrb[48].mxu0 %v501_v54  ;;  %v407_v53 = vld [vmem:[%s2806_s5 + $0x190] sm:$0xff]  ;;  %v409_v54 = vld [vmem:[%s2806_s5 + $0x1a0] sm:$0xff] }
  0xb1   : > { %1186 = vmatprep.mubr.f32.mxu1 %v700_v55  ;;  %1026 = vmatprep.mubr.f32.mxu0 %v508_v56  ;;  %v414_v55 = vld [vmem:[%s2806_s5 + $0x1c8] sm:$0xff]  ;;  %v416_v56 = vld [vmem:[%s2806_s5 + $0x1d8] sm:$0xff] }
  0xb4   : > { %1187 = vmatmul.mubr.f32.gmra.mrb[50].mxu1 %v699_v57  ;;  %1027 = vmatmul.mubr.f32.gmra.mrb[50].mxu0 %v507_v58  ;;  %v413_v57 = vld [vmem:[%s2806_s5 + $0x1c0] sm:$0xff]  ;;  %v415_v58 = vld [vmem:[%s2806_s5 + $0x1d0] sm:$0xff] }
  0xb5   : > { %1191 = vmatprep.mubr.f32.mxu1 %v706_v59  ;;  %1031 = vmatprep.mubr.f32.mxu0 %v514_v60  ;;  %v420_v59 = vld [vmem:[%s2806_s5 + $0x1f8] sm:$0xff]  ;;  %v422_v60 = vld [vmem:[%s2806_s5 + $0x208] sm:$0xff] }
  0xb8   : > { %1192 = vmatmul.mubr.f32.gmra.mrb[52].mxu1 %v705_v61  ;;  %1032 = vmatmul.mubr.f32.gmra.mrb[52].mxu0 %v513_v62  ;;  %v419_v61 = vld [vmem:[%s2806_s5 + $0x1f0] sm:$0xff]  ;;  %v421_v62 = vld [vmem:[%s2806_s5 + $0x200] sm:$0xff] }
  0xb9   : > { %1196 = vmatprep.mubr.f32.mxu1 %v712_v63  ;;  %1036 = vmatprep.mubr.f32.mxu0 %v520_v0  ;;  %v426_v63 = vld [vmem:[%s2806_s5 + $0x228] sm:$0xff]  ;;  %v428_v0 = vld [vmem:[%s2806_s5 + $0x238] sm:$0xff] }
  0xbc   : > { %1197 = vmatmul.mubr.f32.gmra.mrb[54].mxu1 %v711_v1  ;;  %1037 = vmatmul.mubr.f32.gmra.mrb[54].mxu0 %v519_v2  ;;  %v425_v1 = vld [vmem:[%s2806_s5 + $0x220] sm:$0xff]  ;;  %v427_v2 = vld [vmem:[%s2806_s5 + $0x230] sm:$0xff] }
  0xbd   : > { %1201 = vmatprep.mubr.f32.mxu1 %v718_v4  ;;  %1041 = vmatprep.mubr.f32.mxu0 %v526_v5  ;;  %v432_v4 = vld [vmem:[%s2806_s5 + $0x258] sm:$0xff]  ;;  %v434_v5 = vld [vmem:[%s2806_s5 + $0x268] sm:$0xff] }
  0xc0   : > { %1202 = vmatmul.mubr.f32.gmra.mrb[56].mxu1 %v717_v6  ;;  %1042 = vmatmul.mubr.f32.gmra.mrb[56].mxu0 %v525_v7  ;;  %v431_v6 = vld [vmem:[%s2806_s5 + $0x250] sm:$0xff]  ;;  %v433_v7 = vld [vmem:[%s2806_s5 + $0x260] sm:$0xff] }
  0xc1   : > { %1206 = vmatprep.mubr.f32.mxu1 %v724_v8  ;;  %1046 = vmatprep.mubr.f32.mxu0 %v532_v9  ;;  %v438_v8 = vld [vmem:[%s2806_s5 + $0x288] sm:$0xff]  ;;  %v440_v9 = vld [vmem:[%s2806_s5 + $0x298] sm:$0xff] }
  0xc4   : > { %1207 = vmatmul.mubr.f32.gmra.mrb[58].mxu1 %v723_v10  ;;  %1047 = vmatmul.mubr.f32.gmra.mrb[58].mxu0 %v531_v11  ;;  %v437_v10 = vld [vmem:[%s2806_s5 + $0x280] sm:$0xff]  ;;  %v439_v11 = vld [vmem:[%s2806_s5 + $0x290] sm:$0xff] }
  0xc5   : > { %1211 = vmatprep.mubr.f32.mxu1 %v730_v12  ;;  %1051 = vmatprep.mubr.f32.mxu0 %v538_v13  ;;  %v444_v12 = vld [vmem:[%s2806_s5 + $0x2b8] sm:$0xff]  ;;  %v446_v13 = vld [vmem:[%s2806_s5 + $0x2c8] sm:$0xff] }
  0xc8   : > { %1212 = vmatmul.mubr.f32.gmra.mrb[60].mxu1 %v729_v14  ;;  %1052 = vmatmul.mubr.f32.gmra.mrb[60].mxu0 %v537_v15  ;;  %v443_v14 = vld [vmem:[%s2806_s5 + $0x2b0] sm:$0xff]  ;;  %v445_v15 = vld [vmem:[%s2806_s5 + $0x2c0] sm:$0xff] }
  0xc9   : > { %1216 = vmatprep.mubr.f32.mxu1 %v736_v16  ;;  %1056 = vmatprep.mubr.f32.mxu0 %v544_v17  ;;  %v450_v16 = vld [vmem:[%s2806_s5 + $0x2e8] sm:$0xff]  ;;  %v452_v17 = vld [vmem:[%s2806_s5 + $0x2f8] sm:$0xff] }
  0xcc   : > { %1217 = vmatmul.mubr.f32.gmra.mrb[62].mxu1 %v735_v18  ;;  %1057 = vmatmul.mubr.f32.gmra.mrb[62].mxu0 %v543_v19  ;;  %v449_v18 = vld [vmem:[%s2806_s5 + $0x2e0] sm:$0xff]  ;;  %v451_v19 = vld [vmem:[%s2806_s5 + $0x2f0] sm:$0xff] }
  0xcd   : > { %1286 = vmatprep.mubr.f32.mxu1 %v360_v20  ;;  %1671 = vmatprep.mubr.f32.mxu0 %v362_v21  ;;  %v456_v20 = vld [vmem:[%s2806_s5 + $0x318] sm:$0xff]  ;;  %v458_v21 = vld [vmem:[%s2806_s5 + $0x328] sm:$0xff] }
  0xd0   : > { %1287 = vmatmul.mubr.f32.vlgmr.msra.gmra.mrb[64].mxu1 %v359_v22  ;;  %1672 = vmatmul.mubr.f32.vlgmr.msra.gmra.mrb[64].mxu0 %v361_v23  ;;  %v455_v22 = vld [vmem:[%s2806_s5 + $0x310] sm:$0xff]  ;;  %v457_v23 = vld [vmem:[%s2806_s5 + $0x320] sm:$0xff] }
  0xd1   : > { %1291 = vmatprep.mubr.f32.mxu1 %v366_v24  ;;  %1676 = vmatprep.mubr.f32.mxu0 %v368_v25  ;;  %v462_v24 = vld [vmem:[%s2806_s5 + $0x348] sm:$0xff]  ;;  %v464_v25 = vld [vmem:[%s2806_s5 + $0x358] sm:$0xff] }
  0xd4   : > { %1292 = vmatmul.mubr.f32.gmra.mrb[66].mxu1 %v365_v3  ;;  %1677 = vmatmul.mubr.f32.gmra.mrb[66].mxu0 %v367_v26  ;;  %v461_v3 = vld [vmem:[%s2806_s5 + $0x340] sm:$0xff]  ;;  %v463_v26 = vld [vmem:[%s2806_s5 + $0x350] sm:$0xff] }
  0xd5   : > { %1296 = vmatprep.mubr.f32.mxu1 %v372_v27  ;;  %1681 = vmatprep.mubr.f32.mxu0 %v374_v28  ;;  %v468_v27 = vld [vmem:[%s2806_s5 + $0x378] sm:$0xff]  ;;  %v470_v28 = vld [vmem:[%s2806_s5 + $0x388] sm:$0xff] }
  0xd8   : > { %1297 = vmatmul.mubr.f32.gmra.mrb[68].mxu1 %v371_v29  ;;  %1682 = vmatmul.mubr.f32.gmra.mrb[68].mxu0 %v373_v30  ;;  %v467_v29 = vld [vmem:[%s2806_s5 + $0x370] sm:$0xff]  ;;  %v469_v30 = vld [vmem:[%s2806_s5 + $0x380] sm:$0xff] }
  0xd9   : > { %1301 = vmatprep.mubr.f32.mxu1 %v378_v31  ;;  %1686 = vmatprep.mubr.f32.mxu0 %v380_v32  ;;  %v474_v31 = vld [vmem:[%s2806_s5 + $0x3a8] sm:$0xff]  ;;  %v476_v32 = vld [vmem:[%s2806_s5 + $0x3b8] sm:$0xff] }
  0xdc   : > { %1302 = vmatmul.mubr.f32.gmra.mrb[70].mxu1 %v377_v33  ;;  %1687 = vmatmul.mubr.f32.gmra.mrb[70].mxu0 %v379_v34  ;;  %v473_v33 = vld [vmem:[%s2806_s5 + $0x3a0] sm:$0xff]  ;;  %v475_v34 = vld [vmem:[%s2806_s5 + $0x3b0] sm:$0xff] }
  0xdd   : > { %1306 = vmatprep.mubr.f32.mxu1 %v384_v35  ;;  %1691 = vmatprep.mubr.f32.mxu0 %v386_v36  ;;  %v480_v35 = vld [vmem:[%s2806_s5 + $0x3d8] sm:$0xff]  ;;  %v482_v36 = vld [vmem:[%s2806_s5 + $0x3e8] sm:$0xff] }
  0xe0   : > { %1307 = vmatmul.mubr.f32.gmra.mrb[72].mxu1 %v383_v37  ;;  %1692 = vmatmul.mubr.f32.gmra.mrb[72].mxu0 %v385_v38  ;;  %v479_v37 = vld [vmem:[%s2806_s5 + $0x3d0] sm:$0xff]  ;;  %v481_v38 = vld [vmem:[%s2806_s5 + $0x3e0] sm:$0xff] }
  0xe1   : > { %1311 = vmatprep.mubr.f32.mxu1 %v390_v39  ;;  %1696 = vmatprep.mubr.f32.mxu0 %v392_v40  ;;  %v486_v39 = vld [vmem:[%s2806_s5 + $0x408] sm:$0xff]  ;;  %v488_v40 = vld [vmem:[%s2806_s5 + $0x418] sm:$0xff] }
  0xe4   : > { %1312 = vmatmul.mubr.f32.gmra.mrb[74].mxu1 %v389_v41  ;;  %1697 = vmatmul.mubr.f32.gmra.mrb[74].mxu0 %v391_v42  ;;  %v485_v41 = vld [vmem:[%s2806_s5 + $0x400] sm:$0xff]  ;;  %v487_v42 = vld [vmem:[%s2806_s5 + $0x410] sm:$0xff] }
  0xe5   : > { %1316 = vmatprep.mubr.f32.mxu1 %v396_v43  ;;  %1701 = vmatprep.mubr.f32.mxu0 %v398_v44  ;;  %v492_v43 = vld [vmem:[%s2806_s5 + $0x438] sm:$0xff]  ;;  %v494_v44 = vld [vmem:[%s2806_s5 + $0x448] sm:$0xff] }
  0xe8   : > { %1317 = vmatmul.mubr.f32.gmra.mrb[76].mxu1 %v395_v45  ;;  %1702 = vmatmul.mubr.f32.gmra.mrb[76].mxu0 %v397_v46 }
  0xe9   : > { %1321 = vmatprep.mubr.f32.mxu1 %v402_v47  ;;  %1706 = vmatprep.mubr.f32.mxu0 %v404_v48 }
  0xec   : > { %1322 = vmatmul.mubr.f32.gmra.mrb[78].mxu1 %v401_v49  ;;  %1707 = vmatmul.mubr.f32.gmra.mrb[78].mxu0 %v403_v50  ;;  %v491_v49 = vld [vmem:[%s2806_s5 + $0x430] sm:$0xff]  ;;  %v493_v50 = vld [vmem:[%s2806_s5 + $0x440] sm:$0xff] }
  0xed   : > { %1326 = vmatprep.mubr.f32.mxu1 %v408_v51  ;;  %1711 = vmatprep.mubr.f32.mxu0 %v410_v52  ;;  %v498_v51 = vld [vmem:[%s2806_s5 + $0x468] sm:$0xff]  ;;  %v500_v52 = vld [vmem:[%s2806_s5 + $0x478] sm:$0xff] }
  0xf0   : > { %1327 = vmatmul.mubr.f32.gmra.mrb[80].mxu1 %v407_v53  ;;  %1712 = vmatmul.mubr.f32.gmra.mrb[80].mxu0 %v409_v54 }
  0xf1   : > { %1331 = vmatprep.mubr.f32.mxu1 %v414_v55  ;;  %1716 = vmatprep.mubr.f32.mxu0 %v416_v56 }
  0xf4   : > { %1332 = vmatmul.mubr.f32.gmra.mrb[82].mxu1 %v413_v57  ;;  %1717 = vmatmul.mubr.f32.gmra.mrb[82].mxu0 %v415_v58  ;;  %v497_v57 = vld [vmem:[%s2806_s5 + $0x460] sm:$0xff]  ;;  %v499_v58 = vld [vmem:[%s2806_s5 + $0x470] sm:$0xff] }
  0xf5   : > { %1336 = vmatprep.mubr.f32.mxu1 %v420_v59  ;;  %1721 = vmatprep.mubr.f32.mxu0 %v422_v60  ;;  %v504_v59 = vld [vmem:[%s2806_s5 + $0x498] sm:$0xff]  ;;  %v506_v60 = vld [vmem:[%s2806_s5 + $0x4a8] sm:$0xff] }
  0xf8   : > { %1337 = vmatmul.mubr.f32.gmra.mrb[84].mxu1 %v419_v61  ;;  %1722 = vmatmul.mubr.f32.gmra.mrb[84].mxu0 %v421_v62 }
  0xf9   : > { %1341 = vmatprep.mubr.f32.mxu1 %v426_v63  ;;  %1726 = vmatprep.mubr.f32.mxu0 %v428_v0 }
  0xfc   : > { %1342 = vmatmul.mubr.f32.gmra.mrb[86].mxu1 %v425_v1  ;;  %1727 = vmatmul.mubr.f32.gmra.mrb[86].mxu0 %v427_v2  ;;  %v503_v1 = vld [vmem:[%s2806_s5 + $0x490] sm:$0xff]  ;;  %v505_v2 = vld [vmem:[%s2806_s5 + $0x4a0] sm:$0xff] }
  0xfd   : > { %1346 = vmatprep.mubr.f32.mxu1 %v432_v4  ;;  %1731 = vmatprep.mubr.f32.mxu0 %v434_v5  ;;  %v510_v4 = vld [vmem:[%s2806_s5 + $0x4c8] sm:$0xff]  ;;  %v512_v5 = vld [vmem:[%s2806_s5 + $0x4d8] sm:$0xff] }
 0x100   : > { %1347 = vmatmul.mubr.f32.gmra.mrb[88].mxu1 %v431_v6  ;;  %1732 = vmatmul.mubr.f32.gmra.mrb[88].mxu0 %v433_v7 }
 0x101   : > { %1351 = vmatprep.mubr.f32.mxu1 %v438_v8  ;;  %1736 = vmatprep.mubr.f32.mxu0 %v440_v9 }
 0x104   : > { %1352 = vmatmul.mubr.f32.gmra.mrb[90].mxu1 %v437_v10  ;;  %1737 = vmatmul.mubr.f32.gmra.mrb[90].mxu0 %v439_v11  ;;  %v509_v10 = vld [vmem:[%s2806_s5 + $0x4c0] sm:$0xff]  ;;  %v511_v11 = vld [vmem:[%s2806_s5 + $0x4d0] sm:$0xff] }
 0x105   : > { %1356 = vmatprep.mubr.f32.mxu1 %v444_v12  ;;  %1741 = vmatprep.mubr.f32.mxu0 %v446_v13  ;;  %v516_v12 = vld [vmem:[%s2806_s5 + $0x4f8] sm:$0xff]  ;;  %v518_v13 = vld [vmem:[%s2806_s5 + $0x508] sm:$0xff] }
 0x108   : > { %1357 = vmatmul.mubr.f32.gmra.mrb[92].mxu1 %v443_v14  ;;  %1742 = vmatmul.mubr.f32.gmra.mrb[92].mxu0 %v445_v15 }
 0x109   : > { %1361 = vmatprep.mubr.f32.mxu1 %v450_v16  ;;  %1746 = vmatprep.mubr.f32.mxu0 %v452_v17 }
 0x10c   : > { %1362 = vmatmul.mubr.f32.gmra.mrb[94].mxu1 %v449_v18  ;;  %1747 = vmatmul.mubr.f32.gmra.mrb[94].mxu0 %v451_v19  ;;  %v515_v18 = vld [vmem:[%s2806_s5 + $0x4f0] sm:$0xff]  ;;  %v517_v19 = vld [vmem:[%s2806_s5 + $0x500] sm:$0xff] }
 0x10d   : > { %1366 = vmatprep.mubr.f32.mxu1 %v456_v20  ;;  %1751 = vmatprep.mubr.f32.mxu0 %v458_v21  ;;  %v522_v20 = vld [vmem:[%s2806_s5 + $0x528] sm:$0xff]  ;;  %v524_v21 = vld [vmem:[%s2806_s5 + $0x538] sm:$0xff] }
 0x110   : > { %1367 = vmatmul.mubr.f32.gmra.mrb[96].mxu1 %v455_v22  ;;  %1752 = vmatmul.mubr.f32.gmra.mrb[96].mxu0 %v457_v23 }
 0x111   : > { %1371 = vmatprep.mubr.f32.mxu1 %v462_v24  ;;  %1756 = vmatprep.mubr.f32.mxu0 %v464_v25 }
 0x114   : > { %1372 = vmatmul.mubr.f32.gmra.mrb[98].mxu1 %v461_v3  ;;  %1757 = vmatmul.mubr.f32.gmra.mrb[98].mxu0 %v463_v26  ;;  %v521_v3 = vld [vmem:[%s2806_s5 + $0x520] sm:$0xff]  ;;  %v523_v26 = vld [vmem:[%s2806_s5 + $0x530] sm:$0xff] }
 0x115   : > { %1376 = vmatprep.mubr.f32.mxu1 %v468_v27  ;;  %1761 = vmatprep.mubr.f32.mxu0 %v470_v28  ;;  %v528_v27 = vld [vmem:[%s2806_s5 + $0x558] sm:$0xff]  ;;  %v530_v28 = vld [vmem:[%s2806_s5 + $0x568] sm:$0xff] }
 0x118   : > { %1377 = vmatmul.mubr.f32.gmra.mrb[100].mxu1 %v467_v29  ;;  %1762 = vmatmul.mubr.f32.gmra.mrb[100].mxu0 %v469_v30 }
 0x119   : > { %1381 = vmatprep.mubr.f32.mxu1 %v474_v31  ;;  %1766 = vmatprep.mubr.f32.mxu0 %v476_v32 }
 0x11c   : > { %1382 = vmatmul.mubr.f32.gmra.mrb[102].mxu1 %v473_v33  ;;  %1767 = vmatmul.mubr.f32.gmra.mrb[102].mxu0 %v475_v34  ;;  %v527_v33 = vld [vmem:[%s2806_s5 + $0x550] sm:$0xff]  ;;  %v529_v34 = vld [vmem:[%s2806_s5 + $0x560] sm:$0xff] }
 0x11d   : > { %1386 = vmatprep.mubr.f32.mxu1 %v480_v35  ;;  %1771 = vmatprep.mubr.f32.mxu0 %v482_v36  ;;  %v534_v35 = vld [vmem:[%s2806_s5 + $0x588] sm:$0xff]  ;;  %v536_v36 = vld [vmem:[%s2806_s5 + $0x598] sm:$0xff] }
 0x120   : > { %1387 = vmatmul.mubr.f32.gmra.mrb[104].mxu1 %v479_v37  ;;  %1772 = vmatmul.mubr.f32.gmra.mrb[104].mxu0 %v481_v38 }
 0x121   : > { %1391 = vmatprep.mubr.f32.mxu1 %v486_v39  ;;  %1776 = vmatprep.mubr.f32.mxu0 %v488_v40 }
 0x123   : > { %v3356_v45 = vpop.f32.mrb[0].mxu1  ;;  %v3358_v46 = vpop.f32.mrb[0].mxu0 }
 0x124   : > { %v1065_v47 = vpop.f32.mrb[1].mxu1  ;;  %1392 = vmatmul.mubr.f32.gmra.mrb[106].mxu1 %v485_v41  ;;  %v905_v48 = vpop.f32.mrb[1].mxu0  ;;  %1777 = vmatmul.mubr.f32.gmra.mrb[106].mxu0 %v487_v42  ;;  %v533_v41 = vld [vmem:[%s2806_s5 + $0x580] sm:$0xff]  ;;  %v535_v42 = vld [vmem:[%s2806_s5 + $0x590] sm:$0xff] }
 0x125   : > { %1396 = vmatprep.mubr.f32.mxu1 %v492_v43  ;;  %1781 = vmatprep.mubr.f32.mxu0 %v494_v44  ;;  %v540_v43 = vld [vmem:[%s2806_s5 + $0x5b8] sm:$0xff]  ;;  %v542_v44 = vld [vmem:[%s2806_s5 + $0x5c8] sm:$0xff] }
 0x127   : > { %v3364_v53 = vpop.f32.mrb[2].mxu1  ;;  %v3366_v54 = vpop.f32.mrb[2].mxu0 }
 0x128   : > { %v1070_v55 = vpop.f32.mrb[3].mxu1  ;;  %1397 = vmatmul.mubr.f32.gmra.mrb[108].mxu1 %v491_v49  ;;  %v910_v56 = vpop.f32.mrb[3].mxu0  ;;  %1782 = vmatmul.mubr.f32.gmra.mrb[108].mxu0 %v493_v50 }
 0x129   : > { %1401 = vmatprep.mubr.f32.mxu1 %v498_v51  ;;  %1786 = vmatprep.mubr.f32.mxu0 %v500_v52  ;;  %v539_v51 = vld [vmem:[%s2806_s5 + $0x5b0] sm:$0xff]  ;;  %v541_v52 = vld [vmem:[%s2806_s5 + $0x5c0] sm:$0xff]  ;;  %v546_v55 = vld [vmem:[%s2806_s5 + $0x5e8] sm:$0xff] }
 0x12a   : > { %v548_v56 = vld [vmem:[%s2806_s5 + $0x5f8] sm:$0xff] }
 0x12b   : > { %v3372_v61 = vpop.f32.mrb[4].mxu1  ;;  %v3374_v62 = vpop.f32.mrb[4].mxu0 }
 0x12c   : > { %v1075_v63 = vpop.f32.mrb[5].mxu1  ;;  %1402 = vmatmul.mubr.f32.gmra.mrb[110].mxu1 %v497_v57  ;;  %v915_v0 = vpop.f32.mrb[5].mxu0  ;;  %1787 = vmatmul.mubr.f32.gmra.mrb[110].mxu0 %v499_v58 }
 0x12d   : > { %1406 = vmatprep.mubr.f32.mxu1 %v504_v59  ;;  %1791 = vmatprep.mubr.f32.mxu0 %v506_v60  ;;  %v545_v63 = vld [vmem:[%s2806_s5 + $0x5e0] sm:$0xff]  ;;  %v547_v0 = vld [vmem:[%s2806_s5 + $0x5f0] sm:$0xff] }
 0x12f   : > { %v3380_v6 = vpop.f32.mrb[6].mxu1  ;;  %v3382_v7 = vpop.f32.mrb[6].mxu0 }
 0x130   : > { %v1080_v8 = vpop.f32.mrb[7].mxu1  ;;  %1407 = vmatmul.mubr.f32.gmra.mrb[112].mxu1 %v503_v1  ;;  %v920_v9 = vpop.f32.mrb[7].mxu0  ;;  %1792 = vmatmul.mubr.f32.gmra.mrb[112].mxu0 %v505_v2  ;;  %v552_v1 = vld [vmem:[%s2806_s5 + $0x618] sm:$0xff]  ;;  %v554_v2 = vld [vmem:[%s2806_s5 + $0x628] sm:$0xff] }
 0x131   : > { %1411 = vmatprep.mubr.f32.mxu1 %v510_v4  ;;  %1796 = vmatprep.mubr.f32.mxu0 %v512_v5 }
 0x133   : > { %v3388_v14 = vpop.f32.mrb[8].mxu1  ;;  %v3390_v15 = vpop.f32.mrb[8].mxu0 }
 0x134   : > { %v1085_v16 = vpop.f32.mrb[9].mxu1  ;;  %1412 = vmatmul.mubr.f32.gmra.mrb[114].mxu1 %v509_v10  ;;  %v925_v17 = vpop.f32.mrb[9].mxu0  ;;  %1797 = vmatmul.mubr.f32.gmra.mrb[114].mxu0 %v511_v11  ;;  %v551_v10 = vld [vmem:[%s2806_s5 + $0x610] sm:$0xff]  ;;  %v553_v11 = vld [vmem:[%s2806_s5 + $0x620] sm:$0xff] }
 0x135   : > { %1416 = vmatprep.mubr.f32.mxu1 %v516_v12  ;;  %1801 = vmatprep.mubr.f32.mxu0 %v518_v13  ;;  %v558_v12 = vld [vmem:[%s2806_s5 + $0x648] sm:$0xff]  ;;  %v560_v13 = vld [vmem:[%s2806_s5 + $0x658] sm:$0xff] }
 0x137   : > { %v3396_v22 = vpop.f32.mrb[10].mxu1  ;;  %v3398_v23 = vpop.f32.mrb[10].mxu0 }
 0x138   : > { %v1090_v24 = vpop.f32.mrb[11].mxu1  ;;  %1417 = vmatmul.mubr.f32.gmra.mrb[116].mxu1 %v515_v18  ;;  %v930_v25 = vpop.f32.mrb[11].mxu0  ;;  %1802 = vmatmul.mubr.f32.gmra.mrb[116].mxu0 %v517_v19 }
 0x139   : > { %1421 = vmatprep.mubr.f32.mxu1 %v522_v20  ;;  %1806 = vmatprep.mubr.f32.mxu0 %v524_v21  ;;  %v557_v20 = vld [vmem:[%s2806_s5 + $0x640] sm:$0xff]  ;;  %v559_v21 = vld [vmem:[%s2806_s5 + $0x650] sm:$0xff]  ;;  %v564_v24 = vld [vmem:[%s2806_s5 + $0x678] sm:$0xff] }
 0x13a   : > { %v566_v25 = vld [vmem:[%s2806_s5 + $0x688] sm:$0xff] }
 0x13b   : > { %v3404_v29 = vpop.f32.mrb[12].mxu1  ;;  %v3406_v30 = vpop.f32.mrb[12].mxu0 }
 0x13c   : > { %v1095_v31 = vpop.f32.mrb[13].mxu1  ;;  %1422 = vmatmul.mubr.f32.gmra.mrb[118].mxu1 %v521_v3  ;;  %v935_v32 = vpop.f32.mrb[13].mxu0  ;;  %1807 = vmatmul.mubr.f32.gmra.mrb[118].mxu0 %v523_v26 }
 0x13d   : > { %1426 = vmatprep.mubr.f32.mxu1 %v528_v27  ;;  %1811 = vmatprep.mubr.f32.mxu0 %v530_v28  ;;  %v563_v31 = vld [vmem:[%s2806_s5 + $0x670] sm:$0xff]  ;;  %v565_v32 = vld [vmem:[%s2806_s5 + $0x680] sm:$0xff] }
 0x13f   : > { %v3412_v37 = vpop.f32.mrb[14].mxu1  ;;  %v3414_v38 = vpop.f32.mrb[14].mxu0 }
 0x140   : > { %v1100_v39 = vpop.f32.mrb[15].mxu1  ;;  %1427 = vmatmul.mubr.f32.gmra.mrb[120].mxu1 %v527_v33  ;;  %v940_v40 = vpop.f32.mrb[15].mxu0  ;;  %1812 = vmatmul.mubr.f32.gmra.mrb[120].mxu0 %v529_v34  ;;  %v570_v33 = vld [vmem:[%s2806_s5 + $0x6a8] sm:$0xff]  ;;  %v572_v34 = vld [vmem:[%s2806_s5 + $0x6b8] sm:$0xff] }
 0x141   : > { %1431 = vmatprep.mubr.f32.mxu1 %v534_v35  ;;  %1816 = vmatprep.mubr.f32.mxu0 %v536_v36 }
 0x143   : > { %v3420_v47 = vpop.f32.mrb[16].mxu1  ;;  %v3422_v48 = vpop.f32.mrb[16].mxu0 }
 0x144   : > { %v1105_v49 = vpop.f32.mrb[17].mxu1  ;;  %1432 = vmatmul.mubr.f32.gmra.mrb[122].mxu1 %v533_v41  ;;  %v945_v50 = vpop.f32.mrb[17].mxu0  ;;  %1817 = vmatmul.mubr.f32.gmra.mrb[122].mxu0 %v535_v42  ;;  %v569_v41 = vld [vmem:[%s2806_s5 + $0x6a0] sm:$0xff]  ;;  %v571_v42 = vld [vmem:[%s2806_s5 + $0x6b0] sm:$0xff] }
 0x145   : > { %1436 = vmatprep.mubr.f32.mxu1 %v540_v43  ;;  %1821 = vmatprep.mubr.f32.mxu0 %v542_v44  ;;  %v576_v43 = vld [vmem:[%s2806_s5 + $0x6d8] sm:$0xff]  ;;  %v578_v44 = vld [vmem:[%s2806_s5 + $0x6e8] sm:$0xff] }
 0x147   : > { %v3428_v57 = vpop.f32.mrb[18].mxu1  ;;  %v3430_v58 = vpop.f32.mrb[18].mxu0 }
 0x148   : > { %v1110_v59 = vpop.f32.mrb[19].mxu1  ;;  %1437 = vmatmul.mubr.f32.gmra.mrb[124].mxu1 %v539_v51  ;;  %v950_v60 = vpop.f32.mrb[19].mxu0  ;;  %1822 = vmatmul.mubr.f32.gmra.mrb[124].mxu0 %v541_v52 }
 0x149   : > { %1441 = vmatprep.mubr.f32.mxu1 %v546_v55  ;;  %1826 = vmatprep.mubr.f32.mxu0 %v548_v56  ;;  %v575_v55 = vld [vmem:[%s2806_s5 + $0x6d0] sm:$0xff]  ;;  %v577_v56 = vld [vmem:[%s2806_s5 + $0x6e0] sm:$0xff]  ;;  %v582_v59 = vld [vmem:[%s2806_s5 + $0x708] sm:$0xff] }
 0x14a   : > { %v584_v60 = vld [vmem:[%s2806_s5 + $0x718] sm:$0xff] }
 0x14b   : > { %v3436_v4 = vpop.f32.mrb[20].mxu1  ;;  %v3438_v5 = vpop.f32.mrb[20].mxu0 }
 0x14c   : > { %v1115_v8 = vpop.f32.mrb[21].mxu1  ;;  %1442 = vmatmul.mubr.f32.gmra.mrb[126].mxu1 %v545_v63  ;;  %v955_v9 = vpop.f32.mrb[21].mxu0  ;;  %1827 = vmatmul.mubr.f32.gmra.mrb[126].mxu0 %v547_v0 }
 0x14d   : > { %1446 = vmatprep.mubr.f32.mxu1 %v552_v1  ;;  %1831 = vmatprep.mubr.f32.mxu0 %v554_v2  ;;  %v581_v8 = vld [vmem:[%s2806_s5 + $0x700] sm:$0xff]  ;;  %v583_v9 = vld [vmem:[%s2806_s5 + $0x710] sm:$0xff] }
 0x14f   : > { %v3444_v16 = vpop.f32.mrb[22].mxu1  ;;  %v3446_v17 = vpop.f32.mrb[22].mxu0 }
 0x150   : > { %v1120_v18 = vpop.f32.mrb[23].mxu1  ;;  %1447 = vmatmul.mubr.f32.gmra.mrb[128].mxu1 %v551_v10  ;;  %v960_v19 = vpop.f32.mrb[23].mxu0  ;;  %1832 = vmatmul.mubr.f32.gmra.mrb[128].mxu0 %v553_v11  ;;  %v588_v10 = vld [vmem:[%s2806_s5 + $0x738] sm:$0xff]  ;;  %v590_v11 = vld [vmem:[%s2806_s5 + $0x748] sm:$0xff] }
 0x151   : > { %1451 = vmatprep.mubr.f32.mxu1 %v558_v12  ;;  %1836 = vmatprep.mubr.f32.mxu0 %v560_v13 }
 0x153   : > { %v3452_v3 = vpop.f32.mrb[24].mxu1  ;;  %v3454_v26 = vpop.f32.mrb[24].mxu0 }
 0x154   : > { %v1125_v27 = vpop.f32.mrb[25].mxu1  ;;  %1452 = vmatmul.mubr.f32.gmra.mrb[130].mxu1 %v557_v20  ;;  %v965_v28 = vpop.f32.mrb[25].mxu0  ;;  %1837 = vmatmul.mubr.f32.gmra.mrb[130].mxu0 %v559_v21  ;;  %v587_v20 = vld [vmem:[%s2806_s5 + $0x730] sm:$0xff]  ;;  %v589_v21 = vld [vmem:[%s2806_s5 + $0x740] sm:$0xff] }
 0x155   : > { %1456 = vmatprep.mubr.f32.mxu1 %v564_v24  ;;  %1841 = vmatprep.mubr.f32.mxu0 %v566_v25  ;;  %v594_v24 = vld [vmem:[%s2806_s5 + $0x768] sm:$0xff]  ;;  %v596_v25 = vld [vmem:[%s2806_s5 + $0x778] sm:$0xff] }
 0x157   : > { %v3460_v35 = vpop.f32.mrb[26].mxu1  ;;  %v3462_v36 = vpop.f32.mrb[26].mxu0 }
 0x158   : > { %v1130_v39 = vpop.f32.mrb[27].mxu1  ;;  %1457 = vmatmul.mubr.f32.gmra.mrb[132].mxu1 %v563_v31  ;;  %v970_v40 = vpop.f32.mrb[27].mxu0  ;;  %1842 = vmatmul.mubr.f32.gmra.mrb[132].mxu0 %v565_v32 }
 0x159   : > { %1461 = vmatprep.mubr.f32.mxu1 %v570_v33  ;;  %1846 = vmatprep.mubr.f32.mxu0 %v572_v34  ;;  %v593_v33 = vld [vmem:[%s2806_s5 + $0x760] sm:$0xff]  ;;  %v595_v34 = vld [vmem:[%s2806_s5 + $0x770] sm:$0xff]  ;;  %v600_v39 = vld [vmem:[%s2806_s5 + $0x798] sm:$0xff] }
 0x15a   : > { %v602_v40 = vld [vmem:[%s2806_s5 + $0x7a8] sm:$0xff] }
 0x15b   : > { %v3468_v49 = vpop.f32.mrb[28].mxu1  ;;  %v3470_v50 = vpop.f32.mrb[28].mxu0 }
 0x15c   : > { %v1135_v51 = vpop.f32.mrb[29].mxu1  ;;  %1462 = vmatmul.mubr.f32.gmra.mrb[134].mxu1 %v569_v41  ;;  %v975_v52 = vpop.f32.mrb[29].mxu0  ;;  %1847 = vmatmul.mubr.f32.gmra.mrb[134].mxu0 %v571_v42 }
 0x15d   : > { %1466 = vmatprep.mubr.f32.mxu1 %v576_v43  ;;  %1851 = vmatprep.mubr.f32.mxu0 %v578_v44  ;;  %v599_v51 = vld [vmem:[%s2806_s5 + $0x790] sm:$0xff]  ;;  %v601_v52 = vld [vmem:[%s2806_s5 + $0x7a0] sm:$0xff] }
 0x15f   : > { %v3476_v63 = vpop.f32.mrb[30].mxu1  ;;  %v3478_v0 = vpop.f32.mrb[30].mxu0 }
 0x160   : > { %v1140_v1 = vpop.f32.mrb[31].mxu1  ;;  %1467 = vmatmul.mubr.f32.gmra.mrb[136].mxu1 %v575_v55  ;;  %v980_v2 = vpop.f32.mrb[31].mxu0  ;;  %1852 = vmatmul.mubr.f32.gmra.mrb[136].mxu0 %v577_v56  ;;  %v606_v55 = vld [vmem:[%s2806_s5 + $0x7c8] sm:$0xff]  ;;  %v608_v56 = vld [vmem:[%s2806_s5 + $0x7d8] sm:$0xff] }
 0x161   : > { %1471 = vmatprep.mubr.f32.mxu1 %v582_v59  ;;  %1856 = vmatprep.mubr.f32.mxu0 %v584_v60 }
 0x163   : > { %v3484_v12 = vpop.f32.mrb[32].mxu1  ;;  %v3486_v13 = vpop.f32.mrb[32].mxu0 }
 0x164   : > { %3879 = vst [vmem:[#allocation2_spill] sm:$0xff] %v3484_v12  ;;  %v1145_v18 = vpop.f32.mrb[33].mxu1  ;;  %1472 = vmatmul.mubr.f32.gmra.mrb[138].mxu1 %v581_v8  ;;  %v985_v19 = vpop.f32.mrb[33].mxu0  ;;  %1857 = vmatmul.mubr.f32.gmra.mrb[138].mxu0 %v583_v9  ;;  %v605_v8 = vld [vmem:[%s2806_s5 + $0x7c0] sm:$0xff]  ;;  %v607_v9 = vld [vmem:[%s2806_s5 + $0x7d0] sm:$0xff] }
 0x165   : > { %1476 = vmatprep.mubr.f32.mxu1 %v588_v10  ;;  %1861 = vmatprep.mubr.f32.mxu0 %v590_v11  ;;  %v612_v10 = vld [vmem:[%s2806_s5 + $0x7f8] sm:$0xff]  ;;  %v614_v11 = vld [vmem:[%s2806_s5 + $0x808] sm:$0xff] }
 0x167   : > { %v3492_v27 = vpop.f32.mrb[34].mxu1  ;;  %v3494_v28 = vpop.f32.mrb[34].mxu0 }
 0x168   : > { %3880 = vst [vmem:[#allocation3_spill] sm:$0xff] %v3492_v27  ;;  %v1150_v31 = vpop.f32.mrb[35].mxu1  ;;  %1477 = vmatmul.mubr.f32.gmra.mrb[140].mxu1 %v587_v20  ;;  %v990_v32 = vpop.f32.mrb[35].mxu0  ;;  %1862 = vmatmul.mubr.f32.gmra.mrb[140].mxu0 %v589_v21 }
 0x169   : > { %1481 = vmatprep.mubr.f32.mxu1 %v594_v24  ;;  %1866 = vmatprep.mubr.f32.mxu0 %v596_v25  ;;  %v611_v24 = vld [vmem:[%s2806_s5 + $0x7f0] sm:$0xff]  ;;  %v613_v25 = vld [vmem:[%s2806_s5 + $0x800] sm:$0xff]  ;;  %v618_v31 = vld [vmem:[%s2806_s5 + $0x828] sm:$0xff] }
 0x16a   : > { %v620_v32 = vld [vmem:[%s2806_s5 + $0x838] sm:$0xff] }
 0x16b   : > { %v3500_v41 = vpop.f32.mrb[36].mxu1  ;;  %v3502_v42 = vpop.f32.mrb[36].mxu0 }
 0x16c   : > { %3881 = vst [vmem:[#allocation4_spill] sm:$0xff] %v3500_v41  ;;  %v1155_v43 = vpop.f32.mrb[37].mxu1  ;;  %1482 = vmatmul.mubr.f32.gmra.mrb[142].mxu1 %v593_v33  ;;  %v995_v44 = vpop.f32.mrb[37].mxu0  ;;  %1867 = vmatmul.mubr.f32.gmra.mrb[142].mxu0 %v595_v34 }
 0x16d   : > { %1486 = vmatprep.mubr.f32.mxu1 %v600_v39  ;;  %1871 = vmatprep.mubr.f32.mxu0 %v602_v40  ;;  %v617_v43 = vld [vmem:[%s2806_s5 + $0x820] sm:$0xff]  ;;  %v619_v44 = vld [vmem:[%s2806_s5 + $0x830] sm:$0xff] }
 0x16f   : > { %v3508_v59 = vpop.f32.mrb[38].mxu1  ;;  %v3510_v60 = vpop.f32.mrb[38].mxu0 }
 0x170   : > { %3882 = vst [vmem:[#allocation5_spill] sm:$0xff] %v3508_v59  ;;  %v1160_v1 = vpop.f32.mrb[39].mxu1  ;;  %1487 = vmatmul.mubr.f32.gmra.mrb[144].mxu1 %v599_v51  ;;  %v1000_v2 = vpop.f32.mrb[39].mxu0  ;;  %1872 = vmatmul.mubr.f32.gmra.mrb[144].mxu0 %v601_v52  ;;  %v624_v51 = vld [vmem:[%s2806_s5 + $0x858] sm:$0xff]  ;;  %v626_v52 = vld [vmem:[%s2806_s5 + $0x868] sm:$0xff] }
 0x171   : > { %1491 = vmatprep.mubr.f32.mxu1 %v606_v55  ;;  %1876 = vmatprep.mubr.f32.mxu0 %v608_v56 }
 0x173   : > { %v3516_v18 = vpop.f32.mrb[40].mxu1  ;;  %v3518_v19 = vpop.f32.mrb[40].mxu0 }
 0x174   : > { %3883 = vst [vmem:[#allocation6_spill] sm:$0xff] %v3516_v18  ;;  %v1165_v20 = vpop.f32.mrb[41].mxu1  ;;  %1492 = vmatmul.mubr.f32.gmra.mrb[146].mxu1 %v605_v8  ;;  %v1005_v21 = vpop.f32.mrb[41].mxu0  ;;  %1877 = vmatmul.mubr.f32.gmra.mrb[146].mxu0 %v607_v9  ;;  %v623_v8 = vld [vmem:[%s2806_s5 + $0x850] sm:$0xff]  ;;  %v625_v9 = vld [vmem:[%s2806_s5 + $0x860] sm:$0xff] }
 0x175   : > { %1496 = vmatprep.mubr.f32.mxu1 %v612_v10  ;;  %1881 = vmatprep.mubr.f32.mxu0 %v614_v11  ;;  %v630_v10 = vld [vmem:[%s2806_s5 + $0x888] sm:$0xff]  ;;  %v632_v11 = vld [vmem:[%s2806_s5 + $0x898] sm:$0xff] }
 0x177   : > { %v3524_v33 = vpop.f32.mrb[42].mxu1  ;;  %v3526_v34 = vpop.f32.mrb[42].mxu0 }
 0x178   : > { %3884 = vst [vmem:[#allocation7_spill] sm:$0xff] %v3524_v33  ;;  %v1170_v39 = vpop.f32.mrb[43].mxu1  ;;  %1497 = vmatmul.mubr.f32.gmra.mrb[148].mxu1 %v611_v24  ;;  %v1010_v40 = vpop.f32.mrb[43].mxu0  ;;  %1882 = vmatmul.mubr.f32.gmra.mrb[148].mxu0 %v613_v25 }
 0x179   : > { %1501 = vmatprep.mubr.f32.mxu1 %v618_v31  ;;  %1886 = vmatprep.mubr.f32.mxu0 %v620_v32  ;;  %v629_v31 = vld [vmem:[%s2806_s5 + $0x880] sm:$0xff]  ;;  %v631_v32 = vld [vmem:[%s2806_s5 + $0x890] sm:$0xff]  ;;  %v636_v39 = vld [vmem:[%s2806_s5 + $0x8b8] sm:$0xff] }
 0x17a   : > { %v638_v40 = vld [vmem:[%s2806_s5 + $0x8c8] sm:$0xff] }
 0x17b   : > { %v3532_v55 = vpop.f32.mrb[44].mxu1  ;;  %v3534_v56 = vpop.f32.mrb[44].mxu0 }
 0x17c   : > { %3885 = vst [vmem:[#allocation8_spill] sm:$0xff] %v3532_v55  ;;  %v1175_v1 = vpop.f32.mrb[45].mxu1  ;;  %1502 = vmatmul.mubr.f32.gmra.mrb[150].mxu1 %v617_v43  ;;  %v1015_v2 = vpop.f32.mrb[45].mxu0  ;;  %1887 = vmatmul.mubr.f32.gmra.mrb[150].mxu0 %v619_v44 }
 0x17d   : > { %1506 = vmatprep.mubr.f32.mxu1 %v624_v51  ;;  %1891 = vmatprep.mubr.f32.mxu0 %v626_v52  ;;  %v635_v1 = vld [vmem:[%s2806_s5 + $0x8b0] sm:$0xff]  ;;  %v637_v2 = vld [vmem:[%s2806_s5 + $0x8c0] sm:$0xff] }
 0x17f   : > { %v3540_v20 = vpop.f32.mrb[46].mxu1  ;;  %v3542_v21 = vpop.f32.mrb[46].mxu0 }
 0x180   : > { %3886 = vst [vmem:[#allocation9_spill] sm:$0xff] %v3540_v20  ;;  %v1180_v24 = vpop.f32.mrb[47].mxu1  ;;  %1507 = vmatmul.mubr.f32.gmra.mrb[152].mxu1 %v623_v8  ;;  %v1020_v25 = vpop.f32.mrb[47].mxu0  ;;  %1892 = vmatmul.mubr.f32.gmra.mrb[152].mxu0 %v625_v9  ;;  %v642_v8 = vld [vmem:[%s2806_s5 + $0x8e8] sm:$0xff]  ;;  %v644_v9 = vld [vmem:[%s2806_s5 + $0x8f8] sm:$0xff] }
 0x181   : > { %1511 = vmatprep.mubr.f32.mxu1 %v630_v10  ;;  %1896 = vmatprep.mubr.f32.mxu0 %v632_v11 }
 0x183   : > { %v3548_v43 = vpop.f32.mrb[48].mxu1  ;;  %v3550_v44 = vpop.f32.mrb[48].mxu0 }
 0x184   : > { %3887 = vst [vmem:[#allocation10_spill] sm:$0xff] %v3548_v43  ;;  %v1185_v51 = vpop.f32.mrb[49].mxu1  ;;  %1512 = vmatmul.mubr.f32.gmra.mrb[154].mxu1 %v629_v31  ;;  %v1025_v52 = vpop.f32.mrb[49].mxu0  ;;  %1897 = vmatmul.mubr.f32.gmra.mrb[154].mxu0 %v631_v32  ;;  %v641_v31 = vld [vmem:[%s2806_s5 + $0x8e0] sm:$0xff]  ;;  %v643_v32 = vld [vmem:[%s2806_s5 + $0x8f0] sm:$0xff] }
 0x185   : > { %1516 = vmatprep.mubr.f32.mxu1 %v636_v39  ;;  %1901 = vmatprep.mubr.f32.mxu0 %v638_v40  ;;  %v648_v39 = vld [vmem:[%s2806_s5 + $0x918] sm:$0xff]  ;;  %v650_v40 = vld [vmem:[%s2806_s5 + $0x928] sm:$0xff] }
 0x187   : > { %v3556_v10 = vpop.f32.mrb[50].mxu1  ;;  %v3558_v11 = vpop.f32.mrb[50].mxu0 }
 0x188   : > { %3888 = vst [vmem:[#allocation11_spill] sm:$0xff] %v3556_v10  ;;  %v1190_v24 = vpop.f32.mrb[51].mxu1  ;;  %1517 = vmatmul.mubr.f32.gmra.mrb[156].mxu1 %v635_v1  ;;  %v1030_v25 = vpop.f32.mrb[51].mxu0  ;;  %1902 = vmatmul.mubr.f32.gmra.mrb[156].mxu0 %v637_v2  ;;  %v647_v2 = vld [vmem:[%s2806_s5 + $0x910] sm:$0xff] }
 0x189   : > { %1521 = vmatprep.mubr.f32.mxu1 %v642_v8  ;;  %1906 = vmatprep.mubr.f32.mxu0 %v644_v9  ;;  %v649_v8 = vld [vmem:[%s2806_s5 + $0x920] sm:$0xff]  ;;  %v654_v9 = vld [vmem:[%s2806_s5 + $0x948] sm:$0xff]  ;;  %v656_v24 = vld [vmem:[%s2806_s5 + $0x958] sm:$0xff] }
 0x18b   : > { %v3564_v51 = vpop.f32.mrb[52].mxu1  ;;  %v3566_v52 = vpop.f32.mrb[52].mxu0 }
 0x18c   : > { %3889 = vst [vmem:[#allocation12_spill] sm:$0xff] %v3564_v51  ;;  %v1195_v10 = vpop.f32.mrb[53].mxu1  ;;  %1522 = vmatmul.mubr.f32.gmra.mrb[158].mxu1 %v641_v31  ;;  %v1035_v1 = vpop.f32.mrb[53].mxu0  ;;  %1907 = vmatmul.mubr.f32.gmra.mrb[158].mxu0 %v643_v32  ;;  %v653_v31 = vld [vmem:[%s2806_s5 + $0x940] sm:$0xff]  ;;  %v655_v32 = vld [vmem:[%s2806_s5 + $0x950] sm:$0xff] }
 0x18d   : > { %1526 = vmatprep.mubr.f32.mxu1 %v648_v39  ;;  %1911 = vmatprep.mubr.f32.mxu0 %v650_v40  ;;  %v660_v39 = vld [vmem:[%s2806_s5 + $0x978] sm:$0xff]  ;;  %v662_v40 = vld [vmem:[%s2806_s5 + $0x988] sm:$0xff] }
 0x18f   : > { %v3572_v25 = vpop.f32.mrb[54].mxu1  ;;  %v3574_v43 = vpop.f32.mrb[54].mxu0 }
 0x190   : > { %3890 = vst [vmem:[#allocation13_spill] sm:$0xff] %v3572_v25  ;;  %v1200_v51 = vpop.f32.mrb[55].mxu1  ;;  %1527 = vmatmul.mubr.f32.gmra.mrb[160].mxu1 %v647_v2  ;;  %v1040_v10 = vpop.f32.mrb[55].mxu0  ;;  %1912 = vmatmul.mubr.f32.gmra.mrb[160].mxu0 %v649_v8  ;;  %v659_v2 = vld [vmem:[%s2806_s5 + $0x970] sm:$0xff]  ;;  %v661_v8 = vld [vmem:[%s2806_s5 + $0x980] sm:$0xff] }
 0x191   : > { %1531 = vmatprep.mubr.f32.mxu1 %v654_v9  ;;  %1916 = vmatprep.mubr.f32.mxu0 %v656_v24  ;;  %v666_v9 = vld [vmem:[%s2806_s5 + $0x9a8] sm:$0xff]  ;;  %v668_v24 = vld [vmem:[%s2806_s5 + $0x9b8] sm:$0xff] }
 0x193   : > { %v3580_v1 = vpop.f32.mrb[56].mxu1  ;;  %v3582_v20 = vpop.f32.mrb[56].mxu0 }
 0x194   : > { %3891 = vst [vmem:[#allocation14_spill] sm:$0xff] %v3580_v1  ;;  %v1205_v25 = vpop.f32.mrb[57].mxu1  ;;  %1532 = vmatmul.mubr.f32.gmra.mrb[162].mxu1 %v653_v31  ;;  %v1045_v51 = vpop.f32.mrb[57].mxu0  ;;  %1917 = vmatmul.mubr.f32.gmra.mrb[162].mxu0 %v655_v32  ;;  %v665_v31 = vld [vmem:[%s2806_s5 + $0x9a0] sm:$0xff]  ;;  %v667_v32 = vld [vmem:[%s2806_s5 + $0x9b0] sm:$0xff] }
 0x195   : > { %1536 = vmatprep.mubr.f32.mxu1 %v660_v39  ;;  %1921 = vmatprep.mubr.f32.mxu0 %v662_v40  ;;  %v672_v39 = vld [vmem:[%s2806_s5 + $0x9d8] sm:$0xff]  ;;  %v674_v40 = vld [vmem:[%s2806_s5 + $0x9e8] sm:$0xff] }
 0x197   : > { %v3588_v10 = vpop.f32.mrb[58].mxu1  ;;  %v3590_v55 = vpop.f32.mrb[58].mxu0 }
 0x198   : > { %3892 = vst [vmem:[#allocation15_spill] sm:$0xff] %v3588_v10  ;;  %v1210_v1 = vpop.f32.mrb[59].mxu1  ;;  %1537 = vmatmul.mubr.f32.gmra.mrb[164].mxu1 %v659_v2  ;;  %v1050_v25 = vpop.f32.mrb[59].mxu0  ;;  %1922 = vmatmul.mubr.f32.gmra.mrb[164].mxu0 %v661_v8  ;;  %v671_v2 = vld [vmem:[%s2806_s5 + $0x9d0] sm:$0xff]  ;;  %v673_v8 = vld [vmem:[%s2806_s5 + $0x9e0] sm:$0xff] }
 0x199   : > { %1541 = vmatprep.mubr.f32.mxu1 %v666_v9  ;;  %1926 = vmatprep.mubr.f32.mxu0 %v668_v24  ;;  %v678_v9 = vld [vmem:[%s2806_s5 + $0xa08] sm:$0xff]  ;;  %v680_v24 = vld [vmem:[%s2806_s5 + $0xa18] sm:$0xff] }
 0x19b   : > { %v3596_v51 = vpop.f32.mrb[60].mxu1  ;;  %v3598_v33 = vpop.f32.mrb[60].mxu0 }
 0x19c   : > { %3893 = vst [vmem:[#allocation16_spill] sm:$0xff] %v3596_v51  ;;  %v1215_v10 = vpop.f32.mrb[61].mxu1  ;;  %1542 = vmatmul.mubr.f32.gmra.mrb[166].mxu1 %v665_v31  ;;  %v1055_v1 = vpop.f32.mrb[61].mxu0  ;;  %1927 = vmatmul.mubr.f32.gmra.mrb[166].mxu0 %v667_v32  ;;  %v677_v31 = vld [vmem:[%s2806_s5 + $0xa00] sm:$0xff]  ;;  %v679_v32 = vld [vmem:[%s2806_s5 + $0xa10] sm:$0xff] }
 0x19d   : > { %1546 = vmatprep.mubr.f32.mxu1 %v672_v39  ;;  %1931 = vmatprep.mubr.f32.mxu0 %v674_v40  ;;  %v684_v39 = vld [vmem:[%s2806_s5 + $0xa38] sm:$0xff]  ;;  %v686_v40 = vld [vmem:[%s2806_s5 + $0xa48] sm:$0xff] }
 0x19f   : > { %v3604_v25 = vpop.f32.mrb[62].mxu1  ;;  %v3606_v18 = vpop.f32.mrb[62].mxu0 }
 0x1a0   : > { %3894 = vst [vmem:[#allocation17_spill] sm:$0xff] %v3604_v25  ;;  %v1220_v51 = vpop.f32.mrb[63].mxu1  ;;  %1547 = vmatmul.mubr.f32.gmra.mrb[168].mxu1 %v671_v2  ;;  %v1060_v10 = vpop.f32.mrb[63].mxu0  ;;  %1932 = vmatmul.mubr.f32.gmra.mrb[168].mxu0 %v673_v8  ;;  %v683_v2 = vld [vmem:[%s2806_s5 + $0xa30] sm:$0xff]  ;;  %v685_v8 = vld [vmem:[%s2806_s5 + $0xa40] sm:$0xff] }
 0x1a1   : > { %1551 = vmatprep.mubr.f32.mxu1 %v678_v9  ;;  %1936 = vmatprep.mubr.f32.mxu0 %v680_v24  ;;  %v690_v24 = vld [vmem:[%s2806_s5 + $0xa68] sm:$0xff]  ;;  %v692_v10 = vld [vmem:[%s2806_s5 + $0xa78] sm:$0xff] }
 0x1a3   : > { %v1288_v1 = vpop.f32.mrb[64].mxu1  ;;  %v1673_v59 = vpop.f32.mrb[64].mxu0 }
 0x1a4   : > { %v1289_v25 = vadd.f32 %v1288_v1, %v3358_v46  ;;  %v1290_v41 = vpop.f32.mrb[65].mxu1  ;;  %1552 = vmatmul.mubr.f32.gmra.mrb[170].mxu1 %v677_v31  ;;  %v1675_v51 = vpop.f32.mrb[65].mxu0  ;;  %1937 = vmatmul.mubr.f32.gmra.mrb[170].mxu0 %v679_v32  ;;  %v696_v1 = vld [vmem:[%s2806_s5 + $0xa98] sm:$0xff] }
 0x1a5   : > { %1556 = vmatprep.mubr.f32.mxu1 %v684_v39  ;;  %1941 = vmatprep.mubr.f32.mxu0 %v686_v40  ;;  %v698_v51 = vld [vmem:[%s2806_s5 + $0xaa8] sm:$0xff] }
 0x1a6   : > { %v1674_v9 = vadd.f32 %v1673_v59, %v1289_v25  ;;  %v689_v59 = vld [vmem:[%s2806_s5 + $0xa60] sm:$0xff]  ;;  %v691_v25 = vld [vmem:[%s2806_s5 + $0xa70] sm:$0xff] }
 0x1a7   : > { %v1293_v46 = vpop.f32.mrb[66].mxu1  ;;  %v1678_v41 = vpop.f32.mrb[66].mxu0 }
 0x1a8   : > { %v1294_v31 = vadd.f32 %v1293_v46, %v3366_v54  ;;  %v1295_v32 = vpop.f32.mrb[67].mxu1  ;;  %1557 = vmatmul.mubr.f32.gmra.mrb[172].mxu1 %v683_v2  ;;  %v1680_v39 = vpop.f32.mrb[67].mxu0  ;;  %1942 = vmatmul.mubr.f32.gmra.mrb[172].mxu0 %v685_v8  ;;  %2056 = vst [vmem:[%s3621_s26] sm:$0xff] %v1674_v9  ;;  %v702_v46 = vld [vmem:[%s2806_s5 + $0xac8] sm:$0xff] }
 0x1a9   : > { %1561 = vmatprep.mubr.f32.mxu1 %v690_v24  ;;  %1946 = vmatprep.mubr.f32.mxu0 %v692_v10  ;;  %v695_v24 = vld [vmem:[%s2806_s5 + $0xa90] sm:$0xff]  ;;  %v697_v10 = vld [vmem:[%s2806_s5 + $0xaa0] sm:$0xff] }
 0x1aa   : > { %v1679_v40 = vadd.f32 %v1678_v41, %v1294_v31  ;;  %v704_v41 = vld [vmem:[%s2806_s5 + $0xad8] sm:$0xff] }
 0x1ab   : > { %v1298_v27 = vpop.f32.mrb[68].mxu1  ;;  %v1683_v12 = vpop.f32.mrb[68].mxu0 }
 0x1ac   : > { %v1299_v54 = vadd.f32 %v1298_v27, %v3374_v62  ;;  %v1300_v2 = vpop.f32.mrb[69].mxu1  ;;  %1562 = vmatmul.mubr.f32.gmra.mrb[174].mxu1 %v689_v59  ;;  %v1685_v8 = vpop.f32.mrb[69].mxu0  ;;  %1947 = vmatmul.mubr.f32.gmra.mrb[174].mxu0 %v691_v25  ;;  %2057 = vst [vmem:[%s3621_s26 + $0x8] sm:$0xff] %v1679_v40  ;;  %v701_v59 = vld [vmem:[%s2806_s5 + $0xac0] sm:$0xff]  ;;  %v703_v25 = vld [vmem:[%s2806_s5 + $0xad0] sm:$0xff]  ;;  %v708_v40 = vld [vmem:[%s2806_s5 + $0xaf8] sm:$0xff] }
 0x1ad   : > { %1566 = vmatprep.mubr.f32.mxu1 %v696_v1  ;;  %1951 = vmatprep.mubr.f32.mxu0 %v698_v51  ;;  %v710_v1 = vld [vmem:[%s2806_s5 + $0xb08] sm:$0xff] }
 0x1ae   : > { %v1684_v9 = vadd.f32 %v1683_v12, %v1299_v54 }
 0x1af   : > { %v1303_v31 = vpop.f32.mrb[70].mxu1  ;;  %v1688_v32 = vpop.f32.mrb[70].mxu0 }
 0x1b0   : > { %v1304_v62 = vadd.f32 %v1303_v31, %v3382_v7  ;;  %v1305_v27 = vpop.f32.mrb[71].mxu1  ;;  %1567 = vmatmul.mubr.f32.gmra.mrb[176].mxu1 %v695_v24  ;;  %v1690_v39 = vpop.f32.mrb[71].mxu0  ;;  %1952 = vmatmul.mubr.f32.gmra.mrb[176].mxu0 %v697_v10  ;;  %2058 = vst [vmem:[%s3621_s26 + $0x10] sm:$0xff] %v1684_v9  ;;  %v707_v24 = vld [vmem:[%s2806_s5 + $0xaf0] sm:$0xff]  ;;  %v709_v10 = vld [vmem:[%s2806_s5 + $0xb00] sm:$0xff] }
 0x1b1   : > { %1571 = vmatprep.mubr.f32.mxu1 %v702_v46  ;;  %1956 = vmatprep.mubr.f32.mxu0 %v704_v41  ;;  %v714_v46 = vld [vmem:[%s2806_s5 + $0xb28] sm:$0xff]  ;;  %v716_v41 = vld [vmem:[%s2806_s5 + $0xb38] sm:$0xff]  ;;  %v713_v39 = vld [vmem:[%s2806_s5 + $0xb20] sm:$0xff] }
 0x1b2   : > { %v1689_v12 = vadd.f32 %v1688_v32, %v1304_v62 }
 0x1b3   : > { %v1308_v51 = vpop.f32.mrb[72].mxu1  ;;  %v1693_v54 = vpop.f32.mrb[72].mxu0 }
 0x1b4   : > { %v1309_v7 = vadd.f32 %v1308_v51, %v3390_v15  ;;  %v1310_v2 = vpop.f32.mrb[73].mxu1  ;;  %1572 = vmatmul.mubr.f32.gmra.mrb[178].mxu1 %v701_v59  ;;  %v1695_v8 = vpop.f32.mrb[73].mxu0  ;;  %1957 = vmatmul.mubr.f32.gmra.mrb[178].mxu0 %v703_v25  ;;  %2059 = vst [vmem:[%s3621_s26 + $0x18] sm:$0xff] %v1689_v12  ;;  %v715_v59 = vld [vmem:[%s2806_s5 + $0xb30] sm:$0xff]  ;;  %v720_v12 = vld [vmem:[%s2806_s5 + $0xb58] sm:$0xff] }
 0x1b5   : > { %1576 = vmatprep.mubr.f32.mxu1 %v708_v40  ;;  %1961 = vmatprep.mubr.f32.mxu0 %v710_v1  ;;  %v722_v40 = vld [vmem:[%s2806_s5 + $0xb68] sm:$0xff]  ;;  %v719_v2 = vld [vmem:[%s2806_s5 + $0xb50] sm:$0xff]  ;;  %v721_v8 = vld [vmem:[%s2806_s5 + $0xb60] sm:$0xff] }
 0x1b6   : > { %v1694_v9 = vadd.f32 %v1693_v54, %v1309_v7 }
 0x1b7   : > { %v1313_v31 = vpop.f32.mrb[74].mxu1  ;;  %v1698_v32 = vpop.f32.mrb[74].mxu0 }
 0x1b8   : > { %v1314_v15 = vadd.f32 %v1313_v31, %v3398_v23  ;;  %v1315_v62 = vpop.f32.mrb[75].mxu1  ;;  %1577 = vmatmul.mubr.f32.gmra.mrb[180].mxu1 %v707_v24  ;;  %v1700_v27 = vpop.f32.mrb[75].mxu0  ;;  %1962 = vmatmul.mubr.f32.gmra.mrb[180].mxu0 %v709_v10  ;;  %2060 = vst [vmem:[%s3621_s26 + $0x20] sm:$0xff] %v1694_v9  ;;  %v726_v10 = vld [vmem:[%s2806_s5 + $0xb88] sm:$0xff]  ;;  %v728_v9 = vld [vmem:[%s2806_s5 + $0xb98] sm:$0xff] }
 0x1b9   : > { %1581 = vmatprep.mubr.f32.mxu1 %v714_v46  ;;  %1966 = vmatprep.mubr.f32.mxu0 %v716_v41  ;;  %v727_v62 = vld [vmem:[%s2806_s5 + $0xb90] sm:$0xff] }
 0x1ba   : > { %v1699_v25 = vadd.f32 %v1698_v32, %v1314_v15  ;;  %v725_v15 = vld [vmem:[%s2806_s5 + $0xb80] sm:$0xff] }
 0x1bb   : > { %v1318_v1 = vpop.f32.mrb[76].mxu1  ;;  %v1703_v51 = vpop.f32.mrb[76].mxu0 }
 0x1bc   : > { %v1319_v23 = vadd.f32 %v1318_v1, %v3406_v30  ;;  %v1320_v54 = vpop.f32.mrb[77].mxu1  ;;  %1582 = vmatmul.mubr.f32.gmra.mrb[182].mxu1 %v713_v39  ;;  %v1705_v7 = vpop.f32.mrb[77].mxu0  ;;  %1967 = vmatmul.mubr.f32.gmra.mrb[182].mxu0 %v715_v59  ;;  %2061 = vst [vmem:[%s3621_s26 + $0x28] sm:$0xff] %v1699_v25  ;;  %v732_v39 = vld [vmem:[%s2806_s5 + $0xbb8] sm:$0xff]  ;;  %v734_v59 = vld [vmem:[%s2806_s5 + $0xbc8] sm:$0xff] }
 0x1bd   : > { %1586 = vmatprep.mubr.f32.mxu1 %v720_v12  ;;  %1971 = vmatprep.mubr.f32.mxu0 %v722_v40  ;;  %v738_v7 = vld [vmem:[%s2806_s5 + $0xbe8] sm:$0xff] }
 0x1be   : > { %v1704_v24 = vadd.f32 %v1703_v51, %v1319_v23  ;;  %v731_v51 = vld [vmem:[%s2806_s5 + $0xbb0] sm:$0xff]  ;;  %v733_v23 = vld [vmem:[%s2806_s5 + $0xbc0] sm:$0xff] }
 0x1bf   : > { %v1323_v46 = vpop.f32.mrb[78].mxu1  ;;  %v1708_v41 = vpop.f32.mrb[78].mxu0 }
 0x1c0   : > { %v1324_v30 = vadd.f32 %v1323_v46, %v3414_v38  ;;  %v1325_v31 = vpop.f32.mrb[79].mxu1  ;;  %1587 = vmatmul.mubr.f32.gmra.mrb[184].mxu1 %v719_v2  ;;  %v1710_v32 = vpop.f32.mrb[79].mxu0  ;;  %1972 = vmatmul.mubr.f32.gmra.mrb[184].mxu0 %v721_v8  ;;  %2062 = vst [vmem:[%s3621_s26 + $0x30] sm:$0xff] %v1704_v24  ;;  %v740_v2 = vld [vmem:[%s2806_s5 + $0xbf8] sm:$0xff]  ;;  %v737_v46 = vld [vmem:[%s2806_s5 + $0xbe0] sm:$0xff] }
 0x1c1   : > { %1591 = vmatprep.mubr.f32.mxu1 %v726_v10  ;;  %1976 = vmatprep.mubr.f32.mxu0 %v728_v9 }
 0x1c2   : > { %v1709_v27 = vadd.f32 %v1708_v41, %v1324_v30  ;;  %v739_v41 = vld [vmem:[%s2806_s5 + $0xbf0] sm:$0xff] }
 0x1c3   : > { %v1328_v25 = vpop.f32.mrb[80].mxu1  ;;  %v1713_v12 = vpop.f32.mrb[80].mxu0 }
 0x1c4   : > { %v1329_v38 = vadd.f32 %v1328_v25, %v3422_v48  ;;  %v1330_v40 = vpop.f32.mrb[81].mxu1  ;;  %1592 = vmatmul.mubr.f32.gmra.mrb[186].mxu1 %v725_v15  ;;  %v1715_v1 = vpop.f32.mrb[81].mxu0  ;;  %1977 = vmatmul.mubr.f32.gmra.mrb[186].mxu0 %v727_v62  ;;  %2063 = vst [vmem:[%s3621_s26 + $0x38] sm:$0xff] %v1709_v27 }
 0x1c5   : > { %1596 = vmatprep.mubr.f32.mxu1 %v732_v39  ;;  %1981 = vmatprep.mubr.f32.mxu0 %v734_v59 }
 0x1c6   : > { %v1714_v54 = vadd.f32 %v1713_v12, %v1329_v38 }
 0x1c7   : > { %v1333_v8 = vpop.f32.mrb[82].mxu1  ;;  %v1718_v24 = vpop.f32.mrb[82].mxu0 }
 0x1c8   : > { %v1334_v10 = vadd.f32 %v1333_v8, %v3430_v58  ;;  %v1335_v48 = vpop.f32.mrb[83].mxu1  ;;  %1597 = vmatmul.mubr.f32.gmra.mrb[188].mxu1 %v731_v51  ;;  %v1720_v9 = vpop.f32.mrb[83].mxu0  ;;  %1982 = vmatmul.mubr.f32.gmra.mrb[188].mxu0 %v733_v23  ;;  %2064 = vst [vmem:[%s3621_s26 + $0x40] sm:$0xff] %v1714_v54 }
 0x1c9   : > { %1601 = vmatprep.mubr.f32.mxu1 %v738_v7  ;;  %1986 = vmatprep.mubr.f32.mxu0 %v740_v2 }
 0x1ca   : > { %v1719_v30 = vadd.f32 %v1718_v24, %v1334_v10 }
 0x1cb   : > { %v1338_v31 = vpop.f32.mrb[84].mxu1  ;;  %v1723_v32 = vpop.f32.mrb[84].mxu0 }
 0x1cc   : > { %v1339_v15 = vadd.f32 %v1338_v31, %v3438_v5  ;;  %v1340_v62 = vpop.f32.mrb[85].mxu1  ;;  %1602 = vmatmul.mubr.f32.gmra.mrb[190].mxu1 %v737_v46  ;;  %v1725_v27 = vpop.f32.mrb[85].mxu0  ;;  %1987 = vmatmul.mubr.f32.gmra.mrb[190].mxu0 %v739_v41  ;;  %2065 = vst [vmem:[%s3621_s26 + $0x48] sm:$0xff] %v1719_v30 }
 0x1ce   : > { %v1724_v58 = vadd.f32 %v1723_v32, %v1339_v15 }
 0x1cf   : > { %v1343_v39 = vpop.f32.mrb[86].mxu1  ;;  %v1728_v59 = vpop.f32.mrb[86].mxu0 }
 0x1d0   : > { %v1344_v25 = vadd.f32 %v1343_v39, %v3446_v17  ;;  %v1345_v12 = vpop.f32.mrb[87].mxu1  ;;  %v1730_v38 = vpop.f32.mrb[87].mxu0  ;;  %2066 = vst [vmem:[%s3621_s26 + $0x50] sm:$0xff] %v1724_v58 }
 0x1d2   : > { %v1729_v40 = vadd.f32 %v1728_v59, %v1344_v25 }
 0x1d3   : > { %v1348_v1 = vpop.f32.mrb[88].mxu1  ;;  %v1733_v51 = vpop.f32.mrb[88].mxu0 }
 0x1d4   : > { %v1349_v5 = vadd.f32 %v1348_v1, %v3454_v26  ;;  %v1350_v23 = vpop.f32.mrb[89].mxu1  ;;  %v1735_v54 = vpop.f32.mrb[89].mxu0  ;;  %2067 = vst [vmem:[%s3621_s26 + $0x58] sm:$0xff] %v1729_v40 }
 0x1d6   : > { %v1734_v7 = vadd.f32 %v1733_v51, %v1349_v5 }
 0x1d7   : > { %v1353_v2 = vpop.f32.mrb[90].mxu1  ;;  %v1738_v8 = vpop.f32.mrb[90].mxu0 }
 0x1d8   : > { %v1354_v24 = vadd.f32 %v1353_v2, %v3462_v36  ;;  %v1355_v10 = vpop.f32.mrb[91].mxu1  ;;  %v1740_v17 = vpop.f32.mrb[91].mxu0  ;;  %2068 = vst [vmem:[%s3621_s26 + $0x60] sm:$0xff] %v1734_v7 }
 0x1da   : > { %v1739_v48 = vadd.f32 %v1738_v8, %v1354_v24 }
 0x1db   : > { %v1358_v9 = vpop.f32.mrb[92].mxu1  ;;  %v1743_v46 = vpop.f32.mrb[92].mxu0 }
 0x1dc   : > { %v1359_v41 = vadd.f32 %v1358_v9, %v3470_v50  ;;  %v1360_v30 = vpop.f32.mrb[93].mxu1  ;;  %v1745_v26 = vpop.f32.mrb[93].mxu0  ;;  %2069 = vst [vmem:[%s3621_s26 + $0x68] sm:$0xff] %v1739_v48 }
 0x1de   : > { %v1744_v31 = vadd.f32 %v1743_v46, %v1359_v41 }
 0x1df   : > { %v1363_v32 = vpop.f32.mrb[94].mxu1  ;;  %v1748_v15 = vpop.f32.mrb[94].mxu0 }
 0x1e0   : > { %v1364_v62 = vadd.f32 %v1363_v32, %v3478_v0  ;;  %v1365_v27 = vpop.f32.mrb[95].mxu1  ;;  %v1750_v36 = vpop.f32.mrb[95].mxu0  ;;  %2070 = vst [vmem:[%s3621_s26 + $0x70] sm:$0xff] %v1744_v31 }
 0x1e2   : > { %v1749_v58 = vadd.f32 %v1748_v15, %v1364_v62 }
 0x1e3   : > { %v1368_v39 = vpop.f32.mrb[96].mxu1  ;;  %v1753_v59 = vpop.f32.mrb[96].mxu0 }
 0x1e4   : > { %v1369_v25 = vadd.f32 %v1368_v39, %v3486_v13  ;;  %v1370_v12 = vpop.f32.mrb[97].mxu1  ;;  %v1755_v50 = vpop.f32.mrb[97].mxu0  ;;  %2071 = vst [vmem:[%s3621_s26 + $0x78] sm:$0xff] %v1749_v58 }
 0x1e6   : > { %v1754_v38 = vadd.f32 %v1753_v59, %v1369_v25 }
 0x1e7   : > { %v1373_v40 = vpop.f32.mrb[98].mxu1  ;;  %v1758_v1 = vpop.f32.mrb[98].mxu0 }
 0x1e8   : > { %v1374_v51 = vadd.f32 %v1373_v40, %v3494_v28  ;;  %v1375_v5 = vpop.f32.mrb[99].mxu1  ;;  %v1760_v0 = vpop.f32.mrb[99].mxu0  ;;  %2072 = vst [vmem:[%s3621_s26 + $0x80] sm:$0xff] %v1754_v38 }
 0x1ea   : > { %v1759_v23 = vadd.f32 %v1758_v1, %v1374_v51 }
 0x1eb   : > { %v1378_v54 = vpop.f32.mrb[100].mxu1  ;;  %v1763_v7 = vpop.f32.mrb[100].mxu0 }
 0x1ec   : > { %v1379_v2 = vadd.f32 %v1378_v54, %v3502_v42  ;;  %v1380_v8 = vpop.f32.mrb[101].mxu1  ;;  %v1765_v13 = vpop.f32.mrb[101].mxu0  ;;  %2073 = vst [vmem:[%s3621_s26 + $0x88] sm:$0xff] %v1759_v23 }
 0x1ee   : > { %v1764_v24 = vadd.f32 %v1763_v7, %v1379_v2 }
 0x1ef   : > { %v1383_v10 = vpop.f32.mrb[102].mxu1  ;;  %v1768_v17 = vpop.f32.mrb[102].mxu0 }
 0x1f0   : > { %v1384_v48 = vadd.f32 %v1383_v10, %v3510_v60  ;;  %v1385_v9 = vpop.f32.mrb[103].mxu1  ;;  %v1770_v28 = vpop.f32.mrb[103].mxu0  ;;  %2074 = vst [vmem:[%s3621_s26 + $0x90] sm:$0xff] %v1764_v24 }
 0x1f2   : > { %v1769_v46 = vadd.f32 %v1768_v17, %v1384_v48 }
 0x1f3   : > { %v1388_v41 = vpop.f32.mrb[104].mxu1  ;;  %v1773_v30 = vpop.f32.mrb[104].mxu0 }
 0x1f4   : > { %v1389_v26 = vadd.f32 %v1388_v41, %v3518_v19  ;;  %v1390_v31 = vpop.f32.mrb[105].mxu1  ;;  %v1775_v42 = vpop.f32.mrb[105].mxu0  ;;  %2075 = vst [vmem:[%s3621_s26 + $0x98] sm:$0xff] %v1769_v46 }
 0x1f6   : > { %v1774_v32 = vadd.f32 %v1773_v30, %v1389_v26 }
 0x1f7   : > { %v1393_v15 = vpop.f32.mrb[106].mxu1  ;;  %v1778_v62 = vpop.f32.mrb[106].mxu0 }
 0x1f8   : > { %v1394_v27 = vadd.f32 %v1393_v15, %v3526_v34  ;;  %v1395_v36 = vpop.f32.mrb[107].mxu1  ;;  %v1780_v60 = vpop.f32.mrb[107].mxu0  ;;  %2076 = vst [vmem:[%s3621_s26 + $0xa0] sm:$0xff] %v1774_v32 }
 0x1fa   : > { %v1779_v58 = vadd.f32 %v1778_v62, %v1394_v27 }
 0x1fb   : > { %v1398_v39 = vpop.f32.mrb[108].mxu1  ;;  %v1783_v59 = vpop.f32.mrb[108].mxu0 }
 0x1fc   : > { %v1399_v25 = vadd.f32 %v1398_v39, %v3534_v56  ;;  %v1400_v12 = vpop.f32.mrb[109].mxu1  ;;  %v1785_v19 = vpop.f32.mrb[109].mxu0  ;;  %2077 = vst [vmem:[%s3621_s26 + $0xa8] sm:$0xff] %v1779_v58 }
 0x1fe   : > { %v1784_v50 = vadd.f32 %v1783_v59, %v1399_v25 }
 0x1ff   : > { %v1403_v38 = vpop.f32.mrb[110].mxu1  ;;  %v1788_v40 = vpop.f32.mrb[110].mxu0 }
 0x200   : > { %v1404_v1 = vadd.f32 %v1403_v38, %v3542_v21  ;;  %v1405_v51 = vpop.f32.mrb[111].mxu1  ;;  %v1790_v34 = vpop.f32.mrb[111].mxu0  ;;  %2078 = vst [vmem:[%s3621_s26 + $0xb0] sm:$0xff] %v1784_v50 }
 0x202   : > { %v1789_v5 = vadd.f32 %v1788_v40, %v1404_v1 }
 0x203   : > { %v1408_v0 = vpop.f32.mrb[112].mxu1  ;;  %v1793_v23 = vpop.f32.mrb[112].mxu0 }
 0x204   : > { %v1409_v54 = vadd.f32 %v1408_v0, %v3550_v44  ;;  %v1410_v7 = vpop.f32.mrb[113].mxu1  ;;  %v1795_v56 = vpop.f32.mrb[113].mxu0  ;;  %2079 = vst [vmem:[%s3621_s26 + $0xb8] sm:$0xff] %v1789_v5 }
 0x206   : > { %v1794_v2 = vadd.f32 %v1793_v23, %v1409_v54 }
 0x207   : > { %v1413_v8 = vpop.f32.mrb[114].mxu1  ;;  %v1798_v13 = vpop.f32.mrb[114].mxu0 }
 0x208   : > { %v1414_v24 = vadd.f32 %v1413_v8, %v3558_v11  ;;  %v1415_v10 = vpop.f32.mrb[115].mxu1  ;;  %v1800_v21 = vpop.f32.mrb[115].mxu0  ;;  %2080 = vst [vmem:[%s3621_s26 + $0xc0] sm:$0xff] %v1794_v2 }
 0x20a   : > { %v1799_v17 = vadd.f32 %v1798_v13, %v1414_v24 }
 0x20b   : > { %v1418_v48 = vpop.f32.mrb[116].mxu1  ;;  %v1803_v9 = vpop.f32.mrb[116].mxu0 }
 0x20c   : > { %v1419_v28 = vadd.f32 %v1418_v48, %v3566_v52  ;;  %v1420_v46 = vpop.f32.mrb[117].mxu1  ;;  %v1805_v44 = vpop.f32.mrb[117].mxu0  ;;  %2081 = vst [vmem:[%s3621_s26 + $0xc8] sm:$0xff] %v1799_v17 }
 0x20e   : > { %v1804_v41 = vadd.f32 %v1803_v9, %v1419_v28 }
 0x20f   : > { %v1423_v30 = vpop.f32.mrb[118].mxu1  ;;  %v1808_v26 = vpop.f32.mrb[118].mxu0 }
 0x210   : > { %v1424_v31 = vadd.f32 %v1423_v30, %v3574_v43  ;;  %v1425_v42 = vpop.f32.mrb[119].mxu1  ;;  %v1810_v11 = vpop.f32.mrb[119].mxu0  ;;  %2082 = vst [vmem:[%s3621_s26 + $0xd0] sm:$0xff] %v1804_v41 }
 0x212   : > { %v1809_v32 = vadd.f32 %v1808_v26, %v1424_v31 }
 0x213   : > { %v1428_v15 = vpop.f32.mrb[120].mxu1  ;;  %v1813_v62 = vpop.f32.mrb[120].mxu0 }
 0x214   : > { %v1429_v27 = vadd.f32 %v1428_v15, %v3582_v20  ;;  %v1430_v36 = vpop.f32.mrb[121].mxu1  ;;  %v1815_v52 = vpop.f32.mrb[121].mxu0  ;;  %2083 = vst [vmem:[%s3621_s26 + $0xd8] sm:$0xff] %v1809_v32 }
 0x216   : > { %v1814_v60 = vadd.f32 %v1813_v62, %v1429_v27 }
 0x217   : > { %v1433_v58 = vpop.f32.mrb[122].mxu1  ;;  %v1818_v39 = vpop.f32.mrb[122].mxu0 }
 0x218   : > { %v1434_v59 = vadd.f32 %v1433_v58, %v3590_v55  ;;  %v1435_v25 = vpop.f32.mrb[123].mxu1  ;;  %v1820_v43 = vpop.f32.mrb[123].mxu0  ;;  %2084 = vst [vmem:[%s3621_s26 + $0xe0] sm:$0xff] %v1814_v60 }
 0x21a   : > { %v1819_v12 = vadd.f32 %v1818_v39, %v1434_v59 }
 0x21b   : > { %v1438_v19 = vpop.f32.mrb[124].mxu1  ;;  %v1823_v50 = vpop.f32.mrb[124].mxu0 }
 0x21c   : > { %v1439_v38 = vadd.f32 %v1438_v19, %v3598_v33  ;;  %v1440_v40 = vpop.f32.mrb[125].mxu1  ;;  %v1825_v20 = vpop.f32.mrb[125].mxu0  ;;  %2085 = vst [vmem:[%s3621_s26 + $0xe8] sm:$0xff] %v1819_v12 }
 0x21e   : > { %v1824_v1 = vadd.f32 %v1823_v50, %v1439_v38 }
 0x21f   : > { %v1443_v51 = vpop.f32.mrb[126].mxu1  ;;  %v1828_v34 = vpop.f32.mrb[126].mxu0 }
 0x220   : > { %v1444_v5 = vadd.f32 %v1443_v51, %v3606_v18  ;;  %v1445_v55 = vpop.f32.mrb[127].mxu1  ;;  %v1830_v0 = vpop.f32.mrb[127].mxu0  ;;  %2086 = vst [vmem:[%s3621_s26 + $0xf0] sm:$0xff] %v1824_v1 }
 0x222   : > { %v1829_v23 = vadd.f32 %v1828_v34, %v1444_v5 }
 0x223   : > { %v1448_v54 = vpop.f32.mrb[128].mxu1  ;;  %v1833_v7 = vpop.f32.mrb[128].mxu0 }
 0x224   : > { %v1449_v56 = vadd.f32 %v1448_v54, %v3356_v45  ;;  %v1450_v33 = vpop.f32.mrb[129].mxu1  ;;  %v1835_v2 = vpop.f32.mrb[129].mxu0  ;;  %2087 = vst [vmem:[%s3621_s26 + $0xf8] sm:$0xff] %v1829_v23 }
 0x226   : > { %v1834_v8 = vadd.f32 %v1833_v7, %v1449_v56 }
 0x227   : > { %v1453_v13 = vpop.f32.mrb[130].mxu1  ;;  %v1838_v24 = vpop.f32.mrb[130].mxu0 }
 0x228   : > { %v1454_v10 = vadd.f32 %v1453_v13, %v3364_v53  ;;  %v1455_v18 = vpop.f32.mrb[131].mxu1  ;;  %v1840_v21 = vpop.f32.mrb[131].mxu0  ;;  %2088 = vst [vmem:[%s3621_s26 + $0x100] sm:$0xff] %v1834_v8 }
 0x22a   : > { %v1839_v17 = vadd.f32 %v1838_v24, %v1454_v10 }
 0x22b   : > { %v1458_v48 = vpop.f32.mrb[132].mxu1  ;;  %v1843_v9 = vpop.f32.mrb[132].mxu0 }
 0x22c   : > { %v1459_v28 = vadd.f32 %v1458_v48, %v3372_v61  ;;  %v1460_v45 = vpop.f32.mrb[133].mxu1  ;;  %v1845_v46 = vpop.f32.mrb[133].mxu0  ;;  %2089 = vst [vmem:[%s3621_s26 + $0x108] sm:$0xff] %v1839_v17 }
 0x22e   : > { %v1844_v44 = vadd.f32 %v1843_v9, %v1459_v28 }
 0x22f   : > { %v1463_v41 = vpop.f32.mrb[134].mxu1  ;;  %v1848_v30 = vpop.f32.mrb[134].mxu0 }
 0x230   : > { %v1464_v26 = vadd.f32 %v1463_v41, %v3380_v6  ;;  %v1465_v31 = vpop.f32.mrb[135].mxu1  ;;  %v1850_v53 = vpop.f32.mrb[135].mxu0  ;;  %2090 = vst [vmem:[%s3621_s26 + $0x110] sm:$0xff] %v1844_v44 }
 0x232   : > { %v1849_v42 = vadd.f32 %v1848_v30, %v1464_v26 }
 0x233   : > { %v1468_v11 = vpop.f32.mrb[136].mxu1  ;;  %v1853_v32 = vpop.f32.mrb[136].mxu0 }
 0x234   : > { %v1469_v15 = vadd.f32 %v1468_v11, %v3388_v14  ;;  %v1470_v62 = vpop.f32.mrb[137].mxu1  ;;  %v1855_v61 = vpop.f32.mrb[137].mxu0  ;;  %2091 = vst [vmem:[%s3621_s26 + $0x118] sm:$0xff] %v1849_v42 }
 0x236   : > { %v1854_v27 = vadd.f32 %v1853_v32, %v1469_v15 }
 0x237   : > { %v1473_v36 = vpop.f32.mrb[138].mxu1  ;;  %v1858_v52 = vpop.f32.mrb[138].mxu0 }
 0x238   : > { %v1474_v60 = vadd.f32 %v1473_v36, %v3396_v22  ;;  %v1475_v58 = vpop.f32.mrb[139].mxu1  ;;  %v1860_v6 = vpop.f32.mrb[139].mxu0  ;;  %2092 = vst [vmem:[%s3621_s26 + $0x120] sm:$0xff] %v1854_v27 }
 0x23a   : > { %v1859_v39 = vadd.f32 %v1858_v52, %v1474_v60 }
 0x23b   : > { %v1478_v59 = vpop.f32.mrb[140].mxu1  ;;  %v1863_v25 = vpop.f32.mrb[140].mxu0 }
 0x23c   : > { %v1479_v43 = vadd.f32 %v1478_v59, %v3404_v29  ;;  %v1480_v12 = vpop.f32.mrb[141].mxu1  ;;  %v1865_v14 = vpop.f32.mrb[141].mxu0  ;;  %2093 = vst [vmem:[%s3621_s26 + $0x128] sm:$0xff] %v1859_v39  ;;  %v3895_v59 = vld [vmem:[#allocation2_spill] sm:$0xff] }
 0x23e   : > { %v1864_v19 = vadd.f32 %v1863_v25, %v1479_v43 }
 0x23f   : > { %v1483_v50 = vpop.f32.mrb[142].mxu1  ;;  %v1868_v38 = vpop.f32.mrb[142].mxu0 }
 0x240   : > { %v1484_v40 = vadd.f32 %v1483_v50, %v3412_v37  ;;  %v1485_v20 = vpop.f32.mrb[143].mxu1  ;;  %v1870_v22 = vpop.f32.mrb[143].mxu0  ;;  %2094 = vst [vmem:[%s3621_s26 + $0x130] sm:$0xff] %v1864_v19  ;;  %v3896_v50 = vld [vmem:[#allocation3_spill] sm:$0xff] }
 0x242   : > { %v1869_v1 = vadd.f32 %v1868_v38, %v1484_v40 }
 0x243   : > { %v1488_v51 = vpop.f32.mrb[144].mxu1  ;;  %v1873_v34 = vpop.f32.mrb[144].mxu0 }
 0x244   : > { %v1489_v5 = vadd.f32 %v1488_v51, %v3420_v47  ;;  %v1490_v55 = vpop.f32.mrb[145].mxu1  ;;  %v1875_v29 = vpop.f32.mrb[145].mxu0  ;;  %2095 = vst [vmem:[%s3621_s26 + $0x138] sm:$0xff] %v1869_v1  ;;  %v3897_v51 = vld [vmem:[#allocation4_spill] sm:$0xff] }
 0x246   : > { %v1874_v0 = vadd.f32 %v1873_v34, %v1489_v5 }
 0x247   : > { %v1493_v23 = vpop.f32.mrb[146].mxu1  ;;  %v1878_v54 = vpop.f32.mrb[146].mxu0 }
 0x248   : > { %v1494_v7 = vadd.f32 %v1493_v23, %v3428_v57  ;;  %v1495_v56 = vpop.f32.mrb[147].mxu1  ;;  %v1880_v37 = vpop.f32.mrb[147].mxu0  ;;  %2096 = vst [vmem:[%s3621_s26 + $0x140] sm:$0xff] %v1874_v0 }
 0x24a   : > { %v1879_v33 = vadd.f32 %v1878_v54, %v1494_v7  ;;  %v3898_v54 = vld [vmem:[#allocation5_spill] sm:$0xff] }
 0x24b   : > { %v1498_v2 = vpop.f32.mrb[148].mxu1  ;;  %v1883_v8 = vpop.f32.mrb[148].mxu0 }
 0x24c   : > { %v1499_v13 = vadd.f32 %v1498_v2, %v3436_v4  ;;  %v1500_v24 = vpop.f32.mrb[149].mxu1  ;;  %v1885_v47 = vpop.f32.mrb[149].mxu0  ;;  %2097 = vst [vmem:[%s3621_s26 + $0x148] sm:$0xff] %v1879_v33 }
 0x24e   : > { %v1884_v10 = vadd.f32 %v1883_v8, %v1499_v13  ;;  %v3899_v13 = vld [vmem:[#allocation6_spill] sm:$0xff] }
 0x24f   : > { %v1503_v18 = vpop.f32.mrb[150].mxu1  ;;  %v1888_v21 = vpop.f32.mrb[150].mxu0 }
 0x250   : > { %v1504_v17 = vadd.f32 %v1503_v18, %v3444_v16  ;;  %v1505_v48 = vpop.f32.mrb[151].mxu1  ;;  %v1890_v57 = vpop.f32.mrb[151].mxu0  ;;  %2098 = vst [vmem:[%s3621_s26 + $0x150] sm:$0xff] %v1884_v10 }
 0x251   : > { %v3900_v48 = vld [vmem:[#allocation7_spill] sm:$0xff] }
 0x252   : > { %v1889_v9 = vadd.f32 %v1888_v21, %v1504_v17 }
 0x253   : > { %v1508_v28 = vpop.f32.mrb[152].mxu1  ;;  %v1893_v45 = vpop.f32.mrb[152].mxu0 }
 0x254   : > { %v1509_v46 = vadd.f32 %v1508_v28, %v3452_v3  ;;  %v1510_v44 = vpop.f32.mrb[153].mxu1  ;;  %v1895_v4 = vpop.f32.mrb[153].mxu0  ;;  %2099 = vst [vmem:[%s3621_s26 + $0x158] sm:$0xff] %v1889_v9 }
 0x255   : > { %v3901_v4 = vld [vmem:[#allocation8_spill] sm:$0xff] }
 0x256   : > { %v1894_v41 = vadd.f32 %v1893_v45, %v1509_v46 }
 0x257   : > { %v1513_v30 = vpop.f32.mrb[154].mxu1  ;;  %v1898_v26 = vpop.f32.mrb[154].mxu0 }
 0x258   : > { %v1514_v31 = vadd.f32 %v1513_v30, %v3460_v35  ;;  %v1515_v53 = vpop.f32.mrb[155].mxu1  ;;  %v1900_v16 = vpop.f32.mrb[155].mxu0  ;;  %2100 = vst [vmem:[%s3621_s26 + $0x160] sm:$0xff] %v1894_v41 }
 0x25a   : > { %v1899_v42 = vadd.f32 %v1898_v26, %v1514_v31 }
 0x25b   : > { %v1518_v11 = vpop.f32.mrb[156].mxu1  ;;  %v1903_v32 = vpop.f32.mrb[156].mxu0 }
 0x25c   : > { %v1519_v15 = vadd.f32 %v1518_v11, %v3468_v49  ;;  %v1520_v62 = vpop.f32.mrb[157].mxu1  ;;  %v1905_v3 = vpop.f32.mrb[157].mxu0  ;;  %2101 = vst [vmem:[%s3621_s26 + $0x168] sm:$0xff] %v1899_v42  ;;  %v3902_v42 = vld [vmem:[#allocation9_spill] sm:$0xff] }
 0x25e   : > { %v1904_v61 = vadd.f32 %v1903_v32, %v1519_v15 }
 0x25f   : > { %v1523_v27 = vpop.f32.mrb[158].mxu1  ;;  %v1908_v36 = vpop.f32.mrb[158].mxu0 }
 0x260   : > { %v1524_v52 = vadd.f32 %v1523_v27, %v3476_v63  ;;  %v1525_v60 = vpop.f32.mrb[159].mxu1  ;;  %v1910_v35 = vpop.f32.mrb[159].mxu0  ;;  %2102 = vst [vmem:[%s3621_s26 + $0x170] sm:$0xff] %v1904_v61  ;;  %v3903_v27 = vld [vmem:[#allocation10_spill] sm:$0xff] }
 0x262   : > { %v1909_v58 = vadd.f32 %v1908_v36, %v1524_v52 }
 0x263   : > { %v1528_v6 = vpop.f32.mrb[160].mxu1  ;;  %v1913_v39 = vpop.f32.mrb[160].mxu0 }
 0x264   : > { %v1529_v25 = vadd.f32 %v1528_v6, %v3895_v59  ;;  %v1530_v43 = vpop.f32.mrb[161].mxu1  ;;  %v1915_v49 = vpop.f32.mrb[161].mxu0  ;;  %2103 = vst [vmem:[%s3621_s26 + $0x178] sm:$0xff] %v1909_v58 }
 0x266   : > { %v1914_v12 = vadd.f32 %v1913_v39, %v1529_v25  ;;  %v3904_v39 = vld [vmem:[#allocation11_spill] sm:$0xff] }
 0x267   : > { %v1533_v14 = vpop.f32.mrb[162].mxu1  ;;  %v1918_v19 = vpop.f32.mrb[162].mxu0 }
 0x268   : > { %v1534_v38 = vadd.f32 %v1533_v14, %v3896_v50  ;;  %v1535_v40 = vpop.f32.mrb[163].mxu1  ;;  %v1920_v63 = vpop.f32.mrb[163].mxu0  ;;  %2104 = vst [vmem:[%s3621_s26 + $0x180] sm:$0xff] %v1914_v12 }
 0x26a   : > { %v1919_v20 = vadd.f32 %v1918_v19, %v1534_v38  ;;  %v3905_v19 = vld [vmem:[#allocation12_spill] sm:$0xff] }
 0x26b   : > { %v1538_v22 = vpop.f32.mrb[164].mxu1  ;;  %v1923_v1 = vpop.f32.mrb[164].mxu0 }
 0x26c   : > { %v1539_v34 = vadd.f32 %v1538_v22, %v3897_v51  ;;  %v1540_v5 = vpop.f32.mrb[165].mxu1  ;;  %v1925_v55 = vpop.f32.mrb[165].mxu0  ;;  %2105 = vst [vmem:[%s3621_s26 + $0x188] sm:$0xff] %v1919_v20 }
 0x26e   : > { %v1924_v29 = vadd.f32 %v1923_v1, %v1539_v34  ;;  %v3906_v1 = vld [vmem:[#allocation13_spill] sm:$0xff] }
 0x26f   : > { %v1543_v0 = vpop.f32.mrb[166].mxu1  ;;  %v1928_v23 = vpop.f32.mrb[166].mxu0 }
 0x270   : > { %v1544_v7 = vadd.f32 %v1543_v0, %v3898_v54  ;;  %v1545_v56 = vpop.f32.mrb[167].mxu1  ;;  %v1930_v37 = vpop.f32.mrb[167].mxu0  ;;  %2106 = vst [vmem:[%s3621_s26 + $0x190] sm:$0xff] %v1924_v29 }
 0x272   : > { %v1929_v33 = vadd.f32 %v1928_v23, %v1544_v7  ;;  %v3907_v23 = vld [vmem:[#allocation14_spill] sm:$0xff] }
 0x273   : > { %v1548_v2 = vpop.f32.mrb[168].mxu1  ;;  %v1933_v8 = vpop.f32.mrb[168].mxu0 }
 0x274   : > { %v1549_v24 = vadd.f32 %v1548_v2, %v3899_v13  ;;  %v1550_v47 = vpop.f32.mrb[169].mxu1  ;;  %v1935_v10 = vpop.f32.mrb[169].mxu0  ;;  %2107 = vst [vmem:[%s3621_s26 + $0x198] sm:$0xff] %v1929_v33 }
 0x276   : > { %v1934_v18 = vadd.f32 %v1933_v8, %v1549_v24  ;;  %v3908_v8 = vld [vmem:[#allocation15_spill] sm:$0xff] }
 0x277   : > { %v1553_v21 = vpop.f32.mrb[170].mxu1  ;;  %v1938_v17 = vpop.f32.mrb[170].mxu0 }
 0x278   : > { %v1554_v57 = vadd.f32 %v1553_v21, %v3900_v48  ;;  %v1555_v9 = vpop.f32.mrb[171].mxu1  ;;  %v1940_v28 = vpop.f32.mrb[171].mxu0  ;;  %2108 = vst [vmem:[%s3621_s26 + $0x1a0] sm:$0xff] %v1934_v18 }
 0x27a   : > { %v1939_v45 = vadd.f32 %v1938_v17, %v1554_v57  ;;  %v3909_v17 = vld [vmem:[#allocation16_spill] sm:$0xff] }
 0x27b   : > { %v1558_v46 = vpop.f32.mrb[172].mxu1  ;;  %v1943_v44 = vpop.f32.mrb[172].mxu0 }
 0x27c   : > { %v1559_v41 = vadd.f32 %v1558_v46, %v3901_v4  ;;  %v1560_v30 = vpop.f32.mrb[173].mxu1  ;;  %v1945_v26 = vpop.f32.mrb[173].mxu0  ;;  %2109 = vst [vmem:[%s3621_s26 + $0x1a8] sm:$0xff] %v1939_v45 }
 0x27e   : > { %v1944_v31 = vadd.f32 %v1943_v44, %v1559_v41  ;;  %v3910_v44 = vld [vmem:[#allocation17_spill] sm:$0xff] }
 0x27f   : > { %v1563_v53 = vpop.f32.mrb[174].mxu1  ;;  %v1948_v16 = vpop.f32.mrb[174].mxu0 }
 0x280   : > { %v1564_v11 = vadd.f32 %v1563_v53, %v3902_v42  ;;  %v1565_v32 = vpop.f32.mrb[175].mxu1  ;;  %v1950_v15 = vpop.f32.mrb[175].mxu0  ;;  %2110 = vst [vmem:[%s3621_s26 + $0x1b0] sm:$0xff] %v1944_v31  ;;  %v2736_v31 = vmov (%p2120_p5), 0.0  }
 0x281   : > { %2125 = vst [vmem:[%s3878_s3] sm:$0xff] (%p2120_p5), %v2736_v31 }
 0x282   : > { %v1949_v62 = vadd.f32 %v1948_v16, %v1564_v11 }
 0x283   : > { %v1568_v3 = vpop.f32.mrb[176].mxu1  ;;  %v1953_v61 = vpop.f32.mrb[176].mxu0 }
 0x284   : > { %v1569_v36 = vadd.f32 %v1568_v3, %v3903_v27  ;;  %v1570_v52 = vpop.f32.mrb[177].mxu1  ;;  %v1955_v60 = vpop.f32.mrb[177].mxu0  ;;  %2111 = vst [vmem:[%s3621_s26 + $0x1b8] sm:$0xff] %v1949_v62 }
 0x286   : > { %v1954_v35 = vadd.f32 %v1953_v61, %v1569_v36 }
 0x287   : > { %v1573_v58 = vpop.f32.mrb[178].mxu1  ;;  %v1958_v6 = vpop.f32.mrb[178].mxu0 }
 0x288   : > { %v1574_v59 = vadd.f32 %v1573_v58, %v3904_v39  ;;  %v1575_v25 = vpop.f32.mrb[179].mxu1  ;;  %v1960_v43 = vpop.f32.mrb[179].mxu0  ;;  %2112 = vst [vmem:[%s3621_s26 + $0x1c0] sm:$0xff] %v1954_v35 }
 0x28a   : > { %v1959_v49 = vadd.f32 %v1958_v6, %v1574_v59 }
 0x28b   : > { %v1578_v12 = vpop.f32.mrb[180].mxu1  ;;  %v1963_v14 = vpop.f32.mrb[180].mxu0 }
 0x28c   : > { %v1579_v50 = vadd.f32 %v1578_v12, %v3905_v19  ;;  %v1580_v38 = vpop.f32.mrb[181].mxu1  ;;  %v1965_v40 = vpop.f32.mrb[181].mxu0  ;;  %2113 = vst [vmem:[%s3621_s26 + $0x1c8] sm:$0xff] %v1959_v49 }
 0x28e   : > { %v1964_v63 = vadd.f32 %v1963_v14, %v1579_v50 }
 0x28f   : > { %v1583_v20 = vpop.f32.mrb[182].mxu1  ;;  %v1968_v22 = vpop.f32.mrb[182].mxu0 }
 0x290   : > { %v1584_v51 = vadd.f32 %v1583_v20, %v3906_v1  ;;  %v1585_v34 = vpop.f32.mrb[183].mxu1  ;;  %v1970_v5 = vpop.f32.mrb[183].mxu0  ;;  %2114 = vst [vmem:[%s3621_s26 + $0x1d0] sm:$0xff] %v1964_v63 }
 0x292   : > { %v1969_v55 = vadd.f32 %v1968_v22, %v1584_v51 }
 0x293   : > { %v1588_v29 = vpop.f32.mrb[184].mxu1  ;;  %v1973_v0 = vpop.f32.mrb[184].mxu0 }
 0x294   : > { %v1589_v54 = vadd.f32 %v1588_v29, %v3907_v23  ;;  %v1590_v7 = vpop.f32.mrb[185].mxu1  ;;  %v1975_v56 = vpop.f32.mrb[185].mxu0  ;;  %2115 = vst [vmem:[%s3621_s26 + $0x1d8] sm:$0xff] %v1969_v55 }
 0x296   : > { %v1974_v37 = vadd.f32 %v1973_v0, %v1589_v54 }
 0x297   : > { %v1593_v33 = vpop.f32.mrb[186].mxu1  ;;  %v1978_v2 = vpop.f32.mrb[186].mxu0 }
 0x298   : > { %v1594_v13 = vadd.f32 %v1593_v33, %v3908_v8  ;;  %v1595_v24 = vpop.f32.mrb[187].mxu1  ;;  %v1980_v47 = vpop.f32.mrb[187].mxu0  ;;  %2116 = vst [vmem:[%s3621_s26 + $0x1e0] sm:$0xff] %v1974_v37 }
 0x29a   : > { %v1979_v10 = vadd.f32 %v1978_v2, %v1594_v13 }
 0x29b   : > { %v1598_v18 = vpop.f32.mrb[188].mxu1  ;;  %v1983_v21 = vpop.f32.mrb[188].mxu0 }
 0x29c   : > { %v1599_v48 = vadd.f32 %v1598_v18, %v3909_v17  ;;  %v1600_v57 = vpop.f32.mrb[189].mxu1  ;;  %v1985_v9 = vpop.f32.mrb[189].mxu0  ;;  %2117 = vst [vmem:[%s3621_s26 + $0x1e8] sm:$0xff] %v1979_v10 }
 0x29e   : > { %v1984_v28 = vadd.f32 %v1983_v21, %v1599_v48  ;;  %2124 = sbr.rel (!%p2120_p5) target bundleno = 677 (0x2a5), region = 36 }
 0x29f   : > { %v1603_v45 = vpop.f32.mrb[190].mxu1  ;;  %v1988_v46 = vpop.f32.mrb[190].mxu0 }
 0x2a0   : > { %v1604_v4 = vadd.f32 %v1603_v45, %v3910_v44  ;;  %v1605_v41 = vpop.f32.mrb[191].mxu1  ;;  %v1990_v30 = vpop.f32.mrb[191].mxu0  ;;  %2118 = vst [vmem:[%s3621_s26 + $0x1f0] sm:$0xff] %v1984_v28 }
 0x2a2   : > { %v1989_v26 = vadd.f32 %v1988_v46, %v1604_v4 }
 0x2a4   : > { %2119 = vst [vmem:[%s3621_s26 + $0x1f8] sm:$0xff] %v1989_v26 }
 0x2a5 PF: > { %v2129_v53 = vld [vmem:[%s3621_s26] sm:$0xff]  ;;  %v2130_v16 = vld [vmem:[%s3621_s26 + $0x8] sm:$0xff]  ;;  %v2131_v42 = vld [vmem:[%s3621_s26 + $0x10] sm:$0xff] }
 0x2a6   : > { %v2132_v11 = vld [vmem:[%s3621_s26 + $0x18] sm:$0xff]  ;;  %v2194_v32 = vadd.f32 %v2130_v16, %v2129_v53  ;;  %v2266_v15 = vmul.f32 %v2129_v53, %v2129_v53  ;;  %v2267_v62 = vmul.f32 %v2130_v16, %v2130_v16  ;;  %v2268_v3 = vmul.f32 %v2131_v42, %v2131_v42  ;;  %v2133_v61 = vld [vmem:[%s3621_s26 + $0x20] sm:$0xff]  ;;  %v2134_v60 = vld [vmem:[%s3621_s26 + $0x28] sm:$0xff] }
 0x2a7   : > { %v2269_v36 = vmul.f32 %v2132_v11, %v2132_v11  ;;  %v2270_v58 = vmul.f32 %v2133_v61, %v2133_v61  ;;  %v2135_v39 = vld [vmem:[%s3621_s26 + $0x30] sm:$0xff]  ;;  %v2271_v25 = vmul.f32 %v2134_v60, %v2134_v60  ;;  %v2136_v49 = vld [vmem:[%s3621_s26 + $0x38] sm:$0xff]  ;;  %v2137_v50 = vld [vmem:[%s3621_s26 + $0x40] sm:$0xff] }
 0x2a8   : > { %v2195_v27 = vadd.f32 %v2194_v32, %v2131_v42  ;;  %v2330_v52 = vadd.f32 %v2267_v62, %v2266_v15  ;;  %v2272_v14 = vmul.f32 %v2135_v39, %v2135_v39  ;;  %v2273_v40 = vmul.f32 %v2136_v49, %v2136_v49  ;;  %v2138_v20 = vld [vmem:[%s3621_s26 + $0x48] sm:$0xff]  ;;  %v2139_v34 = vld [vmem:[%s3621_s26 + $0x50] sm:$0xff]  ;;  %v2140_v0 = vld [vmem:[%s3621_s26 + $0x58] sm:$0xff] }
 0x2a9   : > { %v2274_v1 = vmul.f32 %v2137_v50, %v2137_v50  ;;  %v2275_v55 = vmul.f32 %v2138_v20, %v2138_v20  ;;  %v2276_v54 = vmul.f32 %v2139_v34, %v2139_v34  ;;  %v2141_v56 = vld [vmem:[%s3621_s26 + $0x60] sm:$0xff]  ;;  %v2277_v33 = vmul.f32 %v2140_v0, %v2140_v0  ;;  %v2142_v8 = vld [vmem:[%s3621_s26 + $0x68] sm:$0xff]  ;;  %v2143_v10 = vld [vmem:[%s3621_s26 + $0x70] sm:$0xff] }
 0x2aa   : > { %v2196_v35 = vadd.f32 %v2195_v27, %v2132_v11  ;;  %v2331_v6 = vadd.f32 %v2330_v52, %v2268_v3  ;;  %v2278_v24 = vmul.f32 %v2141_v56, %v2141_v56  ;;  %v2279_v21 = vmul.f32 %v2142_v8, %v2142_v8  ;;  %v2144_v48 = vld [vmem:[%s3621_s26 + $0x78] sm:$0xff]  ;;  %v2145_v45 = vld [vmem:[%s3621_s26 + $0x80] sm:$0xff]  ;;  %v2146_v41 = vld [vmem:[%s3621_s26 + $0x88] sm:$0xff] }
 0x2ab   : > { %v2280_v9 = vmul.f32 %v2143_v10, %v2143_v10  ;;  %v2281_v44 = vmul.f32 %v2144_v48, %v2144_v48  ;;  %v2282_v26 = vmul.f32 %v2145_v45, %v2145_v45  ;;  %v2147_v53 = vld [vmem:[%s3621_s26 + $0x90] sm:$0xff]  ;;  %v2283_v42 = vmul.f32 %v2146_v41, %v2146_v41  ;;  %v2148_v32 = vld [vmem:[%s3621_s26 + $0x98] sm:$0xff] }
 0x2ac   : > { %v2197_v59 = vadd.f32 %v2196_v35, %v2133_v61  ;;  %v2332_v43 = vadd.f32 %v2331_v6, %v2269_v36  ;;  %v2284_v62 = vmul.f32 %v2147_v53, %v2147_v53  ;;  %v2149_v61 = vld [vmem:[%s3621_s26 + $0xa0] sm:$0xff]  ;;  %v2285_v36 = vmul.f32 %v2148_v32, %v2148_v32 }
 0x2ae   : > { %v2198_v12 = vadd.f32 %v2197_v59, %v2134_v60  ;;  %v2333_v19 = vadd.f32 %v2332_v43, %v2270_v58  ;;  %v2150_v60 = vld [vmem:[%s3621_s26 + $0xa8] sm:$0xff]  ;;  %v2286_v58 = vmul.f32 %v2149_v61, %v2149_v61 }
 0x2b0   : > { %v2199_v38 = vadd.f32 %v2198_v12, %v2135_v39  ;;  %v2334_v63 = vadd.f32 %v2333_v19, %v2271_v25  ;;  %v2151_v39 = vld [vmem:[%s3621_s26 + $0xb0] sm:$0xff]  ;;  %v2287_v25 = vmul.f32 %v2150_v60, %v2150_v60 }
 0x2b2   : > { %v2200_v22 = vadd.f32 %v2199_v38, %v2136_v49  ;;  %v2335_v51 = vadd.f32 %v2334_v63, %v2272_v14  ;;  %v2152_v49 = vld [vmem:[%s3621_s26 + $0xb8] sm:$0xff]  ;;  %v2288_v14 = vmul.f32 %v2151_v39, %v2151_v39 }
 0x2b4   : > { %v2201_v5 = vadd.f32 %v2200_v22, %v2137_v50  ;;  %v2336_v29 = vadd.f32 %v2335_v51, %v2273_v40  ;;  %v2153_v50 = vld [vmem:[%s3621_s26 + $0xc0] sm:$0xff]  ;;  %v2289_v40 = vmul.f32 %v2152_v49, %v2152_v49 }
 0x2b6   : > { %v2202_v23 = vadd.f32 %v2201_v5, %v2138_v20  ;;  %v2337_v7 = vadd.f32 %v2336_v29, %v2274_v1  ;;  %v2154_v20 = vld [vmem:[%s3621_s26 + $0xc8] sm:$0xff]  ;;  %v2290_v1 = vmul.f32 %v2153_v50, %v2153_v50 }
 0x2b8   : > { %v2203_v37 = vadd.f32 %v2202_v23, %v2139_v34  ;;  %v2338_v2 = vadd.f32 %v2337_v7, %v2275_v55  ;;  %v2155_v34 = vld [vmem:[%s3621_s26 + $0xd0] sm:$0xff]  ;;  %v2291_v55 = vmul.f32 %v2154_v20, %v2154_v20 }
 0x2ba   : > { %v2204_v13 = vadd.f32 %v2203_v37, %v2140_v0  ;;  %v2339_v47 = vadd.f32 %v2338_v2, %v2276_v54  ;;  %v2156_v0 = vld [vmem:[%s3621_s26 + $0xd8] sm:$0xff]  ;;  %v2292_v54 = vmul.f32 %v2155_v34, %v2155_v34 }
 0x2bc   : > { %v2205_v18 = vadd.f32 %v2204_v13, %v2141_v56  ;;  %v2340_v17 = vadd.f32 %v2339_v47, %v2277_v33  ;;  %v2157_v56 = vld [vmem:[%s3621_s26 + $0xe0] sm:$0xff]  ;;  %v2293_v33 = vmul.f32 %v2156_v0, %v2156_v0 }
 0x2be   : > { %v2206_v57 = vadd.f32 %v2205_v18, %v2142_v8  ;;  %v2341_v28 = vadd.f32 %v2340_v17, %v2278_v24  ;;  %v2158_v8 = vld [vmem:[%s3621_s26 + $0xe8] sm:$0xff]  ;;  %v2294_v24 = vmul.f32 %v2157_v56, %v2157_v56 }
 0x2c0   : > { %v2207_v46 = vadd.f32 %v2206_v57, %v2143_v10  ;;  %v2342_v4 = vadd.f32 %v2341_v28, %v2279_v21  ;;  %v2159_v10 = vld [vmem:[%s3621_s26 + $0xf0] sm:$0xff]  ;;  %v2295_v21 = vmul.f32 %v2158_v8, %v2158_v8 }
 0x2c2   : > { %v2208_v30 = vadd.f32 %v2207_v46, %v2144_v48  ;;  %v2343_v31 = vadd.f32 %v2342_v4, %v2280_v9  ;;  %v2160_v48 = vld [vmem:[%s3621_s26 + $0xf8] sm:$0xff]  ;;  %v2296_v9 = vmul.f32 %v2159_v10, %v2159_v10 }
 0x2c4   : > { %v2209_v16 = vadd.f32 %v2208_v30, %v2145_v45  ;;  %v2344_v11 = vadd.f32 %v2343_v31, %v2281_v44  ;;  %v2161_v45 = vld [vmem:[%s3621_s26 + $0x100] sm:$0xff]  ;;  %v2297_v44 = vmul.f32 %v2160_v48, %v2160_v48 }
 0x2c6   : > { %v2210_v15 = vadd.f32 %v2209_v16, %v2146_v41  ;;  %v2345_v3 = vadd.f32 %v2344_v11, %v2282_v26  ;;  %v2162_v41 = vld [vmem:[%s3621_s26 + $0x108] sm:$0xff]  ;;  %v2298_v26 = vmul.f32 %v2161_v45, %v2161_v45 }
 0x2c8   : > { %v2211_v27 = vadd.f32 %v2210_v15, %v2147_v53  ;;  %v2346_v52 = vadd.f32 %v2345_v3, %v2283_v42  ;;  %v2163_v53 = vld [vmem:[%s3621_s26 + $0x110] sm:$0xff]  ;;  %v2299_v42 = vmul.f32 %v2162_v41, %v2162_v41 }
 0x2ca   : > { %v2212_v35 = vadd.f32 %v2211_v27, %v2148_v32  ;;  %v2347_v6 = vadd.f32 %v2346_v52, %v2284_v62  ;;  %v2164_v32 = vld [vmem:[%s3621_s26 + $0x118] sm:$0xff]  ;;  %v2300_v62 = vmul.f32 %v2163_v53, %v2163_v53 }
 0x2cc   : > { %v2213_v59 = vadd.f32 %v2212_v35, %v2149_v61  ;;  %v2348_v43 = vadd.f32 %v2347_v6, %v2285_v36  ;;  %v2165_v61 = vld [vmem:[%s3621_s26 + $0x120] sm:$0xff]  ;;  %v2301_v36 = vmul.f32 %v2164_v32, %v2164_v32 }
 0x2ce   : > { %v2214_v12 = vadd.f32 %v2213_v59, %v2150_v60  ;;  %v2349_v19 = vadd.f32 %v2348_v43, %v2286_v58  ;;  %v2166_v60 = vld [vmem:[%s3621_s26 + $0x128] sm:$0xff]  ;;  %v2302_v58 = vmul.f32 %v2165_v61, %v2165_v61 }
 0x2d0   : > { %v2215_v38 = vadd.f32 %v2214_v12, %v2151_v39  ;;  %v2350_v63 = vadd.f32 %v2349_v19, %v2287_v25  ;;  %v2167_v39 = vld [vmem:[%s3621_s26 + $0x130] sm:$0xff]  ;;  %v2303_v25 = vmul.f32 %v2166_v60, %v2166_v60 }
 0x2d2   : > { %v2216_v22 = vadd.f32 %v2215_v38, %v2152_v49  ;;  %v2351_v51 = vadd.f32 %v2350_v63, %v2288_v14  ;;  %v2168_v49 = vld [vmem:[%s3621_s26 + $0x138] sm:$0xff]  ;;  %v2304_v14 = vmul.f32 %v2167_v39, %v2167_v39 }
 0x2d4   : > { %v2217_v5 = vadd.f32 %v2216_v22, %v2153_v50  ;;  %v2352_v29 = vadd.f32 %v2351_v51, %v2289_v40  ;;  %v2169_v50 = vld [vmem:[%s3621_s26 + $0x140] sm:$0xff]  ;;  %v2305_v40 = vmul.f32 %v2168_v49, %v2168_v49 }
 0x2d6   : > { %v2218_v23 = vadd.f32 %v2217_v5, %v2154_v20  ;;  %v2353_v7 = vadd.f32 %v2352_v29, %v2290_v1  ;;  %v2170_v20 = vld [vmem:[%s3621_s26 + $0x148] sm:$0xff]  ;;  %v2306_v1 = vmul.f32 %v2169_v50, %v2169_v50 }
 0x2d8   : > { %v2219_v37 = vadd.f32 %v2218_v23, %v2155_v34  ;;  %v2354_v2 = vadd.f32 %v2353_v7, %v2291_v55  ;;  %v2171_v34 = vld [vmem:[%s3621_s26 + $0x150] sm:$0xff]  ;;  %v2307_v55 = vmul.f32 %v2170_v20, %v2170_v20 }
 0x2da   : > { %v2220_v13 = vadd.f32 %v2219_v37, %v2156_v0  ;;  %v2355_v47 = vadd.f32 %v2354_v2, %v2292_v54  ;;  %v2172_v0 = vld [vmem:[%s3621_s26 + $0x158] sm:$0xff]  ;;  %v2308_v54 = vmul.f32 %v2171_v34, %v2171_v34 }
 0x2dc   : > { %v2221_v18 = vadd.f32 %v2220_v13, %v2157_v56  ;;  %v2356_v17 = vadd.f32 %v2355_v47, %v2293_v33  ;;  %v2173_v56 = vld [vmem:[%s3621_s26 + $0x160] sm:$0xff]  ;;  %v2309_v33 = vmul.f32 %v2172_v0, %v2172_v0 }
 0x2de   : > { %v2222_v57 = vadd.f32 %v2221_v18, %v2158_v8  ;;  %v2357_v28 = vadd.f32 %v2356_v17, %v2294_v24  ;;  %v2174_v8 = vld [vmem:[%s3621_s26 + $0x168] sm:$0xff]  ;;  %v2310_v24 = vmul.f32 %v2173_v56, %v2173_v56 }
 0x2e0   : > { %v2223_v46 = vadd.f32 %v2222_v57, %v2159_v10  ;;  %v2358_v4 = vadd.f32 %v2357_v28, %v2295_v21  ;;  %v2175_v10 = vld [vmem:[%s3621_s26 + $0x170] sm:$0xff]  ;;  %v2311_v21 = vmul.f32 %v2174_v8, %v2174_v8 }
 0x2e2   : > { %v2224_v30 = vadd.f32 %v2223_v46, %v2160_v48  ;;  %v2359_v31 = vadd.f32 %v2358_v4, %v2296_v9  ;;  %v2176_v48 = vld [vmem:[%s3621_s26 + $0x178] sm:$0xff]  ;;  %v2312_v9 = vmul.f32 %v2175_v10, %v2175_v10 }
 0x2e4   : > { %v2225_v16 = vadd.f32 %v2224_v30, %v2161_v45  ;;  %v2360_v11 = vadd.f32 %v2359_v31, %v2297_v44  ;;  %v2177_v45 = vld [vmem:[%s3621_s26 + $0x180] sm:$0xff]  ;;  %v2313_v44 = vmul.f32 %v2176_v48, %v2176_v48 }
 0x2e6   : > { %v2226_v15 = vadd.f32 %v2225_v16, %v2162_v41  ;;  %v2361_v3 = vadd.f32 %v2360_v11, %v2298_v26  ;;  %v2178_v41 = vld [vmem:[%s3621_s26 + $0x188] sm:$0xff]  ;;  %v2314_v26 = vmul.f32 %v2177_v45, %v2177_v45 }
 0x2e8   : > { %v2227_v27 = vadd.f32 %v2226_v15, %v2163_v53  ;;  %v2362_v52 = vadd.f32 %v2361_v3, %v2299_v42  ;;  %v2179_v53 = vld [vmem:[%s3621_s26 + $0x190] sm:$0xff]  ;;  %v2315_v42 = vmul.f32 %v2178_v41, %v2178_v41 }
 0x2ea   : > { %v2228_v35 = vadd.f32 %v2227_v27, %v2164_v32  ;;  %v2363_v6 = vadd.f32 %v2362_v52, %v2300_v62  ;;  %v2180_v32 = vld [vmem:[%s3621_s26 + $0x198] sm:$0xff]  ;;  %v2316_v62 = vmul.f32 %v2179_v53, %v2179_v53 }
 0x2ec   : > { %v2229_v59 = vadd.f32 %v2228_v35, %v2165_v61  ;;  %v2364_v43 = vadd.f32 %v2363_v6, %v2301_v36  ;;  %v2181_v61 = vld [vmem:[%s3621_s26 + $0x1a0] sm:$0xff]  ;;  %v2317_v36 = vmul.f32 %v2180_v32, %v2180_v32 }
 0x2ee   : > { %v2230_v12 = vadd.f32 %v2229_v59, %v2166_v60  ;;  %v2365_v19 = vadd.f32 %v2364_v43, %v2302_v58  ;;  %v2182_v60 = vld [vmem:[%s3621_s26 + $0x1a8] sm:$0xff]  ;;  %v2318_v58 = vmul.f32 %v2181_v61, %v2181_v61 }
 0x2f0   : > { %v2231_v38 = vadd.f32 %v2230_v12, %v2167_v39  ;;  %v2366_v63 = vadd.f32 %v2365_v19, %v2303_v25  ;;  %v2183_v39 = vld [vmem:[%s3621_s26 + $0x1b0] sm:$0xff]  ;;  %v2319_v25 = vmul.f32 %v2182_v60, %v2182_v60 }
 0x2f2   : > { %v2232_v22 = vadd.f32 %v2231_v38, %v2168_v49  ;;  %v2367_v51 = vadd.f32 %v2366_v63, %v2304_v14  ;;  %v2184_v49 = vld [vmem:[%s3621_s26 + $0x1b8] sm:$0xff]  ;;  %v2320_v14 = vmul.f32 %v2183_v39, %v2183_v39 }
 0x2f4   : > { %v2233_v5 = vadd.f32 %v2232_v22, %v2169_v50  ;;  %v2368_v29 = vadd.f32 %v2367_v51, %v2305_v40  ;;  %v2185_v50 = vld [vmem:[%s3621_s26 + $0x1c0] sm:$0xff]  ;;  %v2321_v40 = vmul.f32 %v2184_v49, %v2184_v49 }
 0x2f6   : > { %v2234_v23 = vadd.f32 %v2233_v5, %v2170_v20  ;;  %v2369_v7 = vadd.f32 %v2368_v29, %v2306_v1  ;;  %v2186_v20 = vld [vmem:[%s3621_s26 + $0x1c8] sm:$0xff]  ;;  %v2322_v1 = vmul.f32 %v2185_v50, %v2185_v50 }
 0x2f8   : > { %v2235_v37 = vadd.f32 %v2234_v23, %v2171_v34  ;;  %v2370_v2 = vadd.f32 %v2369_v7, %v2307_v55  ;;  %v2187_v34 = vld [vmem:[%s3621_s26 + $0x1d0] sm:$0xff]  ;;  %v2323_v55 = vmul.f32 %v2186_v20, %v2186_v20 }
 0x2fa   : > { %v2236_v13 = vadd.f32 %v2235_v37, %v2172_v0  ;;  %v2371_v47 = vadd.f32 %v2370_v2, %v2308_v54  ;;  %v2188_v0 = vld [vmem:[%s3621_s26 + $0x1d8] sm:$0xff]  ;;  %v2324_v54 = vmul.f32 %v2187_v34, %v2187_v34 }
 0x2fc   : > { %v2237_v18 = vadd.f32 %v2236_v13, %v2173_v56  ;;  %v2372_v17 = vadd.f32 %v2371_v47, %v2309_v33  ;;  %v2189_v56 = vld [vmem:[%s3621_s26 + $0x1e0] sm:$0xff]  ;;  %v2325_v33 = vmul.f32 %v2188_v0, %v2188_v0 }
 0x2fe   : > { %v2238_v57 = vadd.f32 %v2237_v18, %v2174_v8  ;;  %v2373_v28 = vadd.f32 %v2372_v17, %v2310_v24  ;;  %v2190_v8 = vld [vmem:[%s3621_s26 + $0x1e8] sm:$0xff]  ;;  %v2326_v24 = vmul.f32 %v2189_v56, %v2189_v56 }
 0x300   : > { %v2239_v46 = vadd.f32 %v2238_v57, %v2175_v10  ;;  %v2374_v4 = vadd.f32 %v2373_v28, %v2311_v21  ;;  %v2191_v10 = vld [vmem:[%s3621_s26 + $0x1f0] sm:$0xff]  ;;  %v2327_v21 = vmul.f32 %v2190_v8, %v2190_v8 }
 0x302   : > { %v2240_v30 = vadd.f32 %v2239_v46, %v2176_v48  ;;  %v2375_v31 = vadd.f32 %v2374_v4, %v2312_v9  ;;  %v2192_v48 = vld [vmem:[%s3621_s26 + $0x1f8] sm:$0xff]  ;;  %v2328_v9 = vmul.f32 %v2191_v10, %v2191_v10 }
 0x303   : > { %v2329_v46 = vmul.f32 %v2192_v48, %v2192_v48 }
 0x304   : > { %v2241_v16 = vadd.f32 %v2240_v30, %v2177_v45  ;;  %v2376_v11 = vadd.f32 %v2375_v31, %v2313_v44 }
 0x306   : > { %v2242_v15 = vadd.f32 %v2241_v16, %v2178_v41  ;;  %v2377_v3 = vadd.f32 %v2376_v11, %v2314_v26 }
 0x308   : > { %v2243_v27 = vadd.f32 %v2242_v15, %v2179_v53  ;;  %v2378_v52 = vadd.f32 %v2377_v3, %v2315_v42 }
 0x30a   : > { %v2244_v35 = vadd.f32 %v2243_v27, %v2180_v32  ;;  %v2379_v6 = vadd.f32 %v2378_v52, %v2316_v62  ;;  %v2193_v62 = vld [vmem:[%s3878_s3] sm:$0x1]  ;;  %v2265_v52 = vld [vmem:[%s3878_s3 + $0x1] sm:$0x1] }
 0x30c   : > { %v2245_v59 = vadd.f32 %v2244_v35, %v2181_v61  ;;  %v2380_v43 = vadd.f32 %v2379_v6, %v2317_v36 }
 0x30e   : > { %v2246_v12 = vadd.f32 %v2245_v59, %v2182_v60  ;;  %v2381_v19 = vadd.f32 %v2380_v43, %v2318_v58 }
 0x310   : > { %v2247_v38 = vadd.f32 %v2246_v12, %v2183_v39  ;;  %v2382_v63 = vadd.f32 %v2381_v19, %v2319_v25 }
 0x312   : > { %v2248_v22 = vadd.f32 %v2247_v38, %v2184_v49  ;;  %v2383_v51 = vadd.f32 %v2382_v63, %v2320_v14 }
 0x314   : > { %v2249_v5 = vadd.f32 %v2248_v22, %v2185_v50  ;;  %v2384_v29 = vadd.f32 %v2383_v51, %v2321_v40 }
 0x316   : > { %v2250_v23 = vadd.f32 %v2249_v5, %v2186_v20  ;;  %v2385_v7 = vadd.f32 %v2384_v29, %v2322_v1 }
 0x318   : > { %v2251_v37 = vadd.f32 %v2250_v23, %v2187_v34  ;;  %v2386_v2 = vadd.f32 %v2385_v7, %v2323_v55 }
 0x31a   : > { %v2252_v13 = vadd.f32 %v2251_v37, %v2188_v0  ;;  %v2387_v47 = vadd.f32 %v2386_v2, %v2324_v54 }
 0x31c   : > { %v2253_v18 = vadd.f32 %v2252_v13, %v2189_v56  ;;  %v2388_v17 = vadd.f32 %v2387_v47, %v2325_v33 }
 0x31e   : > { %v2254_v57 = vadd.f32 %v2253_v18, %v2190_v8  ;;  %v2389_v28 = vadd.f32 %v2388_v17, %v2326_v24 }
 0x320   : > { %v2255_v45 = vadd.f32 %v2254_v57, %v2191_v10  ;;  %v2390_v44 = vadd.f32 %v2389_v28, %v2327_v21 }
 0x322   : > { %v2256_v4 = vadd.f32 %v2255_v45, %v2192_v48  ;;  %v2391_v41 = vadd.f32 %v2390_v44, %v2328_v9 }
 0x324   : > { %v2257_v30 = vrot.slane %v2256_v4, 4  ;;  %v2392_v26 = vadd.f32 %v2391_v41, %v2329_v46 }
 0x326   : > { %v2258_v31 = vadd.f32 %v2257_v30, %v2256_v4  ;;  %v2393_v53 = vrot.slane %v2392_v26, 4 }
 0x328   : > { %v2259_v16 = vrot.slane %v2258_v31, 2  ;;  %v2394_v42 = vadd.f32 %v2393_v53, %v2392_v26 }
 0x32a   : > { %v2260_v11 = vadd.f32 %v2259_v16, %v2258_v31  ;;  %v2395_v32 = vrot.slane %v2394_v42, 2 }
 0x32c   : > { %v2261_v15 = vrot.slane %v2260_v11, 1  ;;  %v2396_v3 = vadd.f32 %v2395_v32, %v2394_v42 }
 0x32e   : > { %v2262_v61 = vadd.f32 %v2261_v15, %v2260_v11  ;;  %v2397_v27 = vrot.slane %v2396_v3, 1 }
 0x330   : > { %v2263_v36 = vadd.f32 %v2262_v61, %v2193_v62  ;;  %v2398_v60 = vadd.f32 %v2397_v27, %v2396_v3 }
 0x332   : > { %2264 = vst [vmem:[%s3878_s3] sm:$0x1] %v2263_v36  ;;  %v2399_v35 = vadd.f32 %v2398_v60, %v2265_v52 }
 0x334   : > { %2400 = vst [vmem:[%s3878_s3 + $0x1] sm:$0x1] %v2399_v35 }
 0x335 PF: > { %s14_s14 = sadd.s32 1, %s2733_s14   ;;  %s3911_s12 = smov %s2729_s13 }
 0x336   : > { %p11_p6 = scmp.ge.s32.totalorder %s14_s14, 4   ;;  %s3912_s13 = smov %s3914_s15 }
 0x338   :  { %13 = sbr.rel (!%p11_p6) target bundleno = 2 (0x2), region = 81 }

</bundles_post_ra>
